<compile_context>
chip_gen: v7x
topology: tpu7x:2x2x1
jax: 0.10.0
libtpu: 0.0.40
codegen_flags: <defaults>
</compile_context>

<pallas_src>
import functools

import jax
import jax.numpy as jnp
from jax.experimental import pallas as pl
from jax.experimental.pallas import tpu as pltpu

OP_PRECISION = jax.lax.Precision.HIGHEST    # masked-FFT operator matmul
REF_PRECISION = jax.lax.Precision.HIGHEST   # pure-JAX reference convs


def gradblock_kernel(x_ref, phitb_ref, op_ref, colmask_ref, bias_ref,
                     w1_ref, w2_ref, wr1_ref, wr2_ref,
                     out_ref, pad_ref, stk_ref, *, W, n_batch):
    """Whole batch in one invocation; all images are (rows, H*W) lane-dense."""
    NC, HW = x_ref.shape                 # NC = n_batch * dim, row = n*dim + c
    P0 = (pad_ref.shape[1] - HW) // 2    # lane-aligned flat zero pad (>= W+1)
    RPT = NC                             # stk rows reserved per conv tap

    # Column-boundary masks for the dx = -1 / +1 taps.  Row boundaries are
    # handled for free by the per-row flat zero padding (each pad_ref row is a
    # complete single-sample channel image).
    mask_l = colmask_ref[0:1, :]         # 0 where w == 0
    mask_r = colmask_ref[1:2, :]         # 0 where w == W - 1

    # One-time zeroing of the two padding strips (single invocation, no grid).
    pad_ref[:, 0:P0] = jnp.zeros((NC, P0), jnp.float32)
    pad_ref[:, P0 + HW:P0 + HW + P0] = jnp.zeros((NC, P0), jnp.float32)

    def conv3x3(inp, w_ref, bias):
        # inp : (R, HW) f32 with R = n_batch*Ci rows (row n*Ci + ci).
        # w_ref: (rows_out, 9*RPT) block-diagonal batched weight (bf16/f32).
        # bias : (rows_out, 1) f32, added after the matmul.
        R = inp.shape[0]
        pad_ref[0:R, P0:P0 + HW] = inp
        for ky in range(3):
            for kx in range(3):
                t = ky * 3 + kx
                d = (ky - 1) * W + (kx - 1)          # flat offset of this tap
                tap = pad_ref[0:R, P0 + d:P0 + d + HW]
                if kx == 0:
                    tap = tap * mask_l
                elif kx == 2:
                    tap = tap * mask_r
                # Offsets t*RPT and sizes R are even -> aligned to bf16 packing.
                stk_ref[t * RPT:t * RPT + R, :] = tap.astype(stk_ref.dtype)
        acc = jnp.dot(w_ref[...], stk_ref[...],
                      preferred_element_type=jnp.float32)
        return acc + bias

    x = x_ref[...]                                            # (NC, HW)

    # conv1: dim -> 1  => (n_batch, HW), one row per sample.
    x_pixel = conv3x3(x, w1_ref, bias_ref[0:n_batch, 0:1])

    # FFT_Mask_ForBack: real(IFFT2(mask * FFT2(.))) folded into one dense
    # real operator; rows (samples) are independent.
    phitphix = jnp.dot(x_pixel, op_ref[...], precision=OP_PRECISION,
                       preferred_element_type=jnp.float32)    # (n_batch, HW)

    diff = phitphix - phitb_ref[...]                          # (n_batch, HW)

    # conv2: 1 -> dim  => (NC, HW)
    x_delta = conv3x3(diff, w2_ref, bias_ref[:, 1:2])

    # ResBlock: x_delta + convB(relu(convA(x_delta)))
    t = jnp.maximum(conv3x3(x_delta, wr1_ref, bias_ref[:, 2:3]), 0.0)
    t = conv3x3(t, wr2_ref, bias_ref[:, 3:4])

    out_ref[...] = x_delta + t + x


# ---------------- host-side preprocessing (build once, reuse) ----------------

def _build_fft_mask_operator(mask):
    """Dense real operator A with (x_flat @ A) == real(IFFT2(mask * FFT2(x)))."""
    H, W = mask.shape
    HW = H * W
    basis = jnp.eye(HW, dtype=jnp.complex64).reshape(HW, H, W)
    freq = jnp.fft.fft2(basis, axes=(1, 2)) * mask.astype(jnp.complex64)
    resp = jnp.real(jnp.fft.ifft2(freq, axes=(1, 2)))
    return resp.reshape(HW, HW).astype(jnp.float32)


def _batched_conv_w(w, n_batch, rows_per_tap, stage_dtype):
    """(Co,Ci,3,3) -> (n_batch*Co, 9*rows_per_tap) block-diagonal batched weight.

    Column index = t*rows_per_tap + n*Ci + ci (exact zeros off the sample
    diagonal and in the padding slots), matching the stk_ref row layout.
    """
    Co, Ci = w.shape[0], w.shape[1]
    wt = jnp.transpose(w, (0, 2, 3, 1)).reshape(Co, 9, Ci)        # [co, t, ci]
    eye = jnp.eye(n_batch, dtype=w.dtype)                         # [n, m]
    big = jnp.einsum('nm,otc->notmc', eye, wt)                    # [n,co,t,m,ci]
    big = big.reshape(n_batch * Co, 9, n_batch * Ci)
    pad_slots = rows_per_tap - n_batch * Ci
    if pad_slots:
        big = jnp.pad(big, ((0, 0), (0, 0), (0, pad_slots)))
    return big.reshape(n_batch * Co, 9 * rows_per_tap).astype(stage_dtype)


def _bias_column(b, n_batch, nc):
    v = jnp.tile(b.astype(jnp.float32), n_batch)                  # (n_batch*Co,)
    return jnp.pad(v, (0, nc - v.shape[0]))


def build_gradblock_constants(mask, params, n_batch, stage_dtype=jnp.bfloat16):
    """Host preprocessing; call ONCE per (mask, params) and reuse per forward."""
    w1, b1, w2, b2, wr1, br1, wr2, br2 = params
    C = w2.shape[0]
    H, W = mask.shape
    HW = H * W
    nc = n_batch * C

    op = _build_fft_mask_operator(mask)                           # (HW, HW) f32

    wcol = jnp.arange(HW, dtype=jnp.int32) % W
    colmask = jnp.stack([(wcol > 0), (wcol < W - 1)]).astype(jnp.float32)

    bias = jnp.stack([_bias_column(b1, n_batch, nc),
                      _bias_column(b2, n_batch, nc),
                      _bias_column(br1, n_batch, nc),
                      _bias_column(br2, n_batch, nc)], axis=1)    # (nc, 4) f32

    return dict(
        op=op, colmask=colmask, bias=bias,
        w1=_batched_conv_w(w1, n_batch, nc, stage_dtype),
        w2=_batched_conv_w(w2, n_batch, nc, stage_dtype),
        wr1=_batched_conv_w(wr1, n_batch, nc, stage_dtype),
        wr2=_batched_conv_w(wr2, n_batch, nc, stage_dtype),
    )


def gradblock_pallas(x, phitb, consts):
    N, C, H, W = x.shape
    HW = H * W
    NC = N * C
    P0 = ((max(W + 1, 128) + 127) // 128) * 128     # lane-aligned flat pad

    x2 = x.reshape(NC, HW).astype(jnp.float32)       # row n*C + c (sample-major)
    pb2 = phitb.reshape(N, HW).astype(jnp.float32)
    stage_dtype = consts['w1'].dtype

    vmem = lambda: pl.BlockSpec(memory_space=pltpu.MemorySpace.VMEM)
    kernel = functools.partial(gradblock_kernel, W=W, n_batch=N)

    out = pl.pallas_call(
        kernel,
        out_shape=jax.ShapeDtypeStruct((NC, HW), jnp.float32),
        in_specs=[vmem() for _ in range(9)],        # whole arrays, single-buffered
        out_specs=vmem(),
        scratch_shapes=[
            pltpu.VMEM((NC, HW + 2 * P0), jnp.float32),   # flat-padded conv input
            pltpu.VMEM((9 * NC, HW), stage_dtype),        # im2col staging
        ],
        compiler_params=pltpu.CompilerParams(
            # Explicit scoped-VMEM headroom for larger HW; <= physical VMEM on
            # v5e / v6e / v7x.  Total live usage at this size is < 0.5 MiB.
            vmem_limit_bytes=32 * 1024 * 1024),
    )(x2, pb2, consts['op'], consts['colmask'], consts['bias'],
      consts['w1'], consts['w2'], consts['wr1'], consts['wr2'])
    return out.reshape(N, C, H, W)


# ---------------- pure-JAX reference (for correctness check) ----------------

def _conv_ref(x, w, b):
    y = jax.lax.conv_general_dilated(
        x, w, window_strides=(1, 1), padding="SAME",
        dimension_numbers=("NCHW", "OIHW", "NCHW"), precision=REF_PRECISION)
    return y + b.reshape(1, -1, 1, 1)


def gradblock_ref(x, phitb, mask, params):
    w1, b1, w2, b2, wr1, br1, wr2, br2 = params
    x_pixel = _conv_ref(x, w1, b1)
    f = jnp.fft.fft2(x_pixel.astype(jnp.complex64))
    phitphix = jnp.real(jnp.fft.ifft2(f * mask.astype(jnp.complex64)))
    diff = phitphix.astype(jnp.float32) - phitb
    x_delta = _conv_ref(diff, w2, b2)
    t = _conv_ref(x_delta, wr1, br1)
    t = jnp.maximum(t, 0.0)
    t = _conv_ref(t, wr2, br2)
    return x_delta + t + x


if __name__ == "__main__":
    N, C, H, W = 2, 4, 16, 16   # dim = 4
    key = jax.random.PRNGKey(0)
    ks = jax.random.split(key, 12)

    def winit(k, co, ci):
        return jax.random.normal(k, (co, ci, 3, 3), jnp.float32) / jnp.sqrt(ci * 9)

    w1 = winit(ks[0], 1, C)
    b1 = 0.01 * jax.random.normal(ks[1], (1,), jnp.float32)
    w2 = winit(ks[2], C, 1)
    b2 = 0.01 * jax.random.normal(ks[3], (C,), jnp.float32)
    wr1 = winit(ks[4], C, C)
    br1 = 0.01 * jax.random.normal(ks[5], (C,), jnp.float32)
    wr2 = winit(ks[6], C, C)
    br2 = 0.01 * jax.random.normal(ks[7], (C,), jnp.float32)
    params = (w1, b1, w2, b2, wr1, br1, wr2, br2)

    x = jax.random.normal(ks[8], (N, C, H, W), jnp.float32)
    phitb = jax.random.normal(ks[9], (N, 1, H, W), jnp.float32)
    mask = (jax.random.uniform(ks[10], (H, W)) < 0.35).astype(jnp.float32)

    run = jax.jit(gradblock_pallas)
    consts = build_gradblock_constants(mask, params, N)   # built once, reused
    try:
        out = jax.block_until_ready(run(x, phitb, consts))
    except Exception:
        # Fallback for toolchains without packed sub-tile bf16 VMEM stores:
        # identical kernel with f32 im2col staging (conv numerics unchanged —
        # the MXU runs a single bf16 pass at DEFAULT precision either way).
        consts = build_gradblock_constants(mask, params, N,
                                           stage_dtype=jnp.float32)
        out = jax.block_until_ready(run(x, phitb, consts))

    ref = jax.block_until_ready(gradblock_ref(x, phitb, mask, params))

    assert out.shape == (N, C, H, W)
    err = float(jnp.max(jnp.abs(out - ref)))
    # Convs run as single-pass bf16 on the MXU (reference is f32/HIGHEST), so
    # expect ~1e-2 max deviation on these O(1) outputs; gate at 5e-2.
    if not err < 5e-2:
        raise AssertionError(f"mismatch vs reference, max abs err = {err}")
    print("KERNEL_OK")
</pallas_src>

<mosaic_0001>
module attributes {stable_mosaic.version = 11 : i64} {
  func.func @gradblock_kernel(%arg0: memref<8x256xf32, #tpu.memory_space<vmem>>, %arg1: memref<2x256xf32, #tpu.memory_space<vmem>>, %arg2: memref<256x256xf32, #tpu.memory_space<vmem>>, %arg3: memref<2x256xf32, #tpu.memory_space<vmem>>, %arg4: memref<8x4xf32, #tpu.memory_space<vmem>>, %arg5: memref<2x72xbf16, #tpu.memory_space<vmem>>, %arg6: memref<8x72xbf16, #tpu.memory_space<vmem>>, %arg7: memref<8x72xbf16, #tpu.memory_space<vmem>>, %arg8: memref<8x72xbf16, #tpu.memory_space<vmem>>, %arg9: memref<8x256xf32, #tpu.memory_space<vmem>>, %arg10: memref<8x512xf32, #tpu.memory_space<vmem>>, %arg11: memref<72x256xbf16, #tpu.memory_space<vmem>>) attributes {dimension_semantics = [], scalar_prefetch = 0 : i64, scratch_operands = 2 : i64, tpu.core_type = #tpu.core_type<tc>} {
    %c0 = arith.constant 0 : index
    %c0_0 = arith.constant 0 : index
    %0 = vector.load %arg3[%c0, %c0_0] : memref<2x256xf32, #tpu.memory_space<vmem>>, vector<1x256xf32>
    %c1 = arith.constant 1 : index
    %c0_1 = arith.constant 0 : index
    %1 = vector.load %arg3[%c1, %c0_1] : memref<2x256xf32, #tpu.memory_space<vmem>>, vector<1x256xf32>
    %cst = arith.constant 0.000000e+00 : f32
    %2 = vector.broadcast %cst : f32 to vector<8x128xf32>
    %c0_2 = arith.constant 0 : index
    %c0_3 = arith.constant 0 : index
    %3 = vector.load %arg10[%c0_2, %c0_3] : memref<8x512xf32, #tpu.memory_space<vmem>>, vector<8x128xf32>
    tpu.vector_store %arg10[%c0_2, %c0_3], %2 {strides = array<i32>} : memref<8x512xf32, #tpu.memory_space<vmem>>, vector<8x128xf32>,
    %cst_4 = arith.constant 0.000000e+00 : f32
    %4 = vector.broadcast %cst_4 : f32 to vector<8x128xf32>
    %c0_5 = arith.constant 0 : index
    %c384 = arith.constant 384 : index
    %5 = vector.load %arg10[%c0_5, %c384] : memref<8x512xf32, #tpu.memory_space<vmem>>, vector<8x128xf32>
    tpu.vector_store %arg10[%c0_5, %c384], %4 {strides = array<i32>} : memref<8x512xf32, #tpu.memory_space<vmem>>, vector<8x128xf32>,
    %c0_6 = arith.constant 0 : index
    %c0_7 = arith.constant 0 : index
    %6 = vector.load %arg0[%c0_6, %c0_7] : memref<8x256xf32, #tpu.memory_space<vmem>>, vector<8x256xf32>
    %c0_8 = arith.constant 0 : index
    %c0_9 = arith.constant 0 : index
    %7 = vector.load %arg4[%c0_8, %c0_9] : memref<8x4xf32, #tpu.memory_space<vmem>>, vector<2x1xf32>
    %c0_10 = arith.constant 0 : index
    %c128 = arith.constant 128 : index
    %8 = vector.load %arg10[%c0_10, %c128] : memref<8x512xf32, #tpu.memory_space<vmem>>, vector<8x256xf32>
    tpu.vector_store %arg10[%c0_10, %c128], %6 {strides = array<i32>} : memref<8x512xf32, #tpu.memory_space<vmem>>, vector<8x256xf32>,
    %c0_11 = arith.constant 0 : index
    %c111 = arith.constant 111 : index
    %9 = vector.load %arg10[%c0_11, %c111] : memref<8x512xf32, #tpu.memory_space<vmem>>, vector<8x256xf32>
    %10 = vector.broadcast %0 : vector<1x256xf32> to vector<8x256xf32>
    %11 = arith.mulf %9, %10 : vector<8x256xf32>
    %12 = arith.truncf %11 : vector<8x256xf32> to vector<8x256xbf16>
    %c0_12 = arith.constant 0 : index
    %c0_13 = arith.constant 0 : index
    %13 = vector.load %arg11[%c0_12, %c0_13] : memref<72x256xbf16, #tpu.memory_space<vmem>>, vector<8x256xbf16>
    tpu.vector_store %arg11[%c0_12, %c0_13], %12 {strides = array<i32>} : memref<72x256xbf16, #tpu.memory_space<vmem>>, vector<8x256xbf16>,
    %c0_14 = arith.constant 0 : index
    %c112 = arith.constant 112 : index
    %14 = vector.load %arg10[%c0_14, %c112] : memref<8x512xf32, #tpu.memory_space<vmem>>, vector<8x256xf32>
    %15 = arith.truncf %14 : vector<8x256xf32> to vector<8x256xbf16>
    %c8 = arith.constant 8 : index
    %c0_15 = arith.constant 0 : index
    %16 = vector.load %arg11[%c8, %c0_15] : memref<72x256xbf16, #tpu.memory_space<vmem>>, vector<8x256xbf16>
    tpu.vector_store %arg11[%c8, %c0_15], %15 {strides = array<i32>} : memref<72x256xbf16, #tpu.memory_space<vmem>>, vector<8x256xbf16>,
    %c0_16 = arith.constant 0 : index
    %c113 = arith.constant 113 : index
    %17 = vector.load %arg10[%c0_16, %c113] : memref<8x512xf32, #tpu.memory_space<vmem>>, vector<8x256xf32>
    %18 = vector.broadcast %1 : vector<1x256xf32> to vector<8x256xf32>
    %19 = arith.mulf %17, %18 : vector<8x256xf32>
    %20 = arith.truncf %19 : vector<8x256xf32> to vector<8x256xbf16>
    %c16 = arith.constant 16 : index
    %c0_17 = arith.constant 0 : index
    %21 = vector.load %arg11[%c16, %c0_17] : memref<72x256xbf16, #tpu.memory_space<vmem>>, vector<8x256xbf16>
    tpu.vector_store %arg11[%c16, %c0_17], %20 {strides = array<i32>} : memref<72x256xbf16, #tpu.memory_space<vmem>>, vector<8x256xbf16>,
    %c0_18 = arith.constant 0 : index
    %c127 = arith.constant 127 : index
    %22 = vector.load %arg10[%c0_18, %c127] : memref<8x512xf32, #tpu.memory_space<vmem>>, vector<8x256xf32>
    %23 = vector.broadcast %0 : vector<1x256xf32> to vector<8x256xf32>
    %24 = arith.mulf %22, %23 : vector<8x256xf32>
    %25 = arith.truncf %24 : vector<8x256xf32> to vector<8x256xbf16>
    %c24 = arith.constant 24 : index
    %c0_19 = arith.constant 0 : index
    %26 = vector.load %arg11[%c24, %c0_19] : memref<72x256xbf16, #tpu.memory_space<vmem>>, vector<8x256xbf16>
    tpu.vector_store %arg11[%c24, %c0_19], %25 {strides = array<i32>} : memref<72x256xbf16, #tpu.memory_space<vmem>>, vector<8x256xbf16>,
    %c0_20 = arith.constant 0 : index
    %c128_21 = arith.constant 128 : index
    %27 = vector.load %arg10[%c0_20, %c128_21] : memref<8x512xf32, #tpu.memory_space<vmem>>, vector<8x256xf32>
    %28 = arith.truncf %27 : vector<8x256xf32> to vector<8x256xbf16>
    %c32 = arith.constant 32 : index
    %c0_22 = arith.constant 0 : index
    %29 = vector.load %arg11[%c32, %c0_22] : memref<72x256xbf16, #tpu.memory_space<vmem>>, vector<8x256xbf16>
    tpu.vector_store %arg11[%c32, %c0_22], %28 {strides = array<i32>} : memref<72x256xbf16, #tpu.memory_space<vmem>>, vector<8x256xbf16>,
    %c0_23 = arith.constant 0 : index
    %c129 = arith.constant 129 : index
    %30 = vector.load %arg10[%c0_23, %c129] : memref<8x512xf32, #tpu.memory_space<vmem>>, vector<8x256xf32>
    %31 = vector.broadcast %1 : vector<1x256xf32> to vector<8x256xf32>
    %32 = arith.mulf %30, %31 : vector<8x256xf32>
    %33 = arith.truncf %32 : vector<8x256xf32> to vector<8x256xbf16>
    %c40 = arith.constant 40 : index
    %c0_24 = arith.constant 0 : index
    %34 = vector.load %arg11[%c40, %c0_24] : memref<72x256xbf16, #tpu.memory_space<vmem>>, vector<8x256xbf16>
    tpu.vector_store %arg11[%c40, %c0_24], %33 {strides = array<i32>} : memref<72x256xbf16, #tpu.memory_space<vmem>>, vector<8x256xbf16>,
    %c0_25 = arith.constant 0 : index
    %c143 = arith.constant 143 : index
    %35 = vector.load %arg10[%c0_25, %c143] : memref<8x512xf32, #tpu.memory_space<vmem>>, vector<8x256xf32>
    %36 = vector.broadcast %0 : vector<1x256xf32> to vector<8x256xf32>
    %37 = arith.mulf %35, %36 : vector<8x256xf32>
    %38 = arith.truncf %37 : vector<8x256xf32> to vector<8x256xbf16>
    %c48 = arith.constant 48 : index
    %c0_26 = arith.constant 0 : index
    %39 = vector.load %arg11[%c48, %c0_26] : memref<72x256xbf16, #tpu.memory_space<vmem>>, vector<8x256xbf16>
    tpu.vector_store %arg11[%c48, %c0_26], %38 {strides = array<i32>} : memref<72x256xbf16, #tpu.memory_space<vmem>>, vector<8x256xbf16>,
    %c0_27 = arith.constant 0 : index
    %c144 = arith.constant 144 : index
    %40 = vector.load %arg10[%c0_27, %c144] : memref<8x512xf32, #tpu.memory_space<vmem>>, vector<8x256xf32>
    %41 = arith.truncf %40 : vector<8x256xf32> to vector<8x256xbf16>
    %c56 = arith.constant 56 : index
    %c0_28 = arith.constant 0 : index
    %42 = vector.load %arg11[%c56, %c0_28] : memref<72x256xbf16, #tpu.memory_space<vmem>>, vector<8x256xbf16>
    tpu.vector_store %arg11[%c56, %c0_28], %41 {strides = array<i32>} : memref<72x256xbf16, #tpu.memory_space<vmem>>, vector<8x256xbf16>,
    %c0_29 = arith.constant 0 : index
    %c145 = arith.constant 145 : index
    %43 = vector.load %arg10[%c0_29, %c145] : memref<8x512xf32, #tpu.memory_space<vmem>>, vector<8x256xf32>
    %44 = vector.broadcast %1 : vector<1x256xf32> to vector<8x256xf32>
    %45 = arith.mulf %43, %44 : vector<8x256xf32>
    %46 = arith.truncf %45 : vector<8x256xf32> to vector<8x256xbf16>
    %c64 = arith.constant 64 : index
    %c0_30 = arith.constant 0 : index
    %47 = vector.load %arg11[%c64, %c0_30] : memref<72x256xbf16, #tpu.memory_space<vmem>>, vector<8x256xbf16>
    tpu.vector_store %arg11[%c64, %c0_30], %46 {strides = array<i32>} : memref<72x256xbf16, #tpu.memory_space<vmem>>, vector<8x256xbf16>,
    %c0_31 = arith.constant 0 : index
    %c0_32 = arith.constant 0 : index
    %48 = vector.load %arg5[%c0_31, %c0_32] : memref<2x72xbf16, #tpu.memory_space<vmem>>, vector<2x72xbf16>
    %c0_33 = arith.constant 0 : index
    %c0_34 = arith.constant 0 : index
    %49 = vector.load %arg11[%c0_33, %c0_34] : memref<72x256xbf16, #tpu.memory_space<vmem>>, vector<72x256xbf16>
    %cst_35 = arith.constant dense<0.000000e+00> : vector<2x256xf32>
    %50 = tpu.matmul %48, %49, %cst_35 {dimension_numbers = #tpu.dot_dimension_numbers<[1], [0], [0], [1], [0, 0, 1, 1], [], []>} : vector<2x72xbf16>, vector<72x256xbf16>, vector<2x256xf32> -> vector<2x256xf32>
    %51 = vector.broadcast %7 : vector<2x1xf32> to vector<2x256xf32>
    %52 = arith.addf %50, %51 : vector<2x256xf32>
    %c0_36 = arith.constant 0 : index
    %c0_37 = arith.constant 0 : index
    %53 = vector.load %arg2[%c0_36, %c0_37] : memref<256x256xf32, #tpu.memory_space<vmem>>, vector<256x256xf32>
    %cst_38 = arith.constant dense<0.000000e+00> : vector<2x256xf32>
    %54 = tpu.matmul %52, %53, %cst_38 {dimension_numbers = #tpu.dot_dimension_numbers<[1], [0], [0], [1], [0, 0, 1, 1], [], []>, precision = #tpu.contract_precision<fp32>} : vector<2x256xf32>, vector<256x256xf32>, vector<2x256xf32> -> vector<2x256xf32>
    %c0_39 = arith.constant 0 : index
    %c0_40 = arith.constant 0 : index
    %55 = vector.load %arg1[%c0_39, %c0_40] : memref<2x256xf32, #tpu.memory_space<vmem>>, vector<2x256xf32>
    %56 = arith.subf %54, %55 : vector<2x256xf32>
    %c0_41 = arith.constant 0 : index
    %c1_42 = arith.constant 1 : index
    %57 = vector.load %arg4[%c0_41, %c1_42] : memref<8x4xf32, #tpu.memory_space<vmem>>, vector<8x1xf32>
    %c0_43 = arith.constant 0 : index
    %c128_44 = arith.constant 128 : index
    %58 = vector.load %arg10[%c0_43, %c128_44] : memref<8x512xf32, #tpu.memory_space<vmem>>, vector<2x256xf32>
    tpu.vector_store %arg10[%c0_43, %c128_44], %56 {strides = array<i32>} : memref<8x512xf32, #tpu.memory_space<vmem>>, vector<2x256xf32>,
    %c0_45 = arith.constant 0 : index
    %c111_46 = arith.constant 111 : index
    %59 = vector.load %arg10[%c0_45, %c111_46] : memref<8x512xf32, #tpu.memory_space<vmem>>, vector<2x256xf32>
    %60 = vector.broadcast %0 : vector<1x256xf32> to vector<2x256xf32>
    %61 = arith.mulf %59, %60 : vector<2x256xf32>
    %62 = arith.truncf %61 : vector<2x256xf32> to vector<2x256xbf16>
    %c0_47 = arith.constant 0 : index
    %c0_48 = arith.constant 0 : index
    %63 = vector.load %arg11[%c0_47, %c0_48] : memref<72x256xbf16, #tpu.memory_space<vmem>>, vector<2x256xbf16>
    tpu.vector_store %arg11[%c0_47, %c0_48], %62 {strides = array<i32>} : memref<72x256xbf16, #tpu.memory_space<vmem>>, vector<2x256xbf16>,
    %c0_49 = arith.constant 0 : index
    %c112_50 = arith.constant 112 : index
    %64 = vector.load %arg10[%c0_49, %c112_50] : memref<8x512xf32, #tpu.memory_space<vmem>>, vector<2x256xf32>
    %65 = arith.truncf %64 : vector<2x256xf32> to vector<2x256xbf16>
    %c8_51 = arith.constant 8 : index
    %c0_52 = arith.constant 0 : index
    %66 = vector.load %arg11[%c8_51, %c0_52] : memref<72x256xbf16, #tpu.memory_space<vmem>>, vector<2x256xbf16>
    tpu.vector_store %arg11[%c8_51, %c0_52], %65 {strides = array<i32>} : memref<72x256xbf16, #tpu.memory_space<vmem>>, vector<2x256xbf16>,
    %c0_53 = arith.constant 0 : index
    %c113_54 = arith.constant 113 : index
    %67 = vector.load %arg10[%c0_53, %c113_54] : memref<8x512xf32, #tpu.memory_space<vmem>>, vector<2x256xf32>
    %68 = vector.broadcast %1 : vector<1x256xf32> to vector<2x256xf32>
    %69 = arith.mulf %67, %68 : vector<2x256xf32>
    %70 = arith.truncf %69 : vector<2x256xf32> to vector<2x256xbf16>
    %c16_55 = arith.constant 16 : index
    %c0_56 = arith.constant 0 : index
    %71 = vector.load %arg11[%c16_55, %c0_56] : memref<72x256xbf16, #tpu.memory_space<vmem>>, vector<2x256xbf16>
    tpu.vector_store %arg11[%c16_55, %c0_56], %70 {strides = array<i32>} : memref<72x256xbf16, #tpu.memory_space<vmem>>, vector<2x256xbf16>,
    %c0_57 = arith.constant 0 : index
    %c127_58 = arith.constant 127 : index
    %72 = vector.load %arg10[%c0_57, %c127_58] : memref<8x512xf32, #tpu.memory_space<vmem>>, vector<2x256xf32>
    %73 = vector.broadcast %0 : vector<1x256xf32> to vector<2x256xf32>
    %74 = arith.mulf %72, %73 : vector<2x256xf32>
    %75 = arith.truncf %74 : vector<2x256xf32> to vector<2x256xbf16>
    %c24_59 = arith.constant 24 : index
    %c0_60 = arith.constant 0 : index
    %76 = vector.load %arg11[%c24_59, %c0_60] : memref<72x256xbf16, #tpu.memory_space<vmem>>, vector<2x256xbf16>
    tpu.vector_store %arg11[%c24_59, %c0_60], %75 {strides = array<i32>} : memref<72x256xbf16, #tpu.memory_space<vmem>>, vector<2x256xbf16>,
    %c0_61 = arith.constant 0 : index
    %c128_62 = arith.constant 128 : index
    %77 = vector.load %arg10[%c0_61, %c128_62] : memref<8x512xf32, #tpu.memory_space<vmem>>, vector<2x256xf32>
    %78 = arith.truncf %77 : vector<2x256xf32> to vector<2x256xbf16>
    %c32_63 = arith.constant 32 : index
    %c0_64 = arith.constant 0 : index
    %79 = vector.load %arg11[%c32_63, %c0_64] : memref<72x256xbf16, #tpu.memory_space<vmem>>, vector<2x256xbf16>
    tpu.vector_store %arg11[%c32_63, %c0_64], %78 {strides = array<i32>} : memref<72x256xbf16, #tpu.memory_space<vmem>>, vector<2x256xbf16>,
    %c0_65 = arith.constant 0 : index
    %c129_66 = arith.constant 129 : index
    %80 = vector.load %arg10[%c0_65, %c129_66] : memref<8x512xf32, #tpu.memory_space<vmem>>, vector<2x256xf32>
    %81 = vector.broadcast %1 : vector<1x256xf32> to vector<2x256xf32>
    %82 = arith.mulf %80, %81 : vector<2x256xf32>
    %83 = arith.truncf %82 : vector<2x256xf32> to vector<2x256xbf16>
    %c40_67 = arith.constant 40 : index
    %c0_68 = arith.constant 0 : index
    %84 = vector.load %arg11[%c40_67, %c0_68] : memref<72x256xbf16, #tpu.memory_space<vmem>>, vector<2x256xbf16>
    tpu.vector_store %arg11[%c40_67, %c0_68], %83 {strides = array<i32>} : memref<72x256xbf16, #tpu.memory_space<vmem>>, vector<2x256xbf16>,
    %c0_69 = arith.constant 0 : index
    %c143_70 = arith.constant 143 : index
    %85 = vector.load %arg10[%c0_69, %c143_70] : memref<8x512xf32, #tpu.memory_space<vmem>>, vector<2x256xf32>
    %86 = vector.broadcast %0 : vector<1x256xf32> to vector<2x256xf32>
    %87 = arith.mulf %85, %86 : vector<2x256xf32>
    %88 = arith.truncf %87 : vector<2x256xf32> to vector<2x256xbf16>
    %c48_71 = arith.constant 48 : index
    %c0_72 = arith.constant 0 : index
    %89 = vector.load %arg11[%c48_71, %c0_72] : memref<72x256xbf16, #tpu.memory_space<vmem>>, vector<2x256xbf16>
    tpu.vector_store %arg11[%c48_71, %c0_72], %88 {strides = array<i32>} : memref<72x256xbf16, #tpu.memory_space<vmem>>, vector<2x256xbf16>,
    %c0_73 = arith.constant 0 : index
    %c144_74 = arith.constant 144 : index
    %90 = vector.load %arg10[%c0_73, %c144_74] : memref<8x512xf32, #tpu.memory_space<vmem>>, vector<2x256xf32>
    %91 = arith.truncf %90 : vector<2x256xf32> to vector<2x256xbf16>
    %c56_75 = arith.constant 56 : index
    %c0_76 = arith.constant 0 : index
    %92 = vector.load %arg11[%c56_75, %c0_76] : memref<72x256xbf16, #tpu.memory_space<vmem>>, vector<2x256xbf16>
    tpu.vector_store %arg11[%c56_75, %c0_76], %91 {strides = array<i32>} : memref<72x256xbf16, #tpu.memory_space<vmem>>, vector<2x256xbf16>,
    %c0_77 = arith.constant 0 : index
    %c145_78 = arith.constant 145 : index
    %93 = vector.load %arg10[%c0_77, %c145_78] : memref<8x512xf32, #tpu.memory_space<vmem>>, vector<2x256xf32>
    %94 = vector.broadcast %1 : vector<1x256xf32> to vector<2x256xf32>
    %95 = arith.mulf %93, %94 : vector<2x256xf32>
    %96 = arith.truncf %95 : vector<2x256xf32> to vector<2x256xbf16>
    %c64_79 = arith.constant 64 : index
    %c0_80 = arith.constant 0 : index
    %97 = vector.load %arg11[%c64_79, %c0_80] : memref<72x256xbf16, #tpu.memory_space<vmem>>, vector<2x256xbf16>
    tpu.vector_store %arg11[%c64_79, %c0_80], %96 {strides = array<i32>} : memref<72x256xbf16, #tpu.memory_space<vmem>>, vector<2x256xbf16>,
    %c0_81 = arith.constant 0 : index
    %c0_82 = arith.constant 0 : index
    %98 = vector.load %arg6[%c0_81, %c0_82] : memref<8x72xbf16, #tpu.memory_space<vmem>>, vector<8x72xbf16>
    %c0_83 = arith.constant 0 : index
    %c0_84 = arith.constant 0 : index
    %99 = vector.load %arg11[%c0_83, %c0_84] : memref<72x256xbf16, #tpu.memory_space<vmem>>, vector<72x256xbf16>
    %cst_85 = arith.constant dense<0.000000e+00> : vector<8x256xf32>
    %100 = tpu.matmul %98, %99, %cst_85 {dimension_numbers = #tpu.dot_dimension_numbers<[1], [0], [0], [1], [0, 0, 1, 1], [], []>} : vector<8x72xbf16>, vector<72x256xbf16>, vector<8x256xf32> -> vector<8x256xf32>
    %101 = vector.broadcast %57 : vector<8x1xf32> to vector<8x256xf32>
    %102 = arith.addf %100, %101 : vector<8x256xf32>
    %c0_86 = arith.constant 0 : index
    %c2 = arith.constant 2 : index
    %103 = vector.load %arg4[%c0_86, %c2] : memref<8x4xf32, #tpu.memory_space<vmem>>, vector<8x1xf32>
    %c0_87 = arith.constant 0 : index
    %c128_88 = arith.constant 128 : index
    %104 = vector.load %arg10[%c0_87, %c128_88] : memref<8x512xf32, #tpu.memory_space<vmem>>, vector<8x256xf32>
    tpu.vector_store %arg10[%c0_87, %c128_88], %102 {strides = array<i32>} : memref<8x512xf32, #tpu.memory_space<vmem>>, vector<8x256xf32>,
    %c0_89 = arith.constant 0 : index
    %c111_90 = arith.constant 111 : index
    %105 = vector.load %arg10[%c0_89, %c111_90] : memref<8x512xf32, #tpu.memory_space<vmem>>, vector<8x256xf32>
    %106 = vector.broadcast %0 : vector<1x256xf32> to vector<8x256xf32>
    %107 = arith.mulf %105, %106 : vector<8x256xf32>
    %108 = arith.truncf %107 : vector<8x256xf32> to vector<8x256xbf16>
    %c0_91 = arith.constant 0 : index
    %c0_92 = arith.constant 0 : index
    %109 = vector.load %arg11[%c0_91, %c0_92] : memref<72x256xbf16, #tpu.memory_space<vmem>>, vector<8x256xbf16>
    tpu.vector_store %arg11[%c0_91, %c0_92], %108 {strides = array<i32>} : memref<72x256xbf16, #tpu.memory_space<vmem>>, vector<8x256xbf16>,
    %c0_93 = arith.constant 0 : index
    %c112_94 = arith.constant 112 : index
    %110 = vector.load %arg10[%c0_93, %c112_94] : memref<8x512xf32, #tpu.memory_space<vmem>>, vector<8x256xf32>
    %111 = arith.truncf %110 : vector<8x256xf32> to vector<8x256xbf16>
    %c8_95 = arith.constant 8 : index
    %c0_96 = arith.constant 0 : index
    %112 = vector.load %arg11[%c8_95, %c0_96] : memref<72x256xbf16, #tpu.memory_space<vmem>>, vector<8x256xbf16>
    tpu.vector_store %arg11[%c8_95, %c0_96], %111 {strides = array<i32>} : memref<72x256xbf16, #tpu.memory_space<vmem>>, vector<8x256xbf16>,
    %c0_97 = arith.constant 0 : index
    %c113_98 = arith.constant 113 : index
    %113 = vector.load %arg10[%c0_97, %c113_98] : memref<8x512xf32, #tpu.memory_space<vmem>>, vector<8x256xf32>
    %114 = vector.broadcast %1 : vector<1x256xf32> to vector<8x256xf32>
    %115 = arith.mulf %113, %114 : vector<8x256xf32>
    %116 = arith.truncf %115 : vector<8x256xf32> to vector<8x256xbf16>
    %c16_99 = arith.constant 16 : index
    %c0_100 = arith.constant 0 : index
    %117 = vector.load %arg11[%c16_99, %c0_100] : memref<72x256xbf16, #tpu.memory_space<vmem>>, vector<8x256xbf16>
    tpu.vector_store %arg11[%c16_99, %c0_100], %116 {strides = array<i32>} : memref<72x256xbf16, #tpu.memory_space<vmem>>, vector<8x256xbf16>,
    %c0_101 = arith.constant 0 : index
    %c127_102 = arith.constant 127 : index
    %118 = vector.load %arg10[%c0_101, %c127_102] : memref<8x512xf32, #tpu.memory_space<vmem>>, vector<8x256xf32>
    %119 = vector.broadcast %0 : vector<1x256xf32> to vector<8x256xf32>
    %120 = arith.mulf %118, %119 : vector<8x256xf32>
    %121 = arith.truncf %120 : vector<8x256xf32> to vector<8x256xbf16>
    %c24_103 = arith.constant 24 : index
    %c0_104 = arith.constant 0 : index
    %122 = vector.load %arg11[%c24_103, %c0_104] : memref<72x256xbf16, #tpu.memory_space<vmem>>, vector<8x256xbf16>
    tpu.vector_store %arg11[%c24_103, %c0_104], %121 {strides = array<i32>} : memref<72x256xbf16, #tpu.memory_space<vmem>>, vector<8x256xbf16>,
    %c0_105 = arith.constant 0 : index
    %c128_106 = arith.constant 128 : index
    %123 = vector.load %arg10[%c0_105, %c128_106] : memref<8x512xf32, #tpu.memory_space<vmem>>, vector<8x256xf32>
    %124 = arith.truncf %123 : vector<8x256xf32> to vector<8x256xbf16>
    %c32_107 = arith.constant 32 : index
    %c0_108 = arith.constant 0 : index
    %125 = vector.load %arg11[%c32_107, %c0_108] : memref<72x256xbf16, #tpu.memory_space<vmem>>, vector<8x256xbf16>
    tpu.vector_store %arg11[%c32_107, %c0_108], %124 {strides = array<i32>} : memref<72x256xbf16, #tpu.memory_space<vmem>>, vector<8x256xbf16>,
    %c0_109 = arith.constant 0 : index
    %c129_110 = arith.constant 129 : index
    %126 = vector.load %arg10[%c0_109, %c129_110] : memref<8x512xf32, #tpu.memory_space<vmem>>, vector<8x256xf32>
    %127 = vector.broadcast %1 : vector<1x256xf32> to vector<8x256xf32>
    %128 = arith.mulf %126, %127 : vector<8x256xf32>
    %129 = arith.truncf %128 : vector<8x256xf32> to vector<8x256xbf16>
    %c40_111 = arith.constant 40 : index
    %c0_112 = arith.constant 0 : index
    %130 = vector.load %arg11[%c40_111, %c0_112] : memref<72x256xbf16, #tpu.memory_space<vmem>>, vector<8x256xbf16>
    tpu.vector_store %arg11[%c40_111, %c0_112], %129 {strides = array<i32>} : memref<72x256xbf16, #tpu.memory_space<vmem>>, vector<8x256xbf16>,
    %c0_113 = arith.constant 0 : index
    %c143_114 = arith.constant 143 : index
    %131 = vector.load %arg10[%c0_113, %c143_114] : memref<8x512xf32, #tpu.memory_space<vmem>>, vector<8x256xf32>
    %132 = vector.broadcast %0 : vector<1x256xf32> to vector<8x256xf32>
    %133 = arith.mulf %131, %132 : vector<8x256xf32>
    %134 = arith.truncf %133 : vector<8x256xf32> to vector<8x256xbf16>
    %c48_115 = arith.constant 48 : index
    %c0_116 = arith.constant 0 : index
    %135 = vector.load %arg11[%c48_115, %c0_116] : memref<72x256xbf16, #tpu.memory_space<vmem>>, vector<8x256xbf16>
    tpu.vector_store %arg11[%c48_115, %c0_116], %134 {strides = array<i32>} : memref<72x256xbf16, #tpu.memory_space<vmem>>, vector<8x256xbf16>,
    %c0_117 = arith.constant 0 : index
    %c144_118 = arith.constant 144 : index
    %136 = vector.load %arg10[%c0_117, %c144_118] : memref<8x512xf32, #tpu.memory_space<vmem>>, vector<8x256xf32>
    %137 = arith.truncf %136 : vector<8x256xf32> to vector<8x256xbf16>
    %c56_119 = arith.constant 56 : index
    %c0_120 = arith.constant 0 : index
    %138 = vector.load %arg11[%c56_119, %c0_120] : memref<72x256xbf16, #tpu.memory_space<vmem>>, vector<8x256xbf16>
    tpu.vector_store %arg11[%c56_119, %c0_120], %137 {strides = array<i32>} : memref<72x256xbf16, #tpu.memory_space<vmem>>, vector<8x256xbf16>,
    %c0_121 = arith.constant 0 : index
    %c145_122 = arith.constant 145 : index
    %139 = vector.load %arg10[%c0_121, %c145_122] : memref<8x512xf32, #tpu.memory_space<vmem>>, vector<8x256xf32>
    %140 = vector.broadcast %1 : vector<1x256xf32> to vector<8x256xf32>
    %141 = arith.mulf %139, %140 : vector<8x256xf32>
    %142 = arith.truncf %141 : vector<8x256xf32> to vector<8x256xbf16>
    %c64_123 = arith.constant 64 : index
    %c0_124 = arith.constant 0 : index
    %143 = vector.load %arg11[%c64_123, %c0_124] : memref<72x256xbf16, #tpu.memory_space<vmem>>, vector<8x256xbf16>
    tpu.vector_store %arg11[%c64_123, %c0_124], %142 {strides = array<i32>} : memref<72x256xbf16, #tpu.memory_space<vmem>>, vector<8x256xbf16>,
    %c0_125 = arith.constant 0 : index
    %c0_126 = arith.constant 0 : index
    %144 = vector.load %arg7[%c0_125, %c0_126] : memref<8x72xbf16, #tpu.memory_space<vmem>>, vector<8x72xbf16>
    %c0_127 = arith.constant 0 : index
    %c0_128 = arith.constant 0 : index
    %145 = vector.load %arg11[%c0_127, %c0_128] : memref<72x256xbf16, #tpu.memory_space<vmem>>, vector<72x256xbf16>
    %cst_129 = arith.constant dense<0.000000e+00> : vector<8x256xf32>
    %146 = tpu.matmul %144, %145, %cst_129 {dimension_numbers = #tpu.dot_dimension_numbers<[1], [0], [0], [1], [0, 0, 1, 1], [], []>} : vector<8x72xbf16>, vector<72x256xbf16>, vector<8x256xf32> -> vector<8x256xf32>
    %147 = vector.broadcast %103 : vector<8x1xf32> to vector<8x256xf32>
    %148 = arith.addf %146, %147 : vector<8x256xf32>
    %cst_130 = arith.constant 0.000000e+00 : f32
    %149 = vector.broadcast %cst_130 : f32 to vector<8x256xf32>
    %150 = arith.maximumf %148, %149 : vector<8x256xf32>
    %c0_131 = arith.constant 0 : index
    %c3 = arith.constant 3 : index
    %151 = vector.load %arg4[%c0_131, %c3] : memref<8x4xf32, #tpu.memory_space<vmem>>, vector<8x1xf32>
    %c0_132 = arith.constant 0 : index
    %c128_133 = arith.constant 128 : index
    %152 = vector.load %arg10[%c0_132, %c128_133] : memref<8x512xf32, #tpu.memory_space<vmem>>, vector<8x256xf32>
    tpu.vector_store %arg10[%c0_132, %c128_133], %150 {strides = array<i32>} : memref<8x512xf32, #tpu.memory_space<vmem>>, vector<8x256xf32>,
    %c0_134 = arith.constant 0 : index
    %c111_135 = arith.constant 111 : index
    %153 = vector.load %arg10[%c0_134, %c111_135] : memref<8x512xf32, #tpu.memory_space<vmem>>, vector<8x256xf32>
    %154 = vector.broadcast %0 : vector<1x256xf32> to vector<8x256xf32>
    %155 = arith.mulf %153, %154 : vector<8x256xf32>
    %156 = arith.truncf %155 : vector<8x256xf32> to vector<8x256xbf16>
    %c0_136 = arith.constant 0 : index
    %c0_137 = arith.constant 0 : index
    %157 = vector.load %arg11[%c0_136, %c0_137] : memref<72x256xbf16, #tpu.memory_space<vmem>>, vector<8x256xbf16>
    tpu.vector_store %arg11[%c0_136, %c0_137], %156 {strides = array<i32>} : memref<72x256xbf16, #tpu.memory_space<vmem>>, vector<8x256xbf16>,
    %c0_138 = arith.constant 0 : index
    %c112_139 = arith.constant 112 : index
    %158 = vector.load %arg10[%c0_138, %c112_139] : memref<8x512xf32, #tpu.memory_space<vmem>>, vector<8x256xf32>
    %159 = arith.truncf %158 : vector<8x256xf32> to vector<8x256xbf16>
    %c8_140 = arith.constant 8 : index
    %c0_141 = arith.constant 0 : index
    %160 = vector.load %arg11[%c8_140, %c0_141] : memref<72x256xbf16, #tpu.memory_space<vmem>>, vector<8x256xbf16>
    tpu.vector_store %arg11[%c8_140, %c0_141], %159 {strides = array<i32>} : memref<72x256xbf16, #tpu.memory_space<vmem>>, vector<8x256xbf16>,
    %c0_142 = arith.constant 0 : index
    %c113_143 = arith.constant 113 : index
    %161 = vector.load %arg10[%c0_142, %c113_143] : memref<8x512xf32, #tpu.memory_space<vmem>>, vector<8x256xf32>
    %162 = vector.broadcast %1 : vector<1x256xf32> to vector<8x256xf32>
    %163 = arith.mulf %161, %162 : vector<8x256xf32>
    %164 = arith.truncf %163 : vector<8x256xf32> to vector<8x256xbf16>
    %c16_144 = arith.constant 16 : index
    %c0_145 = arith.constant 0 : index
    %165 = vector.load %arg11[%c16_144, %c0_145] : memref<72x256xbf16, #tpu.memory_space<vmem>>, vector<8x256xbf16>
    tpu.vector_store %arg11[%c16_144, %c0_145], %164 {strides = array<i32>} : memref<72x256xbf16, #tpu.memory_space<vmem>>, vector<8x256xbf16>,
    %c0_146 = arith.constant 0 : index
    %c127_147 = arith.constant 127 : index
    %166 = vector.load %arg10[%c0_146, %c127_147] : memref<8x512xf32, #tpu.memory_space<vmem>>, vector<8x256xf32>
    %167 = vector.broadcast %0 : vector<1x256xf32> to vector<8x256xf32>
    %168 = arith.mulf %166, %167 : vector<8x256xf32>
    %169 = arith.truncf %168 : vector<8x256xf32> to vector<8x256xbf16>
    %c24_148 = arith.constant 24 : index
    %c0_149 = arith.constant 0 : index
    %170 = vector.load %arg11[%c24_148, %c0_149] : memref<72x256xbf16, #tpu.memory_space<vmem>>, vector<8x256xbf16>
    tpu.vector_store %arg11[%c24_148, %c0_149], %169 {strides = array<i32>} : memref<72x256xbf16, #tpu.memory_space<vmem>>, vector<8x256xbf16>,
    %c0_150 = arith.constant 0 : index
    %c128_151 = arith.constant 128 : index
    %171 = vector.load %arg10[%c0_150, %c128_151] : memref<8x512xf32, #tpu.memory_space<vmem>>, vector<8x256xf32>
    %172 = arith.truncf %171 : vector<8x256xf32> to vector<8x256xbf16>
    %c32_152 = arith.constant 32 : index
    %c0_153 = arith.constant 0 : index
    %173 = vector.load %arg11[%c32_152, %c0_153] : memref<72x256xbf16, #tpu.memory_space<vmem>>, vector<8x256xbf16>
    tpu.vector_store %arg11[%c32_152, %c0_153], %172 {strides = array<i32>} : memref<72x256xbf16, #tpu.memory_space<vmem>>, vector<8x256xbf16>,
    %c0_154 = arith.constant 0 : index
    %c129_155 = arith.constant 129 : index
    %174 = vector.load %arg10[%c0_154, %c129_155] : memref<8x512xf32, #tpu.memory_space<vmem>>, vector<8x256xf32>
    %175 = vector.broadcast %1 : vector<1x256xf32> to vector<8x256xf32>
    %176 = arith.mulf %174, %175 : vector<8x256xf32>
    %177 = arith.truncf %176 : vector<8x256xf32> to vector<8x256xbf16>
    %c40_156 = arith.constant 40 : index
    %c0_157 = arith.constant 0 : index
    %178 = vector.load %arg11[%c40_156, %c0_157] : memref<72x256xbf16, #tpu.memory_space<vmem>>, vector<8x256xbf16>
    tpu.vector_store %arg11[%c40_156, %c0_157], %177 {strides = array<i32>} : memref<72x256xbf16, #tpu.memory_space<vmem>>, vector<8x256xbf16>,
    %c0_158 = arith.constant 0 : index
    %c143_159 = arith.constant 143 : index
    %179 = vector.load %arg10[%c0_158, %c143_159] : memref<8x512xf32, #tpu.memory_space<vmem>>, vector<8x256xf32>
    %180 = vector.broadcast %0 : vector<1x256xf32> to vector<8x256xf32>
    %181 = arith.mulf %179, %180 : vector<8x256xf32>
    %182 = arith.truncf %181 : vector<8x256xf32> to vector<8x256xbf16>
    %c48_160 = arith.constant 48 : index
    %c0_161 = arith.constant 0 : index
    %183 = vector.load %arg11[%c48_160, %c0_161] : memref<72x256xbf16, #tpu.memory_space<vmem>>, vector<8x256xbf16>
    tpu.vector_store %arg11[%c48_160, %c0_161], %182 {strides = array<i32>} : memref<72x256xbf16, #tpu.memory_space<vmem>>, vector<8x256xbf16>,
    %c0_162 = arith.constant 0 : index
    %c144_163 = arith.constant 144 : index
    %184 = vector.load %arg10[%c0_162, %c144_163] : memref<8x512xf32, #tpu.memory_space<vmem>>, vector<8x256xf32>
    %185 = arith.truncf %184 : vector<8x256xf32> to vector<8x256xbf16>
    %c56_164 = arith.constant 56 : index
    %c0_165 = arith.constant 0 : index
    %186 = vector.load %arg11[%c56_164, %c0_165] : memref<72x256xbf16, #tpu.memory_space<vmem>>, vector<8x256xbf16>
    tpu.vector_store %arg11[%c56_164, %c0_165], %185 {strides = array<i32>} : memref<72x256xbf16, #tpu.memory_space<vmem>>, vector<8x256xbf16>,
    %c0_166 = arith.constant 0 : index
    %c145_167 = arith.constant 145 : index
    %187 = vector.load %arg10[%c0_166, %c145_167] : memref<8x512xf32, #tpu.memory_space<vmem>>, vector<8x256xf32>
    %188 = vector.broadcast %1 : vector<1x256xf32> to vector<8x256xf32>
    %189 = arith.mulf %187, %188 : vector<8x256xf32>
    %190 = arith.truncf %189 : vector<8x256xf32> to vector<8x256xbf16>
    %c64_168 = arith.constant 64 : index
    %c0_169 = arith.constant 0 : index
    %191 = vector.load %arg11[%c64_168, %c0_169] : memref<72x256xbf16, #tpu.memory_space<vmem>>, vector<8x256xbf16>
    tpu.vector_store %arg11[%c64_168, %c0_169], %190 {strides = array<i32>} : memref<72x256xbf16, #tpu.memory_space<vmem>>, vector<8x256xbf16>,
    %c0_170 = arith.constant 0 : index
    %c0_171 = arith.constant 0 : index
    %192 = vector.load %arg8[%c0_170, %c0_171] : memref<8x72xbf16, #tpu.memory_space<vmem>>, vector<8x72xbf16>
    %c0_172 = arith.constant 0 : index
    %c0_173 = arith.constant 0 : index
    %193 = vector.load %arg11[%c0_172, %c0_173] : memref<72x256xbf16, #tpu.memory_space<vmem>>, vector<72x256xbf16>
    %cst_174 = arith.constant dense<0.000000e+00> : vector<8x256xf32>
    %194 = tpu.matmul %192, %193, %cst_174 {dimension_numbers = #tpu.dot_dimension_numbers<[1], [0], [0], [1], [0, 0, 1, 1], [], []>} : vector<8x72xbf16>, vector<72x256xbf16>, vector<8x256xf32> -> vector<8x256xf32>
    %195 = vector.broadcast %151 : vector<8x1xf32> to vector<8x256xf32>
    %196 = arith.addf %194, %195 : vector<8x256xf32>
    %197 = arith.addf %102, %196 : vector<8x256xf32>
    %198 = arith.addf %197, %6 : vector<8x256xf32>
    %c0_175 = arith.constant 0 : index
    %c0_176 = arith.constant 0 : index
    %199 = vector.load %arg9[%c0_175, %c0_176] : memref<8x256xf32, #tpu.memory_space<vmem>>, vector<8x256xf32>
    tpu.vector_store %arg9[%c0_175, %c0_176], %198 {strides = array<i32>} : memref<8x256xf32, #tpu.memory_space<vmem>>, vector<8x256xf32>,
    return
  }
}

module attributes {stable_mosaic.version = 11 : i64} {
  func.func @gradblock_kernel(%arg0: memref<8x256xf32, #tpu.memory_space<vmem>>, %arg1: memref<2x256xf32, #tpu.memory_space<vmem>>, %arg2: memref<256x256xf32, #tpu.memory_space<vmem>>, %arg3: memref<2x256xf32, #tpu.memory_space<vmem>>, %arg4: memref<8x4xf32, #tpu.memory_space<vmem>>, %arg5: memref<2x72xf32, #tpu.memory_space<vmem>>, %arg6: memref<8x72xf32, #tpu.memory_space<vmem>>, %arg7: memref<8x72xf32, #tpu.memory_space<vmem>>, %arg8: memref<8x72xf32, #tpu.memory_space<vmem>>, %arg9: memref<8x256xf32, #tpu.memory_space<vmem>>, %arg10: memref<8x512xf32, #tpu.memory_space<vmem>>, %arg11: memref<72x256xf32, #tpu.memory_space<vmem>>) attributes {dimension_semantics = [], scalar_prefetch = 0 : i64, scratch_operands = 2 : i64, tpu.core_type = #tpu.core_type<tc>} {
    %c0 = arith.constant 0 : index
    %c0_0 = arith.constant 0 : index
    %0 = vector.load %arg3[%c0, %c0_0] : memref<2x256xf32, #tpu.memory_space<vmem>>, vector<1x256xf32>
    %c1 = arith.constant 1 : index
    %c0_1 = arith.constant 0 : index
    %1 = vector.load %arg3[%c1, %c0_1] : memref<2x256xf32, #tpu.memory_space<vmem>>, vector<1x256xf32>
    %cst = arith.constant 0.000000e+00 : f32
    %2 = vector.broadcast %cst : f32 to vector<8x128xf32>
    %c0_2 = arith.constant 0 : index
    %c0_3 = arith.constant 0 : index
    %3 = vector.load %arg10[%c0_2, %c0_3] : memref<8x512xf32, #tpu.memory_space<vmem>>, vector<8x128xf32>
    tpu.vector_store %arg10[%c0_2, %c0_3], %2 {strides = array<i32>} : memref<8x512xf32, #tpu.memory_space<vmem>>, vector<8x128xf32>,
    %cst_4 = arith.constant 0.000000e+00 : f32
    %4 = vector.broadcast %cst_4 : f32 to vector<8x128xf32>
    %c0_5 = arith.constant 0 : index
    %c384 = arith.constant 384 : index
    %5 = vector.load %arg10[%c0_5, %c384] : memref<8x512xf32, #tpu.memory_space<vmem>>, vector<8x128xf32>
    tpu.vector_store %arg10[%c0_5, %c384], %4 {strides = array<i32>} : memref<8x512xf32, #tpu.memory_space<vmem>>, vector<8x128xf32>,
    %c0_6 = arith.constant 0 : index
    %c0_7 = arith.constant 0 : index
    %6 = vector.load %arg0[%c0_6, %c0_7] : memref<8x256xf32, #tpu.memory_space<vmem>>, vector<8x256xf32>
    %c0_8 = arith.constant 0 : index
    %c0_9 = arith.constant 0 : index
    %7 = vector.load %arg4[%c0_8, %c0_9] : memref<8x4xf32, #tpu.memory_space<vmem>>, vector<2x1xf32>
    %c0_10 = arith.constant 0 : index
    %c128 = arith.constant 128 : index
    %8 = vector.load %arg10[%c0_10, %c128] : memref<8x512xf32, #tpu.memory_space<vmem>>, vector<8x256xf32>
    tpu.vector_store %arg10[%c0_10, %c128], %6 {strides = array<i32>} : memref<8x512xf32, #tpu.memory_space<vmem>>, vector<8x256xf32>,
    %c0_11 = arith.constant 0 : index
    %c111 = arith.constant 111 : index
    %9 = vector.load %arg10[%c0_11, %c111] : memref<8x512xf32, #tpu.memory_space<vmem>>, vector<8x256xf32>
    %10 = vector.broadcast %0 : vector<1x256xf32> to vector<8x256xf32>
    %11 = arith.mulf %9, %10 : vector<8x256xf32>
    %c0_12 = arith.constant 0 : index
    %c0_13 = arith.constant 0 : index
    %12 = vector.load %arg11[%c0_12, %c0_13] : memref<72x256xf32, #tpu.memory_space<vmem>>, vector<8x256xf32>
    tpu.vector_store %arg11[%c0_12, %c0_13], %11 {strides = array<i32>} : memref<72x256xf32, #tpu.memory_space<vmem>>, vector<8x256xf32>,
    %c0_14 = arith.constant 0 : index
    %c112 = arith.constant 112 : index
    %13 = vector.load %arg10[%c0_14, %c112] : memref<8x512xf32, #tpu.memory_space<vmem>>, vector<8x256xf32>
    %c8 = arith.constant 8 : index
    %c0_15 = arith.constant 0 : index
    %14 = vector.load %arg11[%c8, %c0_15] : memref<72x256xf32, #tpu.memory_space<vmem>>, vector<8x256xf32>
    tpu.vector_store %arg11[%c8, %c0_15], %13 {strides = array<i32>} : memref<72x256xf32, #tpu.memory_space<vmem>>, vector<8x256xf32>,
    %c0_16 = arith.constant 0 : index
    %c113 = arith.constant 113 : index
    %15 = vector.load %arg10[%c0_16, %c113] : memref<8x512xf32, #tpu.memory_space<vmem>>, vector<8x256xf32>
    %16 = vector.broadcast %1 : vector<1x256xf32> to vector<8x256xf32>
    %17 = arith.mulf %15, %16 : vector<8x256xf32>
    %c16 = arith.constant 16 : index
    %c0_17 = arith.constant 0 : index
    %18 = vector.load %arg11[%c16, %c0_17] : memref<72x256xf32, #tpu.memory_space<vmem>>, vector<8x256xf32>
    tpu.vector_store %arg11[%c16, %c0_17], %17 {strides = array<i32>} : memref<72x256xf32, #tpu.memory_space<vmem>>, vector<8x256xf32>,
    %c0_18 = arith.constant 0 : index
    %c127 = arith.constant 127 : index
    %19 = vector.load %arg10[%c0_18, %c127] : memref<8x512xf32, #tpu.memory_space<vmem>>, vector<8x256xf32>
    %20 = vector.broadcast %0 : vector<1x256xf32> to vector<8x256xf32>
    %21 = arith.mulf %19, %20 : vector<8x256xf32>
    %c24 = arith.constant 24 : index
    %c0_19 = arith.constant 0 : index
    %22 = vector.load %arg11[%c24, %c0_19] : memref<72x256xf32, #tpu.memory_space<vmem>>, vector<8x256xf32>
    tpu.vector_store %arg11[%c24, %c0_19], %21 {strides = array<i32>} : memref<72x256xf32, #tpu.memory_space<vmem>>, vector<8x256xf32>,
    %c0_20 = arith.constant 0 : index
    %c128_21 = arith.constant 128 : index
    %23 = vector.load %arg10[%c0_20, %c128_21] : memref<8x512xf32, #tpu.memory_space<vmem>>, vector<8x256xf32>
    %c32 = arith.constant 32 : index
    %c0_22 = arith.constant 0 : index
    %24 = vector.load %arg11[%c32, %c0_22] : memref<72x256xf32, #tpu.memory_space<vmem>>, vector<8x256xf32>
    tpu.vector_store %arg11[%c32, %c0_22], %23 {strides = array<i32>} : memref<72x256xf32, #tpu.memory_space<vmem>>, vector<8x256xf32>,
    %c0_23 = arith.constant 0 : index
    %c129 = arith.constant 129 : index
    %25 = vector.load %arg10[%c0_23, %c129] : memref<8x512xf32, #tpu.memory_space<vmem>>, vector<8x256xf32>
    %26 = vector.broadcast %1 : vector<1x256xf32> to vector<8x256xf32>
    %27 = arith.mulf %25, %26 : vector<8x256xf32>
    %c40 = arith.constant 40 : index
    %c0_24 = arith.constant 0 : index
    %28 = vector.load %arg11[%c40, %c0_24] : memref<72x256xf32, #tpu.memory_space<vmem>>, vector<8x256xf32>
    tpu.vector_store %arg11[%c40, %c0_24], %27 {strides = array<i32>} : memref<72x256xf32, #tpu.memory_space<vmem>>, vector<8x256xf32>,
    %c0_25 = arith.constant 0 : index
    %c143 = arith.constant 143 : index
    %29 = vector.load %arg10[%c0_25, %c143] : memref<8x512xf32, #tpu.memory_space<vmem>>, vector<8x256xf32>
    %30 = vector.broadcast %0 : vector<1x256xf32> to vector<8x256xf32>
    %31 = arith.mulf %29, %30 : vector<8x256xf32>
    %c48 = arith.constant 48 : index
    %c0_26 = arith.constant 0 : index
    %32 = vector.load %arg11[%c48, %c0_26] : memref<72x256xf32, #tpu.memory_space<vmem>>, vector<8x256xf32>
    tpu.vector_store %arg11[%c48, %c0_26], %31 {strides = array<i32>} : memref<72x256xf32, #tpu.memory_space<vmem>>, vector<8x256xf32>,
    %c0_27 = arith.constant 0 : index
    %c144 = arith.constant 144 : index
    %33 = vector.load %arg10[%c0_27, %c144] : memref<8x512xf32, #tpu.memory_space<vmem>>, vector<8x256xf32>
    %c56 = arith.constant 56 : index
    %c0_28 = arith.constant 0 : index
    %34 = vector.load %arg11[%c56, %c0_28] : memref<72x256xf32, #tpu.memory_space<vmem>>, vector<8x256xf32>
    tpu.vector_store %arg11[%c56, %c0_28], %33 {strides = array<i32>} : memref<72x256xf32, #tpu.memory_space<vmem>>, vector<8x256xf32>,
    %c0_29 = arith.constant 0 : index
    %c145 = arith.constant 145 : index
    %35 = vector.load %arg10[%c0_29, %c145] : memref<8x512xf32, #tpu.memory_space<vmem>>, vector<8x256xf32>
    %36 = vector.broadcast %1 : vector<1x256xf32> to vector<8x256xf32>
    %37 = arith.mulf %35, %36 : vector<8x256xf32>
    %c64 = arith.constant 64 : index
    %c0_30 = arith.constant 0 : index
    %38 = vector.load %arg11[%c64, %c0_30] : memref<72x256xf32, #tpu.memory_space<vmem>>, vector<8x256xf32>
    tpu.vector_store %arg11[%c64, %c0_30], %37 {strides = array<i32>} : memref<72x256xf32, #tpu.memory_space<vmem>>, vector<8x256xf32>,
    %c0_31 = arith.constant 0 : index
    %c0_32 = arith.constant 0 : index
    %39 = vector.load %arg5[%c0_31, %c0_32] : memref<2x72xf32, #tpu.memory_space<vmem>>, vector<2x72xf32>
    %c0_33 = arith.constant 0 : index
    %c0_34 = arith.constant 0 : index
    %40 = vector.load %arg11[%c0_33, %c0_34] : memref<72x256xf32, #tpu.memory_space<vmem>>, vector<72x256xf32>
    %cst_35 = arith.constant dense<0.000000e+00> : vector<2x256xf32>
    %41 = tpu.matmul %39, %40, %cst_35 {dimension_numbers = #tpu.dot_dimension_numbers<[1], [0], [0], [1], [0, 0, 1, 1], [], []>} : vector<2x72xf32>, vector<72x256xf32>, vector<2x256xf32> -> vector<2x256xf32>
    %42 = vector.broadcast %7 : vector<2x1xf32> to vector<2x256xf32>
    %43 = arith.addf %41, %42 : vector<2x256xf32>
    %c0_36 = arith.constant 0 : index
    %c0_37 = arith.constant 0 : index
    %44 = vector.load %arg2[%c0_36, %c0_37] : memref<256x256xf32, #tpu.memory_space<vmem>>, vector<256x256xf32>
    %cst_38 = arith.constant dense<0.000000e+00> : vector<2x256xf32>
    %45 = tpu.matmul %43, %44, %cst_38 {dimension_numbers = #tpu.dot_dimension_numbers<[1], [0], [0], [1], [0, 0, 1, 1], [], []>, precision = #tpu.contract_precision<fp32>} : vector<2x256xf32>, vector<256x256xf32>, vector<2x256xf32> -> vector<2x256xf32>
    %c0_39 = arith.constant 0 : index
    %c0_40 = arith.constant 0 : index
    %46 = vector.load %arg1[%c0_39, %c0_40] : memref<2x256xf32, #tpu.memory_space<vmem>>, vector<2x256xf32>
    %47 = arith.subf %45, %46 : vector<2x256xf32>
    %c0_41 = arith.constant 0 : index
    %c1_42 = arith.constant 1 : index
    %48 = vector.load %arg4[%c0_41, %c1_42] : memref<8x4xf32, #tpu.memory_space<vmem>>, vector<8x1xf32>
    %c0_43 = arith.constant 0 : index
    %c128_44 = arith.constant 128 : index
    %49 = vector.load %arg10[%c0_43, %c128_44] : memref<8x512xf32, #tpu.memory_space<vmem>>, vector<2x256xf32>
    tpu.vector_store %arg10[%c0_43, %c128_44], %47 {strides = array<i32>} : memref<8x512xf32, #tpu.memory_space<vmem>>, vector<2x256xf32>,
    %c0_45 = arith.constant 0 : index
    %c111_46 = arith.constant 111 : index
    %50 = vector.load %arg10[%c0_45, %c111_46] : memref<8x512xf32, #tpu.memory_space<vmem>>, vector<2x256xf32>
    %51 = vector.broadcast %0 : vector<1x256xf32> to vector<2x256xf32>
    %52 = arith.mulf %50, %51 : vector<2x256xf32>
    %c0_47 = arith.constant 0 : index
    %c0_48 = arith.constant 0 : index
    %53 = vector.load %arg11[%c0_47, %c0_48] : memref<72x256xf32, #tpu.memory_space<vmem>>, vector<2x256xf32>
    tpu.vector_store %arg11[%c0_47, %c0_48], %52 {strides = array<i32>} : memref<72x256xf32, #tpu.memory_space<vmem>>, vector<2x256xf32>,
    %c0_49 = arith.constant 0 : index
    %c112_50 = arith.constant 112 : index
    %54 = vector.load %arg10[%c0_49, %c112_50] : memref<8x512xf32, #tpu.memory_space<vmem>>, vector<2x256xf32>
    %c8_51 = arith.constant 8 : index
    %c0_52 = arith.constant 0 : index
    %55 = vector.load %arg11[%c8_51, %c0_52] : memref<72x256xf32, #tpu.memory_space<vmem>>, vector<2x256xf32>
    tpu.vector_store %arg11[%c8_51, %c0_52], %54 {strides = array<i32>} : memref<72x256xf32, #tpu.memory_space<vmem>>, vector<2x256xf32>,
    %c0_53 = arith.constant 0 : index
    %c113_54 = arith.constant 113 : index
    %56 = vector.load %arg10[%c0_53, %c113_54] : memref<8x512xf32, #tpu.memory_space<vmem>>, vector<2x256xf32>
    %57 = vector.broadcast %1 : vector<1x256xf32> to vector<2x256xf32>
    %58 = arith.mulf %56, %57 : vector<2x256xf32>
    %c16_55 = arith.constant 16 : index
    %c0_56 = arith.constant 0 : index
    %59 = vector.load %arg11[%c16_55, %c0_56] : memref<72x256xf32, #tpu.memory_space<vmem>>, vector<2x256xf32>
    tpu.vector_store %arg11[%c16_55, %c0_56], %58 {strides = array<i32>} : memref<72x256xf32, #tpu.memory_space<vmem>>, vector<2x256xf32>,
    %c0_57 = arith.constant 0 : index
    %c127_58 = arith.constant 127 : index
    %60 = vector.load %arg10[%c0_57, %c127_58] : memref<8x512xf32, #tpu.memory_space<vmem>>, vector<2x256xf32>
    %61 = vector.broadcast %0 : vector<1x256xf32> to vector<2x256xf32>
    %62 = arith.mulf %60, %61 : vector<2x256xf32>
    %c24_59 = arith.constant 24 : index
    %c0_60 = arith.constant 0 : index
    %63 = vector.load %arg11[%c24_59, %c0_60] : memref<72x256xf32, #tpu.memory_space<vmem>>, vector<2x256xf32>
    tpu.vector_store %arg11[%c24_59, %c0_60], %62 {strides = array<i32>} : memref<72x256xf32, #tpu.memory_space<vmem>>, vector<2x256xf32>,
    %c0_61 = arith.constant 0 : index
    %c128_62 = arith.constant 128 : index
    %64 = vector.load %arg10[%c0_61, %c128_62] : memref<8x512xf32, #tpu.memory_space<vmem>>, vector<2x256xf32>
    %c32_63 = arith.constant 32 : index
    %c0_64 = arith.constant 0 : index
    %65 = vector.load %arg11[%c32_63, %c0_64] : memref<72x256xf32, #tpu.memory_space<vmem>>, vector<2x256xf32>
    tpu.vector_store %arg11[%c32_63, %c0_64], %64 {strides = array<i32>} : memref<72x256xf32, #tpu.memory_space<vmem>>, vector<2x256xf32>,
    %c0_65 = arith.constant 0 : index
    %c129_66 = arith.constant 129 : index
    %66 = vector.load %arg10[%c0_65, %c129_66] : memref<8x512xf32, #tpu.memory_space<vmem>>, vector<2x256xf32>
    %67 = vector.broadcast %1 : vector<1x256xf32> to vector<2x256xf32>
    %68 = arith.mulf %66, %67 : vector<2x256xf32>
    %c40_67 = arith.constant 40 : index
    %c0_68 = arith.constant 0 : index
    %69 = vector.load %arg11[%c40_67, %c0_68] : memref<72x256xf32, #tpu.memory_space<vmem>>, vector<2x256xf32>
    tpu.vector_store %arg11[%c40_67, %c0_68], %68 {strides = array<i32>} : memref<72x256xf32, #tpu.memory_space<vmem>>, vector<2x256xf32>,
    %c0_69 = arith.constant 0 : index
    %c143_70 = arith.constant 143 : index
    %70 = vector.load %arg10[%c0_69, %c143_70] : memref<8x512xf32, #tpu.memory_space<vmem>>, vector<2x256xf32>
    %71 = vector.broadcast %0 : vector<1x256xf32> to vector<2x256xf32>
    %72 = arith.mulf %70, %71 : vector<2x256xf32>
    %c48_71 = arith.constant 48 : index
    %c0_72 = arith.constant 0 : index
    %73 = vector.load %arg11[%c48_71, %c0_72] : memref<72x256xf32, #tpu.memory_space<vmem>>, vector<2x256xf32>
    tpu.vector_store %arg11[%c48_71, %c0_72], %72 {strides = array<i32>} : memref<72x256xf32, #tpu.memory_space<vmem>>, vector<2x256xf32>,
    %c0_73 = arith.constant 0 : index
    %c144_74 = arith.constant 144 : index
    %74 = vector.load %arg10[%c0_73, %c144_74] : memref<8x512xf32, #tpu.memory_space<vmem>>, vector<2x256xf32>
    %c56_75 = arith.constant 56 : index
    %c0_76 = arith.constant 0 : index
    %75 = vector.load %arg11[%c56_75, %c0_76] : memref<72x256xf32, #tpu.memory_space<vmem>>, vector<2x256xf32>
    tpu.vector_store %arg11[%c56_75, %c0_76], %74 {strides = array<i32>} : memref<72x256xf32, #tpu.memory_space<vmem>>, vector<2x256xf32>,
    %c0_77 = arith.constant 0 : index
    %c145_78 = arith.constant 145 : index
    %76 = vector.load %arg10[%c0_77, %c145_78] : memref<8x512xf32, #tpu.memory_space<vmem>>, vector<2x256xf32>
    %77 = vector.broadcast %1 : vector<1x256xf32> to vector<2x256xf32>
    %78 = arith.mulf %76, %77 : vector<2x256xf32>
    %c64_79 = arith.constant 64 : index
    %c0_80 = arith.constant 0 : index
    %79 = vector.load %arg11[%c64_79, %c0_80] : memref<72x256xf32, #tpu.memory_space<vmem>>, vector<2x256xf32>
    tpu.vector_store %arg11[%c64_79, %c0_80], %78 {strides = array<i32>} : memref<72x256xf32, #tpu.memory_space<vmem>>, vector<2x256xf32>,
    %c0_81 = arith.constant 0 : index
    %c0_82 = arith.constant 0 : index
    %80 = vector.load %arg6[%c0_81, %c0_82] : memref<8x72xf32, #tpu.memory_space<vmem>>, vector<8x72xf32>
    %c0_83 = arith.constant 0 : index
    %c0_84 = arith.constant 0 : index
    %81 = vector.load %arg11[%c0_83, %c0_84] : memref<72x256xf32, #tpu.memory_space<vmem>>, vector<72x256xf32>
    %cst_85 = arith.constant dense<0.000000e+00> : vector<8x256xf32>
    %82 = tpu.matmul %80, %81, %cst_85 {dimension_numbers = #tpu.dot_dimension_numbers<[1], [0], [0], [1], [0, 0, 1, 1], [], []>} : vector<8x72xf32>, vector<72x256xf32>, vector<8x256xf32> -> vector<8x256xf32>
    %83 = vector.broadcast %48 : vector<8x1xf32> to vector<8x256xf32>
    %84 = arith.addf %82, %83 : vector<8x256xf32>
    %c0_86 = arith.constant 0 : index
    %c2 = arith.constant 2 : index
    %85 = vector.load %arg4[%c0_86, %c2] : memref<8x4xf32, #tpu.memory_space<vmem>>, vector<8x1xf32>
    %c0_87 = arith.constant 0 : index
    %c128_88 = arith.constant 128 : index
    %86 = vector.load %arg10[%c0_87, %c128_88] : memref<8x512xf32, #tpu.memory_space<vmem>>, vector<8x256xf32>
    tpu.vector_store %arg10[%c0_87, %c128_88], %84 {strides = array<i32>} : memref<8x512xf32, #tpu.memory_space<vmem>>, vector<8x256xf32>,
    %c0_89 = arith.constant 0 : index
    %c111_90 = arith.constant 111 : index
    %87 = vector.load %arg10[%c0_89, %c111_90] : memref<8x512xf32, #tpu.memory_space<vmem>>, vector<8x256xf32>
    %88 = vector.broadcast %0 : vector<1x256xf32> to vector<8x256xf32>
    %89 = arith.mulf %87, %88 : vector<8x256xf32>
    %c0_91 = arith.constant 0 : index
    %c0_92 = arith.constant 0 : index
    %90 = vector.load %arg11[%c0_91, %c0_92] : memref<72x256xf32, #tpu.memory_space<vmem>>, vector<8x256xf32>
    tpu.vector_store %arg11[%c0_91, %c0_92], %89 {strides = array<i32>} : memref<72x256xf32, #tpu.memory_space<vmem>>, vector<8x256xf32>,
    %c0_93 = arith.constant 0 : index
    %c112_94 = arith.constant 112 : index
    %91 = vector.load %arg10[%c0_93, %c112_94] : memref<8x512xf32, #tpu.memory_space<vmem>>, vector<8x256xf32>
    %c8_95 = arith.constant 8 : index
    %c0_96 = arith.constant 0 : index
    %92 = vector.load %arg11[%c8_95, %c0_96] : memref<72x256xf32, #tpu.memory_space<vmem>>, vector<8x256xf32>
    tpu.vector_store %arg11[%c8_95, %c0_96], %91 {strides = array<i32>} : memref<72x256xf32, #tpu.memory_space<vmem>>, vector<8x256xf32>,
    %c0_97 = arith.constant 0 : index
    %c113_98 = arith.constant 113 : index
    %93 = vector.load %arg10[%c0_97, %c113_98] : memref<8x512xf32, #tpu.memory_space<vmem>>, vector<8x256xf32>
    %94 = vector.broadcast %1 : vector<1x256xf32> to vector<8x256xf32>
    %95 = arith.mulf %93, %94 : vector<8x256xf32>
    %c16_99 = arith.constant 16 : index
    %c0_100 = arith.constant 0 : index
    %96 = vector.load %arg11[%c16_99, %c0_100] : memref<72x256xf32, #tpu.memory_space<vmem>>, vector<8x256xf32>
    tpu.vector_store %arg11[%c16_99, %c0_100], %95 {strides = array<i32>} : memref<72x256xf32, #tpu.memory_space<vmem>>, vector<8x256xf32>,
    %c0_101 = arith.constant 0 : index
    %c127_102 = arith.constant 127 : index
    %97 = vector.load %arg10[%c0_101, %c127_102] : memref<8x512xf32, #tpu.memory_space<vmem>>, vector<8x256xf32>
    %98 = vector.broadcast %0 : vector<1x256xf32> to vector<8x256xf32>
    %99 = arith.mulf %97, %98 : vector<8x256xf32>
    %c24_103 = arith.constant 24 : index
    %c0_104 = arith.constant 0 : index
    %100 = vector.load %arg11[%c24_103, %c0_104] : memref<72x256xf32, #tpu.memory_space<vmem>>, vector<8x256xf32>
    tpu.vector_store %arg11[%c24_103, %c0_104], %99 {strides = array<i32>} : memref<72x256xf32, #tpu.memory_space<vmem>>, vector<8x256xf32>,
    %c0_105 = arith.constant 0 : index
    %c128_106 = arith.constant 128 : index
    %101 = vector.load %arg10[%c0_105, %c128_106] : memref<8x512xf32, #tpu.memory_space<vmem>>, vector<8x256xf32>
    %c32_107 = arith.constant 32 : index
    %c0_108 = arith.constant 0 : index
    %102 = vector.load %arg11[%c32_107, %c0_108] : memref<72x256xf32, #tpu.memory_space<vmem>>, vector<8x256xf32>
    tpu.vector_store %arg11[%c32_107, %c0_108], %101 {strides = array<i32>} : memref<72x256xf32, #tpu.memory_space<vmem>>, vector<8x256xf32>,
    %c0_109 = arith.constant 0 : index
    %c129_110 = arith.constant 129 : index
    %103 = vector.load %arg10[%c0_109, %c129_110] : memref<8x512xf32, #tpu.memory_space<vmem>>, vector<8x256xf32>
    %104 = vector.broadcast %1 : vector<1x256xf32> to vector<8x256xf32>
    %105 = arith.mulf %103, %104 : vector<8x256xf32>
    %c40_111 = arith.constant 40 : index
    %c0_112 = arith.constant 0 : index
    %106 = vector.load %arg11[%c40_111, %c0_112] : memref<72x256xf32, #tpu.memory_space<vmem>>, vector<8x256xf32>
    tpu.vector_store %arg11[%c40_111, %c0_112], %105 {strides = array<i32>} : memref<72x256xf32, #tpu.memory_space<vmem>>, vector<8x256xf32>,
    %c0_113 = arith.constant 0 : index
    %c143_114 = arith.constant 143 : index
    %107 = vector.load %arg10[%c0_113, %c143_114] : memref<8x512xf32, #tpu.memory_space<vmem>>, vector<8x256xf32>
    %108 = vector.broadcast %0 : vector<1x256xf32> to vector<8x256xf32>
    %109 = arith.mulf %107, %108 : vector<8x256xf32>
    %c48_115 = arith.constant 48 : index
    %c0_116 = arith.constant 0 : index
    %110 = vector.load %arg11[%c48_115, %c0_116] : memref<72x256xf32, #tpu.memory_space<vmem>>, vector<8x256xf32>
    tpu.vector_store %arg11[%c48_115, %c0_116], %109 {strides = array<i32>} : memref<72x256xf32, #tpu.memory_space<vmem>>, vector<8x256xf32>,
    %c0_117 = arith.constant 0 : index
    %c144_118 = arith.constant 144 : index
    %111 = vector.load %arg10[%c0_117, %c144_118] : memref<8x512xf32, #tpu.memory_space<vmem>>, vector<8x256xf32>
    %c56_119 = arith.constant 56 : index
    %c0_120 = arith.constant 0 : index
    %112 = vector.load %arg11[%c56_119, %c0_120] : memref<72x256xf32, #tpu.memory_space<vmem>>, vector<8x256xf32>
    tpu.vector_store %arg11[%c56_119, %c0_120], %111 {strides = array<i32>} : memref<72x256xf32, #tpu.memory_space<vmem>>, vector<8x256xf32>,
    %c0_121 = arith.constant 0 : index
    %c145_122 = arith.constant 145 : index
    %113 = vector.load %arg10[%c0_121, %c145_122] : memref<8x512xf32, #tpu.memory_space<vmem>>, vector<8x256xf32>
    %114 = vector.broadcast %1 : vector<1x256xf32> to vector<8x256xf32>
    %115 = arith.mulf %113, %114 : vector<8x256xf32>
    %c64_123 = arith.constant 64 : index
    %c0_124 = arith.constant 0 : index
    %116 = vector.load %arg11[%c64_123, %c0_124] : memref<72x256xf32, #tpu.memory_space<vmem>>, vector<8x256xf32>
    tpu.vector_store %arg11[%c64_123, %c0_124], %115 {strides = array<i32>} : memref<72x256xf32, #tpu.memory_space<vmem>>, vector<8x256xf32>,
    %c0_125 = arith.constant 0 : index
    %c0_126 = arith.constant 0 : index
    %117 = vector.load %arg7[%c0_125, %c0_126] : memref<8x72xf32, #tpu.memory_space<vmem>>, vector<8x72xf32>
    %c0_127 = arith.constant 0 : index
    %c0_128 = arith.constant 0 : index
    %118 = vector.load %arg11[%c0_127, %c0_128] : memref<72x256xf32, #tpu.memory_space<vmem>>, vector<72x256xf32>
    %cst_129 = arith.constant dense<0.000000e+00> : vector<8x256xf32>
    %119 = tpu.matmul %117, %118, %cst_129 {dimension_numbers = #tpu.dot_dimension_numbers<[1], [0], [0], [1], [0, 0, 1, 1], [], []>} : vector<8x72xf32>, vector<72x256xf32>, vector<8x256xf32> -> vector<8x256xf32>
    %120 = vector.broadcast %85 : vector<8x1xf32> to vector<8x256xf32>
    %121 = arith.addf %119, %120 : vector<8x256xf32>
    %cst_130 = arith.constant 0.000000e+00 : f32
    %122 = vector.broadcast %cst_130 : f32 to vector<8x256xf32>
    %123 = arith.maximumf %121, %122 : vector<8x256xf32>
    %c0_131 = arith.constant 0 : index
    %c3 = arith.constant 3 : index
    %124 = vector.load %arg4[%c0_131, %c3] : memref<8x4xf32, #tpu.memory_space<vmem>>, vector<8x1xf32>
    %c0_132 = arith.constant 0 : index
    %c128_133 = arith.constant 128 : index
    %125 = vector.load %arg10[%c0_132, %c128_133] : memref<8x512xf32, #tpu.memory_space<vmem>>, vector<8x256xf32>
    tpu.vector_store %arg10[%c0_132, %c128_133], %123 {strides = array<i32>} : memref<8x512xf32, #tpu.memory_space<vmem>>, vector<8x256xf32>,
    %c0_134 = arith.constant 0 : index
    %c111_135 = arith.constant 111 : index
    %126 = vector.load %arg10[%c0_134, %c111_135] : memref<8x512xf32, #tpu.memory_space<vmem>>, vector<8x256xf32>
    %127 = vector.broadcast %0 : vector<1x256xf32> to vector<8x256xf32>
    %128 = arith.mulf %126, %127 : vector<8x256xf32>
    %c0_136 = arith.constant 0 : index
    %c0_137 = arith.constant 0 : index
    %129 = vector.load %arg11[%c0_136, %c0_137] : memref<72x256xf32, #tpu.memory_space<vmem>>, vector<8x256xf32>
    tpu.vector_store %arg11[%c0_136, %c0_137], %128 {strides = array<i32>} : memref<72x256xf32, #tpu.memory_space<vmem>>, vector<8x256xf32>,
    %c0_138 = arith.constant 0 : index
    %c112_139 = arith.constant 112 : index
    %130 = vector.load %arg10[%c0_138, %c112_139] : memref<8x512xf32, #tpu.memory_space<vmem>>, vector<8x256xf32>
    %c8_140 = arith.constant 8 : index
    %c0_141 = arith.constant 0 : index
    %131 = vector.load %arg11[%c8_140, %c0_141] : memref<72x256xf32, #tpu.memory_space<vmem>>, vector<8x256xf32>
    tpu.vector_store %arg11[%c8_140, %c0_141], %130 {strides = array<i32>} : memref<72x256xf32, #tpu.memory_space<vmem>>, vector<8x256xf32>,
    %c0_142 = arith.constant 0 : index
    %c113_143 = arith.constant 113 : index
    %132 = vector.load %arg10[%c0_142, %c113_143] : memref<8x512xf32, #tpu.memory_space<vmem>>, vector<8x256xf32>
    %133 = vector.broadcast %1 : vector<1x256xf32> to vector<8x256xf32>
    %134 = arith.mulf %132, %133 : vector<8x256xf32>
    %c16_144 = arith.constant 16 : index
    %c0_145 = arith.constant 0 : index
    %135 = vector.load %arg11[%c16_144, %c0_145] : memref<72x256xf32, #tpu.memory_space<vmem>>, vector<8x256xf32>
    tpu.vector_store %arg11[%c16_144, %c0_145], %134 {strides = array<i32>} : memref<72x256xf32, #tpu.memory_space<vmem>>, vector<8x256xf32>,
    %c0_146 = arith.constant 0 : index
    %c127_147 = arith.constant 127 : index
    %136 = vector.load %arg10[%c0_146, %c127_147] : memref<8x512xf32, #tpu.memory_space<vmem>>, vector<8x256xf32>
    %137 = vector.broadcast %0 : vector<1x256xf32> to vector<8x256xf32>
    %138 = arith.mulf %136, %137 : vector<8x256xf32>
    %c24_148 = arith.constant 24 : index
    %c0_149 = arith.constant 0 : index
    %139 = vector.load %arg11[%c24_148, %c0_149] : memref<72x256xf32, #tpu.memory_space<vmem>>, vector<8x256xf32>
    tpu.vector_store %arg11[%c24_148, %c0_149], %138 {strides = array<i32>} : memref<72x256xf32, #tpu.memory_space<vmem>>, vector<8x256xf32>,
    %c0_150 = arith.constant 0 : index
    %c128_151 = arith.constant 128 : index
    %140 = vector.load %arg10[%c0_150, %c128_151] : memref<8x512xf32, #tpu.memory_space<vmem>>, vector<8x256xf32>
    %c32_152 = arith.constant 32 : index
    %c0_153 = arith.constant 0 : index
    %141 = vector.load %arg11[%c32_152, %c0_153] : memref<72x256xf32, #tpu.memory_space<vmem>>, vector<8x256xf32>
    tpu.vector_store %arg11[%c32_152, %c0_153], %140 {strides = array<i32>} : memref<72x256xf32, #tpu.memory_space<vmem>>, vector<8x256xf32>,
    %c0_154 = arith.constant 0 : index
    %c129_155 = arith.constant 129 : index
    %142 = vector.load %arg10[%c0_154, %c129_155] : memref<8x512xf32, #tpu.memory_space<vmem>>, vector<8x256xf32>
    %143 = vector.broadcast %1 : vector<1x256xf32> to vector<8x256xf32>
    %144 = arith.mulf %142, %143 : vector<8x256xf32>
    %c40_156 = arith.constant 40 : index
    %c0_157 = arith.constant 0 : index
    %145 = vector.load %arg11[%c40_156, %c0_157] : memref<72x256xf32, #tpu.memory_space<vmem>>, vector<8x256xf32>
    tpu.vector_store %arg11[%c40_156, %c0_157], %144 {strides = array<i32>} : memref<72x256xf32, #tpu.memory_space<vmem>>, vector<8x256xf32>,
    %c0_158 = arith.constant 0 : index
    %c143_159 = arith.constant 143 : index
    %146 = vector.load %arg10[%c0_158, %c143_159] : memref<8x512xf32, #tpu.memory_space<vmem>>, vector<8x256xf32>
    %147 = vector.broadcast %0 : vector<1x256xf32> to vector<8x256xf32>
    %148 = arith.mulf %146, %147 : vector<8x256xf32>
    %c48_160 = arith.constant 48 : index
    %c0_161 = arith.constant 0 : index
    %149 = vector.load %arg11[%c48_160, %c0_161] : memref<72x256xf32, #tpu.memory_space<vmem>>, vector<8x256xf32>
    tpu.vector_store %arg11[%c48_160, %c0_161], %148 {strides = array<i32>} : memref<72x256xf32, #tpu.memory_space<vmem>>, vector<8x256xf32>,
    %c0_162 = arith.constant 0 : index
    %c144_163 = arith.constant 144 : index
    %150 = vector.load %arg10[%c0_162, %c144_163] : memref<8x512xf32, #tpu.memory_space<vmem>>, vector<8x256xf32>
    %c56_164 = arith.constant 56 : index
    %c0_165 = arith.constant 0 : index
    %151 = vector.load %arg11[%c56_164, %c0_165] : memref<72x256xf32, #tpu.memory_space<vmem>>, vector<8x256xf32>
    tpu.vector_store %arg11[%c56_164, %c0_165], %150 {strides = array<i32>} : memref<72x256xf32, #tpu.memory_space<vmem>>, vector<8x256xf32>,
    %c0_166 = arith.constant 0 : index
    %c145_167 = arith.constant 145 : index
    %152 = vector.load %arg10[%c0_166, %c145_167] : memref<8x512xf32, #tpu.memory_space<vmem>>, vector<8x256xf32>
    %153 = vector.broadcast %1 : vector<1x256xf32> to vector<8x256xf32>
    %154 = arith.mulf %152, %153 : vector<8x256xf32>
    %c64_168 = arith.constant 64 : index
    %c0_169 = arith.constant 0 : index
    %155 = vector.load %arg11[%c64_168, %c0_169] : memref<72x256xf32, #tpu.memory_space<vmem>>, vector<8x256xf32>
    tpu.vector_store %arg11[%c64_168, %c0_169], %154 {strides = array<i32>} : memref<72x256xf32, #tpu.memory_space<vmem>>, vector<8x256xf32>,
    %c0_170 = arith.constant 0 : index
    %c0_171 = arith.constant 0 : index
    %156 = vector.load %arg8[%c0_170, %c0_171] : memref<8x72xf32, #tpu.memory_space<vmem>>, vector<8x72xf32>
    %c0_172 = arith.constant 0 : index
    %c0_173 = arith.constant 0 : index
    %157 = vector.load %arg11[%c0_172, %c0_173] : memref<72x256xf32, #tpu.memory_space<vmem>>, vector<72x256xf32>
    %cst_174 = arith.constant dense<0.000000e+00> : vector<8x256xf32>
    %158 = tpu.matmul %156, %157, %cst_174 {dimension_numbers = #tpu.dot_dimension_numbers<[1], [0], [0], [1], [0, 0, 1, 1], [], []>} : vector<8x72xf32>, vector<72x256xf32>, vector<8x256xf32> -> vector<8x256xf32>
    %159 = vector.broadcast %124 : vector<8x1xf32> to vector<8x256xf32>
    %160 = arith.addf %158, %159 : vector<8x256xf32>
    %161 = arith.addf %84, %160 : vector<8x256xf32>
    %162 = arith.addf %161, %6 : vector<8x256xf32>
    %c0_175 = arith.constant 0 : index
    %c0_176 = arith.constant 0 : index
    %163 = vector.load %arg9[%c0_175, %c0_176] : memref<8x256xf32, #tpu.memory_space<vmem>>, vector<8x256xf32>
    tpu.vector_store %arg9[%c0_175, %c0_176], %162 {strides = array<i32>} : memref<8x256xf32, #tpu.memory_space<vmem>>, vector<8x256xf32>,
    return
  }
}

</mosaic_0001>

<bundles_post_ra>
// kernel: gradblock_pallas.1
= control target key start
LH: loop header
LB: loop body
LE: loop exit
PB: predicated region body
PF: predicated region fallthrough
CT: control target
= control target key end

     0   :  { %14 = vsyncpa [#allocation5], 0  ;;  %s3486_s30 = smov [#allocation4]   ;;  %s4785_s0 = inlined_call_operand.vmem [shape: f32[8,256], index: 0, kind: input, shape index: {}]   ;;  %s4786_s1 = inlined_call_operand.vmem [shape: f32[2,256], index: 1, kind: input, shape index: {}]   ;;  %s4787_s2 = inlined_call_operand.hbm [shape: f32[256,256], index: 2, kind: input, shape index: {}]   ;;  %s4788_s3 = inlined_call_operand.vmem [shape: f32[2,256], index: 3, kind: input, shape index: {}]   ;;  %s4789_s4 = inlined_call_operand.vmem [shape: f32[8,4], index: 4, kind: input, shape index: {}]   ;;  %s4790_s5 = inlined_call_operand.vmem [shape: bf16[2,72], index: 5, kind: input, shape index: {}]   ;;  %s4791_s6 = inlined_call_operand.vmem [shape: bf16[8,72], index: 6, kind: input, shape index: {}]   ;;  %s4792_s7 = inlined_call_operand.vmem [shape: bf16[8,72], index: 7, kind: input, shape index: {}]   ;;  %s4793_s8 = inlined_call_operand.vmem [shape: bf16[8,72], index: 8, kind: input, shape index: {}]   ;;  %s4794_s9 = inlined_call_operand.vmem [shape: f32[8,256], index: 9, kind: output, shape index: {}]  }
   0x1   :  { %s24_s10 = sshll.u32 %s3486_s30, 4  ;;  %s3462_s13 = scalar_lea.hbm %s4787_s2, 8192  ;;  %s25_s10 = int_to_ptr.vmem [resolvable:$true] %s24_s10 }
   0x2   :  { %p3463_p0 = scmp.ne.s32.totalorder %s4787_s2, %s3462_s13  ;;  %p3466_p1 = scmp.lt.u32.totalorder %s3462_s13, %s4787_s2 }
   0x4   :  { %p3468_p2 = pnand %p3466_p1, %p3463_p0 }
   0x6   :  { %3471 = shalt.err (!%p3468_p2)
}
   0x7   :  { %s3472_s18 = scalar_lea.vmem %s25_s10, 8192  ;;  %p3477_p4 = scmp.lt.s32.totalorder %s25_s10, %s25_s10 }
   0x8   :  { %p3473_p3 = scmp.ne.s32.totalorder %s25_s10, %s3472_s18  ;;  %p3478_p5 = scmp.lt.s32.totalorder %s3472_s18, %s3472_s18 }
   0xa   :  { %p3479_p6 = por %p3478_p5, %p3477_p4 }
   0xc   :  { %p3480_p7 = pnand %p3479_p6, %p3473_p3 }
   0xe   :  { %3483 = shalt.err (!%p3480_p7)
}
   0xf   :  { %s3487_s19 = smov 256   ;;  %s3488_s20 = smov 16  }
  0x10   :  { %30 = dma.hbm_to_vmem [thread:$0]  %s4787_s2, 8192, %s25_s10, [#allocation5], %s3487_s19, %s3487_s19, %s3488_s20  }
  0x11   :  { %3484 = dma.done.wait [#allocation5], 8192  }
  0x12   :  { %3485 = vsyncadd [#allocation5], 4294959104  ;;  %v61_v0 = vlaneseq  ;;  %v3489_v1 = vmov 0.0   ;;  %v2848_v5 = vld [vmem:[%s4788_s3 + $0x1] ss:$2 sm:$0x3] }
  0x13   :  { %50 = vst [vmem:[#allocation2] sm:$0xff] %v3489_v1  ;;  %51 = vst [vmem:[#allocation2 + $0x18] sm:$0xff] %v3489_v1  ;;  %v47_v6 = vld [vmem:[%s4788_s3] ss:$2 sm:$0x3]  ;;  %v3574_v9 = vld [vmem:[%s4785_s0 + $0x8] sm:$0xff] }
  0x14   :  { %v62_v2 = vshrl.u32 %v61_v0, 7  ;;  %5023 = vst [vmem:[#allocation7_spill] sm:$0xff] %v3574_v9  ;;  %v3579_v10 = vld [vmem:[%s4785_s0] sm:$0xff]  ;;  %56 = vst [vmem:[#allocation2 + $0x10] sm:$0xff] %v3574_v9  ;;  %s3490_s3 = smov 113   ;;  %s3491_s30 = smov 111   ;;  %v2969_v14 = vpack.c.bf16 %v3574_v9, %v3574_v9 }
  0x15   :  { %5024 = vst [vmem:[#allocation8_spill] sm:$0xff] %v3579_v10  ;;  %55 = vst [vmem:[#allocation2 + $0x8] sm:$0xff] %v3579_v10  ;;  %v3585_v11 = vpack.c.bf16 %v3574_v9, %v3579_v10  ;;  %s3492_s0 = smov 127   ;;  %s3493_s10 = smov 1   ;;  %v2968_v15 = vpack.c.bf16 %v3579_v10, %v3489_v1  ;;  %v3496_v16 = vmov 0.0|0.0   ;;  %vm145_vm0 = vcmask 924672  }
  0x16   :  { %v63_v3 = vsub.s32 0, %v62_v2  ;;  %v67_v4 = vsub.s32 1, %v62_v2  ;;  %s3494_s11 = smov 15   ;;  %s3495_s12 = smov 17   ;;  %vm73_vm1 = vcmask 908288   ;;  %vm182_vm2 = vcmask 1039360  }
  0x17   :  { %222 = vst [vmem:[#allocation3 + $0x20] sm:$0xff] %v3585_v11  ;;  %s3497_s13 = smov 112   ;;  %vm208_vm3 = vcmask 7168   ;;  %vm171_vm4 = vcmask 121856   ;;  %vm100_vm5 = vcmask 138240   ;;  %vm98_vm6 = vcmask 1043456  }
  0x18   :  { %v136_v7 = vrot.slane %v2848_v5, %v63_v3  ;;  %v64_v8 = vrot.slane %v47_v6, %v63_v3  ;;  %v140_v12 = vrot.slane %v2848_v5, %v67_v4  ;;  %v68_v13 = vrot.slane %v47_v6, %v67_v4 }
  0x19   :  { %vm125_vm7 = vcmask 130048   ;;  %v4795_v6 = vmov 0   ;;  %vm318_vm8 = vcmask 916480   ;;  %vm419_vm9 = vcmask 588800  }
  0x1a   :  { %141 = vrot.lane.b32.xlu1 %v136_v7, %s3490_s3  ;;  %69 = vrot.lane.b32.xlu0 %v64_v8, %s3491_s30  ;;  %v1954_v60 = vld [vmem:[#allocation2 + $0x18] sm:$0x3] }
  0x1b   :  { %462 = vmatprep.mubr.bf16.mxu0 %v4795_v6  ;;  %3443 = vset.pattern.permute.xlu0 %v4795_v6 }
  0x1e   :  { %143 = vrot.lane.b32.xlu1 %v140_v12, %s3490_s3  ;;  %71 = vrot.lane.b32.xlu0 %v68_v13, %s3491_s30 }
  0x22   :  { %180 = vrot.lane.b32.xlu1 %v68_v13, %s3492_s0  ;;  %178 = vrot.lane.b32.xlu0 %v64_v8, %s3492_s0 }
  0x26   :  { %228 = vrot.lane.b32.xlu1 %v140_v12, %s3493_s10  ;;  %226 = vrot.lane.b32.xlu0 %v136_v7, %s3493_s10 }
  0x2a   :  { %265 = vrot.lane.b32.xlu1 %v68_v13, %s3494_s11  ;;  %263 = vrot.lane.b32.xlu0 %v64_v8, %s3494_s11  ;;  %v474_v13 = vld [vmem:[#allocation4 + $0x18] sm:$0xff] }
  0x2e   :  { %327 = vrot.lane.b32.xlu1 %v140_v12, %s3495_s12  ;;  %325 = vrot.lane.b32.xlu0 %v136_v7, %s3495_s12  ;;  %v472_v12 = vld [vmem:[#allocation4 + $0x8] sm:$0xff] }
  0x32   :  { %120 = vrot.lane.b32.xlu1 %v2969_v14, %s3488_s20  ;;  %118 = vrot.lane.b32.xlu0 %v2968_v15, %s3488_s20 }
  0x36   :  { %313 = vrot.lane.b32.xlu1 %v3496_v16, %s3497_s13  ;;  %311 = vrot.lane.b32.xlu0 %v3585_v11, %s3497_s13 }
  0x8c   :  { %v3608_v17 = vpop.permute.xlu1 %141  ;;  %v3610_v18 = vpop.permute.xlu0 %69 }
  0x8d   :  { %5025 = vst [vmem:[#allocation9_spill] sm:$0xff] %v3608_v17  ;;  %5026 = vst [vmem:[#allocation10_spill] sm:$0xff] %v3610_v18  ;;  %v78_v25 = vmul.f32 0.0, %v3610_v18  ;;  %v150_v31 = vmul.f32 0.0, %v3608_v17 }
  0x90   :  { %v3612_v19 = vpop.permute.xlu1 %143  ;;  %v3614_v20 = vpop.permute.xlu0 %71 }
  0x91   :  { %5027 = vst [vmem:[#allocation11_spill] sm:$0xff] %v3612_v19  ;;  %5028 = vst [vmem:[#allocation12_spill] sm:$0xff] %v3614_v20  ;;  %v3619_v21 = vsel %vm145_vm0, %v3608_v17, %v3612_v19  ;;  %v3624_v22 = vsel %vm73_vm1, %v3610_v18, %v3614_v20  ;;  %v80_v23 = vmul.f32 %v3614_v20, %v3574_v9  ;;  %v501_v18 = vld [vmem:[#allocation4 + $0xf0] sm:$0xff] }
  0x92   :  { %5029 = vst [vmem:[#allocation13_spill] sm:$0xff] %v3619_v21  ;;  %5030 = vst [vmem:[#allocation14_spill] sm:$0xff] %v3624_v22  ;;  %v152_v24 = vmul.f32 %v3612_v19, %v3574_v9  ;;  %v79_v26 = vmul.f32 %v3624_v22, %v3579_v10  ;;  %v151_v32 = vmul.f32 %v3619_v21, %v3579_v10 }
  0x93   :  { %v2967_v27 = vpack.c.bf16 %v80_v23, %v80_v23 }
  0x94   :  { %v2966_v28 = vpack.c.bf16 %v79_v26, %v78_v25  ;;  %v3633_v29 = vpop.permute.xlu1 %180  ;;  %v3635_v30 = vpop.permute.xlu0 %178  ;;  %v2971_v34 = vpack.c.bf16 %v152_v24, %v152_v24  ;;  %v2970_v38 = vpack.c.bf16 %v151_v32, %v150_v31  ;;  %v535_v24 = vand.u32 4294901760, %v472_v12  ;;  %v471_v26 = vld [vmem:[#allocation4] sm:$0xff] }
  0x95   :  { %5031 = vst [vmem:[#allocation15_spill] sm:$0xff] %v3633_v29  ;;  %5032 = vst [vmem:[#allocation16_spill] sm:$0xff] %v3635_v30  ;;  %94 = vrot.lane.b32.xlu1 %v2967_v27, %s3495_s12  ;;  %v3644_v33 = vsel %vm182_vm2, %v3635_v30, %v3633_v29  ;;  %v189_v35 = vmul.f32 %v3633_v29, %v3574_v9  ;;  %v187_v36 = vmul.f32 0.0, %v3635_v30  ;;  %v539_v25 = vand.u32 4294901760, %v474_v13  ;;  %v473_v27 = vld [vmem:[#allocation4 + $0x10] sm:$0xff] }
  0x96   :  { %5033 = vst [vmem:[#allocation17_spill] sm:$0xff] %v3644_v33  ;;  %92 = vrot.lane.b32.xlu0 %v2966_v28, %s3495_s12  ;;  %v188_v37 = vmul.f32 %v3644_v33, %v3579_v10  ;;  %v476_v28 = vld [vmem:[#allocation4 + $0x28] sm:$0xff] }
  0x97   :  { %v2973_v42 = vpack.c.bf16 %v189_v35, %v189_v35  ;;  %v541_v35 = vand.u32 4294901760, %v473_v27 }
  0x98   :  { %v3652_v39 = vpop.permute.xlu1 %228  ;;  %v3654_v40 = vpop.permute.xlu0 %226  ;;  %v2972_v44 = vpack.c.bf16 %v188_v37, %v187_v36  ;;  %v478_v36 = vld [vmem:[#allocation4 + $0x38] sm:$0xff]  ;;  %v475_v37 = vld [vmem:[#allocation4 + $0x20] sm:$0xff] }
  0x99   :  { %5034 = vst [vmem:[#allocation18_spill] sm:$0xff] %v3652_v39  ;;  %5035 = vst [vmem:[#allocation19_spill] sm:$0xff] %v3654_v40  ;;  %166 = vrot.lane.b32.xlu1 %v2971_v34, %s3494_s11  ;;  %v3660_v41 = vsel %vm208_vm3, %v3654_v40, %v3652_v39  ;;  %v237_v43 = vmul.f32 0.0, %v3652_v39  ;;  %v235_v45 = vmul.f32 %v3654_v40, %v3579_v10  ;;  %v537_v34 = vand.u32 4294901760, %v471_v26  ;;  %v498_v40 = vld [vmem:[#allocation4 + $0xd8] sm:$0xff] }
  0x9a   :  { %5036 = vst [vmem:[#allocation20_spill] sm:$0xff] %v3660_v41  ;;  %164 = vrot.lane.b32.xlu0 %v2970_v38, %s3494_s11  ;;  %v236_v46 = vmul.f32 %v3660_v41, %v3574_v9  ;;  %v1957_v0 = vmul.f32 %v1954_v60, %v3652_v39  ;;  %v3712_v38 = vsub.f32 %v472_v12, %v535_v24  ;;  %v496_v41 = vld [vmem:[#allocation4 + $0xc8] sm:$0xff]  ;;  %v587_v30 = vand.u32 4294901760, %v498_v40 }
  0x9b   :  { %v2976_v50 = vpack.c.bf16 %v237_v43, %v237_v43  ;;  %v543_v43 = vand.u32 4294901760, %v476_v28  ;;  %v583_v19 = vand.u32 4294901760, %v496_v41 }
  0x9c   :  { %v3668_v47 = vpop.permute.xlu1 %265  ;;  %v3670_v48 = vpop.permute.xlu0 %263  ;;  %v2975_v52 = vpack.c.bf16 %v236_v46, %v235_v45  ;;  %v2993_v14 = vpack.c.bf16 %v1957_v0, %v1957_v0  ;;  %v477_v45 = vld [vmem:[#allocation4 + $0x30] sm:$0xff] }
  0x9d   :  { %5037 = vst [vmem:[#allocation21_spill] sm:$0xff] %v3668_v47  ;;  %5038 = vst [vmem:[#allocation22_spill] sm:$0xff] %v3670_v48  ;;  %203 = vrot.lane.b32.xlu1 %v2973_v42, %s3493_s10  ;;  %v3676_v49 = vsel %vm171_vm4, %v3670_v48, %v3668_v47  ;;  %v274_v51 = vmul.f32 0.0, %v3668_v47  ;;  %v272_v53 = vmul.f32 %v3670_v48, %v3579_v10 }
  0x9e   :  { %5039 = vst [vmem:[#allocation23_spill] sm:$0xff] %v3676_v49  ;;  %201 = vrot.lane.b32.xlu0 %v2972_v44, %s3493_s10  ;;  %v273_v54 = vmul.f32 %v3676_v49, %v3574_v9  ;;  %v3714_v42 = vsub.f32 %v474_v13, %v539_v25  ;;  %v547_v44 = vand.u32 4294901760, %v478_v36  ;;  %v3729_v60 = vsub.f32 %v476_v28, %v543_v43 }
  0x9f   :  { %v2978_v58 = vpack.c.bf16 %v274_v51, %v274_v51  ;;  %v3720_v51 = vsub.f32 %v471_v26, %v537_v34  ;;  %v3745_v13 = vpack.c.bf16 %v541_v35, %v537_v34  ;;  %v483_v26 = vld [vmem:[#allocation4 + $0x60] sm:$0xff] }
  0xa0   :  { %v3684_v55 = vpop.permute.xlu1 %327  ;;  %v3686_v56 = vpop.permute.xlu0 %325  ;;  %v2977_v61 = vpack.c.bf16 %v273_v54, %v272_v53  ;;  %v545_v53 = vand.u32 4294901760, %v475_v37  ;;  %v480_v54 = vld [vmem:[#allocation4 + $0x48] sm:$0xff]  ;;  %5045 = vst [vmem:[#allocation29_spill] sm:$0xff] %v3729_v60 }
  0xa1   :  { %5040 = vst [vmem:[#allocation24_spill] sm:$0xff] %v3684_v55  ;;  %5041 = vst [vmem:[#allocation25_spill] sm:$0xff] %v3686_v56  ;;  %251 = vrot.lane.b32.xlu1 %v2976_v50, %s3492_s0  ;;  %v3692_v57 = vsel %vm100_vm5, %v3686_v56, %v3684_v55  ;;  %v336_v59 = vmul.f32 0.0, %v3684_v55  ;;  %v334_v62 = vmul.f32 %v3686_v56, %v3579_v10  ;;  %v54_v50 = vld [vmem:[%s4789_s4] sm:$0x3] }
  0xa2   :  { %5042 = vst [vmem:[#allocation26_spill] sm:$0xff] %v3692_v57  ;;  %249 = vrot.lane.b32.xlu0 %v2975_v52, %s3492_s0  ;;  %v335_v63 = vmul.f32 %v3692_v57, %v3574_v9  ;;  %5043 = vst [vmem:[#allocation27_spill] sm:$0xff] %v3720_v51  ;;  %v3722_v52 = vsub.f32 %v473_v27, %v541_v35  ;;  %v485_v27 = vld [vmem:[#allocation4 + $0x70] sm:$0xff]  ;;  %v492_v9 = vld [vmem:[#allocation4 + $0xa8] sm:$0xff] }
  0xa3   :  { %v2982_v3 = vpack.c.bf16 %v336_v59, %v336_v59  ;;  %v3162_v59 = vpack.c.bf16 %v3714_v42, %v3712_v38  ;;  %5050 = vst [vmem:[#allocation34_spill] sm:$0xff] %v3745_v13  ;;  %v575_v47 = vand.u32 4294901760, %v492_v9 }
  0xa4   :  { %v121_v1 = vpop.permute.xlu1 %120  ;;  %v119_v2 = vpop.permute.xlu0 %118  ;;  %v2981_v7 = vpack.c.bf16 %v335_v63, %v334_v62  ;;  %5044 = vst [vmem:[#allocation28_spill] sm:$0xff] %v3722_v52  ;;  %v482_v62 = vld [vmem:[#allocation4 + $0x58] sm:$0xff]  ;;  %v479_v63 = vld [vmem:[#allocation4 + $0x40] sm:$0xff]  ;;  %v3164_v0 = vpack.c.bf16 %v3722_v52, %v3720_v51 }
  0xa5   :  { %288 = vrot.lane.b32.xlu1 %v2978_v58, %s3490_s3  ;;  %v123_v4 = vrot.slane %v121_v1, 4  ;;  %v122_v5 = vrot.slane %v119_v2, 4  ;;  %v549_v1 = vand.u32 4294901760, %v477_v45  ;;  %3163 = vmatprep.subr.bf16.mxu1 %v3162_v59  ;;  %v490_v59 = vld [vmem:[#allocation4 + $0x98] sm:$0xff] }
  0xa6   :  { %286 = vrot.lane.b32.xlu0 %v2977_v61, %s3490_s3  ;;  %v3731_v61 = vsub.f32 %v478_v36, %v547_v44  ;;  %3165 = vmatpush1.bf16.msra.mxu1 %v3164_v0  ;;  %v487_v0 = vld [vmem:[#allocation4 + $0x80] sm:$0xff]  ;;  %v571_v39 = vand.u32 4294901760, %v490_v59 }
  0xa7   :  { %v124_v8 = vsel %vm98_vm6, %v122_v5, %v123_v4  ;;  %v3739_v4 = vsub.f32 %v475_v37, %v545_v53  ;;  %v3741_v5 = vpack.c.bf16 %v539_v25, %v535_v24  ;;  %v3743_v12 = vsub.f32 %v477_v45, %v549_v1  ;;  %v488_v37 = vld [vmem:[#allocation4 + $0x88] sm:$0xff] }
  0xa8   :  { %v3707_v15 = vsel %vm125_vm7, %v119_v2, %v124_v8  ;;  %v314_v16 = vpop.permute.xlu1 %313  ;;  %v312_v23 = vpop.permute.xlu0 %311  ;;  %5046 = vst [vmem:[#allocation30_spill] sm:$0xff] %v3731_v61  ;;  %v481_v2 = vld [vmem:[#allocation4 + $0x50] sm:$0xff]  ;;  %v484_v8 = vld [vmem:[#allocation4 + $0x68] sm:$0xff]  ;;  %v3751_v24 = vpack.c.bf16 %v549_v1, %v545_v53  ;;  %v567_v10 = vand.u32 4294901760, %v488_v37 }
  0xa9   :  { %350 = vrot.lane.b32.xlu1 %v2982_v3, %s3491_s30  ;;  %128 = vst [vmem:[#allocation3 + $0x8] sm:$0xff] %v3707_v15  ;;  %v316_v31 = vrot.slane %v314_v16, 4  ;;  %v315_v32 = vrot.slane %v312_v23, 4  ;;  %v3166_v3 = vpack.c.bf16 %v3731_v61, %v3729_v60  ;;  %5047 = vst [vmem:[#allocation31_spill] sm:$0xff] %v3739_v4  ;;  %v553_v16 = vand.u32 4294901760, %v479_v63 }
  0xaa   :  { %348 = vrot.lane.b32.xlu0 %v2981_v7, %s3491_s30  ;;  %5048 = vst [vmem:[#allocation32_spill] sm:$0xff] %v3741_v5  ;;  %v551_v7 = vand.u32 4294901760, %v480_v54  ;;  %5049 = vst [vmem:[#allocation33_spill] sm:$0xff] %v3743_v12  ;;  %v3168_v25 = vpack.c.bf16 %v3743_v12, %v3739_v4  ;;  %v559_v35 = vand.u32 4294901760, %v484_v8 }
  0xab   :  { %v317_v46 = vsel %vm98_vm6, %v315_v32, %v316_v31  ;;  %3167 = vmatprep.subr.bf16.mxu1 %v3166_v3  ;;  %v557_v31 = vand.u32 4294901760, %v481_v2  ;;  %v3749_v32 = vpack.c.bf16 %v547_v44, %v543_v43  ;;  %5053 = vst [vmem:[#allocation37_spill] sm:$0xff] %v3751_v24  ;;  %v3757_v34 = vsub.f32 %v479_v63, %v553_v16  ;;  %v489_v43 = vld [vmem:[#allocation4 + $0x90] sm:$0xff] }
  0xac   :  { %v3725_v58 = vsel %vm318_vm8, %v312_v23, %v317_v46  ;;  %v486_v23 = vld [vmem:[#allocation4 + $0x78] sm:$0xff]  ;;  %v3747_v28 = vsub.f32 %v480_v54, %v551_v7  ;;  %v565_v54 = vand.u32 4294901760, %v485_v27  ;;  %3169 = vmatpush1.bf16.msra.mxu1 %v3168_v25  ;;  %v3763_v53 = vsub.f32 %v484_v8, %v559_v35 }
  0xad   :  { %1971 = vrot.lane.b32.xlu1 %v2993_v14, %s3492_s0  ;;  %321 = vst [vmem:[#allocation3 + $0x38] sm:$0xff] %v3725_v58  ;;  %v555_v14 = vand.u32 4294901760, %v482_v62  ;;  %5052 = vst [vmem:[#allocation36_spill] sm:$0xff] %v3749_v32  ;;  %v3759_v45 = vsub.f32 %v481_v2, %v557_v31  ;;  %v563_v46 = vand.u32 4294901760, %v486_v23  ;;  %v3767_v63 = vpack.c.bf16 %v557_v31, %v553_v16  ;;  %v494_v25 = vld [vmem:[#allocation4 + $0xb8] sm:$0xff] }
  0xae   :  { %371 = vperm.xlu0 %3443, %v54_v50   ;;  %5051 = vst [vmem:[#allocation35_spill] sm:$0xff] %v3747_v28  ;;  %5055 = vst [vmem:[#allocation39_spill] sm:$0xff] %v3757_v34  ;;  %v561_v50 = vand.u32 4294901760, %v483_v26  ;;  %v3775_v6 = vsub.f32 %v485_v27, %v565_v54  ;;  %v569_v8 = vand.u32 4294901760, %v487_v0  ;;  %v573_v55 = vand.u32 4294901760, %v489_v43 }
  0xaf   :  { %v3755_v36 = vsub.f32 %v482_v62, %v555_v14  ;;  %5056 = vst [vmem:[#allocation40_spill] sm:$0xff] %v3759_v45  ;;  %5057 = vst [vmem:[#allocation41_spill] sm:$0xff] %v3763_v53  ;;  %v3765_v62 = vpack.c.bf16 %v555_v14, %v551_v7  ;;  %v3172_v1 = vpack.c.bf16 %v3759_v45, %v3757_v34  ;;  %v491_v7 = vld [vmem:[#allocation4 + $0xa0] sm:$0xff]  ;;  %v493_v14 = vld [vmem:[#allocation4 + $0xb0] sm:$0xff]  ;;  %v579_v49 = vand.u32 4294901760, %v494_v25 }
  0xb0   :  { %5059 = vst [vmem:[#allocation43_spill] sm:$0xff] %v3767_v63  ;;  %v3771_v2 = vsub.f32 %v486_v23, %v563_v46  ;;  %v3773_v3 = vsub.f32 %v483_v26, %v561_v50  ;;  %5062 = vst [vmem:[#allocation46_spill] sm:$0xff] %v3775_v6  ;;  %v3781_v31 = vpack.c.bf16 %v563_v46, %v559_v35  ;;  %v577_v48 = vand.u32 4294901760, %v491_v7 }
  0xb1   :  { %5054 = vst [vmem:[#allocation38_spill] sm:$0xff] %v3755_v36  ;;  %v3170_v44 = vpack.c.bf16 %v3755_v36, %v3747_v28  ;;  %5058 = vst [vmem:[#allocation42_spill] sm:$0xff] %v3765_v62  ;;  %v3783_v26 = vpack.c.bf16 %v565_v54, %v561_v50  ;;  %v3785_v27 = vsub.f32 %v488_v37, %v567_v10  ;;  %v581_v29 = vand.u32 4294901760, %v493_v14  ;;  %v495_v54 = vld [vmem:[#allocation4 + $0xc0] sm:$0xff] }
  0xb2   :  { %5060 = vst [vmem:[#allocation44_spill] sm:$0xff] %v3771_v2  ;;  %5061 = vst [vmem:[#allocation45_spill] sm:$0xff] %v3773_v3  ;;  %v3174_v16 = vpack.c.bf16 %v3771_v2, %v3763_v53  ;;  %v3176_v23 = vpack.c.bf16 %v3775_v6, %v3773_v3  ;;  %v3789_v57 = vsub.f32 %v487_v0, %v569_v8  ;;  %v585_v20 = vand.u32 4294901760, %v495_v54  ;;  %v518_v6 = vld [vmem:[#allocation4 + $0x178] sm:$0xff]  ;;  %v519_v53 = vld [vmem:[#allocation4 + $0x180] sm:$0xff] }
  0xb3   :  { %3171 = vmatprep.subr.bf16.mxu1 %v3170_v44  ;;  %5063 = vst [vmem:[#allocation47_spill] sm:$0xff] %v3781_v31  ;;  %5064 = vst [vmem:[#allocation48_spill] sm:$0xff] %v3783_v26  ;;  %v3787_v44 = vsub.f32 %v490_v59, %v571_v39  ;;  %v3791_v56 = vsub.f32 %v489_v43, %v573_v55  ;;  %v3797_v46 = vpack.c.bf16 %v571_v39, %v567_v10  ;;  %v497_v59 = vld [vmem:[#allocation4 + $0xd0] sm:$0xff]  ;;  %v522_v2 = vld [vmem:[#allocation4 + $0x198] sm:$0xff] }
  0xb4   :  { %3173 = vmatpush1.bf16.msra.mxu1 %v3172_v1  ;;  %5065 = vst [vmem:[#allocation49_spill] sm:$0xff] %v3785_v27  ;;  %5067 = vst [vmem:[#allocation51_spill] sm:$0xff] %v3789_v57  ;;  %v3799_v50 = vpack.c.bf16 %v573_v55, %v569_v8  ;;  %v3801_v0 = vsub.f32 %v492_v9, %v575_v47  ;;  %v3803_v43 = vsub.f32 %v494_v25, %v579_v49  ;;  %v500_v9 = vld [vmem:[#allocation4 + $0xe8] sm:$0xff]  ;;  %v502_v25 = vld [vmem:[#allocation4 + $0xf8] sm:$0xff] }
  0xb5   :  { %5066 = vst [vmem:[#allocation50_spill] sm:$0xff] %v3787_v44  ;;  %5068 = vst [vmem:[#allocation52_spill] sm:$0xff] %v3791_v56  ;;  %3175 = vmatprep.subr.bf16.mxu1 %v3174_v16  ;;  %v3178_v35 = vpack.c.bf16 %v3787_v44, %v3785_v27  ;;  %v3180_v37 = vpack.c.bf16 %v3791_v56, %v3789_v57  ;;  %v3805_v1 = vsub.f32 %v491_v7, %v577_v48  ;;  %v499_v8 = vld [vmem:[#allocation4 + $0xe0] sm:$0xff] }
  0xb6   :  { %5069 = vst [vmem:[#allocation53_spill] sm:$0xff] %v3797_v46  ;;  %5070 = vst [vmem:[#allocation54_spill] sm:$0xff] %v3799_v50  ;;  %v3807_v16 = vsub.f32 %v493_v14, %v581_v29  ;;  %v589_v33 = vand.u32 4294901760, %v497_v59  ;;  %v3182_v10 = vpack.c.bf16 %v3803_v43, %v3801_v0  ;;  %v3811_v39 = vpack.c.bf16 %v579_v49, %v575_v47  ;;  %v507_v57 = vld [vmem:[#allocation4 + $0x120] sm:$0xff] }
  0xb7   :  { %5071 = vst [vmem:[#allocation55_spill] sm:$0xff] %v3801_v0  ;;  %5072 = vst [vmem:[#allocation56_spill] sm:$0xff] %v3803_v43  ;;  %v3813_v55 = vpack.c.bf16 %v581_v29, %v577_v48  ;;  %v3817_v14 = vsub.f32 %v496_v41, %v583_v19  ;;  %v3821_v17 = vsub.f32 %v495_v54, %v585_v20  ;;  %v591_v22 = vand.u32 4294901760, %v500_v9  ;;  %v504_v54 = vld [vmem:[#allocation4 + $0x108] sm:$0xff] }
  0xb8   :  { %5073 = vst [vmem:[#allocation57_spill] sm:$0xff] %v3805_v1  ;;  %5074 = vst [vmem:[#allocation58_spill] sm:$0xff] %v3807_v16  ;;  %3177 = vmatpush1.bf16.msra.mxu1 %v3176_v23  ;;  %v3184_v7 = vpack.c.bf16 %v3807_v16, %v3805_v1  ;;  %v3819_v23 = vsub.f32 %v498_v40, %v587_v30  ;;  %v595_v47 = vand.u32 4294901760, %v502_v25  ;;  %v593_v29 = vand.u32 4294901760, %v499_v8  ;;  %v503_v1 = vld [vmem:[#allocation4 + $0x100] sm:$0xff] }
  0xb9   :  { %3179 = vmatprep.subr.bf16.mxu1 %v3178_v35  ;;  %5075 = vst [vmem:[#allocation59_spill] sm:$0xff] %v3811_v39  ;;  %5076 = vst [vmem:[#allocation60_spill] sm:$0xff] %v3813_v55  ;;  %v3823_v35 = vsub.f32 %v497_v59, %v589_v33  ;;  %v597_v48 = vand.u32 4294901760, %v501_v18  ;;  %v3825_v49 = vpack.c.bf16 %v587_v30, %v583_v19  ;;  %v506_v59 = vld [vmem:[#allocation4 + $0x118] sm:$0xff]  ;;  %v599_v43 = vand.u32 4294901760, %v504_v54 }
  0xba   :  { %5077 = vst [vmem:[#allocation61_spill] sm:$0xff] %v3817_v14  ;;  %5078 = vst [vmem:[#allocation62_spill] sm:$0xff] %v3819_v23  ;;  %v3827_v21 = vpack.c.bf16 %v589_v33, %v585_v20  ;;  %v3186_v41 = vpack.c.bf16 %v3819_v23, %v3817_v14  ;;  %v3831_v40 = vsub.f32 %v500_v9, %v591_v22  ;;  %v603_v0 = vand.u32 4294901760, %v506_v59  ;;  %v510_v14 = vld [vmem:[#allocation4 + $0x138] sm:$0xff] }
  0xbb   :  { %5079 = vst [vmem:[#allocation63_spill] sm:$0xff] %v3821_v17  ;;  %5080 = vst [vmem:[#allocation64_spill] sm:$0xff] %v3823_v35  ;;  %v3833_v16 = vsub.f32 %v502_v25, %v595_v47  ;;  %v3835_v56 = vpack.c.bf16 %v595_v47, %v591_v22  ;;  %v601_v19 = vand.u32 4294901760, %v503_v1  ;;  %v3837_v20 = vpack.c.bf16 %v597_v48, %v593_v29  ;;  %v508_v47 = vld [vmem:[#allocation4 + $0x128] sm:$0xff] }
  0xbc   :  { %3181 = vmatpush1.bf16.msra.mxu1 %v3180_v37  ;;  %5081 = vst [vmem:[#allocation65_spill] sm:$0xff] %v3825_v49  ;;  %5082 = vst [vmem:[#allocation66_spill] sm:$0xff] %v3827_v21  ;;  %v505_v37 = vld [vmem:[#allocation4 + $0x110] sm:$0xff]  ;;  %v3188_v33 = vpack.c.bf16 %v3823_v35, %v3821_v17  ;;  %v3843_v9 = vsub.f32 %v501_v18, %v597_v48  ;;  %v3847_v23 = vsub.f32 %v504_v54, %v599_v43  ;;  %v516_v17 = vld [vmem:[#allocation4 + $0x168] sm:$0xff] }
  0xbd   :  { %3183 = vmatprep.subr.bf16.mxu1 %v3182_v10  ;;  %5083 = vst [vmem:[#allocation67_spill] sm:$0xff] %v3831_v40  ;;  %5084 = vst [vmem:[#allocation68_spill] sm:$0xff] %v3833_v16  ;;  %v605_v30 = vand.u32 4294901760, %v505_v37  ;;  %v3841_v10 = vsub.f32 %v499_v8, %v593_v29  ;;  %v3190_v25 = vpack.c.bf16 %v3833_v16, %v3831_v40  ;;  %v611_v27 = vand.u32 4294901760, %v510_v14  ;;  %v509_v35 = vld [vmem:[#allocation4 + $0x130] sm:$0xff]  ;;  %v514_v16 = vld [vmem:[#allocation4 + $0x158] sm:$0xff] }
  0xbe   :  { %5085 = vst [vmem:[#allocation69_spill] sm:$0xff] %v3835_v56  ;;  %5086 = vst [vmem:[#allocation70_spill] sm:$0xff] %v3837_v20  ;;  %v3849_v22 = vsub.f32 %v506_v59, %v603_v0  ;;  %v3851_v44 = vpack.c.bf16 %v603_v0, %v599_v43  ;;  %v3853_v8 = vsub.f32 %v503_v1, %v601_v19  ;;  %v613_v54 = vand.u32 4294901760, %v509_v35  ;;  %v512_v1 = vld [vmem:[#allocation4 + $0x148] sm:$0xff] }
  0xbf   :  { %5087 = vst [vmem:[#allocation71_spill] sm:$0xff] %v3841_v10  ;;  %5088 = vst [vmem:[#allocation72_spill] sm:$0xff] %v3843_v9  ;;  %v3855_v18 = vsub.f32 %v505_v37, %v605_v30  ;;  %v3857_v29 = vpack.c.bf16 %v605_v30, %v601_v19  ;;  %v3192_v48 = vpack.c.bf16 %v3843_v9, %v3841_v10  ;;  %v511_v37 = vld [vmem:[#allocation4 + $0x140] sm:$0xff]  ;;  %v615_v19 = vand.u32 4294901760, %v512_v1 }
  0xc0   :  { %3185 = vmatpush1.bf16.msra.mxu1 %v3184_v7  ;;  %5089 = vst [vmem:[#allocation73_spill] sm:$0xff] %v3847_v23  ;;  %5090 = vst [vmem:[#allocation74_spill] sm:$0xff] %v3849_v22  ;;  %v607_v7 = vand.u32 4294901760, %v508_v47  ;;  %v3194_v0 = vpack.c.bf16 %v3849_v22, %v3847_v23  ;;  %v3865_v59 = vsub.f32 %v510_v14, %v611_v27  ;;  %v619_v30 = vand.u32 4294901760, %v514_v16 }
  0xc1   :  { %3187 = vmatprep.subr.bf16.mxu1 %v3186_v41  ;;  %5091 = vst [vmem:[#allocation75_spill] sm:$0xff] %v3851_v44  ;;  %5092 = vst [vmem:[#allocation76_spill] sm:$0xff] %v3853_v8  ;;  %v609_v41 = vand.u32 4294901760, %v507_v57  ;;  %v3196_v9 = vpack.c.bf16 %v3855_v18, %v3853_v8  ;;  %v617_v14 = vand.u32 4294901760, %v511_v37  ;;  %v635_v34 = vand.u32 4294901760, %v522_v2 }
  0xc2   :  { %5093 = vst [vmem:[#allocation77_spill] sm:$0xff] %v3855_v18  ;;  %5094 = vst [vmem:[#allocation78_spill] sm:$0xff] %v3857_v29  ;;  %v3863_v43 = vsub.f32 %v508_v47, %v607_v7  ;;  %v3867_v40 = vpack.c.bf16 %v611_v27, %v607_v7  ;;  %v3875_v47 = vsub.f32 %v509_v35, %v613_v54  ;;  %v515_v18 = vld [vmem:[#allocation4 + $0x160] sm:$0xff] }
  0xc3   :  { %5096 = vst [vmem:[#allocation80_spill] sm:$0xff] %v3865_v59  ;;  %v3871_v10 = vpack.c.bf16 %v613_v54, %v609_v41  ;;  %v3879_v7 = vsub.f32 %v512_v1, %v615_v19  ;;  %v3881_v23 = vsub.f32 %v514_v16, %v619_v30  ;;  %v3883_v8 = vpack.c.bf16 %v619_v30, %v615_v19 }
  0xc4   :  { %3189 = vmatpush1.bf16.msra.mxu1 %v3188_v33  ;;  %5095 = vst [vmem:[#allocation79_spill] sm:$0xff] %v3863_v43  ;;  %5097 = vst [vmem:[#allocation81_spill] sm:$0xff] %v3867_v40  ;;  %v513_v33 = vld [vmem:[#allocation4 + $0x150] sm:$0xff]  ;;  %v3198_v27 = vpack.c.bf16 %v3865_v59, %v3863_v43  ;;  %v625_v35 = vand.u32 4294901760, %v515_v18  ;;  %v3889_v1 = vsub.f32 %v511_v37, %v617_v14  ;;  %v520_v43 = vld [vmem:[#allocation4 + $0x188] sm:$0xff] }
  0xc5   :  { %3191 = vmatprep.subr.bf16.mxu1 %v3190_v25  ;;  %5098 = vst [vmem:[#allocation82_spill] sm:$0xff] %v3871_v10  ;;  %v3873_v25 = vsub.f32 %v507_v57, %v609_v41  ;;  %5099 = vst [vmem:[#allocation83_spill] sm:$0xff] %v3875_v47  ;;  %v621_v22 = vand.u32 4294901760, %v513_v33  ;;  %v627_v57 = vand.u32 4294901760, %v518_v6  ;;  %v517_v41 = vld [vmem:[#allocation4 + $0x170] sm:$0xff]  ;;  %v3202_v19 = vpack.c.bf16 %v3881_v23, %v3879_v7 }
  0xc6   :  { %5100 = vst [vmem:[#allocation84_spill] sm:$0xff] %v3883_v8  ;;  %v629_v54 = vand.u32 4294901760, %v517_v41  ;;  %5102 = vst [vmem:[#allocation86_spill] sm:$0xff] %v3889_v1  ;;  %v3901_v37 = vsub.f32 %v515_v18, %v625_v35  ;;  %v3915_v18 = vld [vmem:[#allocation4 + $0x1a8] sm:$0xff] }
  0xc7   :  { %v3885_v3 = vpack.c.bf16 %v621_v22, %v617_v14  ;;  %v3891_v16 = vsub.f32 %v513_v33, %v621_v22  ;;  %v3897_v59 = vsub.f32 %v518_v6, %v627_v57  ;;  %v633_v6 = vand.u32 4294901760, %v519_v53 }
  0xc8   :  { %3193 = vmatpush1.bf16.msra.mxu1 %v3192_v48  ;;  %v623_v48 = vand.u32 4294901760, %v516_v17  ;;  %5107 = vst [vmem:[#allocation91_spill] sm:$0xff] %v3901_v37  ;;  %v3903_v22 = vsub.f32 %v517_v41, %v629_v54  ;;  %v3905_v33 = vpack.c.bf16 %v629_v54, %v625_v35  ;;  %v3917_v41 = vld [vmem:[#allocation4 + $0x1b8] sm:$0xff]  ;;  %v3919_v35 = vld [vmem:[#allocation4 + $0x1a0] sm:$0xff] }
  0xc9   :  { %3195 = vmatprep.subr.bf16.mxu1 %v3194_v0  ;;  %5101 = vst [vmem:[#allocation85_spill] sm:$0xff] %v3885_v3  ;;  %v3200_v0 = vpack.c.bf16 %v3875_v47, %v3873_v25  ;;  %5103 = vst [vmem:[#allocation87_spill] sm:$0xff] %v3891_v16  ;;  %v521_v47 = vld [vmem:[#allocation4 + $0x190] sm:$0xff] }
  0xca   :  { %v3895_v30 = vsub.f32 %v516_v17, %v623_v48  ;;  %5105 = vst [vmem:[#allocation89_spill] sm:$0xff] %v3897_v59  ;;  %v3899_v45 = vpack.c.bf16 %v627_v57, %v623_v48  ;;  %5108 = vst [vmem:[#allocation92_spill] sm:$0xff] %v3903_v22  ;;  %v3204_v17 = vpack.c.bf16 %v3891_v16, %v3889_v1  ;;  %v637_v14 = vand.u32 4294901760, %v521_v47 }
  0xcb   :  { %5109 = vst [vmem:[#allocation93_spill] sm:$0xff] %v3905_v33  ;;  %v3913_v57 = vsub.f32 %v522_v2, %v635_v34  ;;  %v3931_v2 = vsub.f32 %v519_v53, %v633_v6  ;;  %v4903_v1 = vand.u32 4294901760, %v3919_v35 }
  0xcc   :  { %3197 = vmatpush1.bf16.msra.mxu1 %v3196_v9  ;;  %5104 = vst [vmem:[#allocation88_spill] sm:$0xff] %v3895_v30  ;;  %5106 = vst [vmem:[#allocation90_spill] sm:$0xff] %v3899_v45  ;;  %v631_v9 = vand.u32 4294901760, %v520_v43 }
  0xcd   :  { %3199 = vmatprep.subr.bf16.mxu1 %v3198_v27  ;;  %v3206_v27 = vpack.c.bf16 %v3897_v59, %v3895_v30  ;;  %5111 = vst [vmem:[#allocation95_spill] sm:$0xff] %v3913_v57  ;;  %v3929_v59 = vpack.c.bf16 %v637_v14, %v633_v6  ;;  %5114 = vst [vmem:[#allocation98_spill] sm:$0xff] %v3931_v2  ;;  %v3933_v30 = vsub.f32 %v521_v47, %v637_v14 }
  0xce   :  { %v3911_v48 = vsub.f32 %v520_v43, %v631_v9  ;;  %v3921_v54 = vpack.c.bf16 %v635_v34, %v631_v9  ;;  %v3208_v43 = vpack.c.bf16 %v3903_v22, %v3901_v37  ;;  %v5117_v22 = vand.u32 4294901760, %v3917_v41 }
  0xcf   :  { %5113 = vst [vmem:[#allocation97_spill] sm:$0xff] %v3929_v59  ;;  %5115 = vst [vmem:[#allocation99_spill] sm:$0xff] %v3933_v30  ;;  %v3212_v47 = vpack.c.bf16 %v3933_v30, %v3931_v2 }
  0xd0   :  { %3201 = vmatpush1.bf16.msra.mxu1 %v3200_v0  ;;  %5110 = vst [vmem:[#allocation94_spill] sm:$0xff] %v3911_v48  ;;  %5112 = vst [vmem:[#allocation96_spill] sm:$0xff] %v3921_v54  ;;  %v4902_v0 = vand.u32 4294901760, %v3915_v18  ;;  %v3210_v9 = vpack.c.bf16 %v3913_v57, %v3911_v48  ;;  %v3947_v53 = vsub.f32 %v3917_v41, %v5117_v22 }
  0xd1   :  { %3203 = vmatprep.subr.bf16.mxu1 %v3202_v19  ;;  %v3925_v19 = vld [vmem:[#allocation4 + $0x1b0] sm:$0xff] }
  0xd2   :  { %v4908_v34 = vand.u32 4294901760, %v3925_v19  ;;  %v3942_v16 = vsub.f32 %v3915_v18, %v4902_v0  ;;  %5118 = vst [vmem:[#allocation101_spill] sm:$0xff] %v3947_v53 }
  0xd4   :  { %3205 = vmatpush1.bf16.msra.mxu1 %v3204_v17  ;;  %5116 = vst [vmem:[#allocation100_spill] sm:$0xff] %v3942_v16  ;;  %v3954_v17 = vsub.f32 %v3919_v35, %v4903_v1  ;;  %v3959_v6 = vsub.f32 %v3925_v19, %v4908_v34  ;;  %v3214_v14 = vpack.c.bf16 %v3947_v53, %v3942_v16 }
  0xd5   :  { %3207 = vmatprep.subr.bf16.mxu1 %v3206_v27 }
  0xd6   :  { %5119 = vst [vmem:[#allocation102_spill] sm:$0xff] %v3954_v17  ;;  %5120 = vst [vmem:[#allocation103_spill] sm:$0xff] %v3959_v6  ;;  %v3216_v22 = vpack.c.bf16 %v3959_v6, %v3954_v17 }
  0xd8   :  { %3209 = vmatpush1.bf16.msra.mxu1 %v3208_v43 }
  0xd9   :  { %3211 = vmatprep.subr.bf16.mxu1 %v3210_v9 }
  0xdc   :  { %3213 = vmatpush1.bf16.msra.mxu1 %v3212_v47 }
  0xdd   :  { %3215 = vmatprep.subr.bf16.mxu1 %v3214_v14 }
  0xe0   :  { %3217 = vmatpush1.bf16.msra.mxu1 %v3216_v22 }
 0x107   :  { %v95_v27 = vpop.permute.xlu1 %94 }
 0x108   :  { %v97_v43 = vrot.slane %v95_v27, 4  ;;  %v93_v0 = vpop.permute.xlu0 %92 }
 0x109   :  { %v96_v1 = vrot.slane %v93_v0, 4 }
 0x10b   :  { %v99_v30 = vsel %vm98_vm6, %v96_v1, %v97_v43  ;;  %v167_v2 = vpop.permute.xlu1 %166 }
 0x10c   :  { %v101_v34 = vsel %vm100_vm5, %v93_v0, %v99_v30  ;;  %v169_v57 = vrot.slane %v167_v2, 4  ;;  %v165_v9 = vpop.permute.xlu0 %164 }
 0x10d   :  { %103 = vst [vmem:[#allocation3] sm:$0xff] %v101_v34  ;;  %v168_v48 = vrot.slane %v165_v9, 4  ;;  %v2867_v47 = vcombine.high %v101_v34, %v3707_v15  ;;  %v2866_v53 = vcombine.low %v101_v34, %v3707_v15 }
 0x10f   :  { %v170_v14 = vsel %vm98_vm6, %v168_v48, %v169_v57  ;;  %v204_v22 = vpop.permute.xlu1 %203  ;;  %430 = vmatprep.subr.bf16.mxu0 %v2867_v47 }
 0x110   :  { %v172_v27 = vsel %vm171_vm4, %v165_v9, %v170_v14  ;;  %v206_v6 = vrot.slane %v204_v22, 4  ;;  %v202_v17 = vpop.permute.xlu0 %201  ;;  %431 = vmatpush1.bf16.msra.mxu0 %v2866_v53 }
 0x111   :  { %174 = vst [vmem:[#allocation3 + $0x10] sm:$0xff] %v172_v27  ;;  %v205_v1 = vrot.slane %v202_v17, 4 }
 0x113   :  { %v207_v30 = vsel %vm98_vm6, %v205_v1, %v206_v6  ;;  %v252_v0 = vpop.permute.xlu1 %251 }
 0x114   :  { %v209_v2 = vsel %vm208_vm3, %v202_v17, %v207_v30  ;;  %v254_v43 = vrot.slane %v252_v0, 4  ;;  %v250_v16 = vpop.permute.xlu0 %249 }
 0x115   :  { %211 = vst [vmem:[#allocation3 + $0x18] sm:$0xff] %v209_v2  ;;  %v253_v15 = vrot.slane %v250_v16, 4  ;;  %v2869_v34 = vcombine.high %v172_v27, %v209_v2  ;;  %v2868_v48 = vcombine.low %v172_v27, %v209_v2 }
 0x117   :  { %v255_v57 = vsel %vm98_vm6, %v253_v15, %v254_v43  ;;  %v289_v47 = vpop.permute.xlu1 %288  ;;  %432 = vmatprep.subr.bf16.mxu0 %v2869_v34 }
 0x118   :  { %v257_v9 = vsel %vm182_vm2, %v250_v16, %v255_v57  ;;  %v291_v53 = vrot.slane %v289_v47, 4  ;;  %v287_v14 = vpop.permute.xlu0 %286  ;;  %433 = vmatpush1.bf16.msra.mxu0 %v2868_v48 }
 0x119   :  { %259 = vst [vmem:[#allocation3 + $0x28] sm:$0xff] %v257_v9  ;;  %v290_v6 = vrot.slane %v287_v14, 4  ;;  %v2871_v22 = vcombine.high %v3585_v11, %v257_v9  ;;  %v2870_v17 = vcombine.low %v3585_v11, %v257_v9  ;;  %v359_v9 = vld [vmem:[%s4790_s5] sm:$0x1] }
 0x11b   :  { %v292_v1 = vsel %vm98_vm6, %v290_v6, %v291_v53  ;;  %v351_v30 = vpop.permute.xlu1 %350  ;;  %434 = vmatprep.subr.bf16.mxu0 %v2871_v22  ;;  %v530_v53 = vld [vmem:[#allocation4 + $0x1d8] sm:$0xff]  ;;  %v527_v22 = vld [vmem:[#allocation4 + $0x1c0] sm:$0xff] }
 0x11c   :  { %v294_v27 = vsel %vm145_vm0, %v287_v14, %v292_v1  ;;  %v353_v0 = vrot.slane %v351_v30, 4  ;;  %v349_v2 = vpop.permute.xlu0 %348  ;;  %435 = vmatpush1.bf16.msra.mxu0 %v2870_v17  ;;  %v651_v6 = vand.u32 4294901760, %v530_v53  ;;  %v529_v17 = vld [vmem:[#allocation4 + $0x1d0] sm:$0xff]  ;;  %v649_v1 = vand.u32 4294901760, %v527_v22 }
 0x11d   :  { %296 = vst [vmem:[#allocation3 + $0x30] sm:$0xff] %v294_v27  ;;  %v352_v16 = vrot.slane %v349_v2, 4  ;;  %v2873_v43 = vcombine.high %v294_v27, %v3725_v58  ;;  %v2872_v15 = vcombine.low %v294_v27, %v3725_v58  ;;  %v528_v58 = vld [vmem:[#allocation4 + $0x1c8] sm:$0xff]  ;;  %v653_v30 = vand.u32 4294901760, %v529_v17 }
 0x11e   :  { %v647_v14 = vand.u32 4294901760, %v528_v58 }
 0x11f   :  { %v354_v34 = vsel %vm98_vm6, %v352_v16, %v353_v0  ;;  %436 = vmatprep.subr.bf16.mxu0 %v2873_v43  ;;  %v4017_v0 = vsub.f32 %v530_v53, %v651_v6  ;;  %v4021_v16 = vsub.f32 %v529_v17, %v653_v30  ;;  %v532_v43 = vld [vmem:[#allocation4 + $0x1e8] sm:$0xff]  ;;  %v5124_v53 = vand.u32 4294901760, %v3915_v18 }
 0x120   :  { %v356_v11 = vsel %vm73_vm1, %v349_v2, %v354_v34  ;;  %437 = vmatpush1.bf16.msra.mxu0 %v2872_v15  ;;  %v4015_v27 = vsub.f32 %v528_v58, %v647_v14  ;;  %v4019_v2 = vsub.f32 %v527_v22, %v649_v1  ;;  %v534_v15 = vld [vmem:[#allocation4 + $0x1f8] sm:$0xff]  ;;  %v5125_v22 = vand.u32 4294901760, %v3917_v41 }
 0x121   :  { %358 = vst [vmem:[#allocation3 + $0x40] sm:$0xff] %v356_v11  ;;  %v2875_v48 = vcombine.high %v356_v11, %v356_v11  ;;  %v2874_v57 = vcombine.low %v356_v11, %v356_v11  ;;  %5122 = vst [vmem:[#allocation105_spill] sm:$0xff] %v4017_v0  ;;  %v655_v11 = vand.u32 4294901760, %v532_v43 }
 0x122   :  { %5121 = vst [vmem:[#allocation104_spill] sm:$0xff] %v4015_v27  ;;  %5123 = vst [vmem:[#allocation106_spill] sm:$0xff] %v4021_v16  ;;  %v3218_v34 = vpack.c.bf16 %v4017_v0, %v4015_v27  ;;  %v4031_v17 = vpack.c.bf16 %v5125_v22, %v5124_v53  ;;  %v5126_v0 = vand.u32 4294901760, %v3919_v35  ;;  %v5127_v27 = vand.u32 4294901760, %v3925_v19 }
 0x123   :  { %2876 = vmatprep.subr.msk.bf16.mxu0 %vm98_vm6, %v2875_v48  ;;  %v425_v47 = vsel %vm98_vm6, %v2874_v57, 0  ;;  %v659_v48 = vand.u32 4294901760, %v534_v15  ;;  %v531_v57 = vld [vmem:[#allocation4 + $0x1e0] sm:$0xff]  ;;  %v4053_v35 = vpack.c.bf16 %v651_v6, %v647_v14  ;;  %v4055_v19 = vpack.c.bf16 %v653_v30, %v649_v1 }
 0x124   :  { %439 = vmatpush1.bf16.msra.mxu0 %v425_v47  ;;  %v533_v47 = vld [vmem:[#allocation4 + $0x1f0] sm:$0xff]  ;;  %v657_v58 = vand.u32 4294901760, %v531_v57  ;;  %3219 = vmatprep.subr.bf16.mxu1 %v3218_v34 }
 0x125   :  { %3035 = vmatprep.subr.bf16.mxu0 %v3741_v5  ;;  %5128 = vst [vmem:[#allocation107_spill] sm:$0xff] %v4055_v19 }
 0x127   :  { %2877 = vmatmul.mubr.msk.bf16.vlgmr.msra.gmra.mrb[0].mxu0 %vm419_vm9, %v359_v9  ;;  %v3220_v9 = vpack.c.bf16 %v4021_v16, %v4019_v2  ;;  %v4043_v16 = vsub.f32 %v531_v57, %v657_v58 }
 0x128   :  { %3037 = vmatpush1.bf16.msra.mxu0 %v3745_v13 }
 0x129   :  { %3039 = vmatprep.subr.bf16.mxu0 %v3749_v32  ;;  %3221 = vmatpush1.bf16.msra.mxu1 %v3220_v9  ;;  %v4936_v9 = vand.u32 4294901760, %v3720_v51 }
 0x12c   :  { %3041 = vmatpush1.bf16.msra.mxu0 %v3751_v24 }
 0x12d   :  { %3043 = vmatprep.subr.bf16.mxu0 %v3765_v62 }
 0x130   :  { %3045 = vmatpush1.bf16.msra.mxu0 %v3767_v63 }
 0x131   :  { %3047 = vmatprep.subr.bf16.mxu0 %v3781_v31 }
 0x134   :  { %3049 = vmatpush1.bf16.msra.mxu0 %v3783_v26 }
 0x135   :  { %3051 = vmatprep.subr.bf16.mxu0 %v3797_v46 }
 0x138   :  { %3053 = vmatpush1.bf16.msra.mxu0 %v3799_v50 }
 0x139   :  { %3055 = vmatprep.subr.bf16.mxu0 %v3811_v39 }
 0x13c   :  { %3057 = vmatpush1.bf16.msra.mxu0 %v3813_v55 }
 0x13d   :  { %3059 = vmatprep.subr.bf16.mxu0 %v3825_v49 }
 0x140   :  { %3061 = vmatpush1.bf16.msra.mxu0 %v3827_v21 }
 0x141   :  { %3063 = vmatprep.subr.bf16.mxu0 %v3835_v56 }
 0x144   :  { %3065 = vmatpush1.bf16.msra.mxu0 %v3837_v20 }
 0x145   :  { %3067 = vmatprep.subr.bf16.mxu0 %v3851_v44 }
 0x148   :  { %3069 = vmatpush1.bf16.msra.mxu0 %v3857_v29 }
 0x149   :  { %3071 = vmatprep.subr.bf16.mxu0 %v3867_v40 }
 0x14c   :  { %3073 = vmatpush1.bf16.msra.mxu0 %v3871_v10 }
 0x14d   :  { %3075 = vmatprep.subr.bf16.mxu0 %v3883_v8 }
 0x150   :  { %3077 = vmatpush1.bf16.msra.mxu0 %v3885_v3 }
 0x151   :  { %3079 = vmatprep.subr.bf16.mxu0 %v3899_v45  ;;  %v4041_v45 = vpack.c.bf16 %v5127_v27, %v5126_v0  ;;  %v682_v27 = vand.u32 4294901760, %v3712_v38  ;;  %v694_v0 = vand.u32 4294901760, %v3714_v42 }
 0x153   :  { %v695_v14 = vsub.f32 %v3714_v42, %v694_v0  ;;  %v4938_v42 = vand.u32 4294901760, %v3731_v61 }
 0x154   :  { %3081 = vmatpush1.bf16.msra.mxu0 %v3905_v33  ;;  %v4035_v33 = vsub.f32 %v534_v15, %v659_v48  ;;  %v683_v15 = vsub.f32 %v3712_v38, %v682_v27  ;;  %v4937_v38 = vand.u32 4294901760, %v3729_v60 }
 0x155   :  { %3083 = vmatprep.subr.bf16.mxu0 %v3921_v54  ;;  %v4033_v54 = vsub.f32 %v532_v43, %v655_v11  ;;  %v4062_v43 = vpack.c.bf16 %v659_v48, %v655_v11  ;;  %v696_v30 = vand.u32 4294901760, %v695_v14  ;;  %v4935_v11 = vand.u32 4294901760, %v3722_v52  ;;  %v372_v48 = vpop.permute.xlu0 %371 }
 0x156   :  { %v684_v1 = vand.u32 4294901760, %v683_v15  ;;  %v4946_v15 = vand.u32 4294901760, %v3743_v12 }
 0x157   :  { %v3222_v18 = vpack.c.bf16 %v4035_v33, %v4033_v54  ;;  %5129 = vst [vmem:[#allocation108_spill] sm:$0xff] %v4062_v43  ;;  %v701_v53 = vsub.f32 %v3722_v52, %v4935_v11 }
 0x158   :  { %3085 = vmatpush1.bf16.msra.mxu0 %v3929_v59  ;;  %v661_v59 = vand.u32 4294901760, %v533_v47  ;;  %v3098_v57 = vpack.c.bf16 %v696_v30, %v684_v1  ;;  %v707_v30 = vsub.f32 %v3729_v60, %v4937_v38  ;;  %v5136_v60 = vand.u32 4294901760, %v3747_v28 }
 0x159   :  { %3087 = vmatprep.subr.bf16.mxu0 %v4031_v17  ;;  %3223 = vmatprep.subr.bf16.mxu1 %v3222_v18 }
 0x15a   :  { %v4045_v34 = vsub.f32 %v533_v47, %v661_v59  ;;  %v4066_v6 = vpack.c.bf16 %v661_v59, %v657_v58  ;;  %v4070_v47 = vpack.c.bf16 %v694_v0, %v682_v27  ;;  %v689_v58 = vsub.f32 %v3720_v51, %v4936_v9 }
 0x15c   :  { %3089 = vmatpush1.bf16.msra.mxu0 %v4041_v45  ;;  %v3224_v41 = vpack.c.bf16 %v4045_v34, %v4043_v16  ;;  %5130 = vst [vmem:[#allocation109_spill] sm:$0xff] %v4066_v6  ;;  %5131 = vst [vmem:[#allocation110_spill] sm:$0xff] %v4070_v47  ;;  %v690_v9 = vand.u32 4294901760, %v689_v58 }
 0x15d   :  { %3091 = vmatprep.subr.bf16.mxu0 %v4053_v35 }
 0x15e   :  { %3225 = vmatpush1.bf16.msra.mxu1 %v3224_v41  ;;  %v4944_v41 = vand.u32 4294901760, %v3739_v4 }
 0x15f   :  { %3227 = vmatprep.subr.bf16.mxu1 %v3741_v5  ;;  %v5138_v5 = vld [vmem:[#allocation41_spill] sm:$0xff] }
 0x160   :  { %3093 = vmatpush1.bf16.msra.mxu0 %v4055_v19 }
 0x161   :  { %3095 = vmatprep.subr.bf16.mxu0 %v4062_v43 }
 0x164   :  { %3097 = vmatpush1.bf16.msra.mxu0 %v4066_v6 }
 0x165   :  { %3099 = vmatprep.subr.bf16.mxu0 %v3098_v57  ;;  %v719_v57 = vsub.f32 %v3731_v61, %v4938_v42  ;;  %v725_v42 = vsub.f32 %v3743_v12, %v4946_v15  ;;  %v5135_v61 = vld [vmem:[#allocation40_spill] sm:$0xff]  ;;  %v5137_v15 = vand.u32 4294901760, %v3755_v36 }
 0x166   :  { %v5141_v47 = vand.u32 4294901760, %v5135_v61 }
 0x167   :  { %v743_v58 = vsub.f32 %v3755_v36, %v5137_v15  ;;  %v726_v36 = vand.u32 4294901760, %v725_v42 }
 0x1fa   :  { %v464_v59 = vpop.f32.mrb[0].mxu0 }
 0x1fb   :  { %v465_v22 = vadd.f32 %v464_v59, %v372_v48  ;;  %v466_v18 = vpop.f32.mrb[1].mxu0  ;;  %v5134_v59 = vld [vmem:[#allocation39_spill] sm:$0xff] }
 0x1fc   :  { %v467_v27 = vadd.f32 %v466_v18, %v372_v48  ;;  %v468_v0 = vpop.f32.mrb[2].mxu0  ;;  %v702_v48 = vand.u32 4294901760, %v701_v53 }
 0x1fd   :  { %v4084_v14 = vand.u32 4294901760, %v465_v22  ;;  %v469_v1 = vpop.f32.mrb[3].mxu0  ;;  %v713_v0 = vsub.f32 %v3739_v4, %v4944_v41  ;;  %v731_v41 = vsub.f32 %v3747_v28, %v5136_v60 }
 0x1fe   :  { %v4093_v11 = vand.u32 4294901760, %v467_v27  ;;  %v3100_v4 = vpack.c.bf16 %v702_v48, %v690_v9  ;;  %v5140_v9 = vand.u32 4294901760, %v5134_v59 }
 0x1ff   :  { %5132 = vst [vmem:[#allocation111_spill] sm:$0xff] %v4084_v14  ;;  %v4096_v18 = vsub.f32 %v465_v22, %v4084_v14  ;;  %v708_v22 = vand.u32 4294901760, %v707_v30  ;;  %v720_v14 = vand.u32 4294901760, %v719_v57  ;;  %v5139_v57 = vld [vmem:[#allocation44_spill] sm:$0xff]  ;;  %v714_v28 = vand.u32 4294901760, %v713_v0 }
 0x200   :  { %v664_v38 = vsub.f32 %v467_v27, %v4093_v11  ;;  %v737_v48 = vsub.f32 %v5134_v59, %v5140_v9  ;;  %v732_v30 = vand.u32 4294901760, %v731_v41  ;;  %v744_v9 = vand.u32 4294901760, %v743_v58  ;;  %v5149_v0 = vld [vmem:[#allocation52_spill] sm:$0xff] }
 0x201   :  { %5133 = vst [vmem:[#allocation112_spill] sm:$0xff] %v4096_v18  ;;  %v4949_v53 = vand.u32 4294901760, %v4096_v18  ;;  %v3102_v15 = vpack.c.bf16 %v720_v14, %v708_v22  ;;  %v5146_v59 = vand.u32 4294901760, %v5138_v5  ;;  %v5148_v22 = vld [vmem:[#allocation51_spill] sm:$0xff]  ;;  %v3104_v58 = vpack.c.bf16 %v726_v36, %v714_v28 }
 0x202   :  { %1267 = vmatprep.mubr.f32.mxu1 %v664_v38  ;;  %v665_v1 = vand.u32 4294901760, %v664_v38  ;;  %v738_v41 = vand.u32 4294901760, %v737_v48 }
 0x203   :  { %1270 = vmatmul.mubr.f32.vlgmr.msra.gmra.mrb[0].mxu1 %v4096_v18  ;;  %v672_v27 = vsub.f32 %v4096_v18, %v4949_v53  ;;  %v749_v53 = vsub.f32 %v5135_v61, %v5141_v47  ;;  %v5142_v18 = vld [vmem:[#allocation45_spill] sm:$0xff]  ;;  %v755_v47 = vsub.f32 %v5138_v5, %v5146_v59 }
 0x204   :  { %3229 = vmatpush1.bf16.msra.mxu1 %v3745_v13  ;;  %1407 = vmatprep.mubr.f32.mxu1 %v665_v1  ;;  %v666_v60 = vsub.f32 %v664_v38, %v665_v1  ;;  %v4962_v12 = vand.u32 4294901760, %v5142_v18  ;;  %v5143_v13 = vld [vmem:[#allocation46_spill] sm:$0xff]  ;;  %v5144_v38 = vld [vmem:[#allocation49_spill] sm:$0xff] }
 0x205   :  { %3231 = vmatprep.subr.bf16.mxu1 %v3749_v32  ;;  %v5145_v1 = vld [vmem:[#allocation50_spill] sm:$0xff]  ;;  %v673_v43 = vand.u32 4294901760, %v672_v27  ;;  %v5147_v32 = vand.u32 4294901760, %v5139_v57  ;;  %v750_v14 = vand.u32 4294901760, %v749_v53  ;;  %v5150_v27 = vld [vmem:[#allocation55_spill] sm:$0xff]  ;;  %v756_v6 = vand.u32 4294901760, %v755_v47 }
 0x206   :  { %v667_v52 = vand.u32 4294901760, %v666_v60  ;;  %v4964_v60 = vand.u32 4294901760, %v5148_v22  ;;  %v761_v59 = vsub.f32 %v5142_v18, %v4962_v12  ;;  %v5154_v28 = vand.u32 4294901760, %v5145_v1  ;;  %v5158_v47 = vld [vmem:[#allocation57_spill] sm:$0xff] }
 0x207   :  { %v767_v42 = vsub.f32 %v5139_v57, %v5147_v32  ;;  %v5151_v32 = vld [vmem:[#allocation56_spill] sm:$0xff]  ;;  %v3106_v12 = vpack.c.bf16 %v744_v9, %v732_v30 }
 0x208   :  { %3233 = vmatpush1.bf16.msra.mxu1 %v3751_v24  ;;  %668 = vmatprep.mubr.f32.mxu0 %v667_v52  ;;  %v5152_v52 = vand.u32 4294901760, %v5143_v13  ;;  %v791_v36 = vsub.f32 %v5145_v1, %v5154_v28  ;;  %v785_v57 = vsub.f32 %v5148_v22, %v4964_v60  ;;  %v5157_v30 = vand.u32 4294901760, %v5151_v32  ;;  %v5161_v22 = vld [vmem:[#allocation62_spill] sm:$0xff] }
 0x209   :  { %674 = vmatmul.mubr.f32.vlgmr.msra.gmra.mrb[4].mxu0 %v673_v43  ;;  %3235 = vmatprep.subr.bf16.mxu1 %v3765_v62  ;;  %v5153_v43 = vand.u32 4294901760, %v5144_v38  ;;  %v768_v51 = vand.u32 4294901760, %v767_v42  ;;  %v762_v28 = vand.u32 4294901760, %v761_v59  ;;  %v4974_v1 = vand.u32 4294901760, %v5161_v22  ;;  %v5163_v42 = vld [vmem:[#allocation64_spill] sm:$0xff] }
 0x20a   :  { %3101 = vmatpush1.bf16.msra.mxu0 %v3100_v4  ;;  %1065 = vmatprep.mubr.f32.mxu0 %v4093_v11  ;;  %v773_v53 = vsub.f32 %v5143_v13, %v5152_v52  ;;  %v3108_v4 = vpack.c.bf16 %v750_v14, %v738_v41  ;;  %v5155_v52 = vand.u32 4294901760, %v5149_v0  ;;  %v815_v9 = vsub.f32 %v5151_v32, %v5157_v30  ;;  %v5159_v41 = vld [vmem:[#allocation58_spill] sm:$0xff]  ;;  %v5162_v30 = vld [vmem:[#allocation63_spill] sm:$0xff] }
 0x20b   :  { %v779_v48 = vsub.f32 %v5144_v38, %v5153_v43  ;;  %3103 = vmatprep.subr.bf16.mxu0 %v3102_v15  ;;  %v5156_v43 = vand.u32 4294901760, %v5150_v27  ;;  %v4976_v14 = vand.u32 4294901760, %v5159_v41  ;;  %v792_v24 = vand.u32 4294901760, %v791_v36  ;;  %v5165_v36 = vld [vmem:[#allocation67_spill] sm:$0xff] }
 0x20c   :  { %3237 = vmatpush1.bf16.msra.mxu1 %v3767_v63  ;;  %v797_v62 = vsub.f32 %v5149_v0, %v5155_v52  ;;  %v774_v60 = vand.u32 4294901760, %v773_v53  ;;  %v3110_v52 = vpack.c.bf16 %v768_v51, %v756_v6  ;;  %v4980_v32 = vand.u32 4294901760, %v5162_v30 }
 0x20d   :  { %3239 = vmatprep.subr.bf16.mxu1 %v3781_v31  ;;  %v803_v15 = vsub.f32 %v5150_v27, %v5156_v43  ;;  %v780_v63 = vand.u32 4294901760, %v779_v48  ;;  %v5160_v31 = vld [vmem:[#allocation61_spill] sm:$0xff]  ;;  %v786_v43 = vand.u32 4294901760, %v785_v57  ;;  %v4982_v38 = vand.u32 4294901760, %v5163_v42 }
 0x20e   :  { %3105 = vmatpush1.bf16.msra.mxu0 %v3104_v58  ;;  %v4975_v0 = vand.u32 4294901760, %v5160_v31  ;;  %v798_v27 = vand.u32 4294901760, %v797_v62  ;;  %v816_v59 = vand.u32 4294901760, %v815_v9  ;;  %v5164_v53 = vand.u32 4294901760, %v5158_v47  ;;  %v5166_v9 = vld [vmem:[#allocation68_spill] sm:$0xff] }
 0x20f   :  { %3107 = vmatprep.subr.bf16.mxu0 %v3106_v12  ;;  %v804_v58 = vand.u32 4294901760, %v803_v15  ;;  %v821_v12 = vsub.f32 %v5159_v41, %v4976_v14  ;;  %v3112_v6 = vpack.c.bf16 %v774_v60, %v762_v28  ;;  %v3114_v57 = vpack.c.bf16 %v792_v24, %v780_v63  ;;  %v5168_v14 = vld [vmem:[#allocation72_spill] sm:$0xff]  ;;  %v5169_v15 = vld [vmem:[#allocation73_spill] sm:$0xff] }
 0x210   :  { %3241 = vmatpush1.bf16.msra.mxu1 %v3783_v26  ;;  %v809_v51 = vsub.f32 %v5158_v47, %v5164_v53  ;;  %v827_v62 = vsub.f32 %v5160_v31, %v4975_v0  ;;  %v839_v48 = vsub.f32 %v5161_v22, %v4974_v1  ;;  %v833_v60 = vsub.f32 %v5162_v30, %v4980_v32  ;;  %v5167_v1 = vld [vmem:[#allocation71_spill] sm:$0xff]  ;;  %v5176_v26 = vld [vmem:[#allocation80_spill] sm:$0xff] }
 0x211   :  { %3243 = vmatprep.subr.bf16.mxu1 %v3797_v46  ;;  %v845_v24 = vsub.f32 %v5163_v42, %v4982_v38  ;;  %v3116_v63 = vpack.c.bf16 %v798_v27, %v786_v43  ;;  %v4984_v0 = vand.u32 4294901760, %v5167_v1  ;;  %v5170_v46 = vld [vmem:[#allocation74_spill] sm:$0xff]  ;;  %v5171_v38 = vand.u32 4294901760, %v5165_v36 }
 0x212   :  { %3109 = vmatpush1.bf16.msra.mxu0 %v3108_v4  ;;  %v3118_v4 = vpack.c.bf16 %v816_v59, %v804_v58  ;;  %v810_v28 = vand.u32 4294901760, %v809_v51  ;;  %v828_v32 = vand.u32 4294901760, %v827_v62  ;;  %v840_v30 = vand.u32 4294901760, %v839_v48  ;;  %v5173_v51 = vld [vmem:[#allocation76_spill] sm:$0xff]  ;;  %v5175_v62 = vld [vmem:[#allocation79_spill] sm:$0xff] }
 0x213   :  { %3111 = vmatprep.subr.bf16.mxu0 %v3110_v52  ;;  %v822_v52 = vand.u32 4294901760, %v821_v12  ;;  %v5172_v27 = vand.u32 4294901760, %v5166_v9  ;;  %v834_v58 = vand.u32 4294901760, %v833_v60  ;;  %v846_v59 = vand.u32 4294901760, %v845_v24 }
 0x214   :  { %3245 = vmatpush1.bf16.msra.mxu1 %v3799_v50  ;;  %v5178_v24 = vand.u32 4294901760, %v5169_v15  ;;  %v5179_v12 = vand.u32 4294901760, %v5170_v46 }
 0x215   :  { %3247 = vmatprep.subr.bf16.mxu1 %v3811_v39  ;;  %v851_v39 = vsub.f32 %v5165_v36, %v5171_v38  ;;  %v863_v43 = vsub.f32 %v5166_v9, %v5172_v27  ;;  %v857_v38 = vsub.f32 %v5167_v1, %v4984_v0  ;;  %v5177_v27 = vand.u32 4294901760, %v5168_v14 }
 0x216   :  { %3113 = vmatpush1.bf16.msra.mxu0 %v3112_v6  ;;  %v5174_v6 = vld [vmem:[#allocation77_spill] sm:$0xff]  ;;  %v875_v50 = vsub.f32 %v5169_v15, %v5178_v24  ;;  %v3124_v48 = vpack.c.bf16 %v846_v59, %v834_v58  ;;  %v5180_v0 = vand.u32 4294901760, %v5173_v51  ;;  %v5182_v24 = vand.u32 4294901760, %v5175_v62 }
 0x217   :  { %3115 = vmatprep.subr.bf16.mxu0 %v3114_v57  ;;  %v3120_v57 = vpack.c.bf16 %v822_v52, %v810_v28  ;;  %v869_v60 = vsub.f32 %v5168_v14, %v5177_v27  ;;  %v887_v28 = vsub.f32 %v5170_v46, %v5179_v12  ;;  %v3122_v52 = vpack.c.bf16 %v840_v30, %v828_v32  ;;  %v5186_v30 = vld [vmem:[#allocation87_spill] sm:$0xff] }
 0x218   :  { %3249 = vmatpush1.bf16.msra.mxu1 %v3813_v55  ;;  %v852_v53 = vand.u32 4294901760, %v851_v39  ;;  %v5181_v27 = vand.u32 4294901760, %v5174_v6  ;;  %v5183_v39 = vand.u32 4294901760, %v5176_v26  ;;  %v876_v12 = vand.u32 4294901760, %v875_v50 }
 0x219   :  { %3251 = vmatprep.subr.bf16.mxu1 %v3825_v49  ;;  %v881_v49 = vsub.f32 %v5173_v51, %v5180_v0  ;;  %v858_v0 = vand.u32 4294901760, %v857_v38  ;;  %v870_v59 = vand.u32 4294901760, %v869_v60  ;;  %v5000_v51 = vand.u32 4294901760, %v5186_v30 }
 0x21a   :  { %3117 = vmatpush1.bf16.msra.mxu0 %v3116_v63  ;;  %v864_v63 = vand.u32 4294901760, %v863_v43  ;;  %v893_v55 = vsub.f32 %v5174_v6, %v5181_v27  ;;  %v911_v32 = vsub.f32 %v5176_v26, %v5183_v39  ;;  %v5184_v43 = vld [vmem:[#allocation83_spill] sm:$0xff]  ;;  %v4993_v6 = vand.u32 4294901760, %v3881_v23  ;;  %v5185_v39 = vld [vmem:[#allocation86_spill] sm:$0xff] }
 0x21b   :  { %3119 = vmatprep.subr.bf16.mxu0 %v3118_v4  ;;  %v899_v4 = vsub.f32 %v5175_v62, %v5182_v24  ;;  %v4995_v58 = vand.u32 4294901760, %v5184_v43  ;;  %v882_v24 = vand.u32 4294901760, %v881_v49  ;;  %v4998_v26 = vand.u32 4294901760, %v5185_v39 }
 0x21c   :  { %3253 = vmatpush1.bf16.msra.mxu1 %v3827_v21  ;;  %v888_v21 = vand.u32 4294901760, %v887_v28  ;;  %v3126_v27 = vpack.c.bf16 %v864_v63, %v852_v53  ;;  %v894_v62 = vand.u32 4294901760, %v893_v55  ;;  %v912_v38 = vand.u32 4294901760, %v911_v32  ;;  %v5188_v63 = vld [vmem:[#allocation88_spill] sm:$0xff]  ;;  %v5189_v32 = vld [vmem:[#allocation89_spill] sm:$0xff] }
 0x21d   :  { %3255 = vmatprep.subr.bf16.mxu1 %v3835_v56  ;;  %v4994_v56 = vand.u32 4294901760, %v3879_v7  ;;  %v5187_v50 = vand.u32 4294901760, %v3873_v25  ;;  %v917_v60 = vsub.f32 %v5184_v43, %v4995_v58  ;;  %v3128_v28 = vpack.c.bf16 %v870_v59, %v858_v0 }
 0x21e   :  { %3121 = vmatpush1.bf16.msra.mxu0 %v3120_v57  ;;  %v900_v57 = vand.u32 4294901760, %v899_v4  ;;  %v3130_v49 = vpack.c.bf16 %v888_v21, %v876_v12  ;;  %v941_v21 = vsub.f32 %v5186_v30, %v5000_v51  ;;  %v3132_v0 = vpack.c.bf16 %v894_v62, %v882_v24 }
 0x21f   :  { %3123 = vmatprep.subr.bf16.mxu0 %v3122_v52  ;;  %v905_v53 = vsub.f32 %v3873_v25, %v5187_v50  ;;  %v923_v55 = vsub.f32 %v3879_v7, %v4994_v56  ;;  %v935_v52 = vsub.f32 %v3881_v23, %v4993_v6  ;;  %v5002_v6 = vand.u32 4294901760, %v3901_v37  ;;  %v5190_v56 = vld [vmem:[#allocation92_spill] sm:$0xff]  ;;  %v5191_v50 = vld [vmem:[#allocation94_spill] sm:$0xff] }
 0x220   :  { %3257 = vmatpush1.bf16.msra.mxu1 %v3837_v20  ;;  %v3134_v59 = vpack.c.bf16 %v912_v38, %v900_v57  ;;  %v5193_v51 = vand.u32 4294901760, %v5188_v63  ;;  %v5194_v62 = vand.u32 4294901760, %v5189_v32  ;;  %v942_v38 = vand.u32 4294901760, %v941_v21 }
 0x221   :  { %3259 = vmatprep.subr.bf16.mxu1 %v3851_v44  ;;  %v906_v12 = vand.u32 4294901760, %v905_v53  ;;  %v936_v20 = vand.u32 4294901760, %v935_v52  ;;  %v5195_v53 = vld [vmem:[#allocation98_spill] sm:$0xff]  ;;  %v5198_v44 = vld [vmem:[#allocation101_spill] sm:$0xff]  ;;  %v5200_v21 = vand.u32 4294901760, %v5191_v50 }
 0x222   :  { %3125 = vmatpush1.bf16.msra.mxu0 %v3124_v48  ;;  %v929_v48 = vsub.f32 %v5185_v39, %v4998_v26  ;;  %v924_v26 = vand.u32 4294901760, %v923_v55  ;;  %v959_v24 = vsub.f32 %v5189_v32, %v5194_v62  ;;  %v5197_v55 = vld [vmem:[#allocation100_spill] sm:$0xff]  ;;  %v5199_v62 = vand.u32 4294901760, %v5190_v56 }
 0x223   :  { %3127 = vmatprep.subr.bf16.mxu0 %v3126_v27  ;;  %v918_v27 = vand.u32 4294901760, %v917_v60  ;;  %v971_v4 = vsub.f32 %v5191_v50, %v5200_v21  ;;  %v5204_v21 = vld [vmem:[#allocation90_spill] sm:$0xff]  ;;  %v5205_v50 = vand.u32 4294901760, %v5197_v55 }
 0x224   :  { %3261 = vmatpush1.bf16.msra.mxu1 %v3857_v29  ;;  %v5192_v29 = vld [vmem:[#allocation95_spill] sm:$0xff]  ;;  %v930_v57 = vand.u32 4294901760, %v929_v48  ;;  %v965_v48 = vsub.f32 %v5190_v56, %v5199_v62 }
 0x225   :  { %3263 = vmatprep.subr.bf16.mxu1 %v3867_v40  ;;  %v947_v40 = vsub.f32 %v5188_v63, %v5193_v51  ;;  %v953_v51 = vsub.f32 %v3901_v37, %v5002_v6  ;;  %v5201_v60 = vand.u32 4294901760, %v5192_v29  ;;  %v5202_v6 = vand.u32 4294901760, %v5195_v53 }
 0x226   :  { %3129 = vmatpush1.bf16.msra.mxu0 %v3128_v28  ;;  %v5196_v28 = vld [vmem:[#allocation99_spill] sm:$0xff]  ;;  %v3140_v52 = vpack.c.bf16 %v942_v38, %v930_v57 }
 0x227   :  { %3131 = vmatprep.subr.bf16.mxu0 %v3130_v49  ;;  %v3136_v49 = vpack.c.bf16 %v918_v27, %v906_v12  ;;  %v983_v12 = vsub.f32 %v5192_v29, %v5201_v60  ;;  %v3138_v27 = vpack.c.bf16 %v936_v20, %v924_v26  ;;  %v948_v58 = vand.u32 4294901760, %v947_v40  ;;  %v5207_v20 = vld [vmem:[#allocation102_spill] sm:$0xff]  ;;  %v5208_v57 = vld [vmem:[#allocation103_spill] sm:$0xff]  ;;  %v5210_v29 = vld [vmem:[#allocation105_spill] sm:$0xff] }
 0x228   :  { %3265 = vmatpush1.bf16.msra.mxu1 %v3871_v10  ;;  %v5203_v62 = vand.u32 4294901760, %v5196_v28  ;;  %v5206_v26 = vand.u32 4294901760, %v5198_v44  ;;  %v5016_v38 = vand.u32 4294901760, %v5208_v57  ;;  %v966_v60 = vand.u32 4294901760, %v965_v48 }
 0x229   :  { %3267 = vmatprep.subr.bf16.mxu1 %v3883_v8  ;;  %v977_v8 = vsub.f32 %v5195_v53, %v5202_v6  ;;  %v954_v6 = vand.u32 4294901760, %v953_v51  ;;  %v984_v53 = vand.u32 4294901760, %v983_v12  ;;  %v5014_v56 = vand.u32 4294901760, %v5210_v29 }
 0x22a   :  { %3133 = vmatpush1.bf16.msra.mxu0 %v3132_v0  ;;  %v960_v0 = vand.u32 4294901760, %v959_v24  ;;  %v989_v10 = vsub.f32 %v5196_v28, %v5203_v62  ;;  %v1007_v40 = vsub.f32 %v5198_v44, %v5206_v26  ;;  %v5212_v26 = vld [vmem:[#allocation96_spill] sm:$0xff]  ;;  %v5020_v12 = vand.u32 4294901760, %v4019_v2 }
 0x22b   :  { %3135 = vmatprep.subr.bf16.mxu0 %v3134_v59  ;;  %v995_v59 = vsub.f32 %v5197_v55, %v5205_v50  ;;  %v5211_v50 = vld [vmem:[#allocation93_spill] sm:$0xff]  ;;  %v978_v55 = vand.u32 4294901760, %v977_v8 }
 0x22c   :  { %3269 = vmatpush1.bf16.msra.mxu1 %v3885_v3  ;;  %v972_v3 = vand.u32 4294901760, %v971_v4  ;;  %v3142_v62 = vpack.c.bf16 %v960_v0, %v948_v58  ;;  %v990_v37 = vand.u32 4294901760, %v989_v10  ;;  %v1008_v44 = vand.u32 4294901760, %v1007_v40 }
 0x22d   :  { %3271 = vmatprep.subr.bf16.mxu1 %v5204_v21  ;;  %v5209_v21 = vld [vmem:[#allocation104_spill] sm:$0xff]  ;;  %v996_v24 = vand.u32 4294901760, %v995_v59  ;;  %v1013_v58 = vsub.f32 %v5208_v57, %v5016_v38  ;;  %v3144_v4 = vpack.c.bf16 %v966_v60, %v954_v6  ;;  %v1031_v0 = vsub.f32 %v5210_v29, %v5014_v56 }
 0x22e   :  { %3137 = vmatpush1.bf16.msra.mxu0 %v3136_v49  ;;  %v5015_v28 = vand.u32 4294901760, %v5209_v21  ;;  %v5213_v49 = vand.u32 4294901760, %v5207_v20  ;;  %v3146_v48 = vpack.c.bf16 %v984_v53, %v972_v3  ;;  %v5017_v59 = vand.u32 4294901760, %v4033_v54 }
 0x22f   :  { %3139 = vmatprep.subr.bf16.mxu0 %v3138_v27  ;;  %v5214_v27 = vld [vmem:[#allocation106_spill] sm:$0xff]  ;;  %v3148_v3 = vpack.c.bf16 %v990_v37, %v978_v55  ;;  %v3150_v53 = vpack.c.bf16 %v1008_v44, %v996_v24  ;;  %v1014_v60 = vand.u32 4294901760, %v1013_v58  ;;  %v5018_v56 = vand.u32 4294901760, %v4043_v16 }
 0x230   :  { %3273 = vmatpush1.bf16.msra.mxu1 %v5211_v50  ;;  %v1001_v51 = vsub.f32 %v5207_v20, %v5213_v49  ;;  %v5019_v8 = vand.u32 4294901760, %v5214_v27  ;;  %v1019_v10 = vsub.f32 %v5209_v21, %v5015_v28  ;;  %v5021_v28 = vand.u32 4294901760, %v4045_v34 }
 0x231   :  { %3275 = vmatprep.subr.bf16.mxu1 %v5212_v26  ;;  %v1032_v40 = vand.u32 4294901760, %v1031_v0  ;;  %v1043_v44 = vsub.f32 %v4033_v54, %v5017_v59  ;;  %v5216_v37 = vand.u32 4294901760, %v4035_v33  ;;  %v5217_v59 = vld [vmem:[#allocation108_spill] sm:$0xff] }
 0x232   :  { %3141 = vmatpush1.bf16.msra.mxu0 %v3140_v52  ;;  %v5215_v52 = vld [vmem:[#allocation97_spill] sm:$0xff]  ;;  %v1002_v6 = vand.u32 4294901760, %v1001_v51  ;;  %v1037_v49 = vsub.f32 %v5214_v27, %v5019_v8  ;;  %v1020_v38 = vand.u32 4294901760, %v1019_v10 }
 0x233   :  { %3143 = vmatprep.subr.bf16.mxu0 %v3142_v62  ;;  %v1025_v62 = vsub.f32 %v4019_v2, %v5020_v12  ;;  %v1055_v55 = vsub.f32 %v4035_v33, %v5216_v37  ;;  %v1044_v0 = vand.u32 4294901760, %v1043_v44  ;;  %v5221_v12 = vld [vmem:[#allocation28_spill] sm:$0xff] }
 0x234   :  { %3277 = vmatpush1.bf16.msra.mxu1 %v5215_v52  ;;  %v3152_v24 = vpack.c.bf16 %v1014_v60, %v1002_v6  ;;  %v1038_v58 = vand.u32 4294901760, %v1037_v49  ;;  %v3154_v10 = vpack.c.bf16 %v1032_v40, %v1020_v38  ;;  %v5218_v49 = vld [vmem:[#allocation109_spill] sm:$0xff]  ;;  %v5223_v38 = vld [vmem:[#allocation110_spill] sm:$0xff] }
 0x235   :  { %3279 = vmatprep.subr.bf16.mxu1 %v4031_v17  ;;  %v1026_v51 = vand.u32 4294901760, %v1025_v62  ;;  %v1056_v37 = vand.u32 4294901760, %v1055_v55  ;;  %v5224_v40 = vld [vmem:[#allocation29_spill] sm:$0xff]  ;;  %v5226_v55 = vld [vmem:[#allocation30_spill] sm:$0xff] }
 0x236   :  { %3145 = vmatpush1.bf16.msra.mxu0 %v3144_v4  ;;  %v1049_v4 = vsub.f32 %v4043_v16, %v5018_v56  ;;  %v5219_v56 = vld [vmem:[#allocation27_spill] sm:$0xff]  ;;  %v5225_v44 = vand.u32 4294901760, %v5224_v40  ;;  %v5243_v40 = vld [vmem:[#allocation44_spill] sm:$0xff] }
 0x237   :  { %3147 = vmatprep.subr.bf16.mxu0 %v3146_v48  ;;  %v1061_v48 = vsub.f32 %v4045_v34, %v5021_v28  ;;  %v3158_v62 = vpack.c.bf16 %v1056_v37, %v1044_v0  ;;  %v5220_v8 = vand.u32 4294901760, %v5219_v56  ;;  %v5222_v28 = vand.u32 4294901760, %v5221_v12  ;;  %v5230_v56 = vld [vmem:[#allocation31_spill] sm:$0xff]  ;;  %v5232_v12 = vld [vmem:[#allocation33_spill] sm:$0xff]  ;;  %v5236_v0 = vld [vmem:[#allocation38_spill] sm:$0xff] }
 0x238   :  { %3281 = vmatpush1.bf16.msra.mxu1 %v4041_v45  ;;  %v1050_v6 = vand.u32 4294901760, %v1049_v4  ;;  %v5231_v4 = vand.u32 4294901760, %v5230_v56  ;;  %v5237_v37 = vand.u32 4294901760, %v5236_v0  ;;  %v5248_v56 = vld [vmem:[#allocation49_spill] sm:$0xff] }
 0x239   :  { %3283 = vmatprep.subr.bf16.mxu1 %v4053_v35  ;;  %v1062_v60 = vand.u32 4294901760, %v1061_v48  ;;  %v5234_v48 = vld [vmem:[#allocation35_spill] sm:$0xff] }
 0x23a   :  { %3149 = vmatpush1.bf16.msra.mxu0 %v3148_v3  ;;  %v3156_v3 = vpack.c.bf16 %v1038_v58, %v1026_v51  ;;  %v5228_v51 = vld [vmem:[#allocation112_spill] sm:$0xff] }
 0x23b   :  { %3151 = vmatprep.subr.bf16.mxu0 %v3150_v53  ;;  %v3292_v53 = vpack.c.bf16 %v5222_v28, %v5220_v8  ;;  %v5229_v58 = vand.u32 4294901760, %v5228_v51  ;;  %v5233_v28 = vand.u32 4294901760, %v5232_v12  ;;  %v5246_v51 = vand.u32 4294901760, %v5142_v18 }
 0x23c   :  { %3285 = vmatpush1.bf16.msra.mxu1 %v4055_v19  ;;  %v5227_v19 = vand.u32 4294901760, %v5226_v55  ;;  %v5245_v55 = vmov 0  }
 0x23d   :  { %3287 = vmatprep.subr.bf16.mxu1 %v5217_v59  ;;  %v3296_v8 = vpack.c.bf16 %v5233_v28, %v5231_v4  ;;  %v5250_v4 = vld [vmem:[#allocation50_spill] sm:$0xff] }
 0x23e   :  { %3153 = vmatpush1.bf16.msra.mxu0 %v3152_v24  ;;  %v3294_v59 = vpack.c.bf16 %v5227_v19, %v5225_v44  ;;  %v3160_v24 = vpack.c.bf16 %v1062_v60, %v1050_v6  ;;  %v5240_v60 = vand.u32 4294901760, %v5135_v61  ;;  %v5244_v44 = vand.u32 4294901760, %v5243_v40 }
 0x23f   :  { %3155 = vmatprep.subr.bf16.mxu0 %v3154_v10  ;;  %v5235_v10 = vand.u32 4294901760, %v5234_v48  ;;  %v5249_v61 = vand.u32 4294901760, %v5248_v56  ;;  %v5251_v12 = vand.u32 4294901760, %v5250_v4  ;;  %v5254_v48 = vld [vmem:[#allocation52_spill] sm:$0xff]  ;;  %v5263_v40 = vand.u32 4294901760, %v5161_v22 }
 0x240   :  { %3289 = vmatpush1.bf16.msra.mxu1 %v5218_v49  ;;  %v5267_v56 = vand.u32 4294901760, %v5165_v36  ;;  %v5271_v22 = vand.u32 4294901760, %v5169_v15  ;;  %v5282_v15 = vand.u32 4294901760, %v5184_v43  ;;  %v5289_v43 = vld [vmem:[#allocation91_spill] sm:$0xff] }
 0x241   :  { %3291 = vmatprep.subr.bf16.mxu1 %v5223_v38  ;;  %v3298_v19 = vpack.c.bf16 %v5237_v37, %v5235_v10  ;;  %v5242_v38 = vand.u32 4294901760, %v5138_v5  ;;  %v3306_v28 = vpack.c.bf16 %v5251_v12, %v5249_v61  ;;  %v5255_v10 = vand.u32 4294901760, %v5254_v48  ;;  %v5256_v37 = vld [vmem:[#allocation55_spill] sm:$0xff] }
 0x242   :  { %3157 = vmatpush1.bf16.msra.mxu0 %v3156_v3  ;;  %v5238_v3 = vld [vmem:[#allocation39_spill] sm:$0xff]  ;;  %v5272_v12 = vand.u32 4294901760, %v5170_v46  ;;  %v5283_v46 = vand.u32 4294901760, %v3879_v7 }
 0x243   :  { %1411 = vmatmul.mubr.f32.vlgmr.msra.gmra.mrb[0].mxu1 %v5229_v58  ;;  %3159 = vmatprep.subr.bf16.mxu0 %v3158_v62  ;;  %v5239_v6 = vand.u32 4294901760, %v5238_v3  ;;  %v5258_v3 = vld [vmem:[#allocation56_spill] sm:$0xff] }
 0x244   :  { %3293 = vmatpush1.bf16.msra.mxu1 %v3292_v53  ;;  %1674 = vmatprep.mubr.f32.mxu1 %v4093_v11  ;;  %v5241_v53 = vld [vmem:[#allocation111_spill] sm:$0xff]  ;;  %v5259_v18 = vand.u32 4294901760, %v5258_v3  ;;  %v5284_v3 = vand.u32 4294901760, %v3881_v23  ;;  %v5293_v23 = vld [vmem:[#allocation94_spill] sm:$0xff] }
 0x245   :  { %3295 = vmatprep.subr.bf16.mxu1 %v3294_v59  ;;  %v3300_v62 = vpack.c.bf16 %v5240_v60, %v5239_v6  ;;  %v3302_v59 = vpack.c.bf16 %v5244_v44, %v5242_v38  ;;  %v5261_v60 = vand.u32 4294901760, %v5159_v41  ;;  %v5262_v38 = vand.u32 4294901760, %v5160_v31 }
 0x246   :  { %3161 = vmatpush1.bf16.msra.mxu0 %v3160_v24  ;;  %v5247_v24 = vand.u32 4294901760, %v5143_v13  ;;  %v5260_v13 = vand.u32 4294901760, %v5158_v47  ;;  %v5268_v47 = vand.u32 4294901760, %v5166_v9  ;;  %v5269_v41 = vand.u32 4294901760, %v5167_v1  ;;  %v5277_v9 = vld [vmem:[#allocation79_spill] sm:$0xff] }
 0x247   :  { %v3314_v44 = vpack.c.bf16 %v5263_v40, %v5262_v38  ;;  %v5270_v31 = vand.u32 4294901760, %v5168_v14  ;;  %v5281_v14 = vand.u32 4294901760, %v3873_v25  ;;  %v5288_v25 = vand.u32 4294901760, %v5189_v32  ;;  %v5301_v32 = vld [vmem:[#allocation100_spill] sm:$0xff] }
 0x248   :  { %3297 = vmatpush1.bf16.msra.mxu1 %v3296_v8  ;;  %v3304_v58 = vpack.c.bf16 %v5247_v24, %v5246_v51  ;;  %v5252_v8 = vld [vmem:[#allocation51_spill] sm:$0xff]  ;;  %v5266_v24 = vand.u32 4294901760, %v5163_v42  ;;  %v3318_v61 = vpack.c.bf16 %v5268_v47, %v5267_v56  ;;  %v5273_v42 = vld [vmem:[#allocation76_spill] sm:$0xff]  ;;  %v5290_v40 = vand.u32 4294901760, %v5289_v43 }
 0x249   :  { %1067 = vmatmul.mubr.f32.vlgmr.msra.gmra.mrb[4].mxu0 %v5241_v53  ;;  %3299 = vmatprep.subr.bf16.mxu1 %v3298_v19  ;;  %v5253_v5 = vand.u32 4294901760, %v5252_v8  ;;  %v5257_v19 = vand.u32 4294901760, %v5256_v37  ;;  %v3320_v4 = vpack.c.bf16 %v5270_v31, %v5269_v41  ;;  %v5274_v8 = vand.u32 4294901760, %v5273_v42  ;;  %v5299_v47 = vld [vmem:[#allocation99_spill] sm:$0xff]  ;;  %v5303_v31 = vld [vmem:[#allocation101_spill] sm:$0xff]  ;;  %v5335_v43 = vld [vmem:[#allocation84_spill] sm:$0xff] }
 0x24a   :  { %2158 = vmatprep.mubr.bf16.mxu0 %v5245_v55  ;;  %v5302_v41 = vand.u32 4294901760, %v5301_v32 }
 0x24b   :  { %v3308_v0 = vpack.c.bf16 %v5255_v10, %v5253_v5  ;;  %v3310_v6 = vpack.c.bf16 %v5259_v18, %v5257_v19  ;;  %v5275_v5 = vld [vmem:[#allocation77_spill] sm:$0xff]  ;;  %v5278_v10 = vand.u32 4294901760, %v5277_v9  ;;  %v3328_v19 = vpack.c.bf16 %v5282_v15, %v5281_v14  ;;  %v5322_v14 = vld [vmem:[#allocation48_spill] sm:$0xff] }
 0x24c   :  { %3301 = vmatpush1.bf16.msra.mxu1 %v3300_v62  ;;  %v3312_v62 = vpack.c.bf16 %v5261_v60, %v5260_v13  ;;  %v5276_v36 = vand.u32 4294901760, %v5275_v5  ;;  %v3330_v18 = vpack.c.bf16 %v5284_v3, %v5283_v46  ;;  %v5286_v13 = vand.u32 4294901760, %v5186_v30  ;;  %v5297_v30 = vld [vmem:[#allocation98_spill] sm:$0xff]  ;;  %v5323_v15 = vld [vmem:[#allocation53_spill] sm:$0xff]  ;;  %v5325_v46 = vld [vmem:[#allocation59_spill] sm:$0xff] }
 0x24d   :  { %3303 = vmatprep.subr.bf16.mxu1 %v3302_v59  ;;  %v5264_v59 = vld [vmem:[#allocation63_spill] sm:$0xff]  ;;  %v5298_v56 = vand.u32 4294901760, %v5297_v30  ;;  %v5308_v5 = vand.u32 4294901760, %v5210_v29  ;;  %v5310_v9 = vand.u32 4294901760, %v5214_v27  ;;  %v5315_v29 = vld [vmem:[#allocation32_spill] sm:$0xff]  ;;  %v5319_v27 = vld [vmem:[#allocation42_spill] sm:$0xff] }
 0x24e   :  { %v5265_v51 = vand.u32 4294901760, %v5264_v59  ;;  %v3324_v48 = vpack.c.bf16 %v5276_v36, %v5274_v8  ;;  %v5307_v8 = vand.u32 4294901760, %v5209_v21  ;;  %v5314_v21 = vand.u32 4294901760, %v4045_v34  ;;  %v5321_v34 = vld [vmem:[#allocation47_spill] sm:$0xff]  ;;  %v5326_v3 = vld [vmem:[#allocation60_spill] sm:$0xff] }
 0x24f   :  { %v1887_v30 = vld [vmem:[#allocation2] sm:$0x3] }
 0x250   :  { %3305 = vmatpush1.bf16.msra.mxu1 %v3304_v58  ;;  %v3316_v58 = vpack.c.bf16 %v5266_v24, %v5265_v51  ;;  %v5294_v51 = vand.u32 4294901760, %v5293_v23  ;;  %v5295_v24 = vld [vmem:[#allocation95_spill] sm:$0xff]  ;;  %v3346_v36 = vpack.c.bf16 %v5308_v5, %v5307_v8  ;;  %v5343_v5 = vld [vmem:[#allocation10_spill] sm:$0xff] }
 0x251   :  { %3307 = vmatprep.subr.bf16.mxu1 %v3306_v28  ;;  %v3322_v28 = vpack.c.bf16 %v5272_v12, %v5271_v22  ;;  %v5305_v12 = vand.u32 4294901760, %v5207_v20  ;;  %v5312_v20 = vand.u32 4294901760, %v4035_v33  ;;  %v5318_v33 = vld [vmem:[#allocation37_spill] sm:$0xff] }
 0x254   :  { %3309 = vmatpush1.bf16.msra.mxu1 %v3308_v0  ;;  %v5279_v0 = vld [vmem:[#allocation80_spill] sm:$0xff] }
 0x255   :  { %3311 = vmatprep.subr.bf16.mxu1 %v3310_v6  ;;  %v5280_v1 = vand.u32 4294901760, %v5279_v0  ;;  %v5285_v6 = vand.u32 4294901760, %v5185_v39  ;;  %v5296_v39 = vand.u32 4294901760, %v5295_v24  ;;  %v5311_v0 = vand.u32 4294901760, %v4033_v54  ;;  %v5317_v54 = vld [vmem:[#allocation36_spill] sm:$0xff] }
 0x257   :  { %v3326_v37 = vpack.c.bf16 %v5280_v1, %v5278_v10  ;;  %v3332_v60 = vpack.c.bf16 %v5286_v13, %v5285_v6  ;;  %v3350_v1 = vpack.c.bf16 %v5312_v20, %v5311_v0  ;;  %v5329_v6 = vld [vmem:[#allocation69_spill] sm:$0xff]  ;;  %v5330_v13 = vld [vmem:[#allocation70_spill] sm:$0xff] }
 0x258   :  { %3313 = vmatpush1.bf16.msra.mxu1 %v3312_v62  ;;  %v5287_v62 = vand.u32 4294901760, %v5188_v63  ;;  %v5300_v63 = vand.u32 4294901760, %v5299_v47 }
 0x259   :  { %3315 = vmatprep.subr.bf16.mxu1 %v3314_v44  ;;  %v5291_v44 = vld [vmem:[#allocation92_spill] sm:$0xff] }
 0x25a   :  { %v3334_v38 = vpack.c.bf16 %v5288_v25, %v5287_v62  ;;  %v5292_v7 = vand.u32 4294901760, %v5291_v44  ;;  %v5332_v62 = vld [vmem:[#allocation78_spill] sm:$0xff]  ;;  %v5333_v25 = vld [vmem:[#allocation81_spill] sm:$0xff] }
 0x25b   :  { %v5337_v44 = vld [vmem:[#allocation90_spill] sm:$0xff] }
 0x25c   :  { %3317 = vmatpush1.bf16.msra.mxu1 %v3316_v58  ;;  %v3336_v59 = vpack.c.bf16 %v5292_v7, %v5290_v40  ;;  %v3338_v58 = vpack.c.bf16 %v5296_v39, %v5294_v51  ;;  %v5336_v40 = vld [vmem:[#allocation85_spill] sm:$0xff]  ;;  %v5338_v7 = vld [vmem:[#allocation107_spill] sm:$0xff] }
 0x25d   :  { %3319 = vmatprep.subr.bf16.mxu1 %v3318_v61  ;;  %v3340_v61 = vpack.c.bf16 %v5300_v63, %v5298_v56 }
 0x260   :  { %3321 = vmatpush1.bf16.msra.mxu1 %v3320_v4  ;;  %v5304_v4 = vand.u32 4294901760, %v5303_v31 }
 0x261   :  { %3323 = vmatprep.subr.bf16.mxu1 %v3322_v28  ;;  %v5306_v28 = vand.u32 4294901760, %v5208_v57  ;;  %v5313_v57 = vand.u32 4294901760, %v4043_v16  ;;  %v5320_v16 = vld [vmem:[#allocation43_spill] sm:$0xff] }
 0x262   :  { %v3342_v22 = vpack.c.bf16 %v5304_v4, %v5302_v41  ;;  %v1836_v41 = vld [vmem:[#allocation2] sm:$0x3] }
 0x263   :  { %v3344_v42 = vpack.c.bf16 %v5306_v28, %v5305_v12  ;;  %v5341_v4 = vld [vmem:[#allocation14_spill] sm:$0xff]  ;;  %v5342_v28 = vld [vmem:[#allocation9_spill] sm:$0xff] }
 0x264   :  { %3325 = vmatpush1.bf16.msra.mxu1 %v3324_v48  ;;  %v5309_v48 = vand.u32 4294901760, %v4019_v2  ;;  %v5316_v2 = vld [vmem:[#allocation34_spill] sm:$0xff] }
 0x265   :  { %3327 = vmatprep.subr.bf16.mxu1 %v3326_v37  ;;  %v3352_v37 = vpack.c.bf16 %v5314_v21, %v5313_v57  ;;  %v5345_v21 = vld [vmem:[#allocation12_spill] sm:$0xff] }
 0x266   :  { %v3348_v10 = vpack.c.bf16 %v5310_v9, %v5309_v48  ;;  %v1914_v48 = vld [vmem:[#allocation2] sm:$0x3] }
 0x268   :  { %3329 = vmatpush1.bf16.msra.mxu1 %v3328_v19  ;;  %v5324_v19 = vld [vmem:[#allocation54_spill] sm:$0xff] }
 0x269   :  { %3331 = vmatprep.subr.bf16.mxu1 %v3330_v18  ;;  %v5328_v18 = vld [vmem:[#allocation66_spill] sm:$0xff] }
 0x26c   :  { %3333 = vmatpush1.bf16.msra.mxu1 %v3332_v60  ;;  %v5331_v60 = vld [vmem:[#allocation75_spill] sm:$0xff] }
 0x26d   :  { %3335 = vmatprep.subr.bf16.mxu1 %v3334_v38  ;;  %v5334_v38 = vld [vmem:[#allocation82_spill] sm:$0xff] }
 0x270   :  { %3337 = vmatpush1.bf16.msra.mxu1 %v3336_v59  ;;  %v5339_v59 = vld [vmem:[#allocation108_spill] sm:$0xff] }
 0x271   :  { %3339 = vmatprep.subr.bf16.mxu1 %v3338_v58  ;;  %v1863_v58 = vld [vmem:[#allocation2] sm:$0x3] }
 0x274   :  { %3341 = vmatpush1.bf16.msra.mxu1 %v3340_v61  ;;  %v5340_v61 = vld [vmem:[#allocation13_spill] sm:$0xff] }
 0x275   :  { %3343 = vmatprep.subr.bf16.mxu1 %v3342_v22 }
 0x278   :  { %3345 = vmatpush1.bf16.msra.mxu1 %v3344_v42  ;;  %v1890_v42 = vmul.f32 %v1887_v30, %v5342_v28 }
 0x279   :  { %3347 = vmatprep.subr.bf16.mxu1 %v3346_v36  ;;  %v1839_v36 = vmul.f32 %v1836_v41, %v5343_v5 }
 0x27c   :  { %3349 = vmatpush1.bf16.msra.mxu1 %v3348_v10  ;;  %v5344_v10 = vld [vmem:[#allocation17_spill] sm:$0xff] }
 0x27d   :  { %3351 = vmatprep.subr.bf16.mxu1 %v3350_v1 }
 0x280   :  { %3353 = vmatpush1.bf16.msra.mxu1 %v3352_v37 }
 0x281   :  { %3355 = vmatprep.subr.bf16.mxu1 %v5315_v29 }
 0x283   :  { %1676 = vmatmul.mubr.f32.vlgmr.msra.gmra.mrb[0].mxu1 %v5241_v53 }
 0x284   :  { %3357 = vmatpush1.bf16.msra.mxu1 %v5316_v2  ;;  %1811 = vmatprep.mubr.f32.mxu1 %v4093_v11  ;;  %v5327_v11 = vld [vmem:[#allocation65_spill] sm:$0xff]  ;;  %v5346_v2 = vld [vmem:[#allocation16_spill] sm:$0xff] }
 0x285   :  { %3359 = vmatprep.subr.bf16.mxu1 %v5317_v54  ;;  %v1917_v54 = vmul.f32 %v1914_v48, %v5346_v2 }
 0x288   :  { %3361 = vmatpush1.bf16.msra.mxu1 %v5318_v33 }
 0x289   :  { %3363 = vmatprep.subr.bf16.mxu1 %v5319_v27 }
 0x28c   :  { %3365 = vmatpush1.bf16.msra.mxu1 %v5320_v16 }
 0x28d   :  { %3367 = vmatprep.subr.bf16.mxu1 %v5321_v34 }
 0x290   :  { %3369 = vmatpush1.bf16.msra.mxu1 %v5322_v14 }
 0x291   :  { %3371 = vmatprep.subr.bf16.mxu1 %v5323_v15  ;;  %v5347_v15 = vld [vmem:[#allocation11_spill] sm:$0xff] }
 0x294   :  { %3373 = vmatpush1.bf16.msra.mxu1 %v5324_v19 }
 0x295   :  { %3375 = vmatprep.subr.bf16.mxu1 %v5325_v46 }
 0x298   :  { %3377 = vmatpush1.bf16.msra.mxu1 %v5326_v3 }
 0x299   :  { %3379 = vmatprep.subr.bf16.mxu1 %v5327_v11 }
 0x29c   :  { %3381 = vmatpush1.bf16.msra.mxu1 %v5328_v18 }
 0x29d   :  { %3383 = vmatprep.subr.bf16.mxu1 %v5329_v6  ;;  %v5348_v6 = vld [vmem:[#allocation19_spill] sm:$0xff] }
 0x2a0   :  { %3385 = vmatpush1.bf16.msra.mxu1 %v5330_v13 }
 0x2a1   :  { %3387 = vmatprep.subr.bf16.mxu1 %v5331_v60  ;;  %v5349_v60 = vld [vmem:[#allocation20_spill] sm:$0xff] }
 0x2a4   :  { %3389 = vmatpush1.bf16.msra.mxu1 %v5332_v62 }
 0x2a5   :  { %3391 = vmatprep.subr.bf16.mxu1 %v5333_v25 }
 0x2a8   :  { %3393 = vmatpush1.bf16.msra.mxu1 %v5334_v38  ;;  %v5350_v38 = vld [vmem:[#allocation15_spill] sm:$0xff] }
 0x2a9   :  { %3395 = vmatprep.subr.bf16.mxu1 %v5335_v43 }
 0x2ac   :  { %3397 = vmatpush1.bf16.msra.mxu1 %v5336_v40 }
 0x2ad   :  { %3399 = vmatprep.subr.bf16.mxu1 %v5337_v44 }
 0x2b0   :  { %3401 = vmatpush1.bf16.msra.mxu1 %v5211_v50 }
 0x2b1   :  { %3403 = vmatprep.subr.bf16.mxu1 %v5212_v26  ;;  %v2878_v26 = vld.sshfl [vmem:[%s4786_s1] sm:$0x33 pattern:$0x76325410] }
 0x2b4   :  { %3405 = vmatpush1.bf16.msra.mxu1 %v5215_v52 }
 0x2b5   :  { %3407 = vmatprep.subr.bf16.mxu1 %v4031_v17  ;;  %v1828_v17 = vcombine.high %v2878_v26, %v2878_v26 }
 0x2b8   :  { %3409 = vmatpush1.bf16.msra.mxu1 %v4041_v45 }
 0x2b9   :  { %3411 = vmatprep.subr.bf16.mxu1 %v4053_v35 }
 0x2bc   :  { %3413 = vmatpush1.bf16.msra.mxu1 %v5338_v7  ;;  %v1981_v7 = vld [vmem:[#allocation2 + $0x18] sm:$0x3] }
 0x2bd   :  { %3415 = vmatprep.subr.bf16.mxu1 %v5339_v59 }
 0x2c0   :  { %3417 = vmatpush1.bf16.msra.mxu1 %v5218_v49 }
 0x2c3   :  { %1813 = vmatmul.mubr.f32.vlgmr.msra.gmra.mrb[0].mxu1 %v5241_v53 }
 0x31c   :  { %v1068_v23 = vpop.f32.mrb[4].mxu0 }
 0x31d   :  { %v1070_v50 = vpop.f32.mrb[5].mxu0 }
 0x396   :  { %v1814_v52 = vpop.f32.mrb[0].mxu1 }
 0x397   :  { %v3418_v51 = vadd.f32 %v1814_v52, %v1068_v23  ;;  %v1816_v45 = vpop.f32.mrb[1].mxu1  ;;  %v5351_v23 = vld [vmem:[#allocation22_spill] sm:$0xff] }
 0x398   :  { %v3419_v24 = vadd.f32 %v1816_v45, %v1070_v50 }
 0x399   :  { %v1831_v35 = vsub.f32 %v3418_v51, %v2878_v26  ;;  %v5352_v26 = vld [vmem:[#allocation23_spill] sm:$0xff]  ;;  %v5353_v51 = vld [vmem:[#allocation21_spill] sm:$0xff] }
 0x39a   :  { %v1832_v39 = vsub.f32 %v3419_v24, %v1828_v17  ;;  %v1984_v45 = vmul.f32 %v1981_v7, %v5353_v51 }
 0x39b   :  { %1834 = vst [vmem:[#allocation2 + $0x8] sm:$0x3] %v1831_v35 }
 0x39c   :  { %1835 = vst [vmem:[#allocation2 + $0x10] sm:$0x3] %v1832_v39 }
 0x3a2   :  { %v1864_v49 = vld [vmem:[#allocation2 + $0x8] sm:$0x3] }
 0x3a3   :  { %v1888_v56 = vld [vmem:[#allocation2 + $0x8] sm:$0x3]  ;;  %v2985_v47 = vpack.c.bf16 %v1864_v49, %v1863_v58  ;;  %v1865_v63 = vld [vmem:[#allocation2 + $0x10] sm:$0x3]  ;;  %v5354_v58 = vld [vmem:[#allocation25_spill] sm:$0xff] }
 0x3a4   :  { %v1837_v53 = vld [vmem:[#allocation2 + $0x8] sm:$0x3]  ;;  %v1891_v32 = vmul.f32 %v1888_v56, %v5340_v61  ;;  %v2986_v31 = vpack.c.bf16 %v1865_v63, %v1865_v63  ;;  %v1838_v8 = vld [vmem:[#allocation2 + $0x10] sm:$0x3]  ;;  %v5355_v49 = vld [vmem:[#allocation26_spill] sm:$0xff] }
 0x3a5   :  { %v1840_v22 = vmul.f32 %v1837_v53, %v5341_v4  ;;  %v1915_v12 = vld [vmem:[#allocation2 + $0x8] sm:$0x3]  ;;  %1877 = vrot.lane.b32.xlu0 %v2985_v47, %s3488_s20  ;;  %v1942_v1 = vld [vmem:[#allocation2 + $0x10] sm:$0x3]  ;;  %v1841_v37 = vmul.f32 %v1838_v8, %v5345_v21  ;;  %v2008_v53 = vld [vmem:[#allocation2 + $0x18] sm:$0x3]  ;;  %v2995_v47 = vpack.c.bf16 %v1984_v45, %v1984_v45 }
 0x3a6   :  { %1879 = vrot.lane.b32.xlu1 %v2986_v31, %s3488_s20  ;;  %v2987_v9 = vpack.c.bf16 %v1891_v32, %v1890_v42  ;;  %v1918_v0 = vmul.f32 %v1915_v12, %v5344_v10  ;;  %v1941_v20 = vld [vmem:[#allocation2 + $0x8] sm:$0x3]  ;;  %v1889_v33 = vld [vmem:[#allocation2 + $0x10] sm:$0x3]  ;;  %v2032_v63 = vld [vmem:[#allocation2 + $0x18] sm:$0x3]  ;;  %v2997_v32 = vpack.c.bf16 %v2008_v53, %v2008_v53 }
 0x3a7   :  { %v2983_v57 = vpack.c.bf16 %v1840_v22, %v1839_v36  ;;  %v2991_v29 = vpack.c.bf16 %v1942_v1, %v1941_v20  ;;  %v2006_v16 = vld [vmem:[#allocation2 + $0x8] sm:$0x3]  ;;  %v2984_v34 = vpack.c.bf16 %v1841_v37, %v1841_v37  ;;  %v2007_v14 = vld [vmem:[#allocation2 + $0x10] sm:$0x3]  ;;  %v1892_v19 = vmul.f32 %v1889_v33, %v5347_v15  ;;  %v4564_v42 = vld [vmem:[#allocation2] sm:$0xff]  ;;  %v1972_v20 = vpop.permute.xlu1 %1971 }
 0x3a8   :  { %v2989_v27 = vpack.c.bf16 %v1918_v0, %v1917_v54  ;;  %v1952_v46 = vld [vmem:[#allocation2 + $0x8] sm:$0x3]  ;;  %v1953_v3 = vld [vmem:[#allocation2 + $0x10] sm:$0x3]  ;;  %v2996_v18 = vpack.c.bf16 %v2007_v14, %v2006_v16  ;;  %v5357_v8 = vld [vmem:[#allocation18_spill] sm:$0xff]  ;;  %v3499_v0 = vmov 1  }
 0x3a9   :  { %1904 = vrot.lane.b32.xlu0 %v2987_v9, %s3494_s11  ;;  %1951 = vst [vmem:[#allocation3 + $0x20] sm:$0x11] %v2991_v29  ;;  %v1916_v11 = vld [vmem:[#allocation2 + $0x10] sm:$0x3]  ;;  %v1955_v13 = vmul.f32 %v1952_v46, %v5348_v6  ;;  %v1956_v62 = vmul.f32 %v1953_v3, %v5349_v60  ;;  %v2988_v25 = vpack.c.bf16 %v1892_v19, %v1892_v19  ;;  %v1979_v40 = vld [vmem:[#allocation2 + $0x8] sm:$0x3] }
 0x3aa   :  { %1853 = vrot.lane.b32.xlu1 %v2983_v57, %s3495_s12  ;;  %v1919_v43 = vmul.f32 %v1916_v11, %v5350_v38  ;;  %v1980_v44 = vld [vmem:[#allocation2 + $0x10] sm:$0x3]  ;;  %v1982_v50 = vmul.f32 %v1979_v40, %v5351_v23  ;;  %v2030_v24 = vld [vmem:[#allocation2 + $0x8] sm:$0x3]  ;;  %v2291_v36 = vmul.f32 %v4564_v42, %v5357_v8  ;;  %v4576_v9 = vld [vmem:[%s4789_s4] sm:$0xff]  ;;  %3444 = vset.pattern.permute.xlu0 %v3499_v0 }
 0x3ab   :  { %v2992_v59 = vpack.c.bf16 %v1956_v62, %v1955_v13  ;;  %v1983_v52 = vmul.f32 %v1980_v44, %v5352_v26  ;;  %v2031_v35 = vld [vmem:[#allocation2 + $0x10] sm:$0x3]  ;;  %v2033_v30 = vmul.f32 %v2030_v24, %v5354_v58  ;;  %v1974_v44 = vrot.slane %v1972_v20, 4 }
 0x3ac   :  { %v2990_v17 = vpack.c.bf16 %v1919_v43, %v1919_v43  ;;  %v2034_v56 = vmul.f32 %v2031_v35, %v5355_v49  ;;  %v5356_v31 = vld [vmem:[#allocation24_spill] sm:$0xff]  ;;  %v4569_v48 = vpack.c.bf16 %v2291_v36, %v2291_v36 }
 0x3ad   :  { %1931 = vrot.lane.b32.xlu0 %v2989_v27, %s3493_s10  ;;  %v2994_v39 = vpack.c.bf16 %v1983_v52, %v1982_v50  ;;  %v2035_v22 = vmul.f32 %v2032_v63, %v5356_v31 }
 0x3ae   :  { %1855 = vrot.lane.b32.xlu1 %v2984_v34, %s3495_s12  ;;  %v2998_v41 = vpack.c.bf16 %v2034_v56, %v2033_v30 }
 0x3af   :  { %v2999_v12 = vpack.c.bf16 %v2035_v22, %v2035_v22 }
 0x3b1   :  { %2020 = vrot.lane.b32.xlu0 %v2996_v18, %s3497_s13 }
 0x3b2   :  { %1906 = vrot.lane.b32.xlu1 %v2988_v25, %s3494_s11 }
 0x3b5   :  { %1969 = vrot.lane.b32.xlu0 %v2992_v59, %s3492_s0 }
 0x3b6   :  { %1933 = vrot.lane.b32.xlu1 %v2990_v17, %s3493_s10 }
 0x3b9   :  { %1996 = vrot.lane.b32.xlu0 %v2994_v39, %s3490_s3 }
 0x3ba   :  { %1998 = vrot.lane.b32.xlu1 %v2995_v47, %s3490_s3 }
 0x3bd   :  { %2047 = vrot.lane.b32.xlu0 %v2998_v41, %s3491_s30 }
 0x3be   :  { %2022 = vrot.lane.b32.xlu1 %v2997_v32, %s3497_s13 }
 0x3c1   :  { %2069 = vperm.xlu0 %3444, %v4576_v9  }
 0x3c2   :  { %2049 = vrot.lane.b32.xlu1 %v2999_v12, %s3491_s30 }
 0x3c6   :  { %2305 = vrot.lane.b32.xlu1 %v4569_v48, %s3492_s0 }
 0x417   :  { %v1878_v1 = vpop.permute.xlu0 %1877 }
 0x418   :  { %v1881_v57 = vrot.slane %v1878_v1, 4  ;;  %v1880_v37 = vpop.permute.xlu1 %1879 }
 0x419   :  { %v1882_v29 = vrot.slane %v1880_v37, 4 }
 0x41b   :  { %v1883_v54 = vsel %vm98_vm6, %v1881_v57, %v1882_v29  ;;  %v1905_v33 = vpop.permute.xlu0 %1904 }
 0x41c   :  { %v1884_v27 = vsel %vm125_vm7, %v1878_v1, %v1883_v54  ;;  %v1854_v16 = vpop.permute.xlu1 %1853  ;;  %v1908_v62 = vrot.slane %v1905_v33, 4 }
 0x41d   :  { %1886 = vst [vmem:[#allocation3 + $0x8] sm:$0x11] %v1884_v27  ;;  %v1857_v19 = vrot.slane %v1854_v16, 4 }
 0x41f   :  { %v1932_v34 = vpop.permute.xlu0 %1931 }
 0x420   :  { %v1856_v14 = vpop.permute.xlu1 %1855  ;;  %v1935_v52 = vrot.slane %v1932_v34, 4 }
 0x421   :  { %v1858_v46 = vrot.slane %v1856_v14, 4 }
 0x423   :  { %v1859_v3 = vsel %vm98_vm6, %v1857_v19, %v1858_v46  ;;  %v2021_v11 = vpop.permute.xlu0 %2020 }
 0x424   :  { %v1860_v18 = vsel %vm100_vm5, %v1854_v16, %v1859_v3  ;;  %v1907_v13 = vpop.permute.xlu1 %1906  ;;  %v2024_v8 = vrot.slane %v2021_v11, 4 }
 0x425   :  { %1862 = vst [vmem:[#allocation3] sm:$0x11] %v1860_v18  ;;  %v1909_v25 = vrot.slane %v1907_v13, 4 }
 0x427   :  { %v1910_v43 = vsel %vm98_vm6, %v1908_v62, %v1909_v25  ;;  %v1970_v40 = vpop.permute.xlu0 %1969  ;;  %v2057_v62 = vld [vmem:[%s4791_s6] sm:$0xf] }
 0x428   :  { %v1911_v7 = vsel %vm171_vm4, %v1905_v33, %v1910_v43  ;;  %v1973_v59 = vrot.slane %v1970_v40, 4  ;;  %v1934_v50 = vpop.permute.xlu1 %1933 }
 0x429   :  { %1913 = vst [vmem:[#allocation3 + $0x10] sm:$0x11] %v1911_v7  ;;  %v1936_v17 = vrot.slane %v1934_v50, 4 }
 0x42a   :  { %v1975_v45 = vsel %vm98_vm6, %v1973_v59, %v1974_v44 }
 0x42b   :  { %v1976_v24 = vsel %vm182_vm2, %v1970_v40, %v1975_v45  ;;  %v1937_v35 = vsel %vm98_vm6, %v1935_v52, %v1936_v17  ;;  %v1997_v39 = vpop.permute.xlu0 %1996 }
 0x42c   :  { %1978 = vst [vmem:[#allocation3 + $0x28] sm:$0x11] %v1976_v24  ;;  %v1938_v30 = vsel %vm208_vm3, %v1932_v34, %v1937_v35  ;;  %v2000_v56 = vrot.slane %v1997_v39, 4  ;;  %v1999_v53 = vpop.permute.xlu1 %1998  ;;  %v3447_v47 = vld [vmem:[#allocation3 + $0x4] ss:$8 sps:$4 sm:$0xff]   ;;  %v4617_v35 = vmul.f32 %v4564_v42, %v5342_v28  ;;  %v4633_v28 = vmul.f32 %v4564_v42, %v5346_v2 }
 0x42d   :  { %v3449_v63 = vld [vmem:[#allocation3] ss:$8 sps:$4 sm:$0xff]   ;;  %1940 = vst [vmem:[#allocation3 + $0x18] sm:$0x11] %v1938_v30  ;;  %v2001_v32 = vrot.slane %v1999_v53, 4  ;;  %2126 = vmatprep.subr.bf16.mxu0 %v3447_v47 }
 0x42e   :  { %2127 = vmatpush1.bf16.msra.mxu0 %v3449_v63 }
 0x42f   :  { %v2002_v41 = vsel %vm98_vm6, %v2000_v56, %v2001_v32  ;;  %v2048_v0 = vpop.permute.xlu0 %2047 }
 0x430   :  { %v2003_v22 = vsel %vm145_vm0, %v1997_v39, %v2002_v41  ;;  %v2023_v12 = vpop.permute.xlu1 %2022  ;;  %v2051_v54 = vrot.slane %v2048_v0, 4  ;;  %v4622_v39 = vmul.f32 %v4564_v42, %v5343_v5 }
 0x431   :  { %2005 = vst [vmem:[#allocation3 + $0x30] sm:$0x11] %v2003_v22  ;;  %v2025_v36 = vrot.slane %v2023_v12, 4 }
 0x433   :  { %v2026_v20 = vsel %vm98_vm6, %v2024_v8, %v2025_v36  ;;  %v3453_v27 = vld [vmem:[#allocation3 + $0x24] ss:$8 sps:$4 sm:$0xff]   ;;  %v3455_v14 = vld [vmem:[#allocation3 + $0x20] ss:$8 sps:$4 sm:$0xff]  }
 0x434   :  { %v2027_v1 = vsel %vm318_vm8, %v2021_v11, %v2026_v20  ;;  %v2050_v57 = vpop.permute.xlu1 %2049  ;;  %v3450_v37 = vld [vmem:[#allocation3 + $0x14] ss:$8 sps:$4 sm:$0xff]   ;;  %v3452_v29 = vld [vmem:[#allocation3 + $0x10] ss:$8 sps:$4 sm:$0xff]  }
 0x435   :  { %2029 = vst [vmem:[#allocation3 + $0x38] sm:$0x11] %v2027_v1  ;;  %v2052_v33 = vrot.slane %v2050_v57, 4  ;;  %2128 = vmatprep.subr.bf16.mxu0 %v3450_v37  ;;  %v2318_v57 = vmul.f32 %v4564_v42, %v5353_v51  ;;  %v4673_v51 = vpack.c.bf16 %v4564_v42, %v4564_v42 }
 0x436   :  { %2129 = vmatpush1.bf16.msra.mxu0 %v3452_v29 }
 0x437   :  { %v2053_v16 = vsel %vm98_vm6, %v2051_v54, %v2052_v33  ;;  %2130 = vmatprep.subr.bf16.mxu0 %v3453_v27  ;;  %v4666_v33 = vpack.c.bf16 %v2318_v57, %v2318_v57 }
 0x438   :  { %v2054_v34 = vsel %vm73_vm1, %v2048_v0, %v2053_v16  ;;  %v2369_v16 = vmul.f32 %v4564_v42, %v5356_v31 }
 0x439   :  { %2056 = vst [vmem:[#allocation3 + $0x40] sm:$0x11] %v2054_v34 }
 0x43a   :  { %2131 = vmatpush1.bf16.msra.mxu0 %v3455_v14  ;;  %v4680_v34 = vpack.c.bf16 %v2369_v16, %v2369_v16  ;;  %v3500_v14 = vmov 2  }
 0x43b   :  { %3445 = vset.pattern.permute.xlu0 %v3500_v14 }
 0x43c   :  { %v3456_v19 = vld [vmem:[#allocation3 + $0x34] ss:$8 sps:$4 sm:$0xff]   ;;  %v3458_v46 = vld [vmem:[#allocation3 + $0x30] ss:$8 sps:$4 sm:$0xff]  }
 0x43d   :  { %2132 = vmatprep.subr.bf16.mxu0 %v3456_v19  ;;  %v2306_v19 = vpop.permute.xlu1 %2305 }
 0x43e   :  { %2133 = vmatpush1.bf16.msra.mxu0 %v3458_v46 }
 0x440   :  { %v2066_v3 = vld [vmem:[#allocation3 + $0x40] sm:$0xff]  ;;  %v2070_v25 = vpop.permute.xlu0 %2069 }
 0x441   :  { %v2905_v11 = vcombine.high %v2066_v3, %v2066_v3  ;;  %v2904_v18 = vcombine.low %v2066_v3, %v2066_v3 }
 0x443   :  { %2906 = vmatprep.subr.msk.bf16.mxu0 %vm98_vm6, %v2905_v11  ;;  %v2121_v13 = vsel %vm98_vm6, %v2904_v18, 0 }
 0x444   :  { %2135 = vmatpush1.bf16.msra.mxu0 %v2121_v13 }
 0x447   :  { %2907 = vmatmul.mubr.msk.bf16.vlgmr.msra.gmra.mrb[8].mxu0 %vm419_vm9, %v2057_v62 }
 0x448   :  { %2492 = vmatprep.mubr.bf16.mxu0 %v5245_v55 }
 0x51a   :  { %v2160_v43 = vpop.f32.mrb[8].mxu0 }
 0x51b   :  { %v4602_v40 = vadd.f32 %v2160_v43, %v2070_v25  ;;  %v2162_v44 = vpop.f32.mrb[9].mxu0 }
 0x51c   :  { %v4604_v7 = vadd.f32 %v2162_v44, %v2070_v25  ;;  %v2164_v59 = vpop.f32.mrb[10].mxu0 }
 0x51d   :  { %v2165_v50 = vpop.f32.mrb[11].mxu0  ;;  %v3002_v52 = vpack.c.bf16 %v4602_v40, %v4564_v42  ;;  %v2225_v17 = vmul.f32 %v4602_v40, %v5340_v61  ;;  %v2174_v24 = vmul.f32 %v4602_v40, %v5341_v4  ;;  %v2252_v56 = vmul.f32 %v4602_v40, %v5344_v10 }
 0x51e   :  { %v3003_v45 = vpack.c.bf16 %v4604_v7, %v4604_v7  ;;  %v2175_v47 = vmul.f32 %v4604_v7, %v5345_v21  ;;  %v2226_v32 = vmul.f32 %v4604_v7, %v5347_v15  ;;  %v4643_v41 = vpack.c.bf16 %v4604_v7, %v4602_v40 }
 0x51f   :  { %2211 = vrot.lane.b32.xlu0 %v3002_v52, %s3488_s20  ;;  %v3004_v30 = vpack.c.bf16 %v2225_v17, %v4617_v35  ;;  %v3000_v53 = vpack.c.bf16 %v2174_v24, %v4622_v39  ;;  %v3006_v5 = vpack.c.bf16 %v2252_v56, %v4633_v28  ;;  %v2289_v2 = vmul.f32 %v4602_v40, %v5348_v6 }
 0x520   :  { %2213 = vrot.lane.b32.xlu1 %v3003_v45, %s3488_s20  ;;  %v3001_v63 = vpack.c.bf16 %v2175_v47, %v2175_v47  ;;  %v2290_v22 = vmul.f32 %v4604_v7, %v5349_v60  ;;  %v3005_v12 = vpack.c.bf16 %v2226_v32, %v2226_v32  ;;  %v2253_v8 = vmul.f32 %v4604_v7, %v5350_v38 }
 0x521   :  { %v2316_v0 = vmul.f32 %v4602_v40, %v5351_v23  ;;  %v2317_v20 = vmul.f32 %v4604_v7, %v5352_v26  ;;  %v2367_v29 = vmul.f32 %v4602_v40, %v5354_v58  ;;  %v2368_v54 = vmul.f32 %v4604_v7, %v5355_v49 }
 0x522   :  { %v3009_v36 = vpack.c.bf16 %v2290_v22, %v2289_v2  ;;  %v3007_v1 = vpack.c.bf16 %v2253_v8, %v2253_v8 }
 0x523   :  { %2238 = vrot.lane.b32.xlu0 %v3004_v30, %s3494_s11  ;;  %v3011_v37 = vpack.c.bf16 %v2317_v20, %v2316_v0  ;;  %v3015_v27 = vpack.c.bf16 %v2368_v54, %v2367_v29 }
 0x524   :  { %2187 = vrot.lane.b32.xlu1 %v3000_v53, %s3495_s12 }
 0x527   :  { %2265 = vrot.lane.b32.xlu0 %v3006_v5, %s3493_s10  ;;  %v2308_v5 = vrot.slane %v2306_v19, 4 }
 0x528   :  { %2189 = vrot.lane.b32.xlu1 %v3001_v63, %s3495_s12 }
 0x52b   :  { %2354 = vrot.lane.b32.xlu0 %v4643_v41, %s3497_s13 }
 0x52c   :  { %2240 = vrot.lane.b32.xlu1 %v3005_v12, %s3494_s11 }
 0x52f   :  { %2303 = vrot.lane.b32.xlu0 %v3009_v36, %s3492_s0 }
 0x530   :  { %2267 = vrot.lane.b32.xlu1 %v3007_v1, %s3493_s10 }
 0x533   :  { %2330 = vrot.lane.b32.xlu0 %v3011_v37, %s3490_s3 }
 0x534   :  { %2332 = vrot.lane.b32.xlu1 %v4666_v33, %s3490_s3 }
 0x537   :  { %2381 = vrot.lane.b32.xlu0 %v3015_v27, %s3491_s30 }
 0x538   :  { %2356 = vrot.lane.b32.xlu1 %v4673_v51, %s3497_s13 }
 0x53b   :  { %2403 = vperm.xlu0 %3445, %v4576_v9  }
 0x53c   :  { %2383 = vrot.lane.b32.xlu1 %v4680_v34, %s3491_s30 }
 0x540   :  { %2641 = vrot.lane.b32.xlu1 %v4569_v48, %s3492_s0 }
 0x591   :  { %v2212_v46 = vpop.permute.xlu0 %2211 }
 0x592   :  { %v2214_v31 = vpop.permute.xlu1 %2213  ;;  %v2215_v18 = vrot.slane %v2212_v46, 4 }
 0x593   :  { %v2216_v13 = vrot.slane %v2214_v31, 4 }
 0x595   :  { %v2239_v3 = vpop.permute.xlu0 %2238  ;;  %v2217_v43 = vsel %vm98_vm6, %v2215_v18, %v2216_v13 }
 0x596   :  { %v2188_v11 = vpop.permute.xlu1 %2187  ;;  %v2218_v17 = vsel %vm125_vm7, %v2212_v46, %v2217_v43  ;;  %v2242_v53 = vrot.slane %v2239_v3, 4 }
 0x597   :  { %v2191_v44 = vrot.slane %v2188_v11, 4 }
 0x599   :  { %v2266_v62 = vpop.permute.xlu0 %2265 }
 0x59a   :  { %v2190_v25 = vpop.permute.xlu1 %2189  ;;  %v2269_v2 = vrot.slane %v2266_v62, 4 }
 0x59b   :  { %v2192_v59 = vrot.slane %v2190_v25, 4 }
 0x59d   :  { %v2193_v50 = vsel %vm98_vm6, %v2191_v44, %v2192_v59  ;;  %v2355_v52 = vpop.permute.xlu0 %2354 }
 0x59e   :  { %v2194_v48 = vsel %vm100_vm5, %v2188_v11, %v2193_v50  ;;  %v2241_v45 = vpop.permute.xlu1 %2240  ;;  %v2358_v46 = vrot.slane %v2355_v52, 4 }
 0x59f   :  { %v2243_v24 = vrot.slane %v2241_v45, 4  ;;  %v2926_v30 = vcombine.high %v2194_v48, %v2218_v17  ;;  %v2925_v56 = vcombine.low %v2194_v48, %v2218_v17 }
 0x5a1   :  { %v2304_v47 = vpop.permute.xlu0 %2303  ;;  %2460 = vmatprep.subr.bf16.mxu0 %v2926_v30  ;;  %v2244_v22 = vsel %vm98_vm6, %v2242_v53, %v2243_v24 }
 0x5a2   :  { %v2307_v63 = vrot.slane %v2304_v47, 4  ;;  %v2268_v32 = vpop.permute.xlu1 %2267  ;;  %2461 = vmatpush1.bf16.msra.mxu0 %v2925_v56  ;;  %v2245_v20 = vsel %vm171_vm4, %v2239_v3, %v2244_v22 }
 0x5a3   :  { %v2270_v12 = vrot.slane %v2268_v32, 4 }
 0x5a4   :  { %v2309_v8 = vsel %vm98_vm6, %v2307_v63, %v2308_v5 }
 0x5a5   :  { %v2271_v36 = vsel %vm98_vm6, %v2269_v2, %v2270_v12  ;;  %v2331_v0 = vpop.permute.xlu0 %2330  ;;  %v2310_v1 = vsel %vm182_vm2, %v2304_v47, %v2309_v8 }
 0x5a6   :  { %v2272_v57 = vsel %vm208_vm3, %v2266_v62, %v2271_v36  ;;  %v2333_v37 = vpop.permute.xlu1 %2332  ;;  %v2334_v29 = vrot.slane %v2331_v0, 4  ;;  %v2930_v14 = vcombine.high %v4643_v41, %v2310_v1  ;;  %v2929_v18 = vcombine.low %v4643_v41, %v2310_v1 }
 0x5a7   :  { %v2335_v54 = vrot.slane %v2333_v37, 4  ;;  %v2928_v27 = vcombine.high %v2245_v20, %v2272_v57  ;;  %v2927_v16 = vcombine.low %v2245_v20, %v2272_v57 }
 0x5a9   :  { %2462 = vmatprep.subr.bf16.mxu0 %v2928_v27  ;;  %v2336_v31 = vsel %vm98_vm6, %v2334_v29, %v2335_v54  ;;  %v2382_v3 = vpop.permute.xlu0 %2381 }
 0x5aa   :  { %v2357_v19 = vpop.permute.xlu1 %2356  ;;  %2463 = vmatpush1.bf16.msra.mxu0 %v2927_v16  ;;  %v2337_v62 = vsel %vm145_vm0, %v2331_v0, %v2336_v31  ;;  %v2385_v44 = vrot.slane %v2382_v3, 4 }
 0x5ab   :  { %v2359_v11 = vrot.slane %v2357_v19, 4  ;;  %2464 = vmatprep.subr.bf16.mxu0 %v2930_v14 }
 0x5ad   :  { %v2360_v13 = vsel %vm98_vm6, %v2358_v46, %v2359_v11 }
 0x5ae   :  { %v2361_v25 = vsel %vm318_vm8, %v2355_v52, %v2360_v13  ;;  %v2384_v43 = vpop.permute.xlu1 %2383  ;;  %2465 = vmatpush1.bf16.msra.mxu0 %v2929_v18  ;;  %v2391_v52 = vld [vmem:[%s4792_s7] sm:$0xf] }
 0x5af   :  { %v2386_v59 = vrot.slane %v2384_v43, 4  ;;  %v2932_v50 = vcombine.high %v2337_v62, %v2361_v25  ;;  %v2931_v17 = vcombine.low %v2337_v62, %v2361_v25 }
 0x5b1   :  { %v2387_v48 = vsel %vm98_vm6, %v2385_v44, %v2386_v59  ;;  %2466 = vmatprep.subr.bf16.mxu0 %v2932_v50 }
 0x5b2   :  { %v2388_v45 = vsel %vm73_vm1, %v2382_v3, %v2387_v48  ;;  %2467 = vmatpush1.bf16.msra.mxu0 %v2931_v17 }
 0x5b3   :  { %v2934_v24 = vcombine.high %v2388_v45, %v2388_v45  ;;  %v2933_v41 = vcombine.low %v2388_v45, %v2388_v45 }
 0x5b5   :  { %2935 = vmatprep.subr.msk.bf16.mxu0 %vm98_vm6, %v2934_v24  ;;  %v2455_v30 = vsel %vm98_vm6, %v2933_v41, 0 }
 0x5b6   :  { %2469 = vmatpush1.bf16.msra.mxu0 %v2455_v30 }
 0x5b9   :  { %2936 = vmatmul.mubr.msk.bf16.vlgmr.msra.gmra.mrb[12].mxu0 %vm419_vm9, %v2391_v52 }
 0x5ba   :  { %2828 = vmatprep.mubr.bf16.mxu0 %v5245_v55  ;;  %v2404_v56 = vpop.permute.xlu0 %2403 }
 0x68c   :  { %v2494_v53 = vpop.f32.mrb[12].mxu0 }
 0x68d   :  { %v2495_v47 = vadd.f32 %v2494_v53, %v2404_v56  ;;  %v2496_v5 = vpop.f32.mrb[13].mxu0 }
 0x68e   :  { %v2497_v63 = vadd.f32 %v2496_v5, %v2404_v56  ;;  %v2498_v32 = vpop.f32.mrb[14].mxu0 }
 0x68f   :  { %v2501_v2 = vmax.f32 %v2495_v47, 0.0  ;;  %v2499_v22 = vpop.f32.mrb[15].mxu0 }
 0x690   :  { %v2502_v12 = vmax.f32 %v2497_v63, 0.0 }
 0x691   :  { %2504 = vst [vmem:[#allocation2 + $0x8] sm:$0xff] %v2501_v2  ;;  %v3019_v8 = vpack.c.bf16 %v2501_v2, %v4564_v42  ;;  %v2561_v36 = vmul.f32 %v2501_v2, %v5340_v61  ;;  %v2510_v20 = vmul.f32 %v2501_v2, %v5341_v4  ;;  %v2625_v55 = vmul.f32 %v2501_v2, %v5348_v6 }
 0x692   :  { %2505 = vst [vmem:[#allocation2 + $0x10] sm:$0xff] %v2502_v12  ;;  %v3020_v0 = vpack.c.bf16 %v2502_v12, %v2502_v12  ;;  %v4715_v1 = vpack.c.bf16 %v2502_v12, %v2501_v2  ;;  %v2588_v37 = vmul.f32 %v2501_v2, %v5344_v10  ;;  %v2626_v42 = vmul.f32 %v2502_v12, %v5349_v60 }
 0x693   :  { %2547 = vrot.lane.b32.xlu0 %v3019_v8, %s3488_s20  ;;  %v3021_v57 = vpack.c.bf16 %v2561_v36, %v4617_v35  ;;  %v2652_v61 = vmul.f32 %v2501_v2, %v5351_v23  ;;  %v2653_v4 = vmul.f32 %v2502_v12, %v5352_v26  ;;  %v2703_v29 = vmul.f32 %v2501_v2, %v5354_v58 }
 0x694   :  { %2549 = vrot.lane.b32.xlu1 %v3020_v0, %s3488_s20  ;;  %2621 = vst [vmem:[#allocation3 + $0x20] sm:$0xff] %v4715_v1  ;;  %v2704_v54 = vmul.f32 %v2502_v12, %v5355_v49  ;;  %v3017_v6 = vpack.c.bf16 %v2510_v20, %v4622_v39  ;;  %v2511_v27 = vmul.f32 %v2502_v12, %v5345_v21 }
 0x695   :  { %v3026_v16 = vpack.c.bf16 %v2626_v42, %v2625_v55  ;;  %v3028_v10 = vpack.c.bf16 %v2653_v4, %v2652_v61  ;;  %v3023_v60 = vpack.c.bf16 %v2588_v37, %v4633_v28  ;;  %v2562_v26 = vmul.f32 %v2502_v12, %v5347_v15 }
 0x696   :  { %v3032_v35 = vpack.c.bf16 %v2704_v54, %v2703_v29  ;;  %v3018_v23 = vpack.c.bf16 %v2511_v27, %v2511_v27  ;;  %v2589_v49 = vmul.f32 %v2502_v12, %v5350_v38  ;;  %v3501_v15 = vmov 3   ;;  %v2642_v38 = vpop.permute.xlu1 %2641 }
 0x697   :  { %2574 = vrot.lane.b32.xlu0 %v3021_v57, %s3494_s11  ;;  %v3022_v58 = vpack.c.bf16 %v2562_v26, %v2562_v26  ;;  %v2644_v45 = vrot.slane %v2642_v38, 4 }
 0x698   :  { %2523 = vrot.lane.b32.xlu1 %v3017_v6, %s3495_s12  ;;  %v3024_v21 = vpack.c.bf16 %v2589_v49, %v2589_v49  ;;  %3446 = vset.pattern.permute.xlu0 %v3501_v15  ;;  %v2727_v49 = vld [vmem:[%s4793_s8] sm:$0xf] }
 0x69b   :  { %2601 = vrot.lane.b32.xlu0 %v3023_v60, %s3493_s10 }
 0x69c   :  { %2525 = vrot.lane.b32.xlu1 %v3018_v23, %s3495_s12 }
 0x69f   :  { %2690 = vrot.lane.b32.xlu0 %v4715_v1, %s3497_s13 }
 0x6a0   :  { %2576 = vrot.lane.b32.xlu1 %v3022_v58, %s3494_s11 }
 0x6a3   :  { %2639 = vrot.lane.b32.xlu0 %v3026_v16, %s3492_s0 }
 0x6a4   :  { %2603 = vrot.lane.b32.xlu1 %v3024_v21, %s3493_s10 }
 0x6a7   :  { %2666 = vrot.lane.b32.xlu0 %v3028_v10, %s3490_s3 }
 0x6a8   :  { %2668 = vrot.lane.b32.xlu1 %v4666_v33, %s3490_s3 }
 0x6ab   :  { %2717 = vrot.lane.b32.xlu0 %v3032_v35, %s3491_s30 }
 0x6ac   :  { %2692 = vrot.lane.b32.xlu1 %v4673_v51, %s3497_s13 }
 0x6af   :  { %2739 = vperm.xlu0 %3446, %v4576_v9  }
 0x6b0   :  { %2719 = vrot.lane.b32.xlu1 %v4680_v34, %s3491_s30 }
 0x705   :  { %v2548_v39 = vpop.permute.xlu0 %2547 }
 0x706   :  { %v2551_v28 = vrot.slane %v2548_v39, 4  ;;  %v2550_v14 = vpop.permute.xlu1 %2549 }
 0x707   :  { %v2552_v19 = vrot.slane %v2550_v14, 4 }
 0x709   :  { %v2553_v46 = vsel %vm98_vm6, %v2551_v28, %v2552_v19  ;;  %v2575_v33 = vpop.permute.xlu0 %2574 }
 0x70a   :  { %v2554_v31 = vsel %vm125_vm7, %v2548_v39, %v2553_v46  ;;  %v2524_v11 = vpop.permute.xlu1 %2523  ;;  %v2578_v43 = vrot.slane %v2575_v33, 4 }
 0x70b   :  { %2556 = vst [vmem:[#allocation3 + $0x8] sm:$0xff] %v2554_v31  ;;  %v2527_v18 = vrot.slane %v2524_v11, 4 }
 0x70d   :  { %v2602_v51 = vpop.permute.xlu0 %2601 }
 0x70e   :  { %v2526_v3 = vpop.permute.xlu1 %2525  ;;  %v2605_v52 = vrot.slane %v2602_v51, 4 }
 0x70f   :  { %v2528_v13 = vrot.slane %v2526_v3, 4 }
 0x711   :  { %v2529_v9 = vsel %vm98_vm6, %v2527_v18, %v2528_v13  ;;  %v2691_v62 = vpop.permute.xlu0 %2690 }
 0x712   :  { %v2530_v34 = vsel %vm100_vm5, %v2524_v11, %v2529_v9  ;;  %v2577_v25 = vpop.permute.xlu1 %2576  ;;  %v2694_v37 = vrot.slane %v2691_v62, 4 }
 0x713   :  { %2532 = vst [vmem:[#allocation3] sm:$0xff] %v2530_v34  ;;  %v2579_v44 = vrot.slane %v2577_v25, 4  ;;  %v2954_v59 = vcombine.low %v2530_v34, %v2554_v31  ;;  %v2955_v50 = vcombine.high %v2530_v34, %v2554_v31  ;;  %v5358_v31 = vld [vmem:[#allocation8_spill] sm:$0xff] }
 0x715   :  { %v2580_v17 = vsel %vm98_vm6, %v2578_v43, %v2579_v44  ;;  %v2640_v48 = vpop.permute.xlu0 %2639  ;;  %2796 = vmatprep.subr.bf16.mxu0 %v2955_v50 }
 0x716   :  { %v2581_v24 = vsel %vm171_vm4, %v2575_v33, %v2580_v17  ;;  %v2643_v41 = vrot.slane %v2640_v48, 4  ;;  %v2604_v30 = vpop.permute.xlu1 %2603  ;;  %2797 = vmatpush1.bf16.msra.mxu0 %v2954_v59 }
 0x717   :  { %2583 = vst [vmem:[#allocation3 + $0x10] sm:$0xff] %v2581_v24  ;;  %v2606_v56 = vrot.slane %v2604_v30, 4 }
 0x718   :  { %v2645_v53 = vsel %vm98_vm6, %v2643_v41, %v2644_v45 }
 0x719   :  { %v2646_v47 = vsel %vm182_vm2, %v2640_v48, %v2645_v53  ;;  %v2607_v5 = vsel %vm98_vm6, %v2605_v52, %v2606_v56  ;;  %v2667_v63 = vpop.permute.xlu0 %2666 }
 0x71a   :  { %2648 = vst [vmem:[#allocation3 + $0x28] sm:$0xff] %v2646_v47  ;;  %v2608_v32 = vsel %vm208_vm3, %v2602_v51, %v2607_v5  ;;  %v2670_v2 = vrot.slane %v2667_v63, 4  ;;  %v2669_v22 = vpop.permute.xlu1 %2668  ;;  %v2959_v20 = vcombine.high %v4715_v1, %v2646_v47  ;;  %v2958_v4 = vcombine.low %v4715_v1, %v2646_v47  ;;  %v5359_v51 = vld [vmem:[#allocation7_spill] sm:$0xff] }
 0x71b   :  { %2610 = vst [vmem:[#allocation3 + $0x18] sm:$0xff] %v2608_v32  ;;  %v2671_v12 = vrot.slane %v2669_v22, 4  ;;  %v2956_v8 = vcombine.low %v2581_v24, %v2608_v32  ;;  %v2957_v36 = vcombine.high %v2581_v24, %v2608_v32 }
 0x71d   :  { %v2672_v0 = vsel %vm98_vm6, %v2670_v2, %v2671_v12  ;;  %2798 = vmatprep.subr.bf16.mxu0 %v2957_v36  ;;  %v2718_v61 = vpop.permute.xlu0 %2717 }
 0x71e   :  { %v2673_v55 = vsel %vm145_vm0, %v2667_v63, %v2672_v0  ;;  %v2693_v57 = vpop.permute.xlu1 %2692  ;;  %2799 = vmatpush1.bf16.msra.mxu0 %v2956_v8  ;;  %v2721_v27 = vrot.slane %v2718_v61, 4 }
 0x71f   :  { %2675 = vst [vmem:[#allocation3 + $0x30] sm:$0xff] %v2673_v55  ;;  %v2695_v42 = vrot.slane %v2693_v57, 4  ;;  %2800 = vmatprep.subr.bf16.mxu0 %v2959_v20 }
 0x721   :  { %v2696_v29 = vsel %vm98_vm6, %v2694_v37, %v2695_v42 }
 0x722   :  { %v2697_v54 = vsel %vm318_vm8, %v2691_v62, %v2696_v29  ;;  %v2720_v6 = vpop.permute.xlu1 %2719  ;;  %2801 = vmatpush1.bf16.msra.mxu0 %v2958_v4 }
 0x723   :  { %2699 = vst [vmem:[#allocation3 + $0x38] sm:$0xff] %v2697_v54  ;;  %v2722_v16 = vrot.slane %v2720_v6, 4  ;;  %v2960_v10 = vcombine.low %v2673_v55, %v2697_v54  ;;  %v2961_v35 = vcombine.high %v2673_v55, %v2697_v54 }
 0x725   :  { %v2723_v60 = vsel %vm98_vm6, %v2721_v27, %v2722_v16  ;;  %2802 = vmatprep.subr.bf16.mxu0 %v2961_v35 }
 0x726   :  { %v2724_v23 = vsel %vm73_vm1, %v2718_v61, %v2723_v60  ;;  %2803 = vmatpush1.bf16.msra.mxu0 %v2960_v10 }
 0x727   :  { %2726 = vst [vmem:[#allocation3 + $0x40] sm:$0xff] %v2724_v23  ;;  %v2963_v26 = vcombine.high %v2724_v23, %v2724_v23  ;;  %v2962_v1 = vcombine.low %v2724_v23, %v2724_v23 }
 0x729   :  { %2964 = vmatprep.subr.msk.bf16.mxu0 %vm98_vm6, %v2963_v26  ;;  %v2791_v58 = vsel %vm98_vm6, %v2962_v1, 0 }
 0x72a   :  { %2805 = vmatpush1.bf16.msra.mxu0 %v2791_v58 }
 0x72d   :  { %2965 = vmatmul.mubr.msk.bf16.vlgmr.msra.gmra.mrb[16].mxu0 %vm419_vm9, %v2727_v49 }
 0x72e   :  { %v2740_v21 = vpop.permute.xlu0 %2739 }
 0x800   :  { %v2830_v15 = vpop.f32.mrb[16].mxu0 }
 0x801   :  { %v2831_v38 = vadd.f32 %v2830_v15, %v2740_v21  ;;  %v2832_v39 = vpop.f32.mrb[17].mxu0 }
 0x802   :  { %v2833_v28 = vadd.f32 %v2832_v39, %v2740_v21  ;;  %v2834_v14 = vpop.f32.mrb[18].mxu0 }
 0x803   :  { %v2837_v19 = vadd.f32 %v2831_v38, %v4602_v40  ;;  %v2835_v46 = vpop.f32.mrb[19].mxu0 }
 0x804   :  { %v2838_v33 = vadd.f32 %v2833_v28, %v4604_v7 }
 0x805   :  { %v2839_v11 = vadd.f32 %v2837_v19, %v5358_v31 }
 0x806   :  { %v2840_v3 = vadd.f32 %v2838_v33, %v5359_v51 }
 0x807   :  { %2841 = vst [vmem:[%s4794_s9] sm:$0xff] %v2839_v11 }
 0x808   :  { %2842 = vst [vmem:[%s4794_s9 + $0x8] sm:$0xff] %v2840_v3 }
 0x809   :  { %2847 = vsyncpa [#allocation5], 1 }

// kernel: gradblock_pallas.1
= control target key start
LH: loop header
LB: loop body
LE: loop exit
PB: predicated region body
PF: predicated region fallthrough
CT: control target
= control target key end

     0   :  { %14 = vsyncpa [#allocation5], 0  ;;  %s3079_s30 = smov [#allocation4]   ;;  %s4415_s0 = inlined_call_operand.vmem [shape: f32[8,256], index: 0, kind: input, shape index: {}]   ;;  %s4416_s1 = inlined_call_operand.vmem [shape: f32[2,256], index: 1, kind: input, shape index: {}]   ;;  %s4417_s2 = inlined_call_operand.hbm [shape: f32[256,256], index: 2, kind: input, shape index: {}]   ;;  %s4418_s3 = inlined_call_operand.vmem [shape: f32[2,256], index: 3, kind: input, shape index: {}]   ;;  %s4419_s4 = inlined_call_operand.vmem [shape: f32[8,4], index: 4, kind: input, shape index: {}]   ;;  %s4420_s5 = inlined_call_operand.vmem [shape: f32[2,72], index: 5, kind: input, shape index: {}]   ;;  %s4421_s6 = inlined_call_operand.vmem [shape: f32[8,72], index: 6, kind: input, shape index: {}]   ;;  %s4422_s7 = inlined_call_operand.vmem [shape: f32[8,72], index: 7, kind: input, shape index: {}]   ;;  %s4423_s8 = inlined_call_operand.vmem [shape: f32[8,72], index: 8, kind: input, shape index: {}]   ;;  %s4424_s9 = inlined_call_operand.vmem [shape: f32[8,256], index: 9, kind: output, shape index: {}]  }
   0x1   :  { %s24_s10 = sshll.u32 %s3079_s30, 4  ;;  %s3055_s13 = scalar_lea.hbm %s4417_s2, 8192  ;;  %s25_s10 = int_to_ptr.vmem [resolvable:$true] %s24_s10 }
   0x2   :  { %p3056_p0 = scmp.ne.s32.totalorder %s4417_s2, %s3055_s13  ;;  %p3059_p1 = scmp.lt.u32.totalorder %s3055_s13, %s4417_s2 }
   0x4   :  { %p3061_p2 = pnand %p3059_p1, %p3056_p0 }
   0x6   :  { %3064 = shalt.err (!%p3061_p2)
}
   0x7   :  { %s3065_s18 = scalar_lea.vmem %s25_s10, 8192  ;;  %p3070_p4 = scmp.lt.s32.totalorder %s25_s10, %s25_s10 }
   0x8   :  { %p3066_p3 = scmp.ne.s32.totalorder %s25_s10, %s3065_s18  ;;  %p3071_p5 = scmp.lt.s32.totalorder %s3065_s18, %s3065_s18 }
   0xa   :  { %p3072_p6 = por %p3071_p5, %p3070_p4 }
   0xc   :  { %p3073_p7 = pnand %p3072_p6, %p3066_p3 }
   0xe   :  { %3076 = shalt.err (!%p3073_p7)
}
   0xf   :  { %s3080_s19 = smov 256   ;;  %s3081_s20 = smov 16  }
  0x10   :  { %30 = dma.hbm_to_vmem [thread:$0]  %s4417_s2, 8192, %s25_s10, [#allocation5], %s3080_s19, %s3080_s19, %s3081_s20  }
  0x11   :  { %3077 = dma.done.wait [#allocation5], 8192  }
  0x12   :  { %3078 = vsyncadd [#allocation5], 4294959104  ;;  %v60_v0 = vlaneseq  ;;  %v3082_v1 = vmov 0.0   ;;  %v2571_v5 = vld [vmem:[%s4418_s3 + $0x1] ss:$2 sm:$0x3] }
  0x13   :  { %49 = vst [vmem:[#allocation2] sm:$0xff] %v3082_v1  ;;  %50 = vst [vmem:[#allocation2 + $0x18] sm:$0xff] %v3082_v1  ;;  %388 = vmatprep.mubr.f32.mxu0 %v3082_v1  ;;  %v46_v6 = vld [vmem:[%s4418_s3] ss:$2 sm:$0x3]  ;;  %v3169_v9 = vld [vmem:[%s4415_s0 + $0x8] sm:$0xff] }
  0x14   :  { %v61_v2 = vshrl.u32 %v60_v0, 7  ;;  %4659 = vst [vmem:[#allocation7_spill] sm:$0xff] %v3169_v9  ;;  %v3174_v10 = vld [vmem:[%s4415_s0] sm:$0xff]  ;;  %55 = vst [vmem:[#allocation2 + $0x10] sm:$0xff] %v3169_v9  ;;  %s3083_s3 = smov 113   ;;  %s3084_s30 = smov 111  }
  0x15   :  { %4660 = vst [vmem:[#allocation8_spill] sm:$0xff] %v3174_v10  ;;  %54 = vst [vmem:[#allocation2 + $0x8] sm:$0xff] %v3174_v10  ;;  %s3085_s0 = smov 127   ;;  %s3086_s10 = smov 1   ;;  %v3090_v13 = vmov 0   ;;  %vm72_vm0 = vcmask 908288  }
  0x16   :  { %v62_v3 = vsub.s32 0, %v61_v2  ;;  %v66_v4 = vsub.s32 1, %v61_v2  ;;  %189 = vst [vmem:[#allocation3 + $0x48] sm:$0xff] %v3169_v9  ;;  %188 = vst [vmem:[#allocation3 + $0x40] sm:$0xff] %v3174_v10  ;;  %s3087_s11 = smov 15   ;;  %s3088_s12 = smov 17   ;;  %3050 = vset.pattern.permute.xlu0 %v3090_v13 }
  0x17   :  { %s3089_s13 = smov 112   ;;  %vm131_vm1 = vcmask 924672   ;;  %vm108_vm2 = vcmask 130048   ;;  %vm162_vm3 = vcmask 1039360   ;;  %vm148_vm4 = vcmask 121856   ;;  %v402_v13 = vld [vmem:[#allocation4 + $0x38] sm:$0xff] }
  0x18   :  { %v122_v7 = vrot.slane %v2571_v5, %v62_v3  ;;  %v63_v8 = vrot.slane %v46_v6, %v62_v3  ;;  %v126_v11 = vrot.slane %v2571_v5, %v66_v4  ;;  %v67_v12 = vrot.slane %v46_v6, %v66_v4  ;;  %v53_v59 = vld [vmem:[%s4419_s4] sm:$0x3]  ;;  %v396_v3 = vld [vmem:[#allocation4 + $0x8] sm:$0xff]  ;;  %v398_v4 = vld [vmem:[#allocation4 + $0x18] sm:$0xff] }
  0x19   :  { %vm89_vm5 = vcmask 138240   ;;  %vm179_vm6 = vcmask 7168   ;;  %v395_v5 = vld [vmem:[#allocation4] sm:$0xff]  ;;  %v459_v6 = vand.u32 4294901760, %v396_v3  ;;  %vm260_vm7 = vcmask 916480  }
  0x1a   :  { %127 = vrot.lane.b32.xlu1 %v122_v7, %s3083_s3  ;;  %68 = vrot.lane.b32.xlu0 %v63_v8, %s3084_s30  ;;  %v1781_v54 = vld [vmem:[#allocation2] sm:$0x3]  ;;  %v1847_v58 = vld [vmem:[#allocation2 + $0x18] sm:$0x3]  ;;  %vm320_vm8 = vcmask 588800  }
  0x1b   :  { %v1820_v55 = vld [vmem:[#allocation2] sm:$0x3] }
  0x1c   :  { %v1760_v61 = vld [vmem:[#allocation2] sm:$0x3] }
  0x1d   :  { %v1799_v63 = vld [vmem:[#allocation2] sm:$0x3] }
  0x1e   :  { %129 = vrot.lane.b32.xlu1 %v126_v11, %s3083_s3  ;;  %70 = vrot.lane.b32.xlu0 %v67_v12, %s3084_s30 }
  0x22   :  { %160 = vrot.lane.b32.xlu1 %v67_v12, %s3085_s0  ;;  %158 = vrot.lane.b32.xlu0 %v63_v8, %s3085_s0 }
  0x26   :  { %195 = vrot.lane.b32.xlu1 %v126_v11, %s3086_s10  ;;  %193 = vrot.lane.b32.xlu0 %v122_v7, %s3086_s10 }
  0x2a   :  { %224 = vrot.lane.b32.xlu1 %v67_v12, %s3087_s11  ;;  %222 = vrot.lane.b32.xlu0 %v63_v8, %s3087_s11  ;;  %v397_v8 = vld [vmem:[#allocation4 + $0x10] sm:$0xff]  ;;  %v400_v12 = vld [vmem:[#allocation4 + $0x28] sm:$0xff] }
  0x2e   :  { %272 = vrot.lane.b32.xlu1 %v126_v11, %s3088_s12  ;;  %270 = vrot.lane.b32.xlu0 %v122_v7, %s3088_s12  ;;  %v463_v7 = vand.u32 4294901760, %v398_v4  ;;  %v461_v11 = vand.u32 4294901760, %v395_v5 }
  0x32   :  { %106 = vrot.lane.b32.xlu1 %v3169_v9, %s3081_s20  ;;  %104 = vrot.lane.b32.xlu0 %v3174_v10, %s3081_s20 }
  0x36   :  { %102 = vrot.lane.b32.xlu1 %v3082_v1, %s3081_s20 }
  0x3a   :  { %256 = vrot.lane.b32.xlu1 %v3169_v9, %s3089_s13 }
  0x8c   :  { %v3200_v14 = vpop.permute.xlu1 %127  ;;  %v3202_v15 = vpop.permute.xlu0 %68 }
  0x8d   :  { %4661 = vst [vmem:[#allocation9_spill] sm:$0xff] %v3200_v14  ;;  %4662 = vst [vmem:[#allocation10_spill] sm:$0xff] %v3202_v15  ;;  %v77_v16 = vmul.f32 0.0, %v3202_v15  ;;  %v136_v19 = vmul.f32 0.0, %v3200_v14  ;;  %v1763_v62 = vmul.f32 %v1760_v61, %v3202_v15  ;;  %v1802_v0 = vmul.f32 %v1799_v63, %v3200_v14  ;;  %v407_v63 = vld [vmem:[#allocation4 + $0x60] sm:$0xff] }
  0x8f   :  { %83 = vrot.lane.b32.xlu0 %v77_v16, %s3088_s12  ;;  %v465_v16 = vand.u32 4294901760, %v397_v8 }
  0x90   :  { %v3206_v17 = vpop.permute.xlu1 %129  ;;  %v3208_v18 = vpop.permute.xlu0 %70 }
  0x91   :  { %4663 = vst [vmem:[#allocation11_spill] sm:$0xff] %v3206_v17  ;;  %4664 = vst [vmem:[#allocation12_spill] sm:$0xff] %v3208_v18  ;;  %v79_v20 = vmul.f32 %v3208_v18, %v3169_v9  ;;  %v138_v23 = vmul.f32 %v3206_v17, %v3169_v9  ;;  %v3241_v32 = vsel %vm72_vm0, %v3202_v15, %v3208_v18 }
  0x92   :  { %4671 = vst [vmem:[#allocation19_spill] sm:$0xff] %v3241_v32  ;;  %v78_v36 = vmul.f32 %v3241_v32, %v3174_v10  ;;  %v3255_v37 = vsel %vm131_vm1, %v3200_v14, %v3206_v17 }
  0x93   :  { %142 = vrot.lane.b32.xlu0 %v136_v19, %s3087_s11  ;;  %87 = vrot.lane.b32.xlu1 %v79_v20, %s3088_s12  ;;  %4674 = vst [vmem:[#allocation22_spill] sm:$0xff] %v3255_v37  ;;  %v137_v41 = vmul.f32 %v3255_v37, %v3174_v10  ;;  %v467_v19 = vand.u32 4294901760, %v400_v12  ;;  %v471_v20 = vand.u32 4294901760, %v402_v13 }
  0x94   :  { %v3215_v21 = vpop.permute.xlu1 %160  ;;  %v3217_v22 = vpop.permute.xlu0 %158 }
  0x95   :  { %4665 = vst [vmem:[#allocation13_spill] sm:$0xff] %v3215_v21  ;;  %4666 = vst [vmem:[#allocation14_spill] sm:$0xff] %v3217_v22  ;;  %v169_v26 = vmul.f32 %v3215_v21, %v3169_v9  ;;  %v167_v30 = vmul.f32 0.0, %v3217_v22  ;;  %v3269_v43 = vsel %vm162_vm3, %v3217_v22, %v3215_v21  ;;  %v1823_v57 = vmul.f32 %v1820_v55, %v3217_v22  ;;  %v422_v21 = vld [vmem:[#allocation4 + $0xd8] sm:$0xff] }
  0x96   :  { %4675 = vst [vmem:[#allocation23_spill] sm:$0xff] %v3269_v43  ;;  %v168_v47 = vmul.f32 %v3269_v43, %v3174_v10  ;;  %v511_v18 = vand.u32 4294901760, %v422_v21 }
  0x97   :  { %146 = vrot.lane.b32.xlu1 %v138_v23, %s3087_s11  ;;  %v399_v23 = vld [vmem:[#allocation4 + $0x20] sm:$0xff] }
  0x98   :  { %v3222_v24 = vpop.permute.xlu1 %195  ;;  %v3224_v25 = vpop.permute.xlu0 %193 }
  0x99   :  { %4667 = vst [vmem:[#allocation15_spill] sm:$0xff] %v3222_v24  ;;  %4668 = vst [vmem:[#allocation16_spill] sm:$0xff] %v3224_v25  ;;  %v201_v27 = vmul.f32 %v3224_v25, %v3174_v10  ;;  %v203_v35 = vmul.f32 0.0, %v3222_v24  ;;  %v3294_v50 = vsel %vm179_vm6, %v3224_v25, %v3222_v24  ;;  %v1850_v60 = vmul.f32 %v1847_v58, %v3222_v24  ;;  %v418_v24 = vld [vmem:[#allocation4 + $0xb8] sm:$0xff] }
  0x9a   :  { %4678 = vst [vmem:[#allocation26_spill] sm:$0xff] %v3294_v50  ;;  %v202_v52 = vmul.f32 %v3294_v50, %v3169_v9  ;;  %v3352_v58 = vpack.c.bf16 %v465_v16, %v461_v11 }
  0x9b   :  { %177 = vrot.lane.b32.xlu1 %v169_v26, %s3086_s10  ;;  %207 = vrot.lane.b32.xlu0 %v201_v27, %s3085_s0  ;;  %v401_v26 = vld [vmem:[#allocation4 + $0x30] sm:$0xff]  ;;  %v3328_v27 = vsub.f32 %v396_v3, %v459_v6  ;;  %v3356_v3 = vpack.c.bf16 %v471_v20, %v467_v19 }
  0x9c   :  { %v3232_v28 = vpop.permute.xlu1 %224  ;;  %v3234_v29 = vpop.permute.xlu0 %222  ;;  %4687 = vst [vmem:[#allocation35_spill] sm:$0xff] %v3352_v58 }
  0x9d   :  { %4669 = vst [vmem:[#allocation17_spill] sm:$0xff] %v3232_v28  ;;  %4670 = vst [vmem:[#allocation18_spill] sm:$0xff] %v3234_v29  ;;  %v232_v31 = vmul.f32 0.0, %v3232_v28  ;;  %v230_v38 = vmul.f32 %v3234_v29, %v3174_v10  ;;  %v3274_v44 = vsel %vm148_vm4, %v3234_v29, %v3232_v28  ;;  %v420_v29 = vld [vmem:[#allocation4 + $0xc8] sm:$0xff] }
  0x9e   :  { %4676 = vst [vmem:[#allocation24_spill] sm:$0xff] %v3274_v44  ;;  %v231_v48 = vmul.f32 %v3274_v44, %v3169_v9  ;;  %4688 = vst [vmem:[#allocation36_spill] sm:$0xff] %v3356_v3  ;;  %v507_v50 = vand.u32 4294901760, %v420_v29 }
  0x9f   :  { %173 = vrot.lane.b32.xlu1 %v167_v30, %s3086_s10  ;;  %240 = vrot.lane.b32.xlu0 %v232_v31, %s3083_s3  ;;  %v3330_v30 = vsub.f32 %v398_v4, %v463_v7  ;;  %v3332_v31 = vsub.f32 %v395_v5, %v461_v11  ;;  %v412_v11 = vld [vmem:[#allocation4 + $0x88] sm:$0xff] }
  0xa0   :  { %v3245_v33 = vpop.permute.xlu1 %272  ;;  %v3247_v34 = vpop.permute.xlu0 %270  ;;  %v491_v22 = vand.u32 4294901760, %v412_v11 }
  0xa1   :  { %4672 = vst [vmem:[#allocation20_spill] sm:$0xff] %v3245_v33  ;;  %4673 = vst [vmem:[#allocation21_spill] sm:$0xff] %v3247_v34  ;;  %v3282_v45 = vsel %vm89_vm5, %v3247_v34, %v3245_v33  ;;  %v278_v53 = vmul.f32 %v3247_v34, %v3174_v10  ;;  %v280_v56 = vmul.f32 0.0, %v3245_v33 }
  0xa2   :  { %4677 = vst [vmem:[#allocation25_spill] sm:$0xff] %v3282_v45  ;;  %v279_v51 = vmul.f32 %v3282_v45, %v3169_v9  ;;  %4679 = vst [vmem:[#allocation27_spill] sm:$0xff] %v3330_v30  ;;  %v503_v45 = vand.u32 4294901760, %v418_v24 }
  0xa3   :  { %211 = vrot.lane.b32.xlu1 %v203_v35, %s3085_s0  ;;  %85 = vrot.lane.b32.xlu0 %v78_v36, %s3088_s12  ;;  %4680 = vst [vmem:[#allocation28_spill] sm:$0xff] %v3332_v31  ;;  %v469_v35 = vand.u32 4294901760, %v399_v23  ;;  %v3334_v36 = vsub.f32 %v397_v8, %v465_v16  ;;  %v485_v16 = vand.u32 4294901760, %v407_v63 }
  0xa4   :  { %v107_v39 = vpop.permute.xlu1 %106  ;;  %v105_v40 = vpop.permute.xlu0 %104 }
  0xa5   :  { %v3264_v42 = vsel %vm108_vm2, %v105_v40, %v107_v39  ;;  %4681 = vst [vmem:[#allocation29_spill] sm:$0xff] %v3334_v36  ;;  %v3338_v39 = vsub.f32 %v402_v13, %v471_v20 }
  0xa6   :  { %114 = vst [vmem:[#allocation3 + $0x18] sm:$0xff] %v3264_v42 }
  0xa7   :  { %144 = vrot.lane.b32.xlu0 %v137_v41, %s3087_s11  ;;  %236 = vrot.lane.b32.xlu1 %v230_v38, %s3083_s3  ;;  %v3336_v38 = vsub.f32 %v400_v12, %v467_v19  ;;  %4683 = vst [vmem:[#allocation31_spill] sm:$0xff] %v3338_v39  ;;  %v404_v41 = vld [vmem:[#allocation4 + $0x48] sm:$0xff]  ;;  %v413_v19 = vld [vmem:[#allocation4 + $0x90] sm:$0xff] }
  0xa8   :  { %v103_v46 = vpop.permute.xlu1 %102 }
  0xa9   :  { %v3289_v49 = vsel %vm108_vm2, %v103_v46, %v105_v40  ;;  %4682 = vst [vmem:[#allocation30_spill] sm:$0xff] %v3336_v38  ;;  %v473_v40 = vand.u32 4294901760, %v401_v26  ;;  %v406_v46 = vld [vmem:[#allocation4 + $0x58] sm:$0xff]  ;;  %v2725_v55 = vpack.c.bf16 %v3338_v39, %v3336_v38  ;;  %v445_v39 = vld [vmem:[#allocation4 + $0x190] sm:$0xff] }
  0xaa   :  { %113 = vst [vmem:[#allocation3 + $0x10] sm:$0xff] %v3289_v49 }
  0xab   :  { %175 = vrot.lane.b32.xlu0 %v168_v47, %s3086_s10  ;;  %238 = vrot.lane.b32.xlu1 %v231_v48, %s3083_s3  ;;  %v403_v47 = vld [vmem:[#allocation4 + $0x40] sm:$0xff]  ;;  %v2721_v48 = vpack.c.bf16 %v3330_v30, %v3328_v27  ;;  %v3358_v4 = vpack.c.bf16 %v473_v40, %v469_v35 }
  0xac   :  { %v477_v61 = vand.u32 4294901760, %v403_v47 }
  0xad   :  { %2722 = vmatprep.subr.bf16.mxu1 %v2721_v48  ;;  %4689 = vst [vmem:[#allocation37_spill] sm:$0xff] %v3358_v4  ;;  %v411_v48 = vld [vmem:[#allocation4 + $0x80] sm:$0xff] }
  0xaf   :  { %209 = vrot.lane.b32.xlu0 %v202_v52, %s3085_s0  ;;  %286 = vrot.lane.b32.xlu1 %v279_v51, %s3084_s30  ;;  %v3342_v51 = vsub.f32 %v399_v23, %v469_v35  ;;  %v3344_v52 = vpack.c.bf16 %v463_v7, %v459_v6  ;;  %v3364_v7 = vsub.f32 %v403_v47, %v477_v61 }
  0xb1   :  { %4684 = vst [vmem:[#allocation32_spill] sm:$0xff] %v3342_v51  ;;  %4685 = vst [vmem:[#allocation33_spill] sm:$0xff] %v3344_v52 }
  0xb2   :  { %4692 = vst [vmem:[#allocation40_spill] sm:$0xff] %v3364_v7 }
  0xb3   :  { %258 = vrot.lane.b32.xlu0 %v3082_v1, %s3089_s13  ;;  %284 = vrot.lane.b32.xlu1 %v278_v53, %s3084_s30  ;;  %v1868_v1 = vld [vmem:[#allocation2 + $0x18] sm:$0x3]  ;;  %v405_v53 = vld [vmem:[#allocation4 + $0x50] sm:$0xff] }
  0xb4   :  { %v1871_v2 = vmul.f32 %v1868_v1, %v3232_v28  ;;  %v493_v28 = vand.u32 4294901760, %v411_v48 }
  0xb7   :  { %254 = vrot.lane.b32.xlu0 %v3174_v10, %s3089_s13  ;;  %1787 = vrot.lane.b32.xlu1 %v1781_v54, %s3081_s20  ;;  %v2723_v54 = vpack.c.bf16 %v3334_v36, %v3332_v31  ;;  %v561_v31 = vand.u32 4294901760, %v445_v39 }
  0xb9   :  { %2724 = vmatpush1.bf16.msra.mxu1 %v2723_v54 }
  0xba   :  { %2726 = vmatprep.subr.bf16.mxu1 %v2725_v55  ;;  %v416_v55 = vld [vmem:[#allocation4 + $0xa8] sm:$0xff] }
  0xbb   :  { %288 = vrot.lane.b32.xlu0 %v280_v56, %s3084_s30  ;;  %1829 = vrot.lane.b32.xlu1 %v1823_v57, %s3086_s10  ;;  %v3350_v56 = vsub.f32 %v401_v26, %v473_v40  ;;  %v408_v57 = vld [vmem:[#allocation4 + $0x68] sm:$0xff]  ;;  %v414_v26 = vld [vmem:[#allocation4 + $0x98] sm:$0xff]  ;;  %v499_v15 = vand.u32 4294901760, %v416_v55 }
  0xbc   :  { %v483_v8 = vand.u32 4294901760, %v408_v57 }
  0xbd   :  { %4686 = vst [vmem:[#allocation34_spill] sm:$0xff] %v3350_v56  ;;  %v2727_v1 = vpack.c.bf16 %v3350_v56, %v3342_v51  ;;  %v3416_v32 = vpack.c.bf16 %v503_v45, %v499_v15  ;;  %v443_v51 = vld [vmem:[#allocation4 + $0x180] sm:$0xff] }
  0xbe   :  { %v3370_v35 = vsub.f32 %v408_v57, %v483_v8  ;;  %v495_v57 = vand.u32 4294901760, %v414_v26  ;;  %v557_v36 = vand.u32 4294901760, %v443_v51 }
  0xbf   :  { %317 = vperm.xlu0 %3050, %v53_v59   ;;  %1858 = vrot.lane.b32.xlu1 %v1850_v60, %s3085_s0  ;;  %v475_v59 = vand.u32 4294901760, %v404_v41  ;;  %v479_v60 = vand.u32 4294901760, %v406_v46  ;;  %4712 = vst [vmem:[#allocation60_spill] sm:$0xff] %v3416_v32 }
  0xc0   :  { %4694 = vst [vmem:[#allocation42_spill] sm:$0xff] %v3370_v35  ;;  %2728 = vmatpush1.bf16.msra.mxu1 %v2727_v1  ;;  %v3394_v14 = vsub.f32 %v414_v26, %v495_v57 }
  0xc1   :  { %v3360_v5 = vsub.f32 %v404_v41, %v475_v59  ;;  %v3362_v6 = vsub.f32 %v406_v46, %v479_v60  ;;  %v3372_v40 = vpack.c.bf16 %v479_v60, %v475_v59  ;;  %v497_v59 = vand.u32 4294901760, %v413_v19  ;;  %v415_v60 = vld [vmem:[#allocation4 + $0xa0] sm:$0xff] }
  0xc2   :  { %4703 = vst [vmem:[#allocation51_spill] sm:$0xff] %v3394_v14  ;;  %v501_v44 = vand.u32 4294901760, %v415_v60 }
  0xc3   :  { %1769 = vrot.lane.b32.xlu0 %v1763_v62, %s3088_s12  ;;  %v410_v62 = vld [vmem:[#allocation4 + $0x78] sm:$0xff]  ;;  %4690 = vst [vmem:[#allocation38_spill] sm:$0xff] %v3360_v5  ;;  %4691 = vst [vmem:[#allocation39_spill] sm:$0xff] %v3362_v6  ;;  %v2729_v20 = vpack.c.bf16 %v3362_v6, %v3360_v5  ;;  %v3398_v34 = vsub.f32 %v413_v19, %v497_v59  ;;  %v3410_v19 = vsub.f32 %v418_v24, %v503_v45  ;;  %v427_v45 = vld [vmem:[#allocation4 + $0x100] sm:$0xff] }
  0xc4   :  { %v487_v13 = vand.u32 4294901760, %v410_v62  ;;  %4695 = vst [vmem:[#allocation43_spill] sm:$0xff] %v3372_v40  ;;  %v3412_v17 = vsub.f32 %v415_v60, %v501_v44  ;;  %v3424_v60 = vsub.f32 %v422_v21, %v511_v18 }
  0xc5   :  { %2730 = vmatprep.subr.bf16.mxu1 %v2729_v20  ;;  %v3396_v20 = vsub.f32 %v411_v48, %v493_v28  ;;  %4705 = vst [vmem:[#allocation53_spill] sm:$0xff] %v3398_v34  ;;  %v3408_v48 = vsub.f32 %v416_v55, %v499_v15  ;;  %4709 = vst [vmem:[#allocation57_spill] sm:$0xff] %v3410_v19  ;;  %v3422_v55 = vsub.f32 %v420_v29, %v507_v50 }
  0xc6   :  { %v3378_v47 = vsub.f32 %v410_v62, %v487_v13  ;;  %4710 = vst [vmem:[#allocation58_spill] sm:$0xff] %v3412_v17  ;;  %4715 = vst [vmem:[#allocation63_spill] sm:$0xff] %v3424_v60 }
  0xc7   :  { %1808 = vrot.lane.b32.xlu0 %v1802_v0, %s3087_s11  ;;  %v409_v0 = vld [vmem:[#allocation4 + $0x70] sm:$0xff]  ;;  %4704 = vst [vmem:[#allocation52_spill] sm:$0xff] %v3396_v20  ;;  %v2739_v26 = vpack.c.bf16 %v3398_v34, %v3396_v20  ;;  %4708 = vst [vmem:[#allocation56_spill] sm:$0xff] %v3408_v48  ;;  %v2741_v24 = vpack.c.bf16 %v3410_v19, %v3408_v48  ;;  %v2745_v29 = vpack.c.bf16 %v3424_v60, %v3422_v55 }
  0xc8   :  { %v489_v23 = vand.u32 4294901760, %v409_v0  ;;  %4697 = vst [vmem:[#allocation45_spill] sm:$0xff] %v3378_v47  ;;  %v2733_v1 = vpack.c.bf16 %v3378_v47, %v3370_v35  ;;  %4714 = vst [vmem:[#allocation62_spill] sm:$0xff] %v3422_v55  ;;  %v435_v47 = vld [vmem:[#allocation4 + $0x140] sm:$0xff]  ;;  %v437_v35 = vld [vmem:[#allocation4 + $0x150] sm:$0xff] }
  0xc9   :  { %v541_v6 = vand.u32 4294901760, %v435_v47 }
  0xca   :  { %v3382_v54 = vsub.f32 %v409_v0, %v489_v23  ;;  %v3392_v0 = vsub.f32 %v412_v11, %v491_v22  ;;  %v3404_v11 = vpack.c.bf16 %v497_v59, %v493_v28  ;;  %v425_v28 = vld [vmem:[#allocation4 + $0xf0] sm:$0xff] }
  0xcb   :  { %1879 = vrot.lane.b32.xlu0 %v1871_v2, %s3083_s3  ;;  %v481_v2 = vand.u32 4294901760, %v405_v53  ;;  %v521_v20 = vand.u32 4294901760, %v425_v28 }
  0xcc   :  { %4699 = vst [vmem:[#allocation47_spill] sm:$0xff] %v3382_v54  ;;  %4702 = vst [vmem:[#allocation50_spill] sm:$0xff] %v3392_v0 }
  0xcd   :  { %v3366_v12 = vsub.f32 %v405_v53, %v481_v2  ;;  %v3374_v41 = vpack.c.bf16 %v481_v2, %v477_v61  ;;  %v3380_v53 = vsub.f32 %v407_v63, %v485_v16  ;;  %v417_v61 = vld [vmem:[#allocation4 + $0xb0] sm:$0xff]  ;;  %v3388_v2 = vpack.c.bf16 %v487_v13, %v483_v8  ;;  %4707 = vst [vmem:[#allocation55_spill] sm:$0xff] %v3404_v11 }
  0xce   :  { %v3390_v63 = vpack.c.bf16 %v489_v23, %v485_v16  ;;  %v505_v33 = vand.u32 4294901760, %v417_v61  ;;  %v2737_v8 = vpack.c.bf16 %v3394_v14, %v3392_v0  ;;  %v3402_v13 = vpack.c.bf16 %v495_v57, %v491_v22  ;;  %v419_v16 = vld [vmem:[#allocation4 + $0xc0] sm:$0xff]  ;;  %v421_v23 = vld [vmem:[#allocation4 + $0xd0] sm:$0xff]  ;;  %v426_v22 = vld [vmem:[#allocation4 + $0xf8] sm:$0xff] }
  0xcf   :  { %4693 = vst [vmem:[#allocation41_spill] sm:$0xff] %v3366_v12  ;;  %4696 = vst [vmem:[#allocation44_spill] sm:$0xff] %v3374_v41  ;;  %v2731_v46 = vpack.c.bf16 %v3366_v12, %v3364_v7  ;;  %v2735_v62 = vpack.c.bf16 %v3382_v54, %v3380_v53  ;;  %v423_v57 = vld [vmem:[#allocation4 + $0xe0] sm:$0xff]  ;;  %v509_v59 = vand.u32 4294901760, %v419_v16  ;;  %v513_v25 = vand.u32 4294901760, %v421_v23  ;;  %v428_v14 = vld [vmem:[#allocation4 + $0x108] sm:$0xff] }
  0xd0   :  { %4698 = vst [vmem:[#allocation46_spill] sm:$0xff] %v3380_v53  ;;  %4700 = vst [vmem:[#allocation48_spill] sm:$0xff] %v3388_v2  ;;  %v3418_v43 = vpack.c.bf16 %v505_v33, %v501_v44  ;;  %v519_v37 = vand.u32 4294901760, %v426_v22  ;;  %v517_v34 = vand.u32 4294901760, %v423_v57  ;;  %v3426_v0 = vpack.c.bf16 %v511_v18, %v507_v50  ;;  %v434_v54 = vld [vmem:[#allocation4 + $0x138] sm:$0xff]  ;;  %v440_v12 = vld [vmem:[#allocation4 + $0x168] sm:$0xff] }
  0xd1   :  { %4701 = vst [vmem:[#allocation49_spill] sm:$0xff] %v3390_v63  ;;  %2732 = vmatpush1.bf16.msra.mxu1 %v2731_v46  ;;  %4706 = vst [vmem:[#allocation54_spill] sm:$0xff] %v3402_v13  ;;  %v424_v46 = vld [vmem:[#allocation4 + $0xe8] sm:$0xff]  ;;  %v3428_v15 = vpack.c.bf16 %v513_v25, %v509_v59  ;;  %v3434_v44 = vsub.f32 %v419_v16, %v509_v59  ;;  %v3436_v21 = vsub.f32 %v421_v23, %v513_v25  ;;  %v442_v7 = vld [vmem:[#allocation4 + $0x178] sm:$0xff] }
  0xd2   :  { %2734 = vmatprep.subr.bf16.mxu1 %v2733_v1  ;;  %v3414_v1 = vsub.f32 %v417_v61, %v505_v33  ;;  %4713 = vst [vmem:[#allocation61_spill] sm:$0xff] %v3418_v43  ;;  %v515_v61 = vand.u32 4294901760, %v424_v46  ;;  %4716 = vst [vmem:[#allocation64_spill] sm:$0xff] %v3426_v0  ;;  %v3440_v18 = vsub.f32 %v426_v22, %v519_v37  ;;  %v523_v50 = vand.u32 4294901760, %v428_v14  ;;  %v431_v22 = vld [vmem:[#allocation4 + $0x120] sm:$0xff] }
  0xd3   :  { %4717 = vst [vmem:[#allocation65_spill] sm:$0xff] %v3428_v15  ;;  %4718 = vst [vmem:[#allocation66_spill] sm:$0xff] %v3434_v44  ;;  %v3442_v53 = vsub.f32 %v423_v57, %v517_v34  ;;  %v3448_v16 = vpack.c.bf16 %v521_v20, %v517_v34  ;;  %v2747_v55 = vpack.c.bf16 %v3436_v21, %v3434_v44 }
  0xd4   :  { %4711 = vst [vmem:[#allocation59_spill] sm:$0xff] %v3414_v1  ;;  %v2743_v33 = vpack.c.bf16 %v3414_v1, %v3412_v17  ;;  %4719 = vst [vmem:[#allocation67_spill] sm:$0xff] %v3436_v21  ;;  %v3438_v19 = vsub.f32 %v424_v46, %v515_v61  ;;  %v3444_v1 = vsub.f32 %v425_v28, %v521_v20  ;;  %v525_v46 = vand.u32 4294901760, %v427_v45  ;;  %v436_v20 = vld [vmem:[#allocation4 + $0x148] sm:$0xff] }
  0xd5   :  { %2736 = vmatpush1.bf16.msra.mxu1 %v2735_v62  ;;  %v430_v62 = vld [vmem:[#allocation4 + $0x118] sm:$0xff]  ;;  %4721 = vst [vmem:[#allocation69_spill] sm:$0xff] %v3440_v18  ;;  %4722 = vst [vmem:[#allocation70_spill] sm:$0xff] %v3442_v53  ;;  %v3446_v60 = vpack.c.bf16 %v519_v37, %v515_v61  ;;  %v3450_v25 = vsub.f32 %v428_v14, %v523_v50  ;;  %v535_v17 = vand.u32 4294901760, %v434_v54  ;;  %v533_v28 = vand.u32 4294901760, %v431_v22 }
  0xd6   :  { %2738 = vmatprep.subr.bf16.mxu1 %v2737_v8  ;;  %v429_v8 = vld [vmem:[#allocation4 + $0x110] sm:$0xff]  ;;  %4720 = vst [vmem:[#allocation68_spill] sm:$0xff] %v3438_v19  ;;  %v527_v48 = vand.u32 4294901760, %v430_v62  ;;  %4723 = vst [vmem:[#allocation71_spill] sm:$0xff] %v3444_v1  ;;  %v2749_v37 = vpack.c.bf16 %v3440_v18, %v3438_v19 }
  0xd7   :  { %4724 = vst [vmem:[#allocation72_spill] sm:$0xff] %v3446_v60  ;;  %4725 = vst [vmem:[#allocation73_spill] sm:$0xff] %v3448_v16  ;;  %v529_v59 = vand.u32 4294901760, %v429_v8 }
  0xd8   :  { %4726 = vst [vmem:[#allocation74_spill] sm:$0xff] %v3450_v25  ;;  %v3452_v23 = vsub.f32 %v430_v62, %v527_v48  ;;  %v3458_v34 = vpack.c.bf16 %v527_v48, %v523_v50  ;;  %v438_v62 = vld [vmem:[#allocation4 + $0x158] sm:$0xff]  ;;  %v3472_v50 = vsub.f32 %v434_v54, %v535_v17 }
  0xd9   :  { %2740 = vmatpush1.bf16.msra.mxu1 %v2739_v26  ;;  %v432_v26 = vld [vmem:[#allocation4 + $0x128] sm:$0xff]  ;;  %v3460_v14 = vpack.c.bf16 %v529_v59, %v525_v46  ;;  %v3468_v44 = vsub.f32 %v429_v8, %v529_v59  ;;  %v3478_v8 = vsub.f32 %v431_v22, %v533_v28 }
  0xda   :  { %2742 = vmatprep.subr.bf16.mxu1 %v2741_v24  ;;  %4727 = vst [vmem:[#allocation75_spill] sm:$0xff] %v3452_v23  ;;  %v433_v24 = vld [vmem:[#allocation4 + $0x130] sm:$0xff]  ;;  %v531_v57 = vand.u32 4294901760, %v432_v26  ;;  %4728 = vst [vmem:[#allocation76_spill] sm:$0xff] %v3458_v34  ;;  %v2753_v21 = vpack.c.bf16 %v3452_v23, %v3450_v25  ;;  %v545_v23 = vand.u32 4294901760, %v437_v35  ;;  %v444_v59 = vld [vmem:[#allocation4 + $0x188] sm:$0xff] }
  0xdb   :  { %4729 = vst [vmem:[#allocation77_spill] sm:$0xff] %v3460_v14  ;;  %v537_v61 = vand.u32 4294901760, %v433_v24  ;;  %4731 = vst [vmem:[#allocation79_spill] sm:$0xff] %v3468_v44  ;;  %v551_v25 = vand.u32 4294901760, %v442_v7 }
  0xdc   :  { %v3470_v48 = vsub.f32 %v432_v26, %v531_v57  ;;  %4733 = vst [vmem:[#allocation81_spill] sm:$0xff] %v3472_v50  ;;  %v3474_v18 = vpack.c.bf16 %v535_v17, %v531_v57  ;;  %4736 = vst [vmem:[#allocation84_spill] sm:$0xff] %v3478_v8  ;;  %v3486_v26 = vpack.c.bf16 %v545_v23, %v541_v6  ;;  %v446_v57 = vld [vmem:[#allocation4 + $0x198] sm:$0xff] }
  0xdd   :  { %2744 = vmatpush1.bf16.msra.mxu1 %v2743_v33  ;;  %v2751_v33 = vpack.c.bf16 %v3444_v1, %v3442_v53  ;;  %v3476_v19 = vpack.c.bf16 %v537_v61, %v533_v28  ;;  %v539_v1 = vand.u32 4294901760, %v436_v20  ;;  %v543_v53 = vand.u32 4294901760, %v438_v62 }
  0xde   :  { %2746 = vmatprep.subr.bf16.mxu1 %v2745_v29  ;;  %v3466_v29 = vsub.f32 %v427_v45, %v525_v46  ;;  %4732 = vst [vmem:[#allocation80_spill] sm:$0xff] %v3470_v48  ;;  %4734 = vst [vmem:[#allocation82_spill] sm:$0xff] %v3474_v18  ;;  %v439_v45 = vld [vmem:[#allocation4 + $0x160] sm:$0xff]  ;;  %v441_v46 = vld [vmem:[#allocation4 + $0x170] sm:$0xff]  ;;  %v2757_v22 = vpack.c.bf16 %v3472_v50, %v3470_v48  ;;  %v559_v38 = vand.u32 4294901760, %v446_v57 }
  0xdf   :  { %4735 = vst [vmem:[#allocation83_spill] sm:$0xff] %v3476_v19  ;;  %v3484_v17 = vpack.c.bf16 %v543_v53, %v539_v1  ;;  %4739 = vst [vmem:[#allocation87_spill] sm:$0xff] %v3486_v26  ;;  %v549_v5 = vand.u32 4294901760, %v439_v45  ;;  %v553_v56 = vand.u32 4294901760, %v441_v46  ;;  %v3492_v28 = vsub.f32 %v438_v62, %v543_v53  ;;  %v3516_v50 = vld [vmem:[#allocation4 + $0x1b8] sm:$0xff] }
  0xe0   :  { %4730 = vst [vmem:[#allocation78_spill] sm:$0xff] %v3466_v29  ;;  %v2755_v54 = vpack.c.bf16 %v3468_v44, %v3466_v29  ;;  %v555_v29 = vand.u32 4294901760, %v444_v59  ;;  %v3502_v30 = vsub.f32 %v437_v35, %v545_v23  ;;  %v3506_v53 = vsub.f32 %v442_v7, %v551_v25 }
  0xe1   :  { %2748 = vmatpush1.bf16.msra.mxu1 %v2747_v55  ;;  %v3480_v55 = vsub.f32 %v433_v24, %v537_v61  ;;  %4738 = vst [vmem:[#allocation86_spill] sm:$0xff] %v3484_v17  ;;  %v3490_v24 = vsub.f32 %v436_v20, %v539_v1  ;;  %v3520_v35 = vsub.f32 %v441_v46, %v553_v56 }
  0xe2   :  { %2750 = vmatprep.subr.bf16.mxu1 %v2749_v37  ;;  %v547_v37 = vand.u32 4294901760, %v440_v12  ;;  %v3510_v62 = vpack.c.bf16 %v559_v38, %v555_v29  ;;  %v3538_v46 = vsub.f32 %v443_v51, %v557_v36 }
  0xe3   :  { %4737 = vst [vmem:[#allocation85_spill] sm:$0xff] %v3480_v55  ;;  %v2759_v61 = vpack.c.bf16 %v3480_v55, %v3478_v8  ;;  %v2761_v20 = vpack.c.bf16 %v3492_v28, %v3490_v24  ;;  %v3512_v55 = vpack.c.bf16 %v561_v31, %v557_v36  ;;  %v3514_v8 = vld [vmem:[#allocation4 + $0x1a8] sm:$0xff] }
  0xe4   :  { %v3496_v44 = vpack.c.bf16 %v551_v25, %v547_v37  ;;  %v3504_v1 = vsub.f32 %v440_v12, %v547_v37  ;;  %4742 = vst [vmem:[#allocation90_spill] sm:$0xff] %v3510_v62  ;;  %v3528_v25 = vsub.f32 %v446_v57, %v559_v38  ;;  %v4534_v23 = vand.u32 4294901760, %v3514_v8  ;;  %4746 = vst [vmem:[#allocation94_spill] sm:$0xff] %v3538_v46 }
  0xe5   :  { %2752 = vmatpush1.bf16.msra.mxu1 %v2751_v33  ;;  %v3498_v33 = vpack.c.bf16 %v553_v56, %v549_v5  ;;  %4743 = vst [vmem:[#allocation91_spill] sm:$0xff] %v3512_v55  ;;  %v3534_v56 = vld [vmem:[#allocation4 + $0x1b0] sm:$0xff]  ;;  %v3540_v37 = vsub.f32 %v445_v39, %v561_v31 }
  0xe6   :  { %2754 = vmatprep.subr.bf16.mxu1 %v2753_v21  ;;  %4740 = vst [vmem:[#allocation88_spill] sm:$0xff] %v3496_v44  ;;  %v3500_v21 = vsub.f32 %v435_v47, %v541_v6  ;;  %v3518_v6 = vsub.f32 %v439_v45, %v549_v5  ;;  %v2765_v12 = vpack.c.bf16 %v3506_v53, %v3504_v1  ;;  %4745 = vst [vmem:[#allocation93_spill] sm:$0xff] %v3528_v25  ;;  %v3532_v5 = vld [vmem:[#allocation4 + $0x1a0] sm:$0xff] }
  0xe7   :  { %4741 = vst [vmem:[#allocation89_spill] sm:$0xff] %v3498_v33  ;;  %v3526_v47 = vsub.f32 %v444_v59, %v555_v29  ;;  %4747 = vst [vmem:[#allocation95_spill] sm:$0xff] %v3540_v37  ;;  %v4532_v29 = vand.u32 4294901760, %v3532_v5  ;;  %v4535_v38 = vand.u32 4294901760, %v3534_v56  ;;  %v3549_v57 = vsub.f32 %v3514_v8, %v4534_v23 }
  0xe8   :  { %v2763_v7 = vpack.c.bf16 %v3502_v30, %v3500_v21  ;;  %v2767_v45 = vpack.c.bf16 %v3520_v35, %v3518_v6  ;;  %v2771_v31 = vpack.c.bf16 %v3540_v37, %v3538_v46 }
  0xe9   :  { %2756 = vmatpush1.bf16.msra.mxu1 %v2755_v54  ;;  %4744 = vst [vmem:[#allocation92_spill] sm:$0xff] %v3526_v47  ;;  %v4533_v54 = vand.u32 4294901760, %v3516_v50  ;;  %v2769_v59 = vpack.c.bf16 %v3528_v25, %v3526_v47  ;;  %4748 = vst [vmem:[#allocation96_spill] sm:$0xff] %v3549_v57  ;;  %v3561_v39 = vsub.f32 %v3532_v5, %v4532_v29 }
  0xea   :  { %2758 = vmatprep.subr.bf16.mxu1 %v2757_v22  ;;  %v3566_v51 = vsub.f32 %v3534_v56, %v4535_v38  ;;  %v3568_v22 = vpop.permute.xlu1 %256 }
  0xeb   :  { %v3554_v36 = vsub.f32 %v3516_v50, %v4533_v54  ;;  %4750 = vst [vmem:[#allocation98_spill] sm:$0xff] %v3561_v39 }
  0xec   :  { %4751 = vst [vmem:[#allocation99_spill] sm:$0xff] %v3566_v51 }
  0xed   :  { %2760 = vmatpush1.bf16.msra.mxu1 %v2759_v61  ;;  %4749 = vst [vmem:[#allocation97_spill] sm:$0xff] %v3554_v36  ;;  %v2773_v61 = vpack.c.bf16 %v3554_v36, %v3549_v57 }
  0xee   :  { %2762 = vmatprep.subr.bf16.mxu1 %v2761_v20  ;;  %v2775_v20 = vpack.c.bf16 %v3566_v51, %v3561_v39 }
  0xf1   :  { %2764 = vmatpush1.bf16.msra.mxu1 %v2763_v7 }
  0xf2   :  { %2766 = vmatprep.subr.bf16.mxu1 %v2765_v12 }
  0xf5   :  { %2768 = vmatpush1.bf16.msra.mxu1 %v2767_v45 }
  0xf6   :  { %2770 = vmatprep.subr.bf16.mxu1 %v2769_v59 }
  0xf9   :  { %2772 = vmatpush1.bf16.msra.mxu1 %v2771_v31 }
  0xfa   :  { %2774 = vmatprep.subr.bf16.mxu1 %v2773_v61 }
  0xfd   :  { %2776 = vmatpush1.bf16.msra.mxu1 %v2775_v20 }
 0x101   :  { %v84_v7 = vpop.permute.xlu0 %83 }
 0x105   :  { %v88_v12 = vpop.permute.xlu1 %87  ;;  %v143_v45 = vpop.permute.xlu0 %142 }
 0x109   :  { %v147_v29 = vpop.permute.xlu1 %146 }
 0x10d   :  { %v178_v54 = vpop.permute.xlu1 %177  ;;  %v208_v23 = vpop.permute.xlu0 %207 }
 0x111   :  { %v174_v38 = vpop.permute.xlu1 %173  ;;  %v241_v37 = vpop.permute.xlu0 %240 }
 0x115   :  { %v212_v46 = vpop.permute.xlu1 %211  ;;  %v86_v25 = vpop.permute.xlu0 %85 }
 0x116   :  { %v90_v59 = vsel %vm89_vm5, %v84_v7, %v86_v25  ;;  %v91_v36 = vsel %vm89_vm5, %v86_v25, %v88_v12 }
 0x117   :  { %94 = vst [vmem:[#allocation3] sm:$0xff] %v90_v59  ;;  %95 = vst [vmem:[#allocation3 + $0x8] sm:$0xff] %v91_v36  ;;  %v2577_v31 = vpack.c.bf16 %v3264_v42, %v91_v36  ;;  %v2579_v61 = vpack.c.bf16 %v3289_v49, %v90_v59 }
 0x119   :  { %v237_v51 = vpop.permute.xlu1 %236  ;;  %v145_v20 = vpop.permute.xlu0 %144  ;;  %2578 = vmatprep.subr.bf16.mxu0 %v2577_v31 }
 0x11a   :  { %v149_v39 = vsel %vm148_vm4, %v143_v45, %v145_v20  ;;  %v150_v57 = vsel %vm148_vm4, %v145_v20, %v147_v29  ;;  %2580 = vmatpush1.bf16.msra.mxu0 %v2579_v61 }
 0x11b   :  { %153 = vst [vmem:[#allocation3 + $0x20] sm:$0xff] %v149_v39  ;;  %154 = vst [vmem:[#allocation3 + $0x28] sm:$0xff] %v150_v57 }
 0x11d   :  { %v239_v47 = vpop.permute.xlu1 %238  ;;  %v176_v7 = vpop.permute.xlu0 %175 }
 0x11e   :  { %v242_v25 = vsel %vm131_vm1, %v237_v51, %v239_v47  ;;  %v243_v12 = vsel %vm131_vm1, %v239_v47, %v241_v37  ;;  %v180_v42 = vsel %vm179_vm6, %v174_v38, %v176_v7  ;;  %v181_v49 = vsel %vm179_vm6, %v176_v7, %v178_v54 }
 0x11f   :  { %246 = vst [vmem:[#allocation3 + $0x60] sm:$0xff] %v242_v25  ;;  %247 = vst [vmem:[#allocation3 + $0x68] sm:$0xff] %v243_v12  ;;  %v2581_v36 = vpack.c.bf16 %v181_v49, %v150_v57  ;;  %v2583_v45 = vpack.c.bf16 %v180_v42, %v149_v39 }
 0x120   :  { %184 = vst [vmem:[#allocation3 + $0x30] sm:$0xff] %v180_v42  ;;  %185 = vst [vmem:[#allocation3 + $0x38] sm:$0xff] %v181_v49  ;;  %v296_v49 = vld [vmem:[%s4420_s5] sm:$0x3] }
 0x121   :  { %v287_v29 = vpop.permute.xlu1 %286  ;;  %v210_v59 = vpop.permute.xlu0 %209  ;;  %2582 = vmatprep.subr.bf16.mxu0 %v2581_v36 }
 0x122   :  { %v213_v31 = vsel %vm162_vm3, %v208_v23, %v210_v59  ;;  %v214_v61 = vsel %vm162_vm3, %v210_v59, %v212_v46  ;;  %2584 = vmatpush1.bf16.msra.mxu0 %v2583_v45  ;;  %v451_v45 = vld [vmem:[#allocation4 + $0x1c0] sm:$0xff] }
 0x123   :  { %217 = vst [vmem:[#allocation3 + $0x50] sm:$0xff] %v213_v31  ;;  %218 = vst [vmem:[#allocation3 + $0x58] sm:$0xff] %v214_v61  ;;  %v2585_v47 = vpack.c.bf16 %v214_v61, %v3169_v9  ;;  %v2587_v54 = vpack.c.bf16 %v213_v31, %v3174_v10  ;;  %v573_v59 = vand.u32 4294901760, %v451_v45  ;;  %v4760_v10 = vand.u32 4294901760, %v3532_v5 }
 0x125   :  { %v285_v37 = vpop.permute.xlu1 %284  ;;  %v259_v38 = vpop.permute.xlu0 %258  ;;  %2586 = vmatprep.subr.bf16.mxu0 %v2585_v47 }
 0x126   :  { %v290_v57 = vsel %vm72_vm0, %v285_v37, %v287_v29  ;;  %v262_v39 = vsel %vm260_vm7, %v3568_v22, %v259_v38  ;;  %2588 = vmatpush1.bf16.msra.mxu0 %v2587_v54  ;;  %v3628_v54 = vsub.f32 %v451_v45, %v573_v59  ;;  %v456_v38 = vld [vmem:[#allocation4 + $0x1e8] sm:$0xff] }
 0x127   :  { %294 = vst [vmem:[#allocation3 + $0x80] sm:$0xff] %v290_v57  ;;  %266 = vst [vmem:[#allocation3 + $0x78] sm:$0xff] %v262_v39  ;;  %v2589_v23 = vpack.c.bf16 %v262_v39, %v243_v12 }
 0x128   :  { %4753 = vst [vmem:[#allocation101_spill] sm:$0xff] %v3628_v54 }
 0x129   :  { %v255_v46 = vpop.permute.xlu0 %254  ;;  %2590 = vmatprep.subr.bf16.mxu0 %v2589_v23  ;;  %v579_v23 = vand.u32 4294901760, %v456_v38 }
 0x12a   :  { %v261_v51 = vsel %vm260_vm7, %v255_v46, %v3568_v22  ;;  %v452_v22 = vld [vmem:[#allocation4 + $0x1c8] sm:$0xff] }
 0x12b   :  { %265 = vst [vmem:[#allocation3 + $0x70] sm:$0xff] %v261_v51  ;;  %v2591_v20 = vpack.c.bf16 %v261_v51, %v242_v25  ;;  %v454_v25 = vld [vmem:[#allocation4 + $0x1d8] sm:$0xff]  ;;  %v571_v12 = vand.u32 4294901760, %v452_v22  ;;  %v455_v51 = vld [vmem:[#allocation4 + $0x1e0] sm:$0xff] }
 0x12c   :  { %v575_v36 = vand.u32 4294901760, %v454_v25 }
 0x12d   :  { %v289_v7 = vpop.permute.xlu0 %288  ;;  %2592 = vmatpush1.bf16.msra.mxu0 %v2591_v20  ;;  %v3624_v61 = vsub.f32 %v452_v22, %v571_v12  ;;  %v457_v20 = vld [vmem:[#allocation4 + $0x1f0] sm:$0xff]  ;;  %v4755_v22 = vand.u32 4294901760, %v3514_v8 }
 0x12e   :  { %v291_v42 = vsel %vm72_vm0, %v287_v29, %v289_v7  ;;  %v453_v29 = vld [vmem:[#allocation4 + $0x1d0] sm:$0xff]  ;;  %v3626_v47 = vsub.f32 %v454_v25, %v575_v36  ;;  %v4756_v25 = vand.u32 4294901760, %v3516_v50  ;;  %v3662_v5 = vpack.c.bf16 %v575_v36, %v571_v12 }
 0x12f   :  { %295 = vst [vmem:[#allocation3 + $0x88] sm:$0xff] %v291_v42  ;;  %340 = vmatprep.subr.mxu0 %v291_v42  ;;  %v577_v31 = vand.u32 4294901760, %v453_v29  ;;  %v581_v42 = vand.u32 4294901760, %v455_v51 }
 0x130   :  { %4752 = vst [vmem:[#allocation100_spill] sm:$0xff] %v3626_v47  ;;  %v2777_v39 = vpack.c.bf16 %v3626_v47, %v3624_v61  ;;  %v3640_v45 = vpack.c.bf16 %v4756_v25, %v4755_v22  ;;  %4765 = vst [vmem:[#allocation109_spill] sm:$0xff] %v3662_v5  ;;  %v4771_v22 = vld [vmem:[#allocation28_spill] sm:$0xff] }
 0x131   :  { %341 = vmatpush1.msra.mxu0 %v290_v57  ;;  %v3630_v37 = vsub.f32 %v453_v29, %v577_v31  ;;  %v458_v57 = vld [vmem:[#allocation4 + $0x1f8] sm:$0xff]  ;;  %v3642_v29 = vsub.f32 %v456_v38, %v579_v23  ;;  %v4565_v25 = vand.u32 4294901760, %v4771_v22 }
 0x132   :  { %2572 = vmatmul.mubr.msk.f32.vlgmr.msra.gmra.mrb[0].mxu0 %vm320_vm8, %v296_v49  ;;  %2594 = vmatprep.subr.bf16.mxu0 %v3344_v52  ;;  %v583_v46 = vand.u32 4294901760, %v458_v57  ;;  %v585_v49 = vand.u32 4294901760, %v457_v20  ;;  %4757 = vst [vmem:[#allocation103_spill] sm:$0xff] %v3640_v45 }
 0x133   :  { %2596 = vmatpush1.bf16.msra.mxu0 %v3352_v58  ;;  %4754 = vst [vmem:[#allocation102_spill] sm:$0xff] %v3630_v37  ;;  %v2779_v7 = vpack.c.bf16 %v3630_v37, %v3628_v54  ;;  %2778 = vmatprep.subr.bf16.mxu1 %v2777_v39  ;;  %4758 = vst [vmem:[#allocation104_spill] sm:$0xff] %v3642_v29  ;;  %v3652_v37 = vsub.f32 %v455_v51, %v581_v42 }
 0x134   :  { %2598 = vmatprep.subr.bf16.mxu0 %v3356_v3  ;;  %v3644_v9 = vsub.f32 %v458_v57, %v583_v46  ;;  %v3654_v39 = vsub.f32 %v457_v20, %v585_v49  ;;  %v3671_v57 = vpack.c.bf16 %v583_v46, %v579_v23  ;;  %v3675_v36 = vpack.c.bf16 %v585_v49, %v581_v42  ;;  %v4772_v23 = vld [vmem:[#allocation29_spill] sm:$0xff] }
 0x135   :  { %2780 = vmatpush1.bf16.msra.mxu1 %v2779_v7  ;;  %4763 = vst [vmem:[#allocation107_spill] sm:$0xff] %v3652_v37  ;;  %v4569_v46 = vand.u32 4294901760, %v4772_v23 }
 0x136   :  { %4759 = vst [vmem:[#allocation105_spill] sm:$0xff] %v3644_v9  ;;  %4764 = vst [vmem:[#allocation108_spill] sm:$0xff] %v3654_v39  ;;  %v2781_v50 = vpack.c.bf16 %v3644_v9, %v3642_v29  ;;  %v2783_v8 = vpack.c.bf16 %v3654_v39, %v3652_v37  ;;  %v4792_v37 = vld [vmem:[#allocation46_spill] sm:$0xff] }
 0x137   :  { %2600 = vmatpush1.bf16.msra.mxu0 %v3358_v4  ;;  %4769 = vst [vmem:[#allocation111_spill] sm:$0xff] %v3675_v36 }
 0x138   :  { %2602 = vmatprep.subr.bf16.mxu0 %v3372_v40  ;;  %2782 = vmatprep.subr.bf16.mxu1 %v2781_v50  ;;  %v4773_v50 = vld [vmem:[#allocation30_spill] sm:$0xff] }
 0x139   :  { %2784 = vmatpush1.bf16.msra.mxu1 %v2783_v8  ;;  %v4774_v8 = vld [vmem:[#allocation31_spill] sm:$0xff] }
 0x13a   :  { %2786 = vmatprep.subr.bf16.mxu1 %v3344_v52  ;;  %v4776_v52 = vld [vmem:[#allocation34_spill] sm:$0xff] }
 0x13b   :  { %2604 = vmatpush1.bf16.msra.mxu0 %v3374_v41 }
 0x13c   :  { %2606 = vmatprep.subr.bf16.mxu0 %v3388_v2 }
 0x13e   :  { %v318_v42 = vpop.permute.xlu0 %317 }
 0x13f   :  { %2608 = vmatpush1.bf16.msra.mxu0 %v3390_v63 }
 0x140   :  { %2610 = vmatprep.subr.bf16.mxu0 %v3402_v13 }
 0x143   :  { %2612 = vmatpush1.bf16.msra.mxu0 %v3404_v11 }
 0x144   :  { %2614 = vmatprep.subr.bf16.mxu0 %v3416_v32 }
 0x147   :  { %2616 = vmatpush1.bf16.msra.mxu0 %v3418_v43 }
 0x148   :  { %2618 = vmatprep.subr.bf16.mxu0 %v3426_v0 }
 0x14b   :  { %2620 = vmatpush1.bf16.msra.mxu0 %v3428_v15 }
 0x14c   :  { %2622 = vmatprep.subr.bf16.mxu0 %v3446_v60 }
 0x14f   :  { %2624 = vmatpush1.bf16.msra.mxu0 %v3448_v16 }
 0x150   :  { %2626 = vmatprep.subr.bf16.mxu0 %v3458_v34 }
 0x153   :  { %2628 = vmatpush1.bf16.msra.mxu0 %v3460_v14 }
 0x154   :  { %2630 = vmatprep.subr.bf16.mxu0 %v3474_v18 }
 0x157   :  { %2632 = vmatpush1.bf16.msra.mxu0 %v3476_v19 }
 0x158   :  { %2634 = vmatprep.subr.bf16.mxu0 %v3484_v17 }
 0x15b   :  { %2636 = vmatpush1.bf16.msra.mxu0 %v3486_v26 }
 0x15c   :  { %2638 = vmatprep.subr.bf16.mxu0 %v3496_v44 }
 0x15f   :  { %2640 = vmatpush1.bf16.msra.mxu0 %v3498_v33 }
 0x160   :  { %2642 = vmatprep.subr.bf16.mxu0 %v3510_v62 }
 0x163   :  { %2644 = vmatpush1.bf16.msra.mxu0 %v3512_v55  ;;  %v4761_v55 = vand.u32 4294901760, %v3534_v56  ;;  %v4767_v56 = vld [vmem:[#allocation27_spill] sm:$0xff] }
 0x164   :  { %2646 = vmatprep.subr.bf16.mxu0 %v3640_v45  ;;  %v618_v38 = vand.u32 4294901760, %v4767_v56  ;;  %4768 = vst [vmem:[#allocation27_spill] sm:$0xff] %v3671_v57 }
 0x165   :  { %v3650_v62 = vpack.c.bf16 %v4761_v55, %v4760_v10  ;;  %v3664_v10 = vpack.c.bf16 %v577_v31, %v573_v59  ;;  %v606_v55 = vand.u32 4294901760, %v3328_v27 }
 0x166   :  { %v619_v12 = vsub.f32 %v4767_v56, %v618_v38  ;;  %v4778_v56 = vand.u32 4294901760, %v4773_v50 }
 0x167   :  { %4762 = vst [vmem:[#allocation106_spill] sm:$0xff] %v3650_v62  ;;  %2648 = vmatpush1.bf16.msra.mxu0 %v3650_v62  ;;  %4766 = vst [vmem:[#allocation110_spill] sm:$0xff] %v3664_v10  ;;  %v607_v51 = vsub.f32 %v3328_v27, %v606_v55  ;;  %v3679_v7 = vpack.c.bf16 %v618_v38, %v606_v55  ;;  %v4785_v62 = vld [vmem:[#allocation41_spill] sm:$0xff] }
 0x168   :  { %2650 = vmatprep.subr.bf16.mxu0 %v3662_v5  ;;  %v620_v31 = vand.u32 4294901760, %v619_v12  ;;  %v625_v12 = vsub.f32 %v4772_v23, %v4569_v46 }
 0x169   :  { %v608_v59 = vand.u32 4294901760, %v607_v51  ;;  %4770 = vst [vmem:[#allocation112_spill] sm:$0xff] %v3679_v7  ;;  %v613_v51 = vsub.f32 %v4771_v22, %v4565_v25  ;;  %v4780_v22 = vld [vmem:[#allocation38_spill] sm:$0xff]  ;;  %v4782_v7 = vld [vmem:[#allocation39_spill] sm:$0xff] }
 0x16a   :  { %v626_v23 = vand.u32 4294901760, %v625_v12  ;;  %v4786_v39 = vand.u32 4294901760, %v4780_v22 }
 0x16b   :  { %2652 = vmatpush1.bf16.msra.mxu0 %v3664_v10  ;;  %v2657_v20 = vpack.c.bf16 %v620_v31, %v608_v59  ;;  %v4775_v59 = vld [vmem:[#allocation32_spill] sm:$0xff] }
 0x16c   :  { %2654 = vmatprep.subr.bf16.mxu0 %v3671_v57  ;;  %v4581_v31 = vand.u32 4294901760, %v4775_v59  ;;  %v4779_v57 = vand.u32 4294901760, %v4774_v8  ;;  %v4784_v10 = vld [vmem:[#allocation40_spill] sm:$0xff] }
 0x16e   :  { %v643_v25 = vsub.f32 %v4774_v8, %v4779_v57  ;;  %v4788_v8 = vld [vmem:[#allocation42_spill] sm:$0xff] }
 0x16f   :  { %2656 = vmatpush1.bf16.msra.mxu0 %v3675_v36  ;;  %v631_v36 = vsub.f32 %v4773_v50, %v4778_v56  ;;  %v4783_v50 = vand.u32 4294901760, %v4776_v52 }
 0x170   :  { %2658 = vmatprep.subr.bf16.mxu0 %v2657_v20 }
 0x171   :  { %v649_v57 = vsub.f32 %v4776_v52, %v4783_v50  ;;  %v4787_v50 = vand.u32 4294901760, %v4782_v7  ;;  %v4602_v52 = vand.u32 4294901760, %v4792_v37 }
 0x205   :  { %v390_v49 = vpop.f32.mrb[0].mxu0 }
 0x206   :  { %v391_v55 = vadd.f32 %v390_v49, %v318_v42  ;;  %v392_v38 = vpop.f32.mrb[1].mxu0  ;;  %v614_v49 = vand.u32 4294901760, %v613_v51  ;;  %v667_v51 = vsub.f32 %v4782_v7, %v4787_v50  ;;  %v650_v7 = vand.u32 4294901760, %v649_v57 }
 0x207   :  { %v393_v20 = vadd.f32 %v392_v38, %v318_v42  ;;  %v637_v38 = vsub.f32 %v4775_v59, %v4581_v31  ;;  %v655_v31 = vsub.f32 %v4780_v22, %v4786_v39 }
 0x208   :  { %v3693_v27 = vand.u32 4294901760, %v391_v55  ;;  %v2659_v59 = vpack.c.bf16 %v626_v23, %v614_v49  ;;  %v4790_v23 = vand.u32 4294901760, %v4784_v10 }
 0x209   :  { %v3702_v46 = vand.u32 4294901760, %v393_v20  ;;  %v638_v22 = vand.u32 4294901760, %v637_v38  ;;  %v4799_v38 = vld [vmem:[#allocation53_spill] sm:$0xff] }
 0x20a   :  { %4777 = vst [vmem:[#allocation113_spill] sm:$0xff] %v3693_v27  ;;  %v3705_v42 = vsub.f32 %v391_v55, %v3693_v27  ;;  %v632_v55 = vand.u32 4294901760, %v631_v36  ;;  %v644_v27 = vand.u32 4294901760, %v643_v25  ;;  %v4789_v25 = vld [vmem:[#allocation45_spill] sm:$0xff]  ;;  %v661_v49 = vsub.f32 %v4784_v10, %v4790_v23 }
 0x20b   :  { %v588_v56 = vsub.f32 %v393_v20, %v3702_v46  ;;  %v656_v36 = vand.u32 4294901760, %v655_v31  ;;  %v668_v23 = vand.u32 4294901760, %v667_v51  ;;  %v4796_v10 = vand.u32 4294901760, %v4788_v8 }
 0x20c   :  { %4781 = vst [vmem:[#allocation114_spill] sm:$0xff] %v3705_v42  ;;  %v4585_v12 = vand.u32 4294901760, %v3705_v42  ;;  %v2661_v50 = vpack.c.bf16 %v644_v27, %v632_v55  ;;  %v662_v31 = vand.u32 4294901760, %v661_v49  ;;  %v4798_v55 = vld [vmem:[#allocation52_spill] sm:$0xff]  ;;  %v2663_v51 = vpack.c.bf16 %v650_v7, %v638_v22 }
 0x20d   :  { %1191 = vmatprep.mubr.f32.mxu1 %v588_v56  ;;  %v589_v5 = vand.u32 4294901760, %v588_v56 }
 0x20e   :  { %v596_v20 = vsub.f32 %v3705_v42, %v4585_v12  ;;  %1194 = vmatmul.mubr.f32.vlgmr.msra.gmra.mrb[0].mxu1 %v3705_v42  ;;  %v4791_v12 = vand.u32 4294901760, %v4785_v62 }
 0x20f   :  { %2788 = vmatpush1.bf16.msra.mxu1 %v3352_v58  ;;  %1331 = vmatprep.mubr.f32.mxu1 %v589_v5  ;;  %v590_v39 = vsub.f32 %v588_v56, %v589_v5  ;;  %v4793_v58 = vld [vmem:[#allocation47_spill] sm:$0xff]  ;;  %v4794_v5 = vld [vmem:[#allocation50_spill] sm:$0xff] }
 0x210   :  { %v673_v42 = vsub.f32 %v4785_v62, %v4791_v12  ;;  %2790 = vmatprep.subr.bf16.mxu1 %v3356_v3  ;;  %v4795_v56 = vld [vmem:[#allocation51_spill] sm:$0xff]  ;;  %v597_v54 = vand.u32 4294901760, %v596_v20  ;;  %v679_v12 = vsub.f32 %v4788_v8, %v4796_v10  ;;  %v4797_v3 = vand.u32 4294901760, %v4789_v25  ;;  %v4800_v20 = vld [vmem:[#allocation56_spill] sm:$0xff] }
 0x211   :  { %v591_v45 = vand.u32 4294901760, %v590_v39  ;;  %v4604_v39 = vand.u32 4294901760, %v4798_v55  ;;  %v685_v10 = vsub.f32 %v4792_v37, %v4602_v52  ;;  %v4804_v7 = vand.u32 4294901760, %v4795_v56 }
 0x212   :  { %v691_v27 = vsub.f32 %v4789_v25, %v4797_v3  ;;  %v674_v57 = vand.u32 4294901760, %v673_v42  ;;  %v4801_v3 = vld [vmem:[#allocation57_spill] sm:$0xff]  ;;  %v2665_v52 = vpack.c.bf16 %v668_v23, %v656_v36  ;;  %v680_v29 = vand.u32 4294901760, %v679_v12  ;;  %v4808_v12 = vld [vmem:[#allocation58_spill] sm:$0xff] }
 0x213   :  { %2792 = vmatpush1.bf16.msra.mxu1 %v3358_v4  ;;  %592 = vmatprep.mubr.f32.mxu0 %v591_v45  ;;  %v4802_v45 = vand.u32 4294901760, %v4793_v58  ;;  %v715_v22 = vsub.f32 %v4795_v56, %v4804_v7  ;;  %v709_v25 = vsub.f32 %v4798_v55, %v4604_v39  ;;  %v4807_v36 = vand.u32 4294901760, %v4801_v3  ;;  %v4811_v55 = vld [vmem:[#allocation63_spill] sm:$0xff] }
 0x214   :  { %598 = vmatmul.mubr.f32.vlgmr.msra.gmra.mrb[2].mxu0 %v597_v54  ;;  %2794 = vmatprep.subr.bf16.mxu1 %v3372_v40  ;;  %v4803_v54 = vand.u32 4294901760, %v4794_v5  ;;  %v692_v9 = vand.u32 4294901760, %v691_v27  ;;  %v686_v7 = vand.u32 4294901760, %v685_v10  ;;  %v4614_v56 = vand.u32 4294901760, %v4811_v55  ;;  %v4813_v27 = vld [vmem:[#allocation67_spill] sm:$0xff] }
 0x215   :  { %2660 = vmatpush1.bf16.msra.mxu0 %v2659_v59  ;;  %989 = vmatprep.mubr.f32.mxu0 %v3702_v46  ;;  %v697_v42 = vsub.f32 %v4793_v58, %v4802_v45  ;;  %v2667_v59 = vpack.c.bf16 %v674_v57, %v662_v31  ;;  %v4805_v45 = vand.u32 4294901760, %v4799_v38  ;;  %v739_v23 = vsub.f32 %v4801_v3, %v4807_v36  ;;  %v4809_v31 = vld [vmem:[#allocation59_spill] sm:$0xff]  ;;  %v4812_v36 = vld [vmem:[#allocation66_spill] sm:$0xff] }
 0x216   :  { %v703_v49 = vsub.f32 %v4794_v5, %v4803_v54  ;;  %2662 = vmatprep.subr.bf16.mxu0 %v2661_v50  ;;  %v4806_v54 = vand.u32 4294901760, %v4800_v20  ;;  %v4616_v57 = vand.u32 4294901760, %v4809_v31  ;;  %v716_v4 = vand.u32 4294901760, %v715_v22  ;;  %v4815_v22 = vld [vmem:[#allocation68_spill] sm:$0xff] }
 0x217   :  { %2796 = vmatpush1.bf16.msra.mxu1 %v3374_v41  ;;  %v721_v40 = vsub.f32 %v4799_v38, %v4805_v45  ;;  %v698_v39 = vand.u32 4294901760, %v697_v42  ;;  %v2669_v45 = vpack.c.bf16 %v692_v9, %v680_v29  ;;  %v4620_v3 = vand.u32 4294901760, %v4812_v36 }
 0x218   :  { %2798 = vmatprep.subr.bf16.mxu1 %v3388_v2  ;;  %v727_v50 = vsub.f32 %v4800_v20, %v4806_v54  ;;  %v704_v41 = vand.u32 4294901760, %v703_v49  ;;  %v4810_v2 = vld [vmem:[#allocation62_spill] sm:$0xff]  ;;  %v710_v54 = vand.u32 4294901760, %v709_v25  ;;  %v4622_v5 = vand.u32 4294901760, %v4813_v27 }
 0x219   :  { %2664 = vmatpush1.bf16.msra.mxu0 %v2663_v51  ;;  %v4615_v38 = vand.u32 4294901760, %v4810_v2  ;;  %v722_v20 = vand.u32 4294901760, %v721_v40  ;;  %v740_v10 = vand.u32 4294901760, %v739_v23  ;;  %v4814_v42 = vand.u32 4294901760, %v4808_v12  ;;  %v4816_v23 = vld [vmem:[#allocation69_spill] sm:$0xff] }
 0x21a   :  { %2666 = vmatprep.subr.bf16.mxu0 %v2665_v52  ;;  %v728_v51 = vand.u32 4294901760, %v727_v50  ;;  %v745_v52 = vsub.f32 %v4809_v31, %v4616_v57  ;;  %v2671_v29 = vpack.c.bf16 %v698_v39, %v686_v7  ;;  %v2673_v25 = vpack.c.bf16 %v716_v4, %v704_v41  ;;  %v4818_v57 = vld [vmem:[#allocation71_spill] sm:$0xff]  ;;  %v4819_v50 = vld [vmem:[#allocation74_spill] sm:$0xff] }
 0x21b   :  { %2800 = vmatpush1.bf16.msra.mxu1 %v3390_v63  ;;  %v733_v9 = vsub.f32 %v4808_v12, %v4814_v42  ;;  %v751_v40 = vsub.f32 %v4810_v2, %v4615_v38  ;;  %v763_v49 = vsub.f32 %v4811_v55, %v4614_v56  ;;  %v757_v39 = vsub.f32 %v4812_v36, %v4620_v3  ;;  %v4817_v56 = vld [vmem:[#allocation70_spill] sm:$0xff] }
 0x21c   :  { %2802 = vmatprep.subr.bf16.mxu1 %v3402_v13  ;;  %v769_v4 = vsub.f32 %v4813_v27, %v4622_v5  ;;  %v2675_v41 = vpack.c.bf16 %v722_v20, %v710_v54  ;;  %v4624_v38 = vand.u32 4294901760, %v4817_v56  ;;  %v4625_v42 = vand.u32 4294901760, %v4818_v57  ;;  %v4820_v13 = vld [vmem:[#allocation75_spill] sm:$0xff] }
 0x21d   :  { %2668 = vmatpush1.bf16.msra.mxu0 %v2667_v59  ;;  %v2677_v59 = vpack.c.bf16 %v740_v10, %v728_v51  ;;  %v734_v7 = vand.u32 4294901760, %v733_v9  ;;  %v752_v3 = vand.u32 4294901760, %v751_v40  ;;  %v764_v36 = vand.u32 4294901760, %v763_v49  ;;  %v4823_v9 = vld [vmem:[#allocation78_spill] sm:$0xff]  ;;  %v4825_v49 = vld [vmem:[#allocation81_spill] sm:$0xff] }
 0x21e   :  { %2670 = vmatprep.subr.bf16.mxu0 %v2669_v45  ;;  %v746_v45 = vand.u32 4294901760, %v745_v52  ;;  %v4821_v5 = vand.u32 4294901760, %v4815_v22  ;;  %v4822_v20 = vand.u32 4294901760, %v4816_v23  ;;  %v758_v51 = vand.u32 4294901760, %v757_v39 }
 0x21f   :  { %2804 = vmatpush1.bf16.msra.mxu1 %v3404_v11  ;;  %v770_v10 = vand.u32 4294901760, %v769_v4  ;;  %v4627_v52 = vand.u32 4294901760, %v4823_v9  ;;  %v793_v39 = vsub.f32 %v4818_v57, %v4625_v42  ;;  %v4826_v4 = vand.u32 4294901760, %v4819_v50 }
 0x220   :  { %2806 = vmatprep.subr.bf16.mxu1 %v3416_v32  ;;  %v775_v32 = vsub.f32 %v4815_v22, %v4821_v5  ;;  %v787_v54 = vsub.f32 %v4816_v23, %v4822_v20  ;;  %v781_v5 = vsub.f32 %v4817_v56, %v4624_v38  ;;  %v4827_v11 = vand.u32 4294901760, %v4820_v13 }
 0x221   :  { %2672 = vmatpush1.bf16.msra.mxu0 %v2671_v29  ;;  %v4824_v29 = vld [vmem:[#allocation79_spill] sm:$0xff]  ;;  %v799_v20 = vsub.f32 %v4819_v50, %v4826_v4  ;;  %v2683_v40 = vpack.c.bf16 %v770_v10, %v758_v51  ;;  %v805_v38 = vsub.f32 %v4823_v9, %v4627_v52  ;;  %v4829_v4 = vand.u32 4294901760, %v3470_v48 }
 0x222   :  { %2674 = vmatprep.subr.bf16.mxu0 %v2673_v25  ;;  %v2679_v25 = vpack.c.bf16 %v746_v45, %v734_v7  ;;  %v811_v7 = vsub.f32 %v4820_v13, %v4827_v11  ;;  %v2681_v45 = vpack.c.bf16 %v764_v36, %v752_v3  ;;  %v776_v63 = vand.u32 4294901760, %v775_v32  ;;  %v4831_v36 = vld [vmem:[#allocation84_spill] sm:$0xff] }
 0x223   :  { %2808 = vmatpush1.bf16.msra.mxu1 %v3418_v43  ;;  %v4828_v42 = vand.u32 4294901760, %v4824_v29  ;;  %v823_v11 = vsub.f32 %v3470_v48, %v4829_v4  ;;  %v4830_v32 = vand.u32 4294901760, %v4825_v49  ;;  %v782_v10 = vand.u32 4294901760, %v781_v5 }
 0x224   :  { %2810 = vmatprep.subr.bf16.mxu1 %v3426_v0  ;;  %v794_v52 = vand.u32 4294901760, %v793_v39  ;;  %v812_v43 = vand.u32 4294901760, %v811_v7  ;;  %v806_v4 = vand.u32 4294901760, %v805_v38  ;;  %v4833_v39 = vand.u32 4294901760, %v4831_v36 }
 0x225   :  { %2676 = vmatpush1.bf16.msra.mxu0 %v2675_v41  ;;  %v788_v41 = vand.u32 4294901760, %v787_v54  ;;  %v817_v0 = vsub.f32 %v4824_v29, %v4828_v42  ;;  %v835_v3 = vsub.f32 %v4825_v49, %v4830_v32  ;;  %v4832_v54 = vld [vmem:[#allocation85_spill] sm:$0xff]  ;;  %v4633_v29 = vand.u32 4294901760, %v3492_v28 }
 0x226   :  { %2678 = vmatprep.subr.bf16.mxu0 %v2677_v59  ;;  %v4635_v51 = vand.u32 4294901760, %v4832_v54  ;;  %v4636_v32 = vand.u32 4294901760, %v3500_v21  ;;  %v4637_v59 = vand.u32 4294901760, %v3502_v30  ;;  %v2687_v7 = vpack.c.bf16 %v794_v52, %v782_v10 }
 0x227   :  { %2812 = vmatpush1.bf16.msra.mxu1 %v3428_v15  ;;  %v800_v15 = vand.u32 4294901760, %v799_v20  ;;  %v2685_v42 = vpack.c.bf16 %v788_v41, %v776_v63  ;;  %v818_v48 = vand.u32 4294901760, %v817_v0  ;;  %v836_v5 = vand.u32 4294901760, %v835_v3 }
 0x228   :  { %2814 = vmatprep.subr.bf16.mxu1 %v3446_v60  ;;  %v4634_v60 = vand.u32 4294901760, %v3490_v24  ;;  %v829_v63 = vsub.f32 %v4831_v36, %v4833_v39  ;;  %v841_v20 = vsub.f32 %v4832_v54, %v4635_v51  ;;  %v853_v52 = vsub.f32 %v3500_v21, %v4636_v32  ;;  %v4835_v51 = vld [vmem:[#allocation93_spill] sm:$0xff] }
 0x229   :  { %2680 = vmatpush1.bf16.msra.mxu0 %v2679_v25  ;;  %v824_v25 = vand.u32 4294901760, %v823_v11  ;;  %v2689_v38 = vpack.c.bf16 %v812_v43, %v800_v15  ;;  %v865_v43 = vsub.f32 %v3502_v30, %v4637_v59  ;;  %v2691_v15 = vpack.c.bf16 %v818_v48, %v806_v4  ;;  %v4841_v11 = vld [vmem:[#allocation97_spill] sm:$0xff] }
 0x22a   :  { %2682 = vmatprep.subr.bf16.mxu0 %v2681_v45  ;;  %v847_v0 = vsub.f32 %v3490_v24, %v4634_v60  ;;  %v859_v45 = vsub.f32 %v3492_v28, %v4633_v29  ;;  %v830_v3 = vand.u32 4294901760, %v829_v63  ;;  %v842_v10 = vand.u32 4294901760, %v841_v20  ;;  %v4834_v29 = vld [vmem:[#allocation92_spill] sm:$0xff]  ;;  %v4838_v63 = vld [vmem:[#allocation94_spill] sm:$0xff] }
 0x22b   :  { %2816 = vmatpush1.bf16.msra.mxu1 %v3448_v16  ;;  %v4836_v59 = vand.u32 4294901760, %v3504_v1  ;;  %v4837_v48 = vand.u32 4294901760, %v3506_v53  ;;  %v4844_v20 = vand.u32 4294901760, %v4835_v51 }
 0x22c   :  { %2818 = vmatprep.subr.bf16.mxu1 %v3458_v34  ;;  %v848_v32 = vand.u32 4294901760, %v847_v0  ;;  %v860_v41 = vand.u32 4294901760, %v859_v45  ;;  %v4840_v0 = vld [vmem:[#allocation96_spill] sm:$0xff]  ;;  %v4650_v34 = vand.u32 4294901760, %v3626_v47 }
 0x22d   :  { %2684 = vmatpush1.bf16.msra.mxu0 %v2683_v40  ;;  %v2693_v40 = vpack.c.bf16 %v836_v5, %v824_v25  ;;  %v883_v4 = vsub.f32 %v3506_v53, %v4837_v48  ;;  %v854_v25 = vand.u32 4294901760, %v853_v52  ;;  %v866_v5 = vand.u32 4294901760, %v865_v43 }
 0x22e   :  { %2686 = vmatprep.subr.bf16.mxu0 %v2685_v42  ;;  %v4639_v42 = vand.u32 4294901760, %v3518_v6  ;;  %v4842_v48 = vand.u32 4294901760, %v3520_v35  ;;  %v4843_v43 = vand.u32 4294901760, %v4834_v29 }
 0x22f   :  { %2820 = vmatpush1.bf16.msra.mxu1 %v3460_v14  ;;  %v2699_v45 = vpack.c.bf16 %v866_v5, %v854_v25  ;;  %v4850_v25 = vld [vmem:[#allocation99_spill] sm:$0xff] }
 0x230   :  { %2822 = vmatprep.subr.bf16.mxu1 %v3474_v18  ;;  %v871_v18 = vsub.f32 %v3504_v1, %v4836_v59  ;;  %v877_v59 = vsub.f32 %v3518_v6, %v4639_v42  ;;  %v889_v52 = vsub.f32 %v3520_v35, %v4842_v48  ;;  %v895_v60 = vsub.f32 %v4834_v29, %v4843_v43 }
 0x231   :  { %2688 = vmatpush1.bf16.msra.mxu0 %v2687_v7  ;;  %v4839_v7 = vld [vmem:[#allocation95_spill] sm:$0xff]  ;;  %v4845_v42 = vand.u32 4294901760, %v4838_v63  ;;  %v4847_v43 = vand.u32 4294901760, %v4840_v0  ;;  %v4648_v5 = vand.u32 4294901760, %v4850_v25 }
 0x232   :  { %2690 = vmatprep.subr.bf16.mxu0 %v2689_v38  ;;  %v2695_v38 = vpack.c.bf16 %v842_v10, %v830_v3  ;;  %v907_v3 = vsub.f32 %v4835_v51, %v4844_v20  ;;  %v2697_v10 = vpack.c.bf16 %v860_v41, %v848_v32  ;;  %v872_v39 = vand.u32 4294901760, %v871_v18  ;;  %v4849_v41 = vld [vmem:[#allocation98_spill] sm:$0xff] }
 0x233   :  { %2824 = vmatpush1.bf16.msra.mxu1 %v3476_v19  ;;  %v4846_v48 = vand.u32 4294901760, %v4839_v7  ;;  %v4848_v18 = vand.u32 4294901760, %v4841_v11  ;;  %v890_v20 = vand.u32 4294901760, %v889_v52 }
 0x234   :  { %2826 = vmatprep.subr.bf16.mxu1 %v3484_v17  ;;  %v901_v17 = vsub.f32 %v4838_v63, %v4845_v42  ;;  %v878_v42 = vand.u32 4294901760, %v877_v59  ;;  %v908_v14 = vand.u32 4294901760, %v907_v3  ;;  %v4853_v3 = vld [vmem:[#allocation101_spill] sm:$0xff] }
 0x235   :  { %2692 = vmatpush1.bf16.msra.mxu0 %v2691_v15  ;;  %v884_v15 = vand.u32 4294901760, %v883_v4  ;;  %v913_v19 = vsub.f32 %v4839_v7, %v4846_v48  ;;  %v931_v32 = vsub.f32 %v4841_v11, %v4848_v18  ;;  %v4851_v18 = vld [vmem:[#allocation90_spill] sm:$0xff] }
 0x236   :  { %2694 = vmatprep.subr.bf16.mxu0 %v2693_v40  ;;  %v919_v40 = vsub.f32 %v4840_v0, %v4847_v43  ;;  %v902_v43 = vand.u32 4294901760, %v901_v17 }
 0x237   :  { %2828 = vmatpush1.bf16.msra.mxu1 %v3486_v26  ;;  %v896_v26 = vand.u32 4294901760, %v895_v60  ;;  %v2701_v48 = vpack.c.bf16 %v884_v15, %v872_v39  ;;  %v914_v16 = vand.u32 4294901760, %v913_v19  ;;  %v932_v11 = vand.u32 4294901760, %v931_v32  ;;  %v4854_v15 = vld [vmem:[#allocation102_spill] sm:$0xff]  ;;  %v4855_v32 = vld [vmem:[#allocation104_spill] sm:$0xff] }
 0x238   :  { %2830 = vmatprep.subr.bf16.mxu1 %v3496_v44  ;;  %v4649_v44 = vand.u32 4294901760, %v3624_v61  ;;  %v920_v4 = vand.u32 4294901760, %v919_v40  ;;  %v937_v60 = vsub.f32 %v4850_v25, %v4648_v5  ;;  %v2703_v39 = vpack.c.bf16 %v890_v20, %v878_v42  ;;  %v4860_v5 = vld [vmem:[#allocation108_spill] sm:$0xff] }
 0x239   :  { %2696 = vmatpush1.bf16.msra.mxu0 %v2695_v38  ;;  %v4852_v38 = vand.u32 4294901760, %v4849_v41  ;;  %v2705_v52 = vpack.c.bf16 %v908_v14, %v896_v26  ;;  %v4653_v17 = vand.u32 4294901760, %v4854_v15  ;;  %v955_v40 = vsub.f32 %v3626_v47, %v4650_v34  ;;  %v4858_v14 = vld [vmem:[#allocation103_spill] sm:$0xff] }
 0x23a   :  { %2698 = vmatprep.subr.bf16.mxu0 %v2697_v10  ;;  %v4654_v10 = vand.u32 4294901760, %v4853_v3  ;;  %v943_v19 = vsub.f32 %v3624_v61, %v4649_v44  ;;  %v2707_v26 = vpack.c.bf16 %v914_v16, %v902_v43  ;;  %v2709_v42 = vpack.c.bf16 %v932_v11, %v920_v4 }
 0x23b   :  { %2832 = vmatpush1.bf16.msra.mxu1 %v3498_v33  ;;  %v925_v59 = vsub.f32 %v4849_v41, %v4852_v38  ;;  %v961_v34 = vsub.f32 %v4854_v15, %v4653_v17  ;;  %v4859_v38 = vld [vmem:[#allocation107_spill] sm:$0xff]  ;;  %v4658_v47 = vand.u32 4294901760, %v4860_v5  ;;  %v4861_v16 = vand.u32 4294901760, %v4855_v32 }
 0x23c   :  { %2834 = vmatprep.subr.bf16.mxu1 %v4851_v18  ;;  %v4856_v18 = vld [vmem:[#allocation105_spill] sm:$0xff]  ;;  %v949_v44 = vsub.f32 %v4853_v3, %v4654_v10  ;;  %v4656_v33 = vand.u32 4294901760, %v4859_v38 }
 0x23d   :  { %2700 = vmatpush1.bf16.msra.mxu0 %v2699_v45  ;;  %v4857_v45 = vld [vmem:[#allocation91_spill] sm:$0xff]  ;;  %v926_v20 = vand.u32 4294901760, %v925_v59  ;;  %v967_v11 = vsub.f32 %v4855_v32, %v4861_v16  ;;  %v4862_v4 = vand.u32 4294901760, %v4856_v18  ;;  %v4863_v59 = vld [vmem:[#allocation106_spill] sm:$0xff]  ;;  %v962_v10 = vand.u32 4294901760, %v961_v34 }
 0x23e   :  { %2702 = vmatprep.subr.bf16.mxu0 %v2701_v48  ;;  %v938_v48 = vand.u32 4294901760, %v937_v60  ;;  %v4864_v60 = vld [vmem:[#allocation109_spill] sm:$0xff]  ;;  %v950_v17 = vand.u32 4294901760, %v949_v44 }
 0x23f   :  { %2836 = vmatpush1.bf16.msra.mxu1 %v4857_v45  ;;  %v944_v45 = vand.u32 4294901760, %v943_v19  ;;  %v979_v43 = vsub.f32 %v4856_v18, %v4862_v4  ;;  %v985_v19 = vsub.f32 %v4860_v5, %v4658_v47  ;;  %v968_v16 = vand.u32 4294901760, %v967_v11  ;;  %v4865_v18 = vld [vmem:[#allocation110_spill] sm:$0xff] }
 0x240   :  { %2838 = vmatprep.subr.bf16.mxu1 %v4858_v14  ;;  %v956_v14 = vand.u32 4294901760, %v955_v40 }
 0x241   :  { %2704 = vmatpush1.bf16.msra.mxu0 %v2703_v39  ;;  %v2711_v39 = vpack.c.bf16 %v938_v48, %v926_v20  ;;  %v980_v4 = vand.u32 4294901760, %v979_v43  ;;  %v986_v34 = vand.u32 4294901760, %v985_v19  ;;  %v4867_v48 = vld [vmem:[#allocation111_spill] sm:$0xff]  ;;  %v4883_v19 = vld [vmem:[#allocation38_spill] sm:$0xff] }
 0x242   :  { %2706 = vmatprep.subr.bf16.mxu0 %v2705_v52  ;;  %v973_v52 = vsub.f32 %v4859_v38, %v4656_v33  ;;  %v2713_v40 = vpack.c.bf16 %v956_v14, %v944_v45  ;;  %v4868_v33 = vld [vmem:[#allocation28_spill] sm:$0xff]  ;;  %v4870_v38 = vld [vmem:[#allocation29_spill] sm:$0xff]  ;;  %v4873_v14 = vld [vmem:[#allocation30_spill] sm:$0xff] }
 0x243   :  { %2840 = vmatpush1.bf16.msra.mxu1 %v4863_v59  ;;  %v4866_v59 = vld [vmem:[#allocation27_spill] sm:$0xff]  ;;  %v2717_v20 = vpack.c.bf16 %v980_v4, %v968_v16  ;;  %v4871_v47 = vand.u32 4294901760, %v4870_v38  ;;  %v4872_v45 = vld [vmem:[#allocation112_spill] sm:$0xff]  ;;  %v4874_v11 = vand.u32 4294901760, %v4873_v14  ;;  %v4881_v38 = vld [vmem:[#allocation34_spill] sm:$0xff] }
 0x244   :  { %2842 = vmatprep.subr.bf16.mxu1 %v4864_v60  ;;  %v974_v44 = vand.u32 4294901760, %v973_v52  ;;  %v4869_v60 = vand.u32 4294901760, %v4868_v33  ;;  %v4875_v43 = vld [vmem:[#allocation31_spill] sm:$0xff]  ;;  %v4879_v33 = vld [vmem:[#allocation32_spill] sm:$0xff]  ;;  %v4892_v14 = vld [vmem:[#allocation45_spill] sm:$0xff] }
 0x245   :  { %2708 = vmatpush1.bf16.msra.mxu0 %v2707_v26  ;;  %v2715_v26 = vpack.c.bf16 %v962_v10, %v950_v17  ;;  %v4877_v17 = vld [vmem:[#allocation114_spill] sm:$0xff]  ;;  %v4880_v52 = vand.u32 4294901760, %v4879_v33  ;;  %v4885_v16 = vld [vmem:[#allocation39_spill] sm:$0xff] }
 0x246   :  { %2710 = vmatprep.subr.bf16.mxu0 %v2709_v42  ;;  %v2851_v42 = vpack.c.bf16 %v4871_v47, %v4869_v60  ;;  %v2719_v10 = vpack.c.bf16 %v986_v34, %v974_v44  ;;  %v4882_v47 = vand.u32 4294901760, %v4881_v38  ;;  %v4886_v4 = vand.u32 4294901760, %v4885_v16 }
 0x247   :  { %2844 = vmatpush1.bf16.msra.mxu1 %v4865_v18  ;;  %v4876_v18 = vand.u32 4294901760, %v4875_v43  ;;  %v4889_v34 = vand.u32 4294901760, %v4785_v62  ;;  %v4003_v43 = vld [vmem:[#allocation2] sm:$0xff]  ;;  %v4896_v62 = vld [vmem:[#allocation50_spill] sm:$0xff] }
 0x248   :  { %2846 = vmatprep.subr.bf16.mxu1 %v4866_v59  ;;  %v2855_v60 = vpack.c.bf16 %v4882_v47, %v4880_v52  ;;  %v4897_v33 = vand.u32 4294901760, %v4896_v62  ;;  %v4898_v52 = vld [vmem:[#allocation51_spill] sm:$0xff]  ;;  %v4915_v62 = vand.u32 4294901760, %v4815_v22 }
 0x249   :  { %2712 = vmatpush1.bf16.msra.mxu0 %v2711_v39  ;;  %v2853_v59 = vpack.c.bf16 %v4876_v18, %v4874_v11  ;;  %v4878_v39 = vand.u32 4294901760, %v4877_v17  ;;  %v4893_v11 = vand.u32 4294901760, %v4892_v14  ;;  %v4895_v17 = vand.u32 4294901760, %v4793_v58 }
 0x24a   :  { %2714 = vmatprep.subr.bf16.mxu0 %v2713_v40  ;;  %v4884_v40 = vand.u32 4294901760, %v4883_v19  ;;  %v4899_v38 = vand.u32 4294901760, %v4898_v52  ;;  %v4902_v19 = vld [vmem:[#allocation53_spill] sm:$0xff]  ;;  %v4908_v58 = vand.u32 4294901760, %v4808_v12  ;;  %v4911_v14 = vand.u32 4294901760, %v4811_v55 }
 0x24b   :  { %2848 = vmatpush1.bf16.msra.mxu1 %v4867_v48  ;;  %v4916_v12 = vand.u32 4294901760, %v4816_v23  ;;  %v4919_v55 = vand.u32 4294901760, %v4819_v50  ;;  %v4924_v23 = vld [vmem:[#allocation80_spill] sm:$0xff]  ;;  %v4928_v50 = vand.u32 4294901760, %v4832_v54  ;;  %v4935_v54 = vand.u32 4294901760, %v3518_v6 }
 0x24c   :  { %2850 = vmatprep.subr.bf16.mxu1 %v4872_v45  ;;  %v2857_v18 = vpack.c.bf16 %v4886_v4, %v4884_v40  ;;  %v4891_v45 = vand.u32 4294901760, %v4788_v8  ;;  %v2865_v47 = vpack.c.bf16 %v4899_v38, %v4897_v33  ;;  %v4900_v8 = vld [vmem:[#allocation52_spill] sm:$0xff]  ;;  %v4903_v40 = vand.u32 4294901760, %v4902_v19 }
 0x24d   :  { %2716 = vmatpush1.bf16.msra.mxu0 %v2715_v26  ;;  %v4887_v26 = vld [vmem:[#allocation40_spill] sm:$0xff]  ;;  %v2877_v33 = vpack.c.bf16 %v4916_v12, %v4915_v62  ;;  %v4920_v38 = vand.u32 4294901760, %v4820_v13  ;;  %v4925_v19 = vand.u32 4294901760, %v4924_v23  ;;  %v4929_v13 = vand.u32 4294901760, %v3490_v24  ;;  %v4952_v62 = vld [vmem:[#allocation105_spill] sm:$0xff] }
 0x24e   :  { %1335 = vmatmul.mubr.f32.vlgmr.msra.gmra.mrb[0].mxu1 %v4878_v39  ;;  %2718 = vmatprep.subr.bf16.mxu0 %v2717_v20  ;;  %v4888_v44 = vand.u32 4294901760, %v4887_v26  ;;  %v4904_v4 = vld [vmem:[#allocation56_spill] sm:$0xff]  ;;  %v4906_v26 = vld [vmem:[#allocation57_spill] sm:$0xff]  ;;  %v4936_v24 = vand.u32 4294901760, %v3520_v35  ;;  %v4944_v35 = vand.u32 4294901760, %v4849_v41  ;;  %v4953_v41 = vand.u32 4294901760, %v4952_v62 }
 0x24f   :  { %2852 = vmatpush1.bf16.msra.mxu1 %v2851_v42  ;;  %1598 = vmatprep.mubr.f32.mxu1 %v3702_v46  ;;  %v4890_v42 = vld [vmem:[#allocation113_spill] sm:$0xff]  ;;  %v4971_v23 = vld [vmem:[#allocation72_spill] sm:$0xff] }
 0x250   :  { %2854 = vmatprep.subr.bf16.mxu1 %v2853_v59  ;;  %v2859_v20 = vpack.c.bf16 %v4889_v34, %v4888_v44  ;;  %v2861_v59 = vpack.c.bf16 %v4893_v11, %v4891_v45  ;;  %v4909_v34 = vand.u32 4294901760, %v4809_v31  ;;  %v4910_v45 = vand.u32 4294901760, %v4810_v2 }
 0x251   :  { %2720 = vmatpush1.bf16.msra.mxu0 %v2719_v10  ;;  %v4894_v10 = vand.u32 4294901760, %v4792_v37  ;;  %v4907_v37 = vand.u32 4294901760, %v4906_v26  ;;  %v4917_v31 = vand.u32 4294901760, %v4817_v56  ;;  %v4918_v2 = vand.u32 4294901760, %v4818_v57 }
 0x252   :  { %v2873_v11 = vpack.c.bf16 %v4911_v14, %v4910_v45  ;;  %v4926_v56 = vand.u32 4294901760, %v4825_v49  ;;  %v4927_v57 = vand.u32 4294901760, %v4831_v36  ;;  %v4932_v26 = vand.u32 4294901760, %v3502_v30  ;;  %v4942_v45 = vld [vmem:[#allocation97_spill] sm:$0xff] }
 0x253   :  { %2856 = vmatpush1.bf16.msra.mxu1 %v2855_v60  ;;  %v2863_v39 = vpack.c.bf16 %v4895_v17, %v4894_v10  ;;  %v4901_v60 = vand.u32 4294901760, %v4900_v8  ;;  %v4914_v17 = vand.u32 4294901760, %v4813_v27  ;;  %v2879_v52 = vpack.c.bf16 %v4918_v2, %v4917_v31  ;;  %v4922_v8 = vld [vmem:[#allocation79_spill] sm:$0xff]  ;;  %v4957_v2 = vld [vmem:[#allocation33_spill] sm:$0xff] }
 0x254   :  { %991 = vmatmul.mubr.f32.vlgmr.msra.gmra.mrb[2].mxu0 %v4890_v42  ;;  %2858 = vmatprep.subr.bf16.mxu1 %v2857_v18  ;;  %v4905_v18 = vand.u32 4294901760, %v4904_v4  ;;  %v4921_v27 = vand.u32 4294901760, %v4823_v9  ;;  %v4923_v22 = vand.u32 4294901760, %v4922_v8  ;;  %v4930_v9 = vand.u32 4294901760, %v3492_v28  ;;  %v4967_v8 = vld [vmem:[#allocation60_spill] sm:$0xff] }
 0x255   :  { %2017 = vmatprep.mubr.f32.mxu0 %v4003_v43  ;;  %v2867_v16 = vpack.c.bf16 %v4903_v40, %v4901_v60  ;;  %v2885_v40 = vpack.c.bf16 %v4926_v56, %v4925_v19  ;;  %v4933_v49 = vand.u32 4294901760, %v3504_v1  ;;  %v4934_v36 = vand.u32 4294901760, %v3506_v53  ;;  %v4972_v19 = vld [vmem:[#allocation73_spill] sm:$0xff]  ;;  %v4973_v56 = vld [vmem:[#allocation76_spill] sm:$0xff] }
 0x256   :  { %v2869_v44 = vpack.c.bf16 %v4907_v37, %v4905_v18  ;;  %v2883_v60 = vpack.c.bf16 %v4923_v22, %v4921_v27  ;;  %v2889_v4 = vpack.c.bf16 %v4930_v9, %v4929_v13  ;;  %v4931_v18 = vand.u32 4294901760, %v3500_v21  ;;  %v4966_v27 = vld [vmem:[#allocation55_spill] sm:$0xff]  ;;  %v4968_v22 = vld [vmem:[#allocation61_spill] sm:$0xff]  ;;  %v4979_v9 = vld [vmem:[#allocation88_spill] sm:$0xff] }
 0x257   :  { %2860 = vmatpush1.bf16.msra.mxu1 %v2859_v20  ;;  %v2871_v20 = vpack.c.bf16 %v4909_v34, %v4908_v58  ;;  %v2895_v58 = vpack.c.bf16 %v4936_v24, %v4935_v54  ;;  %v4937_v28 = vand.u32 4294901760, %v4834_v29  ;;  %v4938_v21 = vand.u32 4294901760, %v4835_v51  ;;  %v4978_v13 = vld [vmem:[#allocation87_spill] sm:$0xff] }
 0x258   :  { %2862 = vmatprep.subr.bf16.mxu1 %v2861_v59  ;;  %v4912_v59 = vld [vmem:[#allocation66_spill] sm:$0xff]  ;;  %v2891_v37 = vpack.c.bf16 %v4932_v26, %v4931_v18  ;;  %v4939_v30 = vand.u32 4294901760, %v4838_v63  ;;  %v4940_v1 = vand.u32 4294901760, %v4839_v7  ;;  %v4941_v53 = vand.u32 4294901760, %v4840_v0  ;;  %v4982_v26 = vld [vmem:[#allocation91_spill] sm:$0xff] }
 0x259   :  { %v4913_v10 = vand.u32 4294901760, %v4912_v59  ;;  %v2897_v34 = vpack.c.bf16 %v4938_v21, %v4937_v28  ;;  %v4943_v6 = vand.u32 4294901760, %v4942_v45  ;;  %v4945_v29 = vand.u32 4294901760, %v4850_v25  ;;  %v4947_v59 = vld [vmem:[#allocation100_spill] sm:$0xff]  ;;  %v4954_v25 = vld [vmem:[#allocation107_spill] sm:$0xff]  ;;  %v4981_v18 = vld [vmem:[#allocation90_spill] sm:$0xff] }
 0x25a   :  { %v4946_v51 = vand.u32 4294901760, %v3624_v61  ;;  %v4948_v63 = vand.u32 4294901760, %v4947_v59  ;;  %v4949_v7 = vand.u32 4294901760, %v4853_v3  ;;  %v4950_v0 = vand.u32 4294901760, %v4854_v15  ;;  %v4958_v3 = vld [vmem:[#allocation35_spill] sm:$0xff]  ;;  %v4959_v15 = vld [vmem:[#allocation36_spill] sm:$0xff] }
 0x25b   :  { %2864 = vmatpush1.bf16.msra.mxu1 %v2863_v39  ;;  %v2875_v39 = vpack.c.bf16 %v4914_v17, %v4913_v10  ;;  %v2901_v14 = vpack.c.bf16 %v4943_v6, %v4941_v53  ;;  %v4956_v61 = vand.u32 4294901760, %v4860_v5  ;;  %v4963_v5 = vld [vmem:[#allocation48_spill] sm:$0xff]  ;;  %v4987_v54 = vld [vmem:[#allocation27_spill] sm:$0xff]  ;;  %v3091_v28 = vmov 1  }
 0x25c   :  { %2866 = vmatprep.subr.bf16.mxu1 %v2865_v47  ;;  %v2881_v47 = vpack.c.bf16 %v4920_v38, %v4919_v55  ;;  %v2905_v10 = vpack.c.bf16 %v4948_v63, %v4946_v51  ;;  %v2907_v17 = vpack.c.bf16 %v4950_v0, %v4949_v7  ;;  %v4962_v55 = vld [vmem:[#allocation44_spill] sm:$0xff]  ;;  %v4964_v38 = vld [vmem:[#allocation49_spill] sm:$0xff]  ;;  %3051 = vset.pattern.permute.xlu0 %v3091_v28  ;;  %v4989_v7 = vld [vmem:[#allocation23_spill] sm:$0xff] }
 0x25d   :  { %v2573_v21 = vld.sshfl [vmem:[%s4416_s1] sm:$0x33 pattern:$0x76325410] }
 0x25f   :  { %2868 = vmatpush1.bf16.msra.mxu1 %v2867_v16  ;;  %v2887_v16 = vpack.c.bf16 %v4928_v50, %v4927_v57  ;;  %v4975_v57 = vld [vmem:[#allocation82_spill] sm:$0xff]  ;;  %v4976_v50 = vld [vmem:[#allocation83_spill] sm:$0xff] }
 0x260   :  { %2870 = vmatprep.subr.bf16.mxu1 %v2869_v44  ;;  %v2893_v44 = vpack.c.bf16 %v4934_v36, %v4933_v49  ;;  %v4984_v49 = vld [vmem:[#allocation106_spill] sm:$0xff]  ;;  %v4985_v36 = vld [vmem:[#allocation109_spill] sm:$0xff] }
 0x263   :  { %2872 = vmatpush1.bf16.msra.mxu1 %v2871_v20  ;;  %v2899_v20 = vpack.c.bf16 %v4940_v1, %v4939_v30  ;;  %v1752_v30 = vcombine.high %v2573_v21, %v2573_v21 }
 0x264   :  { %2874 = vmatprep.subr.bf16.mxu1 %v2873_v11  ;;  %v2903_v11 = vpack.c.bf16 %v4945_v29, %v4944_v35  ;;  %v4988_v35 = vld [vmem:[#allocation22_spill] sm:$0xff] }
 0x267   :  { %2876 = vmatpush1.bf16.msra.mxu1 %v2875_v39  ;;  %v4951_v39 = vand.u32 4294901760, %v4855_v32  ;;  %v4960_v32 = vld [vmem:[#allocation37_spill] sm:$0xff] }
 0x268   :  { %2878 = vmatprep.subr.bf16.mxu1 %v2877_v33  ;;  %v4955_v33 = vand.u32 4294901760, %v4954_v25 }
 0x269   :  { %v2909_v12 = vpack.c.bf16 %v4953_v41, %v4951_v39 }
 0x26a   :  { %v2911_v31 = vpack.c.bf16 %v4956_v61, %v4955_v33  ;;  %v4992_v33 = vld [vmem:[#allocation12_spill] sm:$0xff] }
 0x26b   :  { %2880 = vmatpush1.bf16.msra.mxu1 %v2879_v52  ;;  %v4961_v52 = vld [vmem:[#allocation43_spill] sm:$0xff] }
 0x26c   :  { %2882 = vmatprep.subr.bf16.mxu1 %v2881_v47  ;;  %v4965_v47 = vld [vmem:[#allocation54_spill] sm:$0xff] }
 0x26f   :  { %2884 = vmatpush1.bf16.msra.mxu1 %v2883_v60  ;;  %v4970_v60 = vld [vmem:[#allocation65_spill] sm:$0xff] }
 0x270   :  { %2886 = vmatprep.subr.bf16.mxu1 %v2885_v40  ;;  %v4974_v40 = vld [vmem:[#allocation77_spill] sm:$0xff] }
 0x273   :  { %2888 = vmatpush1.bf16.msra.mxu1 %v2887_v16  ;;  %v4977_v16 = vld [vmem:[#allocation86_spill] sm:$0xff] }
 0x274   :  { %2890 = vmatprep.subr.bf16.mxu1 %v2889_v4  ;;  %v4980_v4 = vld [vmem:[#allocation89_spill] sm:$0xff] }
 0x277   :  { %2892 = vmatpush1.bf16.msra.mxu1 %v2891_v37  ;;  %v4983_v37 = vld [vmem:[#allocation103_spill] sm:$0xff] }
 0x278   :  { %2894 = vmatprep.subr.bf16.mxu1 %v2893_v44  ;;  %v4986_v44 = vld [vmem:[#allocation110_spill] sm:$0xff] }
 0x27b   :  { %2896 = vmatpush1.bf16.msra.mxu1 %v2895_v58 }
 0x27c   :  { %2898 = vmatprep.subr.bf16.mxu1 %v2897_v34 }
 0x27f   :  { %2900 = vmatpush1.bf16.msra.mxu1 %v2899_v20 }
 0x280   :  { %2902 = vmatprep.subr.bf16.mxu1 %v2901_v14 }
 0x283   :  { %2904 = vmatpush1.bf16.msra.mxu1 %v2903_v11 }
 0x284   :  { %2906 = vmatprep.subr.bf16.mxu1 %v2905_v10 }
 0x287   :  { %2908 = vmatpush1.bf16.msra.mxu1 %v2907_v17  ;;  %v4990_v17 = vld [vmem:[#allocation19_spill] sm:$0xff] }
 0x288   :  { %2910 = vmatprep.subr.bf16.mxu1 %v2909_v12  ;;  %v4991_v12 = vld [vmem:[#allocation16_spill] sm:$0xff] }
 0x28b   :  { %2912 = vmatpush1.bf16.msra.mxu1 %v2911_v31 }
 0x28c   :  { %2914 = vmatprep.subr.bf16.mxu1 %v4957_v2 }
 0x28e   :  { %1600 = vmatmul.mubr.f32.vlgmr.msra.gmra.mrb[0].mxu1 %v4890_v42 }
 0x28f   :  { %2916 = vmatpush1.bf16.msra.mxu1 %v4958_v3  ;;  %1735 = vmatprep.mubr.f32.mxu1 %v3702_v46  ;;  %v4969_v46 = vld [vmem:[#allocation64_spill] sm:$0xff]  ;;  %v4993_v3 = vld [vmem:[#allocation26_spill] sm:$0xff] }
 0x290   :  { %2918 = vmatprep.subr.bf16.mxu1 %v4959_v15 }
 0x293   :  { %2920 = vmatpush1.bf16.msra.mxu1 %v4960_v32  ;;  %v4994_v32 = vld [vmem:[#allocation11_spill] sm:$0xff] }
 0x294   :  { %2922 = vmatprep.subr.bf16.mxu1 %v4961_v52 }
 0x297   :  { %2924 = vmatpush1.bf16.msra.mxu1 %v4962_v55 }
 0x298   :  { %2926 = vmatprep.subr.bf16.mxu1 %v4963_v5  ;;  %v1889_v5 = vld [vmem:[#allocation2 + $0x18] sm:$0x3] }
 0x29b   :  { %2928 = vmatpush1.bf16.msra.mxu1 %v4964_v38  ;;  %v4995_v38 = vld [vmem:[#allocation13_spill] sm:$0xff] }
 0x29c   :  { %2930 = vmatprep.subr.bf16.mxu1 %v4965_v47 }
 0x29f   :  { %2932 = vmatpush1.bf16.msra.mxu1 %v4966_v27 }
 0x2a0   :  { %2934 = vmatprep.subr.bf16.mxu1 %v4967_v8 }
 0x2a3   :  { %2936 = vmatpush1.bf16.msra.mxu1 %v4968_v22  ;;  %v4996_v22 = vld [vmem:[#allocation18_spill] sm:$0xff] }
 0x2a4   :  { %2938 = vmatprep.subr.bf16.mxu1 %v4969_v46 }
 0x2a7   :  { %2940 = vmatpush1.bf16.msra.mxu1 %v4970_v60  ;;  %v1907_v60 = vld [vmem:[#allocation2 + $0x18] sm:$0x3] }
 0x2a8   :  { %2942 = vmatprep.subr.bf16.mxu1 %v4971_v23 }
 0x2ab   :  { %2944 = vmatpush1.bf16.msra.mxu1 %v4972_v19  ;;  %v4997_v19 = vld [vmem:[#allocation20_spill] sm:$0xff] }
 0x2ac   :  { %2946 = vmatprep.subr.bf16.mxu1 %v4973_v56  ;;  %v1910_v56 = vmul.f32 %v1907_v60, %v4997_v19 }
 0x2af   :  { %2948 = vmatpush1.bf16.msra.mxu1 %v4974_v40  ;;  %v4998_v40 = vld [vmem:[#allocation24_spill] sm:$0xff] }
 0x2b0   :  { %2950 = vmatprep.subr.bf16.mxu1 %v4975_v57 }
 0x2b3   :  { %2952 = vmatpush1.bf16.msra.mxu1 %v4976_v50 }
 0x2b4   :  { %2954 = vmatprep.subr.bf16.mxu1 %v4977_v16  ;;  %v4174_v16 = vld [vmem:[%s4419_s4] sm:$0xff] }
 0x2b7   :  { %2956 = vmatpush1.bf16.msra.mxu1 %v4978_v13  ;;  %v4999_v13 = vld [vmem:[#allocation25_spill] sm:$0xff] }
 0x2b8   :  { %2958 = vmatprep.subr.bf16.mxu1 %v4979_v9 }
 0x2bb   :  { %2960 = vmatpush1.bf16.msra.mxu1 %v4980_v4 }
 0x2bc   :  { %2962 = vmatprep.subr.bf16.mxu1 %v4981_v18  ;;  %v5000_v18 = vld [vmem:[#allocation10_spill] sm:$0xff] }
 0x2bf   :  { %2964 = vmatpush1.bf16.msra.mxu1 %v4982_v26  ;;  %v4181_v26 = vmul.f32 %v4003_v43, %v5000_v18 }
 0x2c0   :  { %2966 = vmatprep.subr.bf16.mxu1 %v4983_v37  ;;  %v5001_v37 = vld [vmem:[#allocation21_spill] sm:$0xff] }
 0x2c3   :  { %2968 = vmatpush1.bf16.msra.mxu1 %v4984_v49 }
 0x2c4   :  { %2970 = vmatprep.subr.bf16.mxu1 %v4985_v36  ;;  %v5002_v36 = vld [vmem:[#allocation9_spill] sm:$0xff] }
 0x2c7   :  { %2972 = vmatpush1.bf16.msra.mxu1 %v4986_v44  ;;  %v4189_v44 = vmul.f32 %v4003_v43, %v5002_v36 }
 0x2c8   :  { %2974 = vmatprep.subr.bf16.mxu1 %v4987_v54  ;;  %v5003_v54 = vld [vmem:[#allocation17_spill] sm:$0xff] }
 0x2cb   :  { %2976 = vmatpush1.bf16.msra.mxu1 %v4867_v48 }
 0x2ce   :  { %1737 = vmatmul.mubr.f32.vlgmr.msra.gmra.mrb[0].mxu1 %v4890_v42 }
 0x327   :  { %v992_v24 = vpop.f32.mrb[2].mxu0 }
 0x328   :  { %v994_v58 = vpop.f32.mrb[3].mxu0 }
 0x3a1   :  { %v1738_v34 = vpop.f32.mrb[0].mxu1 }
 0x3a2   :  { %v3025_v1 = vadd.f32 %v1738_v34, %v992_v24  ;;  %v1740_v20 = vpop.f32.mrb[1].mxu1  ;;  %v4197_v24 = vmul.f32 %v4003_v43, %v5003_v54 }
 0x3a3   :  { %v3026_v53 = vadd.f32 %v1740_v20, %v994_v58  ;;  %v5004_v58 = vld [vmem:[#allocation14_spill] sm:$0xff] }
 0x3a4   :  { %v1755_v45 = vsub.f32 %v3025_v1, %v2573_v21  ;;  %v4201_v28 = vmul.f32 %v4003_v43, %v5004_v58  ;;  %v5005_v21 = vld [vmem:[#allocation15_spill] sm:$0xff]  ;;  %v1788_v1 = vpop.permute.xlu1 %1787 }
 0x3a5   :  { %v1756_v6 = vsub.f32 %v3026_v53, %v1752_v30  ;;  %v4209_v34 = vmul.f32 %v4003_v43, %v5005_v21  ;;  %v1770_v30 = vpop.permute.xlu0 %1769 }
 0x3a6   :  { %1758 = vst [vmem:[#allocation2 + $0x8] sm:$0x3] %v1755_v45 }
 0x3a7   :  { %1759 = vst [vmem:[#allocation2 + $0x10] sm:$0x3] %v1756_v6 }
 0x3a8   :  { %v1830_v53 = vpop.permute.xlu1 %1829 }
 0x3a9   :  { %v1809_v20 = vpop.permute.xlu0 %1808 }
 0x3ac   :  { %v1859_v6 = vpop.permute.xlu1 %1858 }
 0x3ad   :  { %v1782_v48 = vld [vmem:[#allocation2 + $0x8] sm:$0x3]  ;;  %v1880_v45 = vpop.permute.xlu0 %1879 }
 0x3ae   :  { %v1800_v14 = vld [vmem:[#allocation2 + $0x8] sm:$0x3]  ;;  %1789 = vrot.lane.b32.xlu0 %v1782_v48, %s3081_s20  ;;  %v1783_v42 = vld [vmem:[#allocation2 + $0x10] sm:$0x3] }
 0x3af   :  { %1791 = vrot.lane.b32.xlu1 %v1783_v42, %s3081_s20  ;;  %v1803_v29 = vmul.f32 %v1800_v14, %v4988_v35  ;;  %v1888_v11 = vld [vmem:[#allocation2 + $0x10] sm:$0x3]  ;;  %v1821_v51 = vld [vmem:[#allocation2 + $0x8] sm:$0x3] }
 0x3b0   :  { %v1761_v59 = vld [vmem:[#allocation2 + $0x8] sm:$0x3]  ;;  %v1842_v63 = vld [vmem:[#allocation2 + $0x10] sm:$0x3]  ;;  %v1824_v0 = vmul.f32 %v1821_v51, %v4989_v7 }
 0x3b1   :  { %v1841_v10 = vld [vmem:[#allocation2 + $0x8] sm:$0x3]  ;;  %1844 = vst [vmem:[#allocation3 + $0x48] sm:$0x3] %v1842_v63  ;;  %v1764_v39 = vmul.f32 %v1761_v59, %v4990_v17  ;;  %v1762_v41 = vld [vmem:[#allocation2 + $0x10] sm:$0x3] }
 0x3b2   :  { %1810 = vrot.lane.b32.xlu0 %v1803_v29, %s3087_s11  ;;  %1843 = vst [vmem:[#allocation3 + $0x40] sm:$0x3] %v1841_v10  ;;  %v1845_v62 = vld [vmem:[#allocation2 + $0x8] sm:$0x3]  ;;  %v1765_v61 = vmul.f32 %v1762_v41, %v4992_v33  ;;  %v1846_v31 = vld [vmem:[#allocation2 + $0x10] sm:$0x3] }
 0x3b3   :  { %1895 = vrot.lane.b32.xlu1 %v1888_v11, %s3089_s13  ;;  %v1848_v25 = vmul.f32 %v1845_v62, %v4991_v12  ;;  %v1801_v2 = vld [vmem:[#allocation2 + $0x10] sm:$0x3]  ;;  %v1849_v15 = vmul.f32 %v1846_v31, %v4993_v3  ;;  %v1866_v27 = vld [vmem:[#allocation2 + $0x8] sm:$0x3] }
 0x3b4   :  { %v1804_v52 = vmul.f32 %v1801_v2, %v4994_v32  ;;  %v1822_v55 = vld [vmem:[#allocation2 + $0x10] sm:$0x3]  ;;  %v1887_v8 = vld [vmem:[#allocation2 + $0x8] sm:$0x3]  ;;  %v1869_v46 = vmul.f32 %v1866_v27, %v4996_v22 }
 0x3b5   :  { %v1825_v47 = vmul.f32 %v1822_v55, %v4995_v38  ;;  %v1867_v23 = vld [vmem:[#allocation2 + $0x10] sm:$0x3]  ;;  %v1905_v4 = vld [vmem:[#allocation2 + $0x8] sm:$0x3] }
 0x3b6   :  { %1831 = vrot.lane.b32.xlu0 %v1824_v0, %s3086_s10  ;;  %v1870_v57 = vmul.f32 %v1867_v23, %v4998_v40  ;;  %v1906_v50 = vld [vmem:[#allocation2 + $0x10] sm:$0x3]  ;;  %v1908_v49 = vmul.f32 %v1905_v4, %v5001_v37 }
 0x3b7   :  { %1771 = vrot.lane.b32.xlu1 %v1764_v39, %s3088_s12  ;;  %v1909_v9 = vmul.f32 %v1906_v50, %v4999_v13 }
 0x3ba   :  { %1854 = vrot.lane.b32.xlu0 %v1848_v25, %s3085_s0 }
 0x3bb   :  { %1773 = vrot.lane.b32.xlu1 %v1765_v61, %s3088_s12 }
 0x3be   :  { %1856 = vrot.lane.b32.xlu0 %v1849_v15, %s3085_s0 }
 0x3bf   :  { %1812 = vrot.lane.b32.xlu1 %v1804_v52, %s3087_s11 }
 0x3c2   :  { %1897 = vrot.lane.b32.xlu0 %v1889_v5, %s3089_s13 }
 0x3c3   :  { %1833 = vrot.lane.b32.xlu1 %v1825_v47, %s3086_s10 }
 0x3c6   :  { %1893 = vrot.lane.b32.xlu0 %v1887_v8, %s3089_s13 }
 0x3c7   :  { %1875 = vrot.lane.b32.xlu1 %v1869_v46, %s3083_s3 }
 0x3ca   :  { %1918 = vrot.lane.b32.xlu0 %v1910_v56, %s3084_s30 }
 0x3cb   :  { %1877 = vrot.lane.b32.xlu1 %v1870_v57, %s3083_s3 }
 0x3ce   :  { %1947 = vperm.xlu0 %3051, %v4174_v16  }
 0x3cf   :  { %1916 = vrot.lane.b32.xlu1 %v1909_v9, %s3084_s30 }
 0x3d2   :  { %2036 = vrot.lane.b32.xlu0 %v4181_v26, %s3088_s12 }
 0x3d3   :  { %1914 = vrot.lane.b32.xlu1 %v1908_v49, %s3084_s30 }
 0x3d6   :  { %2075 = vrot.lane.b32.xlu0 %v4189_v44, %s3087_s11 }
 0x3d7   :  { %2054 = vrot.lane.b32.xlu1 %v4003_v43, %s3081_s20 }
 0x3da   :  { %2146 = vrot.lane.b32.xlu0 %v4197_v24, %s3083_s3 }
 0x3db   :  { %2096 = vrot.lane.b32.xlu1 %v4201_v28, %s3086_s10 }
 0x3df   :  { %2125 = vrot.lane.b32.xlu1 %v4209_v34, %s3085_s0 }
 0x420   :  { %v1790_v48 = vpop.permute.xlu0 %1789 }
 0x421   :  { %v1793_v14 = vsel %vm108_vm2, %v1788_v1, %v1790_v48  ;;  %v1792_v42 = vpop.permute.xlu1 %1791 }
 0x422   :  { %1797 = vst [vmem:[#allocation3 + $0x10] sm:$0x3] %v1793_v14  ;;  %v1794_v29 = vsel %vm108_vm2, %v1790_v48, %v1792_v42 }
 0x423   :  { %1798 = vst [vmem:[#allocation3 + $0x18] sm:$0x3] %v1794_v29 }
 0x424   :  { %v1811_v11 = vpop.permute.xlu0 %1810 }
 0x425   :  { %v1814_v51 = vsel %vm148_vm4, %v1809_v20, %v1811_v11  ;;  %v1896_v59 = vpop.permute.xlu1 %1895 }
 0x426   :  { %1818 = vst [vmem:[#allocation3 + $0x20] sm:$0x3] %v1814_v51 }
 0x428   :  { %v1832_v63 = vpop.permute.xlu0 %1831 }
 0x429   :  { %v1835_v10 = vsel %vm179_vm6, %v1830_v53, %v1832_v63  ;;  %v1772_v0 = vpop.permute.xlu1 %1771  ;;  %v1929_v56 = vld [vmem:[#allocation3 + $0x10] sm:$0xff] }
 0x42a   :  { %1839 = vst [vmem:[#allocation3 + $0x30] sm:$0x3] %v1835_v10  ;;  %v1775_v39 = vsel %vm89_vm5, %v1770_v30, %v1772_v0  ;;  %v1930_v60 = vld [vmem:[#allocation3 + $0x18] sm:$0xff] }
 0x42b   :  { %1779 = vst [vmem:[#allocation3] sm:$0x3] %v1775_v39 }
 0x42c   :  { %v1855_v62 = vpop.permute.xlu0 %1854 }
 0x42d   :  { %v1774_v41 = vpop.permute.xlu1 %1773  ;;  %v1931_v20 = vld [vmem:[#allocation3 + $0x20] sm:$0xff] }
 0x42e   :  { %v1776_v25 = vsel %vm89_vm5, %v1772_v0, %v1774_v41 }
 0x42f   :  { %1780 = vst [vmem:[#allocation3 + $0x8] sm:$0x3] %v1776_v25 }
 0x430   :  { %v1857_v61 = vpop.permute.xlu0 %1856 }
 0x431   :  { %v1860_v31 = vsel %vm162_vm3, %v1855_v62, %v1857_v61  ;;  %v1861_v2 = vsel %vm162_vm3, %v1857_v61, %v1859_v6  ;;  %v1813_v15 = vpop.permute.xlu1 %1812  ;;  %v1933_v49 = vld [vmem:[#allocation3 + $0x30] sm:$0xff]  ;;  %v1936_v6 = vld [vmem:[#allocation3 + $0x48] sm:$0xff] }
 0x432   :  { %1864 = vst [vmem:[#allocation3 + $0x50] sm:$0x3] %v1860_v31  ;;  %1865 = vst [vmem:[#allocation3 + $0x58] sm:$0x3] %v1861_v2  ;;  %v1815_v52 = vsel %vm148_vm4, %v1811_v11, %v1813_v15  ;;  %v1927_v27 = vld [vmem:[#allocation3] sm:$0xff]  ;;  %v2983_v53 = vpack.c.bf16 %v1933_v49, %v1931_v20  ;;  %v3092_v15 = vmov 2  }
 0x433   :  { %1819 = vst [vmem:[#allocation3 + $0x28] sm:$0x3] %v1815_v52  ;;  %v2979_v50 = vpack.c.bf16 %v1929_v56, %v1927_v27  ;;  %v1926_v31 = vld [vmem:[%s4421_s6] sm:$0xff]  ;;  %3052 = vset.pattern.permute.xlu0 %v3092_v15 }
 0x434   :  { %v1898_v55 = vpop.permute.xlu0 %1897 }
 0x435   :  { %v1900_v5 = vsel %vm260_vm7, %v1896_v59, %v1898_v55  ;;  %v1834_v47 = vpop.permute.xlu1 %1833 }
 0x436   :  { %1904 = vst [vmem:[#allocation3 + $0x78] sm:$0x3] %v1900_v5  ;;  %v1836_v8 = vsel %vm179_vm6, %v1832_v63, %v1834_v47  ;;  %v1928_v46 = vld [vmem:[#allocation3 + $0x8] sm:$0xff] }
 0x437   :  { %1840 = vst [vmem:[#allocation3 + $0x38] sm:$0x3] %v1836_v8  ;;  %v2977_v23 = vpack.c.bf16 %v1930_v60, %v1928_v46 }
 0x438   :  { %v1894_v57 = vpop.permute.xlu0 %1893 }
 0x439   :  { %v1899_v9 = vsel %vm260_vm7, %v1894_v57, %v1896_v59  ;;  %v1876_v4 = vpop.permute.xlu1 %1875  ;;  %2978 = vmatprep.subr.bf16.mxu0 %v2977_v23  ;;  %v1938_v30 = vld [vmem:[#allocation3 + $0x58] sm:$0xff]  ;;  %v1937_v29 = vld [vmem:[#allocation3 + $0x50] sm:$0xff] }
 0x43a   :  { %1903 = vst [vmem:[#allocation3 + $0x70] sm:$0x3] %v1899_v9  ;;  %2980 = vmatpush1.bf16.msra.mxu0 %v2979_v50  ;;  %v1932_v58 = vld [vmem:[#allocation3 + $0x28] sm:$0xff]  ;;  %v2985_v42 = vpack.c.bf16 %v1938_v30, %v1936_v6 }
 0x43c   :  { %v1919_v48 = vpop.permute.xlu0 %1918 }
 0x43d   :  { %v1878_v18 = vpop.permute.xlu1 %1877  ;;  %v1942_v63 = vld [vmem:[#allocation3 + $0x78] sm:$0xff] }
 0x43e   :  { %v1881_v36 = vsel %vm131_vm1, %v1876_v4, %v1878_v18  ;;  %v1882_v54 = vsel %vm131_vm1, %v1878_v18, %v1880_v45  ;;  %v1934_v21 = vld [vmem:[#allocation3 + $0x38] sm:$0xff]  ;;  %v1935_v45 = vld [vmem:[#allocation3 + $0x40] sm:$0xff]  ;;  %v4277_v18 = vmul.f32 %v4003_v43, %v4997_v19 }
 0x43f   :  { %1885 = vst [vmem:[#allocation3 + $0x60] sm:$0x3] %v1881_v36  ;;  %1886 = vst [vmem:[#allocation3 + $0x68] sm:$0x3] %v1882_v54  ;;  %v2981_v1 = vpack.c.bf16 %v1934_v21, %v1932_v58  ;;  %v2987_v51 = vpack.c.bf16 %v1937_v29, %v1935_v45 }
 0x441   :  { %v1917_v14 = vpop.permute.xlu1 %1916  ;;  %2982 = vmatprep.subr.bf16.mxu0 %v2981_v1  ;;  %v1941_v62 = vld [vmem:[#allocation3 + $0x70] sm:$0xff] }
 0x442   :  { %v1921_v11 = vsel %vm72_vm0, %v1917_v14, %v1919_v48  ;;  %2984 = vmatpush1.bf16.msra.mxu0 %v2983_v53 }
 0x443   :  { %1925 = vst [vmem:[#allocation3 + $0x88] sm:$0x3] %v1921_v11  ;;  %2986 = vmatprep.subr.bf16.mxu0 %v2985_v42 }
 0x445   :  { %v1915_v59 = vpop.permute.xlu1 %1914 }
 0x446   :  { %v1920_v10 = vsel %vm72_vm0, %v1915_v59, %v1917_v14  ;;  %2988 = vmatpush1.bf16.msra.mxu0 %v2987_v51  ;;  %v1940_v0 = vld [vmem:[#allocation3 + $0x68] sm:$0xff]  ;;  %v1939_v39 = vld [vmem:[#allocation3 + $0x60] sm:$0xff] }
 0x447   :  { %1924 = vst [vmem:[#allocation3 + $0x80] sm:$0x3] %v1920_v10  ;;  %v2989_v41 = vpack.c.bf16 %v1942_v63, %v1940_v0  ;;  %v2991_v25 = vpack.c.bf16 %v1941_v62, %v1939_v39 }
 0x449   :  { %2990 = vmatprep.subr.bf16.mxu0 %v2989_v41  ;;  %v2055_v58 = vpop.permute.xlu1 %2054 }
 0x44a   :  { %2992 = vmatpush1.bf16.msra.mxu0 %v2991_v25  ;;  %v1944_v61 = vld [vmem:[#allocation3 + $0x88] sm:$0xff] }
 0x44b   :  { %1969 = vmatprep.subr.mxu0 %v1944_v61 }
 0x44d   :  { %v1948_v52 = vpop.permute.xlu0 %1947  ;;  %v2097_v21 = vpop.permute.xlu1 %2096 }
 0x44e   :  { %v1943_v2 = vld [vmem:[#allocation3 + $0x80] sm:$0xff] }
 0x44f   :  { %1970 = vmatpush1.msra.mxu0 %v1943_v2 }
 0x450   :  { %2574 = vmatmul.mubr.msk.f32.vlgmr.msra.gmra.mrb[4].mxu0 %vm320_vm8, %v1926_v31 }
 0x451   :  { %2284 = vmatprep.mubr.f32.mxu0 %v4003_v43  ;;  %v2037_v19 = vpop.permute.xlu0 %2036  ;;  %v2126_v1 = vpop.permute.xlu1 %2125 }
 0x523   :  { %v2019_v55 = vpop.f32.mrb[4].mxu0 }
 0x524   :  { %v4234_v5 = vadd.f32 %v2019_v55, %v1948_v52  ;;  %v2021_v47 = vpop.f32.mrb[5].mxu0 }
 0x525   :  { %v4236_v27 = vadd.f32 %v2021_v47, %v1948_v52 }
 0x526   :  { %2056 = vrot.lane.b32.xlu0 %v4234_v5, %s3081_s20  ;;  %v2070_v8 = vmul.f32 %v4234_v5, %v4988_v35  ;;  %v2091_v46 = vmul.f32 %v4234_v5, %v4989_v7  ;;  %v2031_v60 = vmul.f32 %v4234_v5, %v4990_v17  ;;  %v2115_v23 = vmul.f32 %v4234_v5, %v4991_v12 }
 0x527   :  { %2058 = vrot.lane.b32.xlu1 %v4236_v27, %s3081_s20  ;;  %v2032_v56 = vmul.f32 %v4236_v27, %v4992_v33  ;;  %v2116_v57 = vmul.f32 %v4236_v27, %v4993_v3  ;;  %v2071_v50 = vmul.f32 %v4236_v27, %v4994_v32  ;;  %v2092_v9 = vmul.f32 %v4236_v27, %v4995_v38 }
 0x528   :  { %v2136_v4 = vmul.f32 %v4234_v5, %v4996_v22  ;;  %v2137_v49 = vmul.f32 %v4236_v27, %v4998_v40  ;;  %v2176_v36 = vmul.f32 %v4236_v27, %v4999_v13  ;;  %v2175_v54 = vmul.f32 %v4234_v5, %v5001_v37 }
 0x52a   :  { %2077 = vrot.lane.b32.xlu0 %v2070_v8, %s3087_s11 }
 0x52b   :  { %2162 = vrot.lane.b32.xlu1 %v4236_v27, %s3089_s13 }
 0x52e   :  { %2098 = vrot.lane.b32.xlu0 %v2091_v46, %s3086_s10 }
 0x52f   :  { %2038 = vrot.lane.b32.xlu1 %v2031_v60, %s3088_s12 }
 0x532   :  { %2121 = vrot.lane.b32.xlu0 %v2115_v23, %s3085_s0 }
 0x533   :  { %2040 = vrot.lane.b32.xlu1 %v2032_v56, %s3088_s12 }
 0x536   :  { %2123 = vrot.lane.b32.xlu0 %v2116_v57, %s3085_s0 }
 0x537   :  { %2079 = vrot.lane.b32.xlu1 %v2071_v50, %s3087_s11 }
 0x53a   :  { %2164 = vrot.lane.b32.xlu0 %v4003_v43, %s3089_s13 }
 0x53b   :  { %2100 = vrot.lane.b32.xlu1 %v2092_v9, %s3086_s10 }
 0x53e   :  { %2160 = vrot.lane.b32.xlu0 %v4234_v5, %s3089_s13 }
 0x53f   :  { %2142 = vrot.lane.b32.xlu1 %v2136_v4, %s3083_s3 }
 0x542   :  { %2185 = vrot.lane.b32.xlu0 %v4277_v18, %s3084_s30 }
 0x543   :  { %2144 = vrot.lane.b32.xlu1 %v2137_v49, %s3083_s3 }
 0x546   :  { %2214 = vperm.xlu0 %3052, %v4174_v16  }
 0x547   :  { %2183 = vrot.lane.b32.xlu1 %v2176_v36, %s3084_s30 }
 0x54a   :  { %2305 = vrot.lane.b32.xlu0 %v4181_v26, %s3088_s12  ;;  %v2076_v26 = vpop.permute.xlu0 %2075 }
 0x54b   :  { %2181 = vrot.lane.b32.xlu1 %v2175_v54, %s3084_s30 }
 0x54e   :  { %2344 = vrot.lane.b32.xlu0 %v4189_v44, %s3087_s11  ;;  %v2147_v30 = vpop.permute.xlu0 %2146 }
 0x54f   :  { %2323 = vrot.lane.b32.xlu1 %v4003_v43, %s3081_s20 }
 0x552   :  { %2415 = vrot.lane.b32.xlu0 %v4197_v24, %s3083_s3 }
 0x553   :  { %2365 = vrot.lane.b32.xlu1 %v4201_v28, %s3086_s10 }
 0x557   :  { %2394 = vrot.lane.b32.xlu1 %v4209_v34, %s3085_s0 }
 0x598   :  { %v2057_v20 = vpop.permute.xlu0 %2056 }
 0x599   :  { %v2059_v44 = vpop.permute.xlu1 %2058  ;;  %v2060_v11 = vsel %vm108_vm2, %v2055_v58, %v2057_v20 }
 0x59a   :  { %v2061_v28 = vsel %vm108_vm2, %v2057_v20, %v2059_v44 }
 0x59c   :  { %v2078_v53 = vpop.permute.xlu0 %2077 }
 0x59d   :  { %v2163_v6 = vpop.permute.xlu1 %2162  ;;  %v2081_v61 = vsel %vm148_vm4, %v2076_v26, %v2078_v53 }
 0x5a0   :  { %v2099_v48 = vpop.permute.xlu0 %2098 }
 0x5a1   :  { %v2039_v14 = vpop.permute.xlu1 %2038  ;;  %v2102_v10 = vsel %vm179_vm6, %v2097_v21, %v2099_v48 }
 0x5a2   :  { %v2042_v24 = vsel %vm89_vm5, %v2037_v19, %v2039_v14  ;;  %v2999_v2 = vpack.c.bf16 %v2102_v10, %v2081_v61  ;;  %v2193_v19 = vld [vmem:[%s4422_s7] sm:$0xff] }
 0x5a3   :  { %v2995_v59 = vpack.c.bf16 %v2060_v11, %v2042_v24 }
 0x5a4   :  { %v2122_v42 = vpop.permute.xlu0 %2121 }
 0x5a5   :  { %v2041_v29 = vpop.permute.xlu1 %2040 }
 0x5a6   :  { %v2043_v34 = vsel %vm89_vm5, %v2039_v14, %v2041_v29 }
 0x5a7   :  { %v2993_v45 = vpack.c.bf16 %v2061_v28, %v2043_v34 }
 0x5a8   :  { %v2124_v51 = vpop.permute.xlu0 %2123 }
 0x5a9   :  { %v2080_v63 = vpop.permute.xlu1 %2079  ;;  %2994 = vmatprep.subr.bf16.mxu0 %v2993_v45  ;;  %v2128_v62 = vsel %vm162_vm3, %v2124_v51, %v2126_v1  ;;  %v2127_v15 = vsel %vm162_vm3, %v2122_v42, %v2124_v51 }
 0x5aa   :  { %2996 = vmatpush1.bf16.msra.mxu0 %v2995_v59  ;;  %v2082_v41 = vsel %vm148_vm4, %v2078_v53, %v2080_v63  ;;  %v3001_v55 = vpack.c.bf16 %v2128_v62, %v4236_v27  ;;  %v3003_v8 = vpack.c.bf16 %v2127_v15, %v4234_v5 }
 0x5ac   :  { %v2165_v0 = vpop.permute.xlu0 %2164 }
 0x5ad   :  { %v2101_v39 = vpop.permute.xlu1 %2100  ;;  %v2167_v60 = vsel %vm260_vm7, %v2163_v6, %v2165_v0 }
 0x5ae   :  { %v2103_v25 = vsel %vm179_vm6, %v2099_v48, %v2101_v39 }
 0x5af   :  { %v2997_v31 = vpack.c.bf16 %v2103_v25, %v2082_v41 }
 0x5b0   :  { %v2161_v47 = vpop.permute.xlu0 %2160 }
 0x5b1   :  { %v2143_v52 = vpop.permute.xlu1 %2142  ;;  %2998 = vmatprep.subr.bf16.mxu0 %v2997_v31  ;;  %v2166_v23 = vsel %vm260_vm7, %v2161_v47, %v2163_v6 }
 0x5b2   :  { %3000 = vmatpush1.bf16.msra.mxu0 %v2999_v2 }
 0x5b3   :  { %3002 = vmatprep.subr.bf16.mxu0 %v3001_v55 }
 0x5b4   :  { %v2186_v4 = vpop.permute.xlu0 %2185 }
 0x5b5   :  { %v2145_v46 = vpop.permute.xlu1 %2144 }
 0x5b6   :  { %v2148_v56 = vsel %vm131_vm1, %v2143_v52, %v2145_v46  ;;  %v2149_v57 = vsel %vm131_vm1, %v2145_v46, %v2147_v30  ;;  %3004 = vmatpush1.bf16.msra.mxu0 %v3003_v8 }
 0x5b7   :  { %v3005_v50 = vpack.c.bf16 %v2167_v60, %v2149_v57  ;;  %v3007_v9 = vpack.c.bf16 %v2166_v23, %v2148_v56 }
 0x5b9   :  { %v2184_v49 = vpop.permute.xlu1 %2183  ;;  %3006 = vmatprep.subr.bf16.mxu0 %v3005_v50 }
 0x5ba   :  { %v2188_v36 = vsel %vm72_vm0, %v2184_v49, %v2186_v4  ;;  %3008 = vmatpush1.bf16.msra.mxu0 %v3007_v9 }
 0x5bb   :  { %2236 = vmatprep.subr.mxu0 %v2188_v36 }
 0x5bd   :  { %v2182_v54 = vpop.permute.xlu1 %2181 }
 0x5be   :  { %v2187_v58 = vsel %vm72_vm0, %v2182_v54, %v2184_v49 }
 0x5bf   :  { %2237 = vmatpush1.msra.mxu0 %v2187_v58 }
 0x5c0   :  { %2575 = vmatmul.mubr.msk.f32.vlgmr.msra.gmra.mrb[6].mxu0 %vm320_vm8, %v2193_v19 }
 0x5c1   :  { %2553 = vmatprep.mubr.f32.mxu0 %v4003_v43 }
 0x5c5   :  { %v2215_v26 = vpop.permute.xlu0 %2214 }
 0x693   :  { %v2286_v21 = vpop.f32.mrb[6].mxu0 }
 0x694   :  { %v2287_v30 = vadd.f32 %v2286_v21, %v2215_v26  ;;  %v2288_v1 = vpop.f32.mrb[7].mxu0 }
 0x695   :  { %v2289_v20 = vadd.f32 %v2288_v1, %v2215_v26 }
 0x696   :  { %v4326_v44 = vmax.f32 %v2287_v30, 0.0 }
 0x697   :  { %v4328_v53 = vmax.f32 %v2289_v20, 0.0 }
 0x698   :  { %2294 = vst [vmem:[#allocation2 + $0x8] sm:$0xff] %v4326_v44  ;;  %2325 = vrot.lane.b32.xlu0 %v4326_v44, %s3081_s20  ;;  %2379 = vst [vmem:[#allocation3 + $0x40] sm:$0xff] %v4326_v44  ;;  %v2339_v6 = vmul.f32 %v4326_v44, %v4988_v35  ;;  %v2360_v48 = vmul.f32 %v4326_v44, %v4989_v7  ;;  %v2300_v14 = vmul.f32 %v4326_v44, %v4990_v17 }
 0x699   :  { %2295 = vst [vmem:[#allocation2 + $0x10] sm:$0xff] %v4328_v53  ;;  %2327 = vrot.lane.b32.xlu1 %v4328_v53, %s3081_s20  ;;  %2380 = vst [vmem:[#allocation3 + $0x48] sm:$0xff] %v4328_v53  ;;  %v2384_v42 = vmul.f32 %v4326_v44, %v4991_v12  ;;  %v2301_v35 = vmul.f32 %v4328_v53, %v4992_v33  ;;  %v2385_v7 = vmul.f32 %v4328_v53, %v4993_v3 }
 0x69a   :  { %v2340_v17 = vmul.f32 %v4328_v53, %v4994_v32  ;;  %v2361_v12 = vmul.f32 %v4328_v53, %v4995_v38  ;;  %v2405_v33 = vmul.f32 %v4326_v44, %v4996_v22  ;;  %v2406_v3 = vmul.f32 %v4328_v53, %v4998_v40  ;;  %v2306_v22 = vpop.permute.xlu0 %2305  ;;  %v2324_v40 = vpop.permute.xlu1 %2323 }
 0x69b   :  { %v3093_v32 = vmov 3   ;;  %v2444_v38 = vmul.f32 %v4326_v44, %v5001_v37 }
 0x69c   :  { %2346 = vrot.lane.b32.xlu0 %v2339_v6, %s3087_s11 }
 0x69d   :  { %2431 = vrot.lane.b32.xlu1 %v4328_v53, %s3089_s13  ;;  %3053 = vset.pattern.permute.xlu0 %v3093_v32 }
 0x69e   :  { %v2345_v24 = vpop.permute.xlu0 %2344  ;;  %v2366_v29 = vpop.permute.xlu1 %2365 }
 0x6a0   :  { %2367 = vrot.lane.b32.xlu0 %v2360_v48, %s3086_s10 }
 0x6a1   :  { %2307 = vrot.lane.b32.xlu1 %v2300_v14, %s3088_s12 }
 0x6a2   :  { %v2416_v28 = vpop.permute.xlu0 %2415 }
 0x6a4   :  { %2390 = vrot.lane.b32.xlu0 %v2384_v42, %s3085_s0 }
 0x6a5   :  { %2309 = vrot.lane.b32.xlu1 %v2301_v35, %s3088_s12 }
 0x6a8   :  { %2392 = vrot.lane.b32.xlu0 %v2385_v7, %s3085_s0 }
 0x6a9   :  { %2348 = vrot.lane.b32.xlu1 %v2340_v17, %s3087_s11 }
 0x6ac   :  { %2433 = vrot.lane.b32.xlu0 %v4003_v43, %s3089_s13  ;;  %v2445_v43 = vmul.f32 %v4328_v53, %v4999_v13 }
 0x6ad   :  { %2369 = vrot.lane.b32.xlu1 %v2361_v12, %s3086_s10  ;;  %v5006_v12 = vld [vmem:[#allocation8_spill] sm:$0xff] }
 0x6b0   :  { %2429 = vrot.lane.b32.xlu0 %v4326_v44, %s3089_s13 }
 0x6b1   :  { %2411 = vrot.lane.b32.xlu1 %v2405_v33, %s3083_s3 }
 0x6b4   :  { %2454 = vrot.lane.b32.xlu0 %v4277_v18, %s3084_s30  ;;  %v2395_v18 = vpop.permute.xlu1 %2394 }
 0x6b5   :  { %2413 = vrot.lane.b32.xlu1 %v2406_v3, %s3083_s3  ;;  %v5007_v3 = vld [vmem:[#allocation7_spill] sm:$0xff] }
 0x6b8   :  { %2483 = vperm.xlu0 %3053, %v4174_v16  }
 0x6b9   :  { %2452 = vrot.lane.b32.xlu1 %v2445_v43, %s3084_s30 }
 0x6bd   :  { %2450 = vrot.lane.b32.xlu1 %v2444_v38, %s3084_s30 }
 0x70a   :  { %v2326_v34 = vpop.permute.xlu0 %2325 }
 0x70b   :  { %v2329_v11 = vsel %vm108_vm2, %v2324_v40, %v2326_v34  ;;  %v2328_v45 = vpop.permute.xlu1 %2327 }
 0x70c   :  { %2333 = vst [vmem:[#allocation3 + $0x10] sm:$0xff] %v2329_v11  ;;  %v2330_v16 = vsel %vm108_vm2, %v2326_v34, %v2328_v45 }
 0x70d   :  { %2334 = vst [vmem:[#allocation3 + $0x18] sm:$0xff] %v2330_v16 }
 0x70e   :  { %v2347_v13 = vpop.permute.xlu0 %2346 }
 0x70f   :  { %v2350_v51 = vsel %vm148_vm4, %v2345_v24, %v2347_v13  ;;  %v2432_v37 = vpop.permute.xlu1 %2431 }
 0x710   :  { %2354 = vst [vmem:[#allocation3 + $0x20] sm:$0xff] %v2350_v51 }
 0x712   :  { %v2368_v59 = vpop.permute.xlu0 %2367 }
 0x713   :  { %v2371_v63 = vsel %vm179_vm6, %v2366_v29, %v2368_v59  ;;  %v2308_v10 = vpop.permute.xlu1 %2307 }
 0x714   :  { %2375 = vst [vmem:[#allocation3 + $0x30] sm:$0xff] %v2371_v63  ;;  %v2311_v0 = vsel %vm89_vm5, %v2306_v22, %v2308_v10  ;;  %v3015_v57 = vpack.c.bf16 %v2371_v63, %v2350_v51 }
 0x715   :  { %2315 = vst [vmem:[#allocation3] sm:$0xff] %v2311_v0  ;;  %v3011_v31 = vpack.c.bf16 %v2329_v11, %v2311_v0 }
 0x716   :  { %v2391_v39 = vpop.permute.xlu0 %2390 }
 0x717   :  { %v2310_v62 = vpop.permute.xlu1 %2309 }
 0x718   :  { %v2312_v41 = vsel %vm89_vm5, %v2308_v10, %v2310_v62 }
 0x719   :  { %2316 = vst [vmem:[#allocation3 + $0x8] sm:$0xff] %v2312_v41  ;;  %v3009_v25 = vpack.c.bf16 %v2330_v16, %v2312_v41 }
 0x71a   :  { %v2393_v61 = vpop.permute.xlu0 %2392 }
 0x71b   :  { %v2396_v2 = vsel %vm162_vm3, %v2391_v39, %v2393_v61  ;;  %v2397_v15 = vsel %vm162_vm3, %v2393_v61, %v2395_v18  ;;  %v2349_v52 = vpop.permute.xlu1 %2348  ;;  %3010 = vmatprep.subr.bf16.mxu0 %v3009_v25 }
 0x71c   :  { %2400 = vst [vmem:[#allocation3 + $0x50] sm:$0xff] %v2396_v2  ;;  %2401 = vst [vmem:[#allocation3 + $0x58] sm:$0xff] %v2397_v15  ;;  %v2351_v55 = vsel %vm148_vm4, %v2347_v13, %v2349_v52  ;;  %3012 = vmatpush1.bf16.msra.mxu0 %v3011_v31  ;;  %v3017_v4 = vpack.c.bf16 %v2397_v15, %v4328_v53  ;;  %v3019_v49 = vpack.c.bf16 %v2396_v2, %v4326_v44  ;;  %v2462_v44 = vld [vmem:[%s4423_s8] sm:$0xff] }
 0x71d   :  { %2355 = vst [vmem:[#allocation3 + $0x28] sm:$0xff] %v2351_v55 }
 0x71e   :  { %v2434_v47 = vpop.permute.xlu0 %2433 }
 0x71f   :  { %v2436_v8 = vsel %vm260_vm7, %v2432_v37, %v2434_v47  ;;  %v2370_v46 = vpop.permute.xlu1 %2369 }
 0x720   :  { %2440 = vst [vmem:[#allocation3 + $0x78] sm:$0xff] %v2436_v8  ;;  %v2372_v60 = vsel %vm179_vm6, %v2368_v59, %v2370_v46 }
 0x721   :  { %2376 = vst [vmem:[#allocation3 + $0x38] sm:$0xff] %v2372_v60  ;;  %v3013_v23 = vpack.c.bf16 %v2372_v60, %v2351_v55 }
 0x722   :  { %v2430_v56 = vpop.permute.xlu0 %2429 }
 0x723   :  { %v2435_v50 = vsel %vm260_vm7, %v2430_v56, %v2432_v37  ;;  %v2412_v9 = vpop.permute.xlu1 %2411  ;;  %3014 = vmatprep.subr.bf16.mxu0 %v3013_v23 }
 0x724   :  { %2439 = vst [vmem:[#allocation3 + $0x70] sm:$0xff] %v2435_v50  ;;  %3016 = vmatpush1.bf16.msra.mxu0 %v3015_v57 }
 0x725   :  { %3018 = vmatprep.subr.bf16.mxu0 %v3017_v4 }
 0x726   :  { %v2455_v21 = vpop.permute.xlu0 %2454 }
 0x727   :  { %v2414_v36 = vpop.permute.xlu1 %2413 }
 0x728   :  { %v2417_v54 = vsel %vm131_vm1, %v2412_v9, %v2414_v36  ;;  %v2418_v19 = vsel %vm131_vm1, %v2414_v36, %v2416_v28  ;;  %3020 = vmatpush1.bf16.msra.mxu0 %v3019_v49 }
 0x729   :  { %2421 = vst [vmem:[#allocation3 + $0x60] sm:$0xff] %v2417_v54  ;;  %2422 = vst [vmem:[#allocation3 + $0x68] sm:$0xff] %v2418_v19  ;;  %v3021_v58 = vpack.c.bf16 %v2436_v8, %v2418_v19  ;;  %v3023_v26 = vpack.c.bf16 %v2435_v50, %v2417_v54 }
 0x72b   :  { %v2453_v30 = vpop.permute.xlu1 %2452  ;;  %3022 = vmatprep.subr.bf16.mxu0 %v3021_v58 }
 0x72c   :  { %v2457_v1 = vsel %vm72_vm0, %v2453_v30, %v2455_v21  ;;  %3024 = vmatpush1.bf16.msra.mxu0 %v3023_v26 }
 0x72d   :  { %2461 = vst [vmem:[#allocation3 + $0x88] sm:$0xff] %v2457_v1  ;;  %2505 = vmatprep.subr.mxu0 %v2457_v1 }
 0x72f   :  { %v2451_v20 = vpop.permute.xlu1 %2450 }
 0x730   :  { %v2456_v53 = vsel %vm72_vm0, %v2451_v20, %v2453_v30 }
 0x731   :  { %2460 = vst [vmem:[#allocation3 + $0x80] sm:$0xff] %v2456_v53  ;;  %2506 = vmatpush1.msra.mxu0 %v2456_v53 }
 0x732   :  { %2576 = vmatmul.mubr.msk.f32.vlgmr.msra.gmra.mrb[8].mxu0 %vm320_vm8, %v2462_v44 }
 0x737   :  { %v2484_v6 = vpop.permute.xlu0 %2483 }
 0x805   :  { %v2555_v48 = vpop.f32.mrb[8].mxu0 }
 0x806   :  { %v2556_v14 = vadd.f32 %v2555_v48, %v2484_v6  ;;  %v2557_v42 = vpop.f32.mrb[9].mxu0 }
 0x807   :  { %v2558_v35 = vadd.f32 %v2557_v42, %v2484_v6 }
 0x808   :  { %v2560_v7 = vadd.f32 %v2556_v14, %v4234_v5 }
 0x809   :  { %v2561_v17 = vadd.f32 %v2558_v35, %v4236_v27 }
 0x80a   :  { %v2562_v33 = vadd.f32 %v2560_v7, %v5006_v12 }
 0x80b   :  { %v2563_v32 = vadd.f32 %v2561_v17, %v5007_v3 }
 0x80c   :  { %2564 = vst [vmem:[%s4424_s9] sm:$0xff] %v2562_v33 }
 0x80d   :  { %2565 = vst [vmem:[%s4424_s9 + $0x8] sm:$0xff] %v2563_v32 }
 0x80e   :  { %2570 = vsyncpa [#allocation5], 1 }

</bundles_post_ra>
